<compile_context>
chip_gen: v7x
topology: tpu7x:2x2x1
jax: 0.10.0
libtpu: 0.0.40
codegen_flags: <defaults>
</compile_context>

<pallas_src>
import functools
import math

import jax
import jax.numpy as jnp
from jax.experimental import pallas as pl
from jax.experimental.pallas import tpu as pltpu


# ----------------------------------------------------------------------------
# Pallas kernels
# ----------------------------------------------------------------------------
def _matmul_bias_act_kernel(a_ref, b_ref, bias_ref, o_ref, *, apply_relu):
    """Single-K-block fused matmul: out = act(A @ B + bias). Grid = (M/tm,)."""
    out = jnp.dot(a_ref[...], b_ref[...], preferred_element_type=jnp.float32)
    out = out + bias_ref[...]
    if apply_relu:
        out = jnp.maximum(out, 0.0)
    o_ref[...] = out.astype(o_ref.dtype)


def _maxpool4_kernel(a_ref, b_ref, c_ref, d_ref, o_ref):
    """Elementwise max of the four 2x2-window positions. Grid = (B,)."""
    o_ref[...] = jnp.maximum(jnp.maximum(a_ref[...], b_ref[...]),
                             jnp.maximum(c_ref[...], d_ref[...]))


def _fused_fc_kernel(x_ref, w1_ref, b1_ref, w2_ref, b2_ref, w3_ref, b3_ref,
                     o_ref):
    """fc1 -> relu -> fc2 -> relu -> fc3, all weights resident in VMEM."""
    h = jnp.dot(x_ref[...], w1_ref[...],
                preferred_element_type=jnp.float32) + b1_ref[...]
    h = jnp.maximum(h, 0.0)
    h = jnp.dot(h, w2_ref[...],
                preferred_element_type=jnp.float32) + b2_ref[...]
    h = jnp.maximum(h, 0.0)
    out = jnp.dot(h, w3_ref[...],
                  preferred_element_type=jnp.float32) + b3_ref[...]
    o_ref[...] = out.astype(o_ref.dtype)


# ----------------------------------------------------------------------------
# Wrappers
# ----------------------------------------------------------------------------
def _round_up(x, m):
    return ((x + m - 1) // m) * m


def matmul_bias_act(a, b, bias, *, relu, out_dtype=jnp.float32, tm=512):
    """a: (M, K), b: (K, N), bias: (N,) -> (M, N).

    K and N are kept as single full-dim blocks (no (8,128) constraint, no
    padding copies); the grid runs over M only with boundary-block masking.
    """
    M, K = a.shape
    K2, N = b.shape
    assert K == K2
    if M <= tm:
        tm = M if M % 8 == 0 else _round_up(M, 8)
    grid_m = pl.cdiv(M, tm)

    kernel = functools.partial(_matmul_bias_act_kernel, apply_relu=relu)
    return pl.pallas_call(
        kernel,
        out_shape=jax.ShapeDtypeStruct((M, N), out_dtype),
        grid=(grid_m,),
        in_specs=[
            pl.BlockSpec((tm, K), lambda i: (i, 0)),
            pl.BlockSpec((K, N), lambda i: (0, 0)),   # weight stays resident
            pl.BlockSpec((1, N), lambda i: (0, 0)),
        ],
        out_specs=pl.BlockSpec((tm, N), lambda i: (i, 0)),
        compiler_params=pltpu.CompilerParams(
            dimension_semantics=("parallel",)),
    )(a, b, bias.astype(jnp.float32).reshape(1, N))


def maxpool2x2(x):
    """x: (B, H, W, C) NHWC, H and W even -> (B, H/2, W/2, C)."""
    B, H, W, C = x.shape
    oh, ow = H // 2, W // 2
    # Four window positions as strided slices (lane dim stays contiguous).
    # TODO(synk): read the 4 positions in-kernel via strided pl.ds to avoid
    # materializing these views.
    parts = [x[:, di::2, dj::2, :].reshape(B, oh * ow, C)
             for di in (0, 1) for dj in (0, 1)]
    spec = pl.BlockSpec((1, oh * ow, C), lambda b: (b, 0, 0))
    out = pl.pallas_call(
        _maxpool4_kernel,
        out_shape=jax.ShapeDtypeStruct((B, oh * ow, C), x.dtype),
        grid=(B,),
        in_specs=[spec] * 4,
        out_specs=spec,
        compiler_params=pltpu.CompilerParams(
            dimension_semantics=("parallel",)),
    )(*parts)
    return out.reshape(B, oh, ow, C)


def _im2col(x, kh, kw):
    """x: (B, H, W, C) -> (B*OH*OW, KH*KW*C), valid conv, stride 1."""
    # TODO(synk): for conv2 this could stream shifted windows inside the kernel
    # instead of materializing the 25x-expanded patch matrix.
    B, H, W, C = x.shape
    oh, ow = H - kh + 1, W - kw + 1
    patches = jnp.stack(
        [x[:, i:i + oh, j:j + ow, :] for i in range(kh) for j in range(kw)],
        axis=3)                                   # (B, oh, ow, kh*kw, C)
    return patches.reshape(B * oh * ow, kh * kw * C), oh, ow


def conv2d_relu(x, w, b, *, out_dtype=jnp.bfloat16):
    """x: (B,H,W,Cin) NHWC; w: (Cout,Cin,KH,KW) torch layout; fused ReLU."""
    B = x.shape[0]
    cout, cin, kh, kw = w.shape
    cols, oh, ow = _im2col(x, kh, kw)
    wmat = jnp.transpose(w, (2, 3, 1, 0)).reshape(kh * kw * cin,
                                                  cout).astype(x.dtype)
    y = matmul_bias_act(cols, wmat, b, relu=True, out_dtype=out_dtype)
    return y.reshape(B, oh, ow, cout)


# Map NHWC-flatten index (h*80 + w*16 + c) -> PyTorch NCHW-flatten index
# (c*25 + h*5 + w), so the flatten can stay a plain reshape of NHWC.
_FC1_COL_PERM = jnp.array(
    [c * 25 + h * 5 + w for h in range(5) for w in range(5) for c in range(16)],
    dtype=jnp.int32)


def fused_fc(flat, p):
    """flat: (B, 400) f32 (NHWC flatten) -> (B, 10) f32. One pallas_call."""
    B = flat.shape[0]
    Bp = max(8, _round_up(B, 8))
    xp = jnp.zeros((Bp, 400), jnp.float32).at[:B].set(flat)

    w1 = jnp.take(p["fc1_w"], _FC1_COL_PERM, axis=1).T      # (400, 120)
    w1p = jnp.zeros((400, 128), jnp.float32).at[:, :120].set(w1)
    b1p = jnp.zeros((1, 128), jnp.float32).at[0, :120].set(p["fc1_b"])
    w2p = jnp.zeros((128, 128), jnp.float32).at[:120, :84].set(p["fc2_w"].T)
    b2p = jnp.zeros((1, 128), jnp.float32).at[0, :84].set(p["fc2_b"])
    w3p = jnp.zeros((128, 128), jnp.float32).at[:84, :10].set(p["fc3_w"].T)
    b3p = jnp.zeros((1, 128), jnp.float32).at[0, :10].set(p["fc3_b"])

    out = pl.pallas_call(
        _fused_fc_kernel,
        out_shape=jax.ShapeDtypeStruct((Bp, 128), jnp.float32),
    )(xp, w1p, b1p, w2p, b2p, w3p, b3p)
    return out[:B, :10]


# ----------------------------------------------------------------------------
# Net forward
# ----------------------------------------------------------------------------
def init_params(key):
    def u(k, shape, fan_in):
        bound = 1.0 / math.sqrt(fan_in)
        return jax.random.uniform(k, shape, jnp.float32, -bound, bound)

    ks = jax.random.split(key, 10)
    return dict(
        conv1_w=u(ks[0], (200, 3, 5, 5), 3 * 25),    # PyTorch (Cout,Cin,KH,KW)
        conv1_b=u(ks[1], (200,), 3 * 25),
        conv2_w=u(ks[2], (16, 200, 5, 5), 200 * 25),
        conv2_b=u(ks[3], (16,), 200 * 25),
        fc1_w=u(ks[4], (120, 400), 400),             # PyTorch (out, in)
        fc1_b=u(ks[5], (120,), 400),
        fc2_w=u(ks[6], (84, 120), 120),
        fc2_b=u(ks[7], (84,), 120),
        fc3_w=u(ks[8], (10, 84), 84),
        fc3_b=u(ks[9], (10,), 84),
    )


def net_forward(x_nchw, p):
    """x_nchw: (B, 3, 32, 32) float32 -> (B, 10) float32."""
    x = jnp.transpose(x_nchw, (0, 2, 3, 1)).astype(jnp.bfloat16)  # NHWC, bf16
    B = x.shape[0]

    y = conv2d_relu(x, p["conv1_w"], p["conv1_b"])   # (B,28,28,200) bf16
    y = maxpool2x2(y)                                # (B,14,14,200)
    y = conv2d_relu(y, p["conv2_w"], p["conv2_b"])   # (B,10,10,16)  bf16
    y = maxpool2x2(y)                                # (B,5,5,16)

    flat = y.reshape(B, 16 * 5 * 5).astype(jnp.float32)   # NHWC flatten
    return fused_fc(flat, p)                         # (B, 10) f32


# ----------------------------------------------------------------------------
if __name__ == "__main__":
    key = jax.random.PRNGKey(0)
    pkey, xkey = jax.random.split(key)
    params = init_params(pkey)
    # 32x32 spatial is required: 32 -conv5-> 28 -pool-> 14 -conv5-> 10 -pool-> 5
    x = jax.random.normal(xkey, (2, 3, 32, 32), jnp.float32)

    out = jax.jit(net_forward)(x, params)
    out = jax.block_until_ready(out)
    assert out.shape == (2, 10) and out.dtype == jnp.float32
    assert bool(jnp.all(jnp.isfinite(out)))
    print("KERNEL_OK")
</pallas_src>

<mosaic_0001>
module attributes {stable_mosaic.version = 11 : i64} {
  func.func @_matmul_bias_act_kernel(%arg0: i32, %arg1: memref<512x75xbf16, #tpu.memory_space<vmem>>, %arg2: memref<75x200xbf16, #tpu.memory_space<vmem>>, %arg3: memref<1x200xf32, #tpu.memory_space<vmem>>, %arg4: memref<512x200xbf16, #tpu.memory_space<vmem>>) attributes {dimension_semantics = [#tpu.dimension_semantics<parallel>], iteration_bounds = array<i64: 4>, scalar_prefetch = 0 : i64, scratch_operands = 0 : i64, tpu.core_type = #tpu.core_type<tc>, window_params = [{transform_indices = @transform_0, window_bounds = array<i64: 512, 75>}, {pipeline_mode = #tpu.pipeline_mode<synchronous>, transform_indices = @transform_1, window_bounds = array<i64: 75, 200>}, {pipeline_mode = #tpu.pipeline_mode<synchronous>, transform_indices = @transform_2, window_bounds = array<i64: 1, 200>}, {transform_indices = @transform_3, window_bounds = array<i64: 512, 200>}]} {
    %c0 = arith.constant 0 : index
    %c0_0 = arith.constant 0 : index
    %0 = vector.load %arg1[%c0, %c0_0] : memref<512x75xbf16, #tpu.memory_space<vmem>>, vector<512x75xbf16>
    %c0_1 = arith.constant 0 : index
    %c0_2 = arith.constant 0 : index
    %1 = vector.load %arg2[%c0_1, %c0_2] : memref<75x200xbf16, #tpu.memory_space<vmem>>, vector<75x200xbf16>
    %cst = arith.constant dense<0.000000e+00> : vector<512x200xf32>
    %2 = tpu.matmul %0, %1, %cst {dimension_numbers = #tpu.dot_dimension_numbers<[1], [0], [0], [1], [0, 0, 1, 1], [], []>} : vector<512x75xbf16>, vector<75x200xbf16>, vector<512x200xf32> -> vector<512x200xf32>
    %c0_3 = arith.constant 0 : index
    %c0_4 = arith.constant 0 : index
    %3 = vector.load %arg3[%c0_3, %c0_4] : memref<1x200xf32, #tpu.memory_space<vmem>>, vector<1x200xf32>
    %4 = vector.broadcast %3 : vector<1x200xf32> to vector<512x200xf32>
    %5 = arith.addf %2, %4 : vector<512x200xf32>
    %cst_5 = arith.constant 0.000000e+00 : f32
    %6 = vector.broadcast %cst_5 : f32 to vector<512x200xf32>
    %7 = arith.maximumf %5, %6 : vector<512x200xf32>
    %8 = arith.truncf %7 : vector<512x200xf32> to vector<512x200xbf16>
    %c0_6 = arith.constant 0 : index
    %c0_7 = arith.constant 0 : index
    %9 = vector.load %arg4[%c0_6, %c0_7] : memref<512x200xbf16, #tpu.memory_space<vmem>>, vector<512x200xbf16>
    tpu.vector_store %arg4[%c0_6, %c0_7], %8 {strides = array<i32>} : memref<512x200xbf16, #tpu.memory_space<vmem>>, vector<512x200xbf16>,
    return
  }
  func.func @transform_0(%arg0: i32) -> (i32, i32) {
    %c0_i32 = arith.constant 0 : i32
    %c0_i32_0 = arith.constant 0 : i32
    return %arg0, %c0_i32 : i32, i32
  }
  func.func @transform_1(%arg0: i32) -> (i32, i32) {
    %c0_i32 = arith.constant 0 : i32
    %c0_i32_0 = arith.constant 0 : i32
    %c0_i32_1 = arith.constant 0 : i32
    return %c0_i32, %c0_i32_0 : i32, i32
  }
  func.func @transform_2(%arg0: i32) -> (i32, i32) {
    %c0_i32 = arith.constant 0 : i32
    %c0_i32_0 = arith.constant 0 : i32
    %c0_i32_1 = arith.constant 0 : i32
    return %c0_i32, %c0_i32_0 : i32, i32
  }
  func.func @transform_3(%arg0: i32) -> (i32, i32) {
    %c0_i32 = arith.constant 0 : i32
    %c0_i32_0 = arith.constant 0 : i32
    return %arg0, %c0_i32 : i32, i32
  }
}

module attributes {stable_mosaic.version = 11 : i64} {
  func.func @_maxpool4_kernel(%arg0: i32, %arg1: memref<1x196x200xbf16, #tpu.memory_space<vmem>>, %arg2: memref<1x196x200xbf16, #tpu.memory_space<vmem>>, %arg3: memref<1x196x200xbf16, #tpu.memory_space<vmem>>, %arg4: memref<1x196x200xbf16, #tpu.memory_space<vmem>>, %arg5: memref<1x196x200xbf16, #tpu.memory_space<vmem>>) attributes {dimension_semantics = [#tpu.dimension_semantics<parallel>], iteration_bounds = array<i64: 2>, scalar_prefetch = 0 : i64, scratch_operands = 0 : i64, tpu.core_type = #tpu.core_type<tc>, window_params = [{transform_indices = @transform_0, window_bounds = array<i64: 1, 196, 200>}, {transform_indices = @transform_1, window_bounds = array<i64: 1, 196, 200>}, {transform_indices = @transform_2, window_bounds = array<i64: 1, 196, 200>}, {transform_indices = @transform_3, window_bounds = array<i64: 1, 196, 200>}, {transform_indices = @transform_4, window_bounds = array<i64: 1, 196, 200>}]} {
    %c0 = arith.constant 0 : index
    %c0_0 = arith.constant 0 : index
    %c0_1 = arith.constant 0 : index
    %0 = vector.load %arg1[%c0, %c0_0, %c0_1] : memref<1x196x200xbf16, #tpu.memory_space<vmem>>, vector<1x196x200xbf16>
    %c0_2 = arith.constant 0 : index
    %c0_3 = arith.constant 0 : index
    %c0_4 = arith.constant 0 : index
    %1 = vector.load %arg2[%c0_2, %c0_3, %c0_4] : memref<1x196x200xbf16, #tpu.memory_space<vmem>>, vector<1x196x200xbf16>
    %2 = arith.maximumf %0, %1 : vector<1x196x200xbf16>
    %c0_5 = arith.constant 0 : index
    %c0_6 = arith.constant 0 : index
    %c0_7 = arith.constant 0 : index
    %3 = vector.load %arg3[%c0_5, %c0_6, %c0_7] : memref<1x196x200xbf16, #tpu.memory_space<vmem>>, vector<1x196x200xbf16>
    %c0_8 = arith.constant 0 : index
    %c0_9 = arith.constant 0 : index
    %c0_10 = arith.constant 0 : index
    %4 = vector.load %arg4[%c0_8, %c0_9, %c0_10] : memref<1x196x200xbf16, #tpu.memory_space<vmem>>, vector<1x196x200xbf16>
    %5 = arith.maximumf %3, %4 : vector<1x196x200xbf16>
    %6 = arith.maximumf %2, %5 : vector<1x196x200xbf16>
    %c0_11 = arith.constant 0 : index
    %c0_12 = arith.constant 0 : index
    %c0_13 = arith.constant 0 : index
    %7 = vector.load %arg5[%c0_11, %c0_12, %c0_13] : memref<1x196x200xbf16, #tpu.memory_space<vmem>>, vector<1x196x200xbf16>
    tpu.vector_store %arg5[%c0_11, %c0_12, %c0_13], %6 {strides = array<i32>} : memref<1x196x200xbf16, #tpu.memory_space<vmem>>, vector<1x196x200xbf16>,
    return
  }
  func.func @transform_0(%arg0: i32) -> (i32, i32, i32) {
    %c0_i32 = arith.constant 0 : i32
    %c0_i32_0 = arith.constant 0 : i32
    %c0_i32_1 = arith.constant 0 : i32
    return %arg0, %c0_i32, %c0_i32_0 : i32, i32, i32
  }
  func.func @transform_1(%arg0: i32) -> (i32, i32, i32) {
    %c0_i32 = arith.constant 0 : i32
    %c0_i32_0 = arith.constant 0 : i32
    %c0_i32_1 = arith.constant 0 : i32
    return %arg0, %c0_i32, %c0_i32_0 : i32, i32, i32
  }
  func.func @transform_2(%arg0: i32) -> (i32, i32, i32) {
    %c0_i32 = arith.constant 0 : i32
    %c0_i32_0 = arith.constant 0 : i32
    %c0_i32_1 = arith.constant 0 : i32
    return %arg0, %c0_i32, %c0_i32_0 : i32, i32, i32
  }
  func.func @transform_3(%arg0: i32) -> (i32, i32, i32) {
    %c0_i32 = arith.constant 0 : i32
    %c0_i32_0 = arith.constant 0 : i32
    %c0_i32_1 = arith.constant 0 : i32
    return %arg0, %c0_i32, %c0_i32_0 : i32, i32, i32
  }
  func.func @transform_4(%arg0: i32) -> (i32, i32, i32) {
    %c0_i32 = arith.constant 0 : i32
    %c0_i32_0 = arith.constant 0 : i32
    %c0_i32_1 = arith.constant 0 : i32
    return %arg0, %c0_i32, %c0_i32_0 : i32, i32, i32
  }
}

module attributes {stable_mosaic.version = 11 : i64} {
  func.func @_matmul_bias_act_kernel(%arg0: i32, %arg1: memref<200x5000xbf16, #tpu.memory_space<vmem>>, %arg2: memref<5000x16xbf16, #tpu.memory_space<vmem>>, %arg3: memref<1x16xf32, #tpu.memory_space<vmem>>, %arg4: memref<200x16xbf16, #tpu.memory_space<vmem>>) attributes {dimension_semantics = [#tpu.dimension_semantics<parallel>], iteration_bounds = array<i64: 1>, scalar_prefetch = 0 : i64, scratch_operands = 0 : i64, tpu.core_type = #tpu.core_type<tc>, window_params = [{transform_indices = @transform_0, window_bounds = array<i64: 200, 5000>}, {pipeline_mode = #tpu.pipeline_mode<synchronous>, transform_indices = @transform_1, window_bounds = array<i64: 5000, 16>}, {pipeline_mode = #tpu.pipeline_mode<synchronous>, transform_indices = @transform_2, window_bounds = array<i64: 1, 16>}, {transform_indices = @transform_3, window_bounds = array<i64: 200, 16>}]} {
    %c0 = arith.constant 0 : index
    %c0_0 = arith.constant 0 : index
    %0 = vector.load %arg1[%c0, %c0_0] : memref<200x5000xbf16, #tpu.memory_space<vmem>>, vector<200x5000xbf16>
    %c0_1 = arith.constant 0 : index
    %c0_2 = arith.constant 0 : index
    %1 = vector.load %arg2[%c0_1, %c0_2] : memref<5000x16xbf16, #tpu.memory_space<vmem>>, vector<5000x16xbf16>
    %cst = arith.constant dense<0.000000e+00> : vector<200x16xf32>
    %2 = tpu.matmul %0, %1, %cst {dimension_numbers = #tpu.dot_dimension_numbers<[1], [0], [0], [1], [0, 0, 1, 1], [], []>} : vector<200x5000xbf16>, vector<5000x16xbf16>, vector<200x16xf32> -> vector<200x16xf32>
    %c0_3 = arith.constant 0 : index
    %c0_4 = arith.constant 0 : index
    %3 = vector.load %arg3[%c0_3, %c0_4] : memref<1x16xf32, #tpu.memory_space<vmem>>, vector<1x16xf32>
    %4 = vector.broadcast %3 : vector<1x16xf32> to vector<200x16xf32>
    %5 = arith.addf %2, %4 : vector<200x16xf32>
    %cst_5 = arith.constant 0.000000e+00 : f32
    %6 = vector.broadcast %cst_5 : f32 to vector<200x16xf32>
    %7 = arith.maximumf %5, %6 : vector<200x16xf32>
    %8 = arith.truncf %7 : vector<200x16xf32> to vector<200x16xbf16>
    %c0_6 = arith.constant 0 : index
    %c0_7 = arith.constant 0 : index
    %9 = vector.load %arg4[%c0_6, %c0_7] : memref<200x16xbf16, #tpu.memory_space<vmem>>, vector<200x16xbf16>
    tpu.vector_store %arg4[%c0_6, %c0_7], %8 {strides = array<i32>} : memref<200x16xbf16, #tpu.memory_space<vmem>>, vector<200x16xbf16>,
    return
  }
  func.func @transform_0(%arg0: i32) -> (i32, i32) {
    %c0_i32 = arith.constant 0 : i32
    %c0_i32_0 = arith.constant 0 : i32
    return %arg0, %c0_i32 : i32, i32
  }
  func.func @transform_1(%arg0: i32) -> (i32, i32) {
    %c0_i32 = arith.constant 0 : i32
    %c0_i32_0 = arith.constant 0 : i32
    %c0_i32_1 = arith.constant 0 : i32
    return %c0_i32, %c0_i32_0 : i32, i32
  }
  func.func @transform_2(%arg0: i32) -> (i32, i32) {
    %c0_i32 = arith.constant 0 : i32
    %c0_i32_0 = arith.constant 0 : i32
    %c0_i32_1 = arith.constant 0 : i32
    return %c0_i32, %c0_i32_0 : i32, i32
  }
  func.func @transform_3(%arg0: i32) -> (i32, i32) {
    %c0_i32 = arith.constant 0 : i32
    %c0_i32_0 = arith.constant 0 : i32
    return %arg0, %c0_i32 : i32, i32
  }
}

module attributes {stable_mosaic.version = 11 : i64} {
  func.func @_maxpool4_kernel(%arg0: i32, %arg1: memref<1x25x16xbf16, #tpu.memory_space<vmem>>, %arg2: memref<1x25x16xbf16, #tpu.memory_space<vmem>>, %arg3: memref<1x25x16xbf16, #tpu.memory_space<vmem>>, %arg4: memref<1x25x16xbf16, #tpu.memory_space<vmem>>, %arg5: memref<1x25x16xbf16, #tpu.memory_space<vmem>>) attributes {dimension_semantics = [#tpu.dimension_semantics<parallel>], iteration_bounds = array<i64: 2>, scalar_prefetch = 0 : i64, scratch_operands = 0 : i64, tpu.core_type = #tpu.core_type<tc>, window_params = [{transform_indices = @transform_0, window_bounds = array<i64: 1, 25, 16>}, {transform_indices = @transform_1, window_bounds = array<i64: 1, 25, 16>}, {transform_indices = @transform_2, window_bounds = array<i64: 1, 25, 16>}, {transform_indices = @transform_3, window_bounds = array<i64: 1, 25, 16>}, {transform_indices = @transform_4, window_bounds = array<i64: 1, 25, 16>}]} {
    %c0 = arith.constant 0 : index
    %c0_0 = arith.constant 0 : index
    %c0_1 = arith.constant 0 : index
    %0 = vector.load %arg1[%c0, %c0_0, %c0_1] : memref<1x25x16xbf16, #tpu.memory_space<vmem>>, vector<1x25x16xbf16>
    %c0_2 = arith.constant 0 : index
    %c0_3 = arith.constant 0 : index
    %c0_4 = arith.constant 0 : index
    %1 = vector.load %arg2[%c0_2, %c0_3, %c0_4] : memref<1x25x16xbf16, #tpu.memory_space<vmem>>, vector<1x25x16xbf16>
    %2 = arith.maximumf %0, %1 : vector<1x25x16xbf16>
    %c0_5 = arith.constant 0 : index
    %c0_6 = arith.constant 0 : index
    %c0_7 = arith.constant 0 : index
    %3 = vector.load %arg3[%c0_5, %c0_6, %c0_7] : memref<1x25x16xbf16, #tpu.memory_space<vmem>>, vector<1x25x16xbf16>
    %c0_8 = arith.constant 0 : index
    %c0_9 = arith.constant 0 : index
    %c0_10 = arith.constant 0 : index
    %4 = vector.load %arg4[%c0_8, %c0_9, %c0_10] : memref<1x25x16xbf16, #tpu.memory_space<vmem>>, vector<1x25x16xbf16>
    %5 = arith.maximumf %3, %4 : vector<1x25x16xbf16>
    %6 = arith.maximumf %2, %5 : vector<1x25x16xbf16>
    %c0_11 = arith.constant 0 : index
    %c0_12 = arith.constant 0 : index
    %c0_13 = arith.constant 0 : index
    %7 = vector.load %arg5[%c0_11, %c0_12, %c0_13] : memref<1x25x16xbf16, #tpu.memory_space<vmem>>, vector<1x25x16xbf16>
    tpu.vector_store %arg5[%c0_11, %c0_12, %c0_13], %6 {strides = array<i32>} : memref<1x25x16xbf16, #tpu.memory_space<vmem>>, vector<1x25x16xbf16>,
    return
  }
  func.func @transform_0(%arg0: i32) -> (i32, i32, i32) {
    %c0_i32 = arith.constant 0 : i32
    %c0_i32_0 = arith.constant 0 : i32
    %c0_i32_1 = arith.constant 0 : i32
    return %arg0, %c0_i32, %c0_i32_0 : i32, i32, i32
  }
  func.func @transform_1(%arg0: i32) -> (i32, i32, i32) {
    %c0_i32 = arith.constant 0 : i32
    %c0_i32_0 = arith.constant 0 : i32
    %c0_i32_1 = arith.constant 0 : i32
    return %arg0, %c0_i32, %c0_i32_0 : i32, i32, i32
  }
  func.func @transform_2(%arg0: i32) -> (i32, i32, i32) {
    %c0_i32 = arith.constant 0 : i32
    %c0_i32_0 = arith.constant 0 : i32
    %c0_i32_1 = arith.constant 0 : i32
    return %arg0, %c0_i32, %c0_i32_0 : i32, i32, i32
  }
  func.func @transform_3(%arg0: i32) -> (i32, i32, i32) {
    %c0_i32 = arith.constant 0 : i32
    %c0_i32_0 = arith.constant 0 : i32
    %c0_i32_1 = arith.constant 0 : i32
    return %arg0, %c0_i32, %c0_i32_0 : i32, i32, i32
  }
  func.func @transform_4(%arg0: i32) -> (i32, i32, i32) {
    %c0_i32 = arith.constant 0 : i32
    %c0_i32_0 = arith.constant 0 : i32
    %c0_i32_1 = arith.constant 0 : i32
    return %arg0, %c0_i32, %c0_i32_0 : i32, i32, i32
  }
}

module attributes {stable_mosaic.version = 11 : i64} {
  func.func @_fused_fc_kernel(%arg0: memref<8x400xf32, #tpu.memory_space<vmem>>, %arg1: memref<400x128xf32, #tpu.memory_space<vmem>>, %arg2: memref<1x128xf32, #tpu.memory_space<vmem>>, %arg3: memref<128x128xf32, #tpu.memory_space<vmem>>, %arg4: memref<1x128xf32, #tpu.memory_space<vmem>>, %arg5: memref<128x128xf32, #tpu.memory_space<vmem>>, %arg6: memref<1x128xf32, #tpu.memory_space<vmem>>, %arg7: memref<8x128xf32, #tpu.memory_space<vmem>>) attributes {dimension_semantics = [], scalar_prefetch = 0 : i64, scratch_operands = 0 : i64, tpu.core_type = #tpu.core_type<tc>} {
    %c0 = arith.constant 0 : index
    %c0_0 = arith.constant 0 : index
    %0 = vector.load %arg0[%c0, %c0_0] : memref<8x400xf32, #tpu.memory_space<vmem>>, vector<8x400xf32>
    %c0_1 = arith.constant 0 : index
    %c0_2 = arith.constant 0 : index
    %1 = vector.load %arg1[%c0_1, %c0_2] : memref<400x128xf32, #tpu.memory_space<vmem>>, vector<400x128xf32>
    %cst = arith.constant dense<0.000000e+00> : vector<8x128xf32>
    %2 = tpu.matmul %0, %1, %cst {dimension_numbers = #tpu.dot_dimension_numbers<[1], [0], [0], [1], [0, 0, 1, 1], [], []>} : vector<8x400xf32>, vector<400x128xf32>, vector<8x128xf32> -> vector<8x128xf32>
    %c0_3 = arith.constant 0 : index
    %c0_4 = arith.constant 0 : index
    %3 = vector.load %arg2[%c0_3, %c0_4] : memref<1x128xf32, #tpu.memory_space<vmem>>, vector<1x128xf32>
    %4 = vector.broadcast %3 : vector<1x128xf32> to vector<8x128xf32>
    %5 = arith.addf %2, %4 : vector<8x128xf32>
    %cst_5 = arith.constant 0.000000e+00 : f32
    %6 = vector.broadcast %cst_5 : f32 to vector<8x128xf32>
    %7 = arith.maximumf %5, %6 : vector<8x128xf32>
    %c0_6 = arith.constant 0 : index
    %c0_7 = arith.constant 0 : index
    %8 = vector.load %arg3[%c0_6, %c0_7] : memref<128x128xf32, #tpu.memory_space<vmem>>, vector<128x128xf32>
    %cst_8 = arith.constant dense<0.000000e+00> : vector<8x128xf32>
    %9 = tpu.matmul %7, %8, %cst_8 {dimension_numbers = #tpu.dot_dimension_numbers<[1], [0], [0], [1], [0, 0, 1, 1], [], []>} : vector<8x128xf32>, vector<128x128xf32>, vector<8x128xf32> -> vector<8x128xf32>
    %c0_9 = arith.constant 0 : index
    %c0_10 = arith.constant 0 : index
    %10 = vector.load %arg4[%c0_9, %c0_10] : memref<1x128xf32, #tpu.memory_space<vmem>>, vector<1x128xf32>
    %11 = vector.broadcast %10 : vector<1x128xf32> to vector<8x128xf32>
    %12 = arith.addf %9, %11 : vector<8x128xf32>
    %cst_11 = arith.constant 0.000000e+00 : f32
    %13 = vector.broadcast %cst_11 : f32 to vector<8x128xf32>
    %14 = arith.maximumf %12, %13 : vector<8x128xf32>
    %c0_12 = arith.constant 0 : index
    %c0_13 = arith.constant 0 : index
    %15 = vector.load %arg5[%c0_12, %c0_13] : memref<128x128xf32, #tpu.memory_space<vmem>>, vector<128x128xf32>
    %cst_14 = arith.constant dense<0.000000e+00> : vector<8x128xf32>
    %16 = tpu.matmul %14, %15, %cst_14 {dimension_numbers = #tpu.dot_dimension_numbers<[1], [0], [0], [1], [0, 0, 1, 1], [], []>} : vector<8x128xf32>, vector<128x128xf32>, vector<8x128xf32> -> vector<8x128xf32>
    %c0_15 = arith.constant 0 : index
    %c0_16 = arith.constant 0 : index
    %17 = vector.load %arg6[%c0_15, %c0_16] : memref<1x128xf32, #tpu.memory_space<vmem>>, vector<1x128xf32>
    %18 = vector.broadcast %17 : vector<1x128xf32> to vector<8x128xf32>
    %19 = arith.addf %16, %18 : vector<8x128xf32>
    %c0_17 = arith.constant 0 : index
    %c0_18 = arith.constant 0 : index
    %20 = vector.load %arg7[%c0_17, %c0_18] : memref<8x128xf32, #tpu.memory_space<vmem>>, vector<8x128xf32>
    tpu.vector_store %arg7[%c0_17, %c0_18], %19 {strides = array<i32>} : memref<8x128xf32, #tpu.memory_space<vmem>>, vector<8x128xf32>,
    return
  }
}

</mosaic_0001>

<bundles_post_ra>
// kernel: net_forward.5
= control target key start
LH: loop header
LB: loop body
LE: loop exit
PB: predicated region body
PF: predicated region fallthrough
CT: control target
= control target key end

     0   :  { %s2486_s12 = smov 0   ;;  %s2488_s13 = smov 0   ;;  %s3192_s0 = inlined_call_operand.vmem [shape: bf16[1568,75], index: 0, kind: input, shape index: {}]   ;;  %s3193_s1 = inlined_call_operand.vmem [shape: bf16[75,200], index: 1, kind: input, shape index: {}]   ;;  %s3194_s2 = inlined_call_operand.vmem [shape: f32[1,200], index: 2, kind: input, shape index: {}]   ;;  %s3195_s3 = inlined_call_operand.vmem [shape: bf16[1568,200], index: 3, kind: output, shape index: {}]  }
   0x1   :  { %s2490_s14 = smov 0  }
   0x2 LB: > { %s2499_s15 = sadd.s32 4294967295, %s2430_s14   ;;  %s2501_s16 = sadd.s32 1, %s2430_s14   ;;  %s2430_s14 = sphi %s2490_s14, %s3206_s14   ;;  %s2426_s13 = sphi %s2488_s13, %s3205_s13   ;;  %s2422_s12 = sphi %s2486_s12, %s3204_s12  }
   0x3   : > { %s85_s17 = ssub.s32 %s2430_s14, %s2501_s16  ;;  %s88_s18 = sadd.s32 1, %s2426_s13 }
   0x4   : > { %p86_p0 = scmp.eq.s32.totalorder %s85_s17, 0  ;;  %p98_p1 = scmp.ne.s32.totalorder %s2426_s13, %s2422_s12 }
   0x5   : > { %p99_p2 = scmp.eq.s32.totalorder %s2499_s15, 3  ;;  %p1999_p3 = scmp.ge.s32.totalorder %s2430_s14, 1 }
   0x6   : > { %s2509_s19 = scalar_select %p86_p0, %s2426_s13, %s88_s18  }
   0x7   : > { %p2511_p4 = por %p99_p2, %p98_p1  ;;  %p146_p5 = scmp.lt.s32.totalorder %s2430_s14, 5 }
   0x9   : > { %p147_p6 = pnand %p1999_p3, %p146_p5 }
   0xa   : > { %v2329_v0 = vld [vmem:[%s3193_s1 + $0x4] ss:$8 sps:$4 sm:$0xff] (!%p147_p6)   ;;  %v2331_v1 = vld [vmem:[%s3193_s1] ss:$8 sps:$4 sm:$0xff] (!%p147_p6)   ;;  %v2332_v2 = vld [vmem:[%s3193_s1 + $0x14] ss:$8 sps:$4 sm:$0xff] (!%p147_p6)   ;;  %v270_v48 = vlaneseq (!%p147_p6) }
   0xb   : > { %150 = sbr.rel (%p147_p6) target bundleno = 445 (0x1bd), region = 32  ;;  %595 = vmatprep.subr.bf16.mxu0 (!%p147_p6), %v2329_v0  ;;  %2229 = vmatprep.subr.bf16.mxu1 (!%p147_p6), %v2329_v0  ;;  %v2334_v3 = vld [vmem:[%s3193_s1 + $0x10] ss:$8 sps:$4 sm:$0xff] (!%p147_p6)   ;;  %vm585_vm0 = vcmask (!%p147_p6), 1044480   ;;  %v2335_v4 = vld [vmem:[%s3193_s1 + $0x24] ss:$8 sps:$4 sm:$0xff] (!%p147_p6)  }
   0xc   : > { %596 = vmatpush1.bf16.msra.mxu0 (!%p147_p6), %v2331_v1  ;;  %2234 = vmatpush1.bf16.msra.mxu1 (!%p147_p6), %v2331_v1  ;;  %s2531_s4 = sshll.u32 (!%p147_p6), %s2499_s15, 6  ;;  %v2464_v5 = vmov (!%p147_p6), 0   ;;  %vm586_vm1 = vcmask (!%p147_p6), 1045504   ;;  %v2465_v6 = vmov (!%p147_p6), 65535   ;;  %v2337_v8 = vld [vmem:[%s3193_s1 + $0x20] ss:$8 sps:$4 sm:$0xff] (!%p147_p6)  }
   0xd   : > { %597 = vmatprep.subr.bf16.mxu0 (!%p147_p6), %v2332_v2  ;;  %2230 = vmatprep.subr.bf16.mxu1 (!%p147_p6), %v2332_v2  ;;  %p178_p7 = scmp.lt.s32.totalorder (!%p147_p6), %s2531_s4, 195  ;;  %v587_v7 = vsel (!%p147_p6), %vm585_vm0, 4294967295, %v2465_v6  ;;  %v2338_v9 = vld [vmem:[%s3193_s1 + $0x34] ss:$8 sps:$4 sm:$0xff] (!%p147_p6)   ;;  %v2340_v13 = vld [vmem:[%s3193_s1 + $0x30] ss:$8 sps:$4 sm:$0xff] (!%p147_p6)  }
   0xe   : > { %627 = vmatprep.mubr.bf16.mxu0 (!%p147_p6), %v2464_v5  ;;  %787 = vmatprep.mubr.bf16.mxu1 (!%p147_p6), %v2464_v5  ;;  %v2341_v10 = vld [vmem:[%s3193_s1 + $0x44] ss:$8 sps:$4 sm:$0x3f] (!%p147_p6)   ;;  %v588_v11 = vsel (!%p147_p6), %vm586_vm1, %v587_v7, 0  ;;  %vm488_vm2 = vcmask (!%p147_p6), 613376   ;;  %v271_v49 = vshrl.u32 (!%p147_p6), %v270_v48, 7 }
   0xf   : > { %v2343_v12 = vld [vmem:[%s3193_s1 + $0x40] ss:$8 sps:$4 sm:$0x3f] (!%p147_p6)   ;;  %v593_v14 = vand.u32 (!%p147_p6), %v2341_v10, %v588_v11  ;;  %s170_s28 = sand.u32 (!%p147_p6), 1, %s2422_s12   ;;  %vm1460_vm3 = vcmask (!%p147_p6), 1043456   ;;  %vm1461_vm4 = vcmask (!%p147_p6), 588804  }
  0x10   : > { %598 = vmatpush1.bf16.msra.mxu0 (!%p147_p6), %v2334_v3  ;;  %2235 = vmatpush1.bf16.msra.mxu1 (!%p147_p6), %v2334_v3  ;;  %v590_v15 = vand.u32 (!%p147_p6), %v2343_v12, %v588_v11  ;;  %v272_v50 = vsub.s32 (!%p147_p6), 0, %v271_v49  ;;  %v268_v51 = vld [vmem:[%s3194_s2] sm:$0x3] (!%p147_p6)  ;;  %v276_v52 = vsub.s32 (!%p147_p6), 1, %v271_v49  ;;  %s2000_s29 = sshll.u32 (!%p147_p6), %s170_s28, 9  ;;  %vm2668_vm5 = vmor (!%p147_p6), %vm1461_vm4, %vm1460_vm3 }
  0x11   : > { %599 = vmatprep.subr.bf16.mxu0 (!%p147_p6), %v2335_v4  ;;  %2231 = vmatprep.subr.bf16.mxu1 (!%p147_p6), %v2335_v4  ;;  %s2672_s12 = scalar_lea.vmem (!%p147_p6), [#allocation2], %s2000_s29  }
  0x12   : > { %s179_s7 = scalar_select %p178_p7, %s2531_s4, 195  ;;  %v2654_v53 = vrot.slane %v268_v51, %v272_v50  ;;  %v2656_v54 = vrot.slane %v268_v51, %v276_v52 }
  0x13   : > { %s1535_s30 = ssub.s32 (%p2511_p4), 196, %s2531_s4  ;;  %s2226_s5 = sshll.u32 (%p2511_p4), %s2499_s15, 9 }
  0x14   : > { %s2002_s14 = sshll.u32 %s179_s7, 2  ;;  %600 = vmatpush1.bf16.msra.mxu0 %v2337_v8  ;;  %2236 = vmatpush1.bf16.msra.mxu1 %v2337_v8  ;;  %p1536_p8 = scmp.lt.s32.totalorder (%p2511_p4), %s1535_s30, 64 }
  0x15   : > { %s2552_s23 = scalar_lea.vmem %s3192_s0, %s2002_s14  ;;  %601 = vmatprep.subr.bf16.mxu0 %v2338_v9  ;;  %2232 = vmatprep.subr.bf16.mxu1 %v2338_v9  ;;  %s2993_s8 = scalar_lea.vmem (%p2511_p4), %s3195_s3, %s2226_s5  }
  0x16   : > { %v2344_v16 = vld [vmem:[%s2552_s23] sm:$0xff]   ;;  %v2346_v18 = vld [vmem:[%s2552_s23 + $0x8] sm:$0xff]   ;;  %v2348_v20 = vld [vmem:[%s2552_s23 + $0x10] sm:$0xff]  }
  0x17   : > { %v2345_v17 = vld [vmem:[%s2552_s23 + $0x80] sm:$0xff]   ;;  %v2347_v19 = vld [vmem:[%s2552_s23 + $0x88] sm:$0xff]   ;;  %v2349_v21 = vld [vmem:[%s2552_s23 + $0x90] sm:$0xff]  }
  0x18   : > { %602 = vmatpush1.bf16.msra.mxu0 %v2340_v13  ;;  %2237 = vmatpush1.bf16.msra.mxu1 %v2340_v13  ;;  %v2350_v22 = vld [vmem:[%s2552_s23 + $0x18] sm:$0xff]   ;;  %v2352_v24 = vld [vmem:[%s2552_s23 + $0x20] sm:$0xff]   ;;  %v2354_v26 = vld [vmem:[%s2552_s23 + $0x28] sm:$0xff]  }
  0x19   : > { %603 = vmatprep.subr.bf16.mxu0 %v593_v14  ;;  %2233 = vmatprep.subr.bf16.mxu1 %v593_v14  ;;  %v2351_v23 = vld [vmem:[%s2552_s23 + $0x98] sm:$0xff]   ;;  %v2353_v25 = vld [vmem:[%s2552_s23 + $0xa0] sm:$0xff]   ;;  %v2355_v27 = vld [vmem:[%s2552_s23 + $0xa8] sm:$0xff]  }
  0x1a   : > { %v2356_v28 = vld [vmem:[%s2552_s23 + $0x30] sm:$0xff]   ;;  %v2358_v30 = vld [vmem:[%s2552_s23 + $0x38] sm:$0xff]   ;;  %v2360_v32 = vld [vmem:[%s2552_s23 + $0x40] sm:$0xff]  }
  0x1b   : > { %v2357_v29 = vld [vmem:[%s2552_s23 + $0xb0] sm:$0xff]   ;;  %v2359_v31 = vld [vmem:[%s2552_s23 + $0xb8] sm:$0xff]   ;;  %v2361_v33 = vld [vmem:[%s2552_s23 + $0xc0] sm:$0xff]  }
  0x1c   : > { %604 = vmatpush1.bf16.msra.mxu0 %v590_v15  ;;  %2238 = vmatpush1.bf16.msra.mxu1 %v590_v15  ;;  %v2362_v34 = vld [vmem:[%s2552_s23 + $0x48] sm:$0xff]   ;;  %v2364_v36 = vld [vmem:[%s2552_s23 + $0x50] sm:$0xff]   ;;  %v2366_v38 = vld [vmem:[%s2552_s23 + $0x58] sm:$0xff]  }
  0x1d   : > { %v2363_v35 = vld [vmem:[%s2552_s23 + $0xc8] sm:$0xff]   ;;  %v2365_v37 = vld [vmem:[%s2552_s23 + $0xd0] sm:$0xff]   ;;  %v2367_v39 = vld [vmem:[%s2552_s23 + $0xd8] sm:$0xff]  }
  0x1e   : > { %v2368_v40 = vld [vmem:[%s2552_s23 + $0x60] sm:$0xff]   ;;  %v2370_v42 = vld [vmem:[%s2552_s23 + $0x68] sm:$0xff]   ;;  %v2372_v44 = vld [vmem:[%s2552_s23 + $0x70] sm:$0xff]  }
  0x1f   : > { %2045 = vmatmul.mubr.msk.bf16.vlgmr.msra.gmra.mrb[0].mxu0 %vm488_vm2, %v2344_v16  ;;  %2061 = vmatmul.mubr.msk.bf16.vlgmr.msra.gmra.mrb[0].mxu1 %vm488_vm2, %v2345_v17  ;;  %v2369_v41 = vld [vmem:[%s2552_s23 + $0xe0] sm:$0xff]   ;;  %v2371_v43 = vld [vmem:[%s2552_s23 + $0xe8] sm:$0xff]   ;;  %v2373_v45 = vld [vmem:[%s2552_s23 + $0xf0] sm:$0xff]  }
  0x20   : > { %637 = vmatprep.mubr.bf16.mxu0 %v2464_v5  ;;  %797 = vmatprep.mubr.bf16.mxu1 %v2464_v5  ;;  %v2374_v46 = vld [vmem:[%s2552_s23 + $0x78] sm:$0xff]  }
  0x21   : > { %v2375_v47 = vld [vmem:[%s2552_s23 + $0xf8] sm:$0xff]  }
  0x27   : > { %2046 = vmatmul.mubr.msk.bf16.gmra.mrb[4].mxu0 %vm488_vm2, %v2346_v18  ;;  %2062 = vmatmul.mubr.msk.bf16.gmra.mrb[4].mxu1 %vm488_vm2, %v2347_v19 }
  0x28   : > { %647 = vmatprep.mubr.bf16.mxu0 %v2464_v5  ;;  %807 = vmatprep.mubr.bf16.mxu1 %v2464_v5 }
  0x2f   : > { %2047 = vmatmul.mubr.msk.bf16.gmra.mrb[8].mxu0 %vm488_vm2, %v2348_v20  ;;  %2063 = vmatmul.mubr.msk.bf16.gmra.mrb[8].mxu1 %vm488_vm2, %v2349_v21 }
  0x30   : > { %657 = vmatprep.mubr.bf16.mxu0 %v2464_v5  ;;  %817 = vmatprep.mubr.bf16.mxu1 %v2464_v5 }
  0x37   : > { %2048 = vmatmul.mubr.msk.bf16.gmra.mrb[12].mxu0 %vm488_vm2, %v2350_v22  ;;  %2064 = vmatmul.mubr.msk.bf16.gmra.mrb[12].mxu1 %vm488_vm2, %v2351_v23 }
  0x38   : > { %667 = vmatprep.mubr.bf16.mxu0 %v2464_v5  ;;  %827 = vmatprep.mubr.bf16.mxu1 %v2464_v5 }
  0x3f   : > { %2049 = vmatmul.mubr.msk.bf16.gmra.mrb[16].mxu0 %vm488_vm2, %v2352_v24  ;;  %2065 = vmatmul.mubr.msk.bf16.gmra.mrb[16].mxu1 %vm488_vm2, %v2353_v25 }
  0x40   : > { %677 = vmatprep.mubr.bf16.mxu0 %v2464_v5  ;;  %837 = vmatprep.mubr.bf16.mxu1 %v2464_v5 }
  0x47   : > { %2050 = vmatmul.mubr.msk.bf16.gmra.mrb[20].mxu0 %vm488_vm2, %v2354_v26  ;;  %2066 = vmatmul.mubr.msk.bf16.gmra.mrb[20].mxu1 %vm488_vm2, %v2355_v27 }
  0x48   : > { %687 = vmatprep.mubr.bf16.mxu0 %v2464_v5  ;;  %847 = vmatprep.mubr.bf16.mxu1 %v2464_v5 }
  0x4f   : > { %2051 = vmatmul.mubr.msk.bf16.gmra.mrb[24].mxu0 %vm488_vm2, %v2356_v28  ;;  %2067 = vmatmul.mubr.msk.bf16.gmra.mrb[24].mxu1 %vm488_vm2, %v2357_v29 }
  0x50   : > { %697 = vmatprep.mubr.bf16.mxu0 %v2464_v5  ;;  %857 = vmatprep.mubr.bf16.mxu1 %v2464_v5 }
  0x57   : > { %2052 = vmatmul.mubr.msk.bf16.gmra.mrb[28].mxu0 %vm488_vm2, %v2358_v30  ;;  %2068 = vmatmul.mubr.msk.bf16.gmra.mrb[28].mxu1 %vm488_vm2, %v2359_v31 }
  0x58   : > { %707 = vmatprep.mubr.bf16.mxu0 %v2464_v5  ;;  %867 = vmatprep.mubr.bf16.mxu1 %v2464_v5 }
  0x5f   : > { %2053 = vmatmul.mubr.msk.bf16.gmra.mrb[32].mxu0 %vm488_vm2, %v2360_v32  ;;  %2069 = vmatmul.mubr.msk.bf16.gmra.mrb[32].mxu1 %vm488_vm2, %v2361_v33 }
  0x60   : > { %717 = vmatprep.mubr.bf16.mxu0 %v2464_v5  ;;  %877 = vmatprep.mubr.bf16.mxu1 %v2464_v5 }
  0x67   : > { %2054 = vmatmul.mubr.msk.bf16.gmra.mrb[36].mxu0 %vm488_vm2, %v2362_v34  ;;  %2070 = vmatmul.mubr.msk.bf16.gmra.mrb[36].mxu1 %vm488_vm2, %v2363_v35 }
  0x68   : > { %727 = vmatprep.mubr.bf16.mxu0 %v2464_v5  ;;  %887 = vmatprep.mubr.bf16.mxu1 %v2464_v5 }
  0x6f   : > { %2055 = vmatmul.mubr.msk.bf16.gmra.mrb[40].mxu0 %vm488_vm2, %v2364_v36  ;;  %2071 = vmatmul.mubr.msk.bf16.gmra.mrb[40].mxu1 %vm488_vm2, %v2365_v37 }
  0x70   : > { %737 = vmatprep.mubr.bf16.mxu0 %v2464_v5  ;;  %897 = vmatprep.mubr.bf16.mxu1 %v2464_v5 }
  0x77   : > { %2056 = vmatmul.mubr.msk.bf16.gmra.mrb[44].mxu0 %vm488_vm2, %v2366_v38  ;;  %2072 = vmatmul.mubr.msk.bf16.gmra.mrb[44].mxu1 %vm488_vm2, %v2367_v39 }
  0x78   : > { %747 = vmatprep.mubr.bf16.mxu0 %v2464_v5  ;;  %907 = vmatprep.mubr.bf16.mxu1 %v2464_v5 }
  0x7f   : > { %2057 = vmatmul.mubr.msk.bf16.gmra.mrb[48].mxu0 %vm488_vm2, %v2368_v40  ;;  %2073 = vmatmul.mubr.msk.bf16.gmra.mrb[48].mxu1 %vm488_vm2, %v2369_v41 }
  0x80   : > { %757 = vmatprep.mubr.bf16.mxu0 %v2464_v5  ;;  %917 = vmatprep.mubr.bf16.mxu1 %v2464_v5 }
  0x87   : > { %2058 = vmatmul.mubr.msk.bf16.gmra.mrb[52].mxu0 %vm488_vm2, %v2370_v42  ;;  %2074 = vmatmul.mubr.msk.bf16.gmra.mrb[52].mxu1 %vm488_vm2, %v2371_v43 }
  0x88   : > { %767 = vmatprep.mubr.bf16.mxu0 %v2464_v5  ;;  %927 = vmatprep.mubr.bf16.mxu1 %v2464_v5 }
  0x8f   : > { %2059 = vmatmul.mubr.msk.bf16.gmra.mrb[56].mxu0 %vm488_vm2, %v2372_v44  ;;  %2075 = vmatmul.mubr.msk.bf16.gmra.mrb[56].mxu1 %vm488_vm2, %v2373_v45 }
  0x90   : > { %777 = vmatprep.mubr.bf16.mxu0 %v2464_v5  ;;  %937 = vmatprep.mubr.bf16.mxu1 %v2464_v5 }
  0x97   : > { %2060 = vmatmul.mubr.msk.bf16.gmra.mrb[60].mxu0 %vm488_vm2, %v2374_v46  ;;  %2076 = vmatmul.mubr.msk.bf16.gmra.mrb[60].mxu1 %vm488_vm2, %v2375_v47 }
  0xf2   : > { %v629_v55 = vpop.f32.mrb[0].mxu0  ;;  %v789_v56 = vpop.f32.mrb[0].mxu1 }
  0xf3   : > { %v630_v57 = vadd.f32 %v629_v55, %v2654_v53  ;;  %v790_v58 = vadd.f32 %v789_v56, %v2654_v53  ;;  %v631_v59 = vpop.f32.mrb[1].mxu0  ;;  %v791_v60 = vpop.f32.mrb[1].mxu1 }
  0xf4   : > { %v632_v61 = vadd.f32 %v631_v59, %v2656_v54  ;;  %v792_v62 = vadd.f32 %v791_v60, %v2656_v54  ;;  %v633_v63 = vpop.f32.mrb[2].mxu0  ;;  %v793_v0 = vpop.f32.mrb[2].mxu1 }
  0xf5   : > { %v948_v1 = vmax.f32 %v630_v57, 0.0  ;;  %v1012_v2 = vmax.f32 %v790_v58, 0.0  ;;  %v634_v3 = vadd.f32 %v633_v63, %v2654_v53  ;;  %v794_v4 = vadd.f32 %v793_v0, %v2654_v53  ;;  %v635_v5 = vpop.f32.mrb[3].mxu0  ;;  %v795_v6 = vpop.f32.mrb[3].mxu1 }
  0xf6   : > { %v949_v7 = vmax.f32 %v632_v61, 0.0  ;;  %v1013_v8 = vmax.f32 %v792_v62, 0.0  ;;  %v636_v9 = vadd.f32 %v635_v5, %v2656_v54  ;;  %v796_v10 = vadd.f32 %v795_v6, %v2656_v54 }
  0xf7   : > { %v950_v12 = vmax.f32 %v634_v3, 0.0  ;;  %v1014_v13 = vmax.f32 %v794_v4, 0.0 }
  0xf8   : > { %v2160_v14 = vpack.c.bf16 %v949_v7, %v948_v1  ;;  %v2192_v15 = vpack.c.bf16 %v1013_v8, %v1012_v2  ;;  %v951_v16 = vmax.f32 %v636_v9, 0.0  ;;  %v1015_v17 = vmax.f32 %v796_v10, 0.0 }
  0xfa   : > { %1463 = vst.msk [vmem:[%s2672_s12] sm:$0xff] %vm2668_vm5, %v2160_v14  ;;  %1495 = vst.msk [vmem:[%s2672_s12 + $0x100] sm:$0xff] %vm2668_vm5, %v2192_v15  ;;  %v2161_v18 = vpack.c.bf16 %v951_v16, %v950_v12  ;;  %v2193_v19 = vpack.c.bf16 %v1015_v17, %v1014_v13  ;;  %v639_v20 = vpop.f32.mrb[4].mxu0  ;;  %v799_v21 = vpop.f32.mrb[4].mxu1 }
  0xfb   : > { %v640_v22 = vadd.f32 %v639_v20, %v2654_v53  ;;  %v800_v23 = vadd.f32 %v799_v21, %v2654_v53  ;;  %v641_v24 = vpop.f32.mrb[5].mxu0  ;;  %v801_v25 = vpop.f32.mrb[5].mxu1 }
  0xfc   : > { %1464 = vst.msk [vmem:[%s2672_s12 + $0x8] sm:$0xff] %vm2668_vm5, %v2161_v18  ;;  %1496 = vst.msk [vmem:[%s2672_s12 + $0x108] sm:$0xff] %vm2668_vm5, %v2193_v19  ;;  %v642_v26 = vadd.f32 %v641_v24, %v2656_v54  ;;  %v802_v27 = vadd.f32 %v801_v25, %v2656_v54  ;;  %v643_v28 = vpop.f32.mrb[6].mxu0  ;;  %v803_v29 = vpop.f32.mrb[6].mxu1 }
  0xfd   : > { %v952_v30 = vmax.f32 %v640_v22, 0.0  ;;  %v1016_v31 = vmax.f32 %v800_v23, 0.0  ;;  %v644_v32 = vadd.f32 %v643_v28, %v2654_v53  ;;  %v804_v33 = vadd.f32 %v803_v29, %v2654_v53  ;;  %v645_v34 = vpop.f32.mrb[7].mxu0  ;;  %v805_v35 = vpop.f32.mrb[7].mxu1 }
  0xfe   : > { %v953_v36 = vmax.f32 %v642_v26, 0.0  ;;  %v1017_v37 = vmax.f32 %v802_v27, 0.0  ;;  %v646_v38 = vadd.f32 %v645_v34, %v2656_v54  ;;  %v806_v39 = vadd.f32 %v805_v35, %v2656_v54 }
  0xff   : > { %v954_v40 = vmax.f32 %v644_v32, 0.0  ;;  %v1018_v41 = vmax.f32 %v804_v33, 0.0 }
 0x100   : > { %v2162_v42 = vpack.c.bf16 %v953_v36, %v952_v30  ;;  %v2194_v43 = vpack.c.bf16 %v1017_v37, %v1016_v31  ;;  %v955_v44 = vmax.f32 %v646_v38, 0.0  ;;  %v1019_v45 = vmax.f32 %v806_v39, 0.0 }
 0x102   : > { %1465 = vst.msk [vmem:[%s2672_s12 + $0x10] sm:$0xff] %vm2668_vm5, %v2162_v42  ;;  %1497 = vst.msk [vmem:[%s2672_s12 + $0x110] sm:$0xff] %vm2668_vm5, %v2194_v43  ;;  %v2163_v46 = vpack.c.bf16 %v955_v44, %v954_v40  ;;  %v2195_v47 = vpack.c.bf16 %v1019_v45, %v1018_v41  ;;  %v649_v48 = vpop.f32.mrb[8].mxu0  ;;  %v809_v49 = vpop.f32.mrb[8].mxu1 }
 0x103   : > { %v650_v50 = vadd.f32 %v649_v48, %v2654_v53  ;;  %v810_v51 = vadd.f32 %v809_v49, %v2654_v53  ;;  %v651_v52 = vpop.f32.mrb[9].mxu0  ;;  %v811_v55 = vpop.f32.mrb[9].mxu1 }
 0x104   : > { %1466 = vst.msk [vmem:[%s2672_s12 + $0x18] sm:$0xff] %vm2668_vm5, %v2163_v46  ;;  %1498 = vst.msk [vmem:[%s2672_s12 + $0x118] sm:$0xff] %vm2668_vm5, %v2195_v47  ;;  %v652_v56 = vadd.f32 %v651_v52, %v2656_v54  ;;  %v812_v57 = vadd.f32 %v811_v55, %v2656_v54  ;;  %v653_v58 = vpop.f32.mrb[10].mxu0  ;;  %v813_v59 = vpop.f32.mrb[10].mxu1 }
 0x105   : > { %v956_v60 = vmax.f32 %v650_v50, 0.0  ;;  %v1020_v61 = vmax.f32 %v810_v51, 0.0  ;;  %v654_v62 = vadd.f32 %v653_v58, %v2654_v53  ;;  %v814_v63 = vadd.f32 %v813_v59, %v2654_v53  ;;  %v655_v0 = vpop.f32.mrb[11].mxu0  ;;  %v815_v1 = vpop.f32.mrb[11].mxu1 }
 0x106   : > { %v957_v2 = vmax.f32 %v652_v56, 0.0  ;;  %v1021_v3 = vmax.f32 %v812_v57, 0.0  ;;  %v656_v4 = vadd.f32 %v655_v0, %v2656_v54  ;;  %v816_v5 = vadd.f32 %v815_v1, %v2656_v54 }
 0x107   : > { %v958_v6 = vmax.f32 %v654_v62, 0.0  ;;  %v1022_v7 = vmax.f32 %v814_v63, 0.0 }
 0x108   : > { %v2164_v8 = vpack.c.bf16 %v957_v2, %v956_v60  ;;  %v2196_v9 = vpack.c.bf16 %v1021_v3, %v1020_v61  ;;  %v959_v10 = vmax.f32 %v656_v4, 0.0  ;;  %v1023_v12 = vmax.f32 %v816_v5, 0.0 }
 0x10a   : > { %1467 = vst.msk [vmem:[%s2672_s12 + $0x20] sm:$0xff] %vm2668_vm5, %v2164_v8  ;;  %1499 = vst.msk [vmem:[%s2672_s12 + $0x120] sm:$0xff] %vm2668_vm5, %v2196_v9  ;;  %v2165_v13 = vpack.c.bf16 %v959_v10, %v958_v6  ;;  %v2197_v14 = vpack.c.bf16 %v1023_v12, %v1022_v7  ;;  %v659_v15 = vpop.f32.mrb[12].mxu0  ;;  %v819_v16 = vpop.f32.mrb[12].mxu1 }
 0x10b   : > { %v660_v17 = vadd.f32 %v659_v15, %v2654_v53  ;;  %v820_v18 = vadd.f32 %v819_v16, %v2654_v53  ;;  %v661_v19 = vpop.f32.mrb[13].mxu0  ;;  %v821_v20 = vpop.f32.mrb[13].mxu1 }
 0x10c   : > { %1468 = vst.msk [vmem:[%s2672_s12 + $0x28] sm:$0xff] %vm2668_vm5, %v2165_v13  ;;  %1500 = vst.msk [vmem:[%s2672_s12 + $0x128] sm:$0xff] %vm2668_vm5, %v2197_v14  ;;  %v662_v21 = vadd.f32 %v661_v19, %v2656_v54  ;;  %v822_v22 = vadd.f32 %v821_v20, %v2656_v54  ;;  %v663_v23 = vpop.f32.mrb[14].mxu0  ;;  %v823_v24 = vpop.f32.mrb[14].mxu1 }
 0x10d   : > { %v960_v25 = vmax.f32 %v660_v17, 0.0  ;;  %v1024_v26 = vmax.f32 %v820_v18, 0.0  ;;  %v664_v27 = vadd.f32 %v663_v23, %v2654_v53  ;;  %v824_v28 = vadd.f32 %v823_v24, %v2654_v53  ;;  %v665_v29 = vpop.f32.mrb[15].mxu0  ;;  %v825_v30 = vpop.f32.mrb[15].mxu1 }
 0x10e   : > { %v961_v31 = vmax.f32 %v662_v21, 0.0  ;;  %v1025_v32 = vmax.f32 %v822_v22, 0.0  ;;  %v666_v33 = vadd.f32 %v665_v29, %v2656_v54  ;;  %v826_v34 = vadd.f32 %v825_v30, %v2656_v54 }
 0x10f   : > { %v962_v35 = vmax.f32 %v664_v27, 0.0  ;;  %v1026_v36 = vmax.f32 %v824_v28, 0.0 }
 0x110   : > { %v2166_v37 = vpack.c.bf16 %v961_v31, %v960_v25  ;;  %v2198_v38 = vpack.c.bf16 %v1025_v32, %v1024_v26  ;;  %v963_v39 = vmax.f32 %v666_v33, 0.0  ;;  %v1027_v40 = vmax.f32 %v826_v34, 0.0 }
 0x112   : > { %1469 = vst.msk [vmem:[%s2672_s12 + $0x30] sm:$0xff] %vm2668_vm5, %v2166_v37  ;;  %1501 = vst.msk [vmem:[%s2672_s12 + $0x130] sm:$0xff] %vm2668_vm5, %v2198_v38  ;;  %v2167_v41 = vpack.c.bf16 %v963_v39, %v962_v35  ;;  %v2199_v42 = vpack.c.bf16 %v1027_v40, %v1026_v36  ;;  %v669_v43 = vpop.f32.mrb[16].mxu0  ;;  %v829_v44 = vpop.f32.mrb[16].mxu1 }
 0x113   : > { %v670_v45 = vadd.f32 %v669_v43, %v2654_v53  ;;  %v830_v46 = vadd.f32 %v829_v44, %v2654_v53  ;;  %v671_v47 = vpop.f32.mrb[17].mxu0  ;;  %v831_v48 = vpop.f32.mrb[17].mxu1 }
 0x114   : > { %1470 = vst.msk [vmem:[%s2672_s12 + $0x38] sm:$0xff] %vm2668_vm5, %v2167_v41  ;;  %1502 = vst.msk [vmem:[%s2672_s12 + $0x138] sm:$0xff] %vm2668_vm5, %v2199_v42  ;;  %v672_v49 = vadd.f32 %v671_v47, %v2656_v54  ;;  %v832_v50 = vadd.f32 %v831_v48, %v2656_v54  ;;  %v673_v51 = vpop.f32.mrb[18].mxu0  ;;  %v833_v52 = vpop.f32.mrb[18].mxu1 }
 0x115   : > { %v964_v55 = vmax.f32 %v670_v45, 0.0  ;;  %v1028_v56 = vmax.f32 %v830_v46, 0.0  ;;  %v674_v57 = vadd.f32 %v673_v51, %v2654_v53  ;;  %v834_v58 = vadd.f32 %v833_v52, %v2654_v53  ;;  %v675_v59 = vpop.f32.mrb[19].mxu0  ;;  %v835_v60 = vpop.f32.mrb[19].mxu1 }
 0x116   : > { %v965_v61 = vmax.f32 %v672_v49, 0.0  ;;  %v1029_v62 = vmax.f32 %v832_v50, 0.0  ;;  %v676_v63 = vadd.f32 %v675_v59, %v2656_v54  ;;  %v836_v0 = vadd.f32 %v835_v60, %v2656_v54 }
 0x117   : > { %v966_v1 = vmax.f32 %v674_v57, 0.0  ;;  %v1030_v2 = vmax.f32 %v834_v58, 0.0 }
 0x118   : > { %v2168_v3 = vpack.c.bf16 %v965_v61, %v964_v55  ;;  %v2200_v4 = vpack.c.bf16 %v1029_v62, %v1028_v56  ;;  %v967_v5 = vmax.f32 %v676_v63, 0.0  ;;  %v1031_v6 = vmax.f32 %v836_v0, 0.0 }
 0x11a   : > { %1471 = vst.msk [vmem:[%s2672_s12 + $0x40] sm:$0xff] %vm2668_vm5, %v2168_v3  ;;  %1503 = vst.msk [vmem:[%s2672_s12 + $0x140] sm:$0xff] %vm2668_vm5, %v2200_v4  ;;  %v2169_v7 = vpack.c.bf16 %v967_v5, %v966_v1  ;;  %v2201_v8 = vpack.c.bf16 %v1031_v6, %v1030_v2  ;;  %v679_v9 = vpop.f32.mrb[20].mxu0  ;;  %v839_v10 = vpop.f32.mrb[20].mxu1 }
 0x11b   : > { %v680_v12 = vadd.f32 %v679_v9, %v2654_v53  ;;  %v840_v13 = vadd.f32 %v839_v10, %v2654_v53  ;;  %v681_v14 = vpop.f32.mrb[21].mxu0  ;;  %v841_v15 = vpop.f32.mrb[21].mxu1 }
 0x11c   : > { %1472 = vst.msk [vmem:[%s2672_s12 + $0x48] sm:$0xff] %vm2668_vm5, %v2169_v7  ;;  %1504 = vst.msk [vmem:[%s2672_s12 + $0x148] sm:$0xff] %vm2668_vm5, %v2201_v8  ;;  %v682_v16 = vadd.f32 %v681_v14, %v2656_v54  ;;  %v842_v17 = vadd.f32 %v841_v15, %v2656_v54  ;;  %v683_v18 = vpop.f32.mrb[22].mxu0  ;;  %v843_v19 = vpop.f32.mrb[22].mxu1 }
 0x11d   : > { %v968_v20 = vmax.f32 %v680_v12, 0.0  ;;  %v1032_v21 = vmax.f32 %v840_v13, 0.0  ;;  %v684_v22 = vadd.f32 %v683_v18, %v2654_v53  ;;  %v844_v23 = vadd.f32 %v843_v19, %v2654_v53  ;;  %v685_v24 = vpop.f32.mrb[23].mxu0  ;;  %v845_v25 = vpop.f32.mrb[23].mxu1 }
 0x11e   : > { %v969_v26 = vmax.f32 %v682_v16, 0.0  ;;  %v1033_v27 = vmax.f32 %v842_v17, 0.0  ;;  %v686_v28 = vadd.f32 %v685_v24, %v2656_v54  ;;  %v846_v29 = vadd.f32 %v845_v25, %v2656_v54 }
 0x11f   : > { %v970_v30 = vmax.f32 %v684_v22, 0.0  ;;  %v1034_v31 = vmax.f32 %v844_v23, 0.0 }
 0x120   : > { %v2170_v32 = vpack.c.bf16 %v969_v26, %v968_v20  ;;  %v2202_v33 = vpack.c.bf16 %v1033_v27, %v1032_v21  ;;  %v971_v34 = vmax.f32 %v686_v28, 0.0  ;;  %v1035_v35 = vmax.f32 %v846_v29, 0.0 }
 0x122   : > { %1473 = vst.msk [vmem:[%s2672_s12 + $0x50] sm:$0xff] %vm2668_vm5, %v2170_v32  ;;  %1505 = vst.msk [vmem:[%s2672_s12 + $0x150] sm:$0xff] %vm2668_vm5, %v2202_v33  ;;  %v2171_v36 = vpack.c.bf16 %v971_v34, %v970_v30  ;;  %v2203_v37 = vpack.c.bf16 %v1035_v35, %v1034_v31  ;;  %v689_v38 = vpop.f32.mrb[24].mxu0  ;;  %v849_v39 = vpop.f32.mrb[24].mxu1 }
 0x123   : > { %v690_v40 = vadd.f32 %v689_v38, %v2654_v53  ;;  %v850_v41 = vadd.f32 %v849_v39, %v2654_v53  ;;  %v691_v42 = vpop.f32.mrb[25].mxu0  ;;  %v851_v43 = vpop.f32.mrb[25].mxu1 }
 0x124   : > { %1474 = vst.msk [vmem:[%s2672_s12 + $0x58] sm:$0xff] %vm2668_vm5, %v2171_v36  ;;  %1506 = vst.msk [vmem:[%s2672_s12 + $0x158] sm:$0xff] %vm2668_vm5, %v2203_v37  ;;  %v692_v44 = vadd.f32 %v691_v42, %v2656_v54  ;;  %v852_v45 = vadd.f32 %v851_v43, %v2656_v54  ;;  %v693_v46 = vpop.f32.mrb[26].mxu0  ;;  %v853_v47 = vpop.f32.mrb[26].mxu1 }
 0x125   : > { %v972_v48 = vmax.f32 %v690_v40, 0.0  ;;  %v1036_v49 = vmax.f32 %v850_v41, 0.0  ;;  %v694_v50 = vadd.f32 %v693_v46, %v2654_v53  ;;  %v854_v51 = vadd.f32 %v853_v47, %v2654_v53  ;;  %v695_v52 = vpop.f32.mrb[27].mxu0  ;;  %v855_v55 = vpop.f32.mrb[27].mxu1 }
 0x126   : > { %v973_v56 = vmax.f32 %v692_v44, 0.0  ;;  %v1037_v57 = vmax.f32 %v852_v45, 0.0  ;;  %v696_v58 = vadd.f32 %v695_v52, %v2656_v54  ;;  %v856_v59 = vadd.f32 %v855_v55, %v2656_v54 }
 0x127   : > { %v974_v60 = vmax.f32 %v694_v50, 0.0  ;;  %v1038_v61 = vmax.f32 %v854_v51, 0.0 }
 0x128   : > { %v2172_v62 = vpack.c.bf16 %v973_v56, %v972_v48  ;;  %v2204_v63 = vpack.c.bf16 %v1037_v57, %v1036_v49  ;;  %v975_v0 = vmax.f32 %v696_v58, 0.0  ;;  %v1039_v1 = vmax.f32 %v856_v59, 0.0 }
 0x12a   : > { %1475 = vst.msk [vmem:[%s2672_s12 + $0x60] sm:$0xff] %vm2668_vm5, %v2172_v62  ;;  %1507 = vst.msk [vmem:[%s2672_s12 + $0x160] sm:$0xff] %vm2668_vm5, %v2204_v63  ;;  %v2173_v2 = vpack.c.bf16 %v975_v0, %v974_v60  ;;  %v2205_v3 = vpack.c.bf16 %v1039_v1, %v1038_v61  ;;  %v699_v4 = vpop.f32.mrb[28].mxu0  ;;  %v859_v5 = vpop.f32.mrb[28].mxu1 }
 0x12b   : > { %v700_v6 = vadd.f32 %v699_v4, %v2654_v53  ;;  %v860_v7 = vadd.f32 %v859_v5, %v2654_v53  ;;  %v701_v8 = vpop.f32.mrb[29].mxu0  ;;  %v861_v9 = vpop.f32.mrb[29].mxu1 }
 0x12c   : > { %1476 = vst.msk [vmem:[%s2672_s12 + $0x68] sm:$0xff] %vm2668_vm5, %v2173_v2  ;;  %1508 = vst.msk [vmem:[%s2672_s12 + $0x168] sm:$0xff] %vm2668_vm5, %v2205_v3  ;;  %v702_v10 = vadd.f32 %v701_v8, %v2656_v54  ;;  %v862_v12 = vadd.f32 %v861_v9, %v2656_v54  ;;  %v703_v13 = vpop.f32.mrb[30].mxu0  ;;  %v863_v14 = vpop.f32.mrb[30].mxu1 }
 0x12d   : > { %v976_v15 = vmax.f32 %v700_v6, 0.0  ;;  %v1040_v16 = vmax.f32 %v860_v7, 0.0  ;;  %v704_v17 = vadd.f32 %v703_v13, %v2654_v53  ;;  %v864_v18 = vadd.f32 %v863_v14, %v2654_v53  ;;  %v705_v19 = vpop.f32.mrb[31].mxu0  ;;  %v865_v20 = vpop.f32.mrb[31].mxu1 }
 0x12e   : > { %v977_v21 = vmax.f32 %v702_v10, 0.0  ;;  %v1041_v22 = vmax.f32 %v862_v12, 0.0  ;;  %v706_v23 = vadd.f32 %v705_v19, %v2656_v54  ;;  %v866_v24 = vadd.f32 %v865_v20, %v2656_v54 }
 0x12f   : > { %v978_v25 = vmax.f32 %v704_v17, 0.0  ;;  %v1042_v26 = vmax.f32 %v864_v18, 0.0 }
 0x130   : > { %v2174_v27 = vpack.c.bf16 %v977_v21, %v976_v15  ;;  %v2206_v28 = vpack.c.bf16 %v1041_v22, %v1040_v16  ;;  %v979_v29 = vmax.f32 %v706_v23, 0.0  ;;  %v1043_v30 = vmax.f32 %v866_v24, 0.0 }
 0x132   : > { %1477 = vst.msk [vmem:[%s2672_s12 + $0x70] sm:$0xff] %vm2668_vm5, %v2174_v27  ;;  %1509 = vst.msk [vmem:[%s2672_s12 + $0x170] sm:$0xff] %vm2668_vm5, %v2206_v28  ;;  %v2175_v31 = vpack.c.bf16 %v979_v29, %v978_v25  ;;  %v2207_v32 = vpack.c.bf16 %v1043_v30, %v1042_v26  ;;  %v709_v33 = vpop.f32.mrb[32].mxu0  ;;  %v869_v34 = vpop.f32.mrb[32].mxu1 }
 0x133   : > { %v710_v35 = vadd.f32 %v709_v33, %v2654_v53  ;;  %v870_v36 = vadd.f32 %v869_v34, %v2654_v53  ;;  %v711_v37 = vpop.f32.mrb[33].mxu0  ;;  %v871_v38 = vpop.f32.mrb[33].mxu1 }
 0x134   : > { %1478 = vst.msk [vmem:[%s2672_s12 + $0x78] sm:$0xff] %vm2668_vm5, %v2175_v31  ;;  %1510 = vst.msk [vmem:[%s2672_s12 + $0x178] sm:$0xff] %vm2668_vm5, %v2207_v32  ;;  %v712_v39 = vadd.f32 %v711_v37, %v2656_v54  ;;  %v872_v40 = vadd.f32 %v871_v38, %v2656_v54  ;;  %v713_v41 = vpop.f32.mrb[34].mxu0  ;;  %v873_v42 = vpop.f32.mrb[34].mxu1 }
 0x135   : > { %v980_v43 = vmax.f32 %v710_v35, 0.0  ;;  %v1044_v44 = vmax.f32 %v870_v36, 0.0  ;;  %v714_v45 = vadd.f32 %v713_v41, %v2654_v53  ;;  %v874_v46 = vadd.f32 %v873_v42, %v2654_v53  ;;  %v715_v47 = vpop.f32.mrb[35].mxu0  ;;  %v875_v48 = vpop.f32.mrb[35].mxu1 }
 0x136   : > { %v981_v49 = vmax.f32 %v712_v39, 0.0  ;;  %v1045_v50 = vmax.f32 %v872_v40, 0.0  ;;  %v716_v51 = vadd.f32 %v715_v47, %v2656_v54  ;;  %v876_v52 = vadd.f32 %v875_v48, %v2656_v54 }
 0x137   : > { %v982_v55 = vmax.f32 %v714_v45, 0.0  ;;  %v1046_v56 = vmax.f32 %v874_v46, 0.0 }
 0x138   : > { %v2176_v57 = vpack.c.bf16 %v981_v49, %v980_v43  ;;  %v2208_v58 = vpack.c.bf16 %v1045_v50, %v1044_v44  ;;  %v983_v59 = vmax.f32 %v716_v51, 0.0  ;;  %v1047_v60 = vmax.f32 %v876_v52, 0.0 }
 0x13a   : > { %1479 = vst.msk [vmem:[%s2672_s12 + $0x80] sm:$0xff] %vm2668_vm5, %v2176_v57  ;;  %1511 = vst.msk [vmem:[%s2672_s12 + $0x180] sm:$0xff] %vm2668_vm5, %v2208_v58  ;;  %v2177_v61 = vpack.c.bf16 %v983_v59, %v982_v55  ;;  %v2209_v62 = vpack.c.bf16 %v1047_v60, %v1046_v56  ;;  %v719_v63 = vpop.f32.mrb[36].mxu0  ;;  %v879_v0 = vpop.f32.mrb[36].mxu1 }
 0x13b   : > { %v720_v1 = vadd.f32 %v719_v63, %v2654_v53  ;;  %v880_v2 = vadd.f32 %v879_v0, %v2654_v53  ;;  %v721_v3 = vpop.f32.mrb[37].mxu0  ;;  %v881_v4 = vpop.f32.mrb[37].mxu1 }
 0x13c   : > { %1480 = vst.msk [vmem:[%s2672_s12 + $0x88] sm:$0xff] %vm2668_vm5, %v2177_v61  ;;  %1512 = vst.msk [vmem:[%s2672_s12 + $0x188] sm:$0xff] %vm2668_vm5, %v2209_v62  ;;  %v722_v5 = vadd.f32 %v721_v3, %v2656_v54  ;;  %v882_v6 = vadd.f32 %v881_v4, %v2656_v54  ;;  %v723_v7 = vpop.f32.mrb[38].mxu0  ;;  %v883_v8 = vpop.f32.mrb[38].mxu1 }
 0x13d   : > { %v984_v9 = vmax.f32 %v720_v1, 0.0  ;;  %v1048_v10 = vmax.f32 %v880_v2, 0.0  ;;  %v724_v12 = vadd.f32 %v723_v7, %v2654_v53  ;;  %v884_v13 = vadd.f32 %v883_v8, %v2654_v53  ;;  %v725_v14 = vpop.f32.mrb[39].mxu0  ;;  %v885_v15 = vpop.f32.mrb[39].mxu1 }
 0x13e   : > { %v985_v16 = vmax.f32 %v722_v5, 0.0  ;;  %v1049_v17 = vmax.f32 %v882_v6, 0.0  ;;  %v726_v18 = vadd.f32 %v725_v14, %v2656_v54  ;;  %v886_v19 = vadd.f32 %v885_v15, %v2656_v54 }
 0x13f   : > { %v986_v20 = vmax.f32 %v724_v12, 0.0  ;;  %v1050_v21 = vmax.f32 %v884_v13, 0.0 }
 0x140   : > { %v2178_v22 = vpack.c.bf16 %v985_v16, %v984_v9  ;;  %v2210_v23 = vpack.c.bf16 %v1049_v17, %v1048_v10  ;;  %v987_v24 = vmax.f32 %v726_v18, 0.0  ;;  %v1051_v25 = vmax.f32 %v886_v19, 0.0 }
 0x142   : > { %1481 = vst.msk [vmem:[%s2672_s12 + $0x90] sm:$0xff] %vm2668_vm5, %v2178_v22  ;;  %1513 = vst.msk [vmem:[%s2672_s12 + $0x190] sm:$0xff] %vm2668_vm5, %v2210_v23  ;;  %v2179_v26 = vpack.c.bf16 %v987_v24, %v986_v20  ;;  %v2211_v27 = vpack.c.bf16 %v1051_v25, %v1050_v21  ;;  %v729_v28 = vpop.f32.mrb[40].mxu0  ;;  %v889_v29 = vpop.f32.mrb[40].mxu1 }
 0x143   : > { %v730_v30 = vadd.f32 %v729_v28, %v2654_v53  ;;  %v890_v31 = vadd.f32 %v889_v29, %v2654_v53  ;;  %v731_v32 = vpop.f32.mrb[41].mxu0  ;;  %v891_v33 = vpop.f32.mrb[41].mxu1 }
 0x144   : > { %1482 = vst.msk [vmem:[%s2672_s12 + $0x98] sm:$0xff] %vm2668_vm5, %v2179_v26  ;;  %1514 = vst.msk [vmem:[%s2672_s12 + $0x198] sm:$0xff] %vm2668_vm5, %v2211_v27  ;;  %v732_v34 = vadd.f32 %v731_v32, %v2656_v54  ;;  %v892_v35 = vadd.f32 %v891_v33, %v2656_v54  ;;  %v733_v36 = vpop.f32.mrb[42].mxu0  ;;  %v893_v37 = vpop.f32.mrb[42].mxu1 }
 0x145   : > { %v988_v38 = vmax.f32 %v730_v30, 0.0  ;;  %v1052_v39 = vmax.f32 %v890_v31, 0.0  ;;  %v734_v40 = vadd.f32 %v733_v36, %v2654_v53  ;;  %v894_v41 = vadd.f32 %v893_v37, %v2654_v53  ;;  %v735_v42 = vpop.f32.mrb[43].mxu0  ;;  %v895_v43 = vpop.f32.mrb[43].mxu1 }
 0x146   : > { %v989_v44 = vmax.f32 %v732_v34, 0.0  ;;  %v1053_v45 = vmax.f32 %v892_v35, 0.0  ;;  %v736_v46 = vadd.f32 %v735_v42, %v2656_v54  ;;  %v896_v47 = vadd.f32 %v895_v43, %v2656_v54 }
 0x147   : > { %v990_v48 = vmax.f32 %v734_v40, 0.0  ;;  %v1054_v49 = vmax.f32 %v894_v41, 0.0 }
 0x148   : > { %v2180_v50 = vpack.c.bf16 %v989_v44, %v988_v38  ;;  %v2212_v51 = vpack.c.bf16 %v1053_v45, %v1052_v39  ;;  %v991_v52 = vmax.f32 %v736_v46, 0.0  ;;  %v1055_v55 = vmax.f32 %v896_v47, 0.0 }
 0x14a   : > { %1483 = vst.msk [vmem:[%s2672_s12 + $0xa0] sm:$0xff] %vm2668_vm5, %v2180_v50  ;;  %1515 = vst.msk [vmem:[%s2672_s12 + $0x1a0] sm:$0xff] %vm2668_vm5, %v2212_v51  ;;  %v2181_v56 = vpack.c.bf16 %v991_v52, %v990_v48  ;;  %v2213_v57 = vpack.c.bf16 %v1055_v55, %v1054_v49  ;;  %v739_v58 = vpop.f32.mrb[44].mxu0  ;;  %v899_v59 = vpop.f32.mrb[44].mxu1 }
 0x14b   : > { %v740_v60 = vadd.f32 %v739_v58, %v2654_v53  ;;  %v900_v61 = vadd.f32 %v899_v59, %v2654_v53  ;;  %v741_v62 = vpop.f32.mrb[45].mxu0  ;;  %v901_v63 = vpop.f32.mrb[45].mxu1 }
 0x14c   : > { %1484 = vst.msk [vmem:[%s2672_s12 + $0xa8] sm:$0xff] %vm2668_vm5, %v2181_v56  ;;  %1516 = vst.msk [vmem:[%s2672_s12 + $0x1a8] sm:$0xff] %vm2668_vm5, %v2213_v57  ;;  %v742_v0 = vadd.f32 %v741_v62, %v2656_v54  ;;  %v902_v1 = vadd.f32 %v901_v63, %v2656_v54  ;;  %v743_v2 = vpop.f32.mrb[46].mxu0  ;;  %v903_v3 = vpop.f32.mrb[46].mxu1 }
 0x14d   : > { %v992_v4 = vmax.f32 %v740_v60, 0.0  ;;  %v1056_v5 = vmax.f32 %v900_v61, 0.0  ;;  %v744_v6 = vadd.f32 %v743_v2, %v2654_v53  ;;  %v904_v7 = vadd.f32 %v903_v3, %v2654_v53  ;;  %v745_v8 = vpop.f32.mrb[47].mxu0  ;;  %v905_v9 = vpop.f32.mrb[47].mxu1 }
 0x14e   : > { %v993_v10 = vmax.f32 %v742_v0, 0.0  ;;  %v1057_v12 = vmax.f32 %v902_v1, 0.0  ;;  %v746_v13 = vadd.f32 %v745_v8, %v2656_v54  ;;  %v906_v14 = vadd.f32 %v905_v9, %v2656_v54 }
 0x14f   : > { %v994_v15 = vmax.f32 %v744_v6, 0.0  ;;  %v1058_v16 = vmax.f32 %v904_v7, 0.0 }
 0x150   : > { %v2182_v17 = vpack.c.bf16 %v993_v10, %v992_v4  ;;  %v2214_v18 = vpack.c.bf16 %v1057_v12, %v1056_v5  ;;  %v995_v19 = vmax.f32 %v746_v13, 0.0  ;;  %v1059_v20 = vmax.f32 %v906_v14, 0.0 }
 0x152   : > { %1485 = vst.msk [vmem:[%s2672_s12 + $0xb0] sm:$0xff] %vm2668_vm5, %v2182_v17  ;;  %1517 = vst.msk [vmem:[%s2672_s12 + $0x1b0] sm:$0xff] %vm2668_vm5, %v2214_v18  ;;  %v2183_v21 = vpack.c.bf16 %v995_v19, %v994_v15  ;;  %v2215_v22 = vpack.c.bf16 %v1059_v20, %v1058_v16  ;;  %v749_v23 = vpop.f32.mrb[48].mxu0  ;;  %v909_v24 = vpop.f32.mrb[48].mxu1 }
 0x153   : > { %v750_v25 = vadd.f32 %v749_v23, %v2654_v53  ;;  %v910_v26 = vadd.f32 %v909_v24, %v2654_v53  ;;  %v751_v27 = vpop.f32.mrb[49].mxu0  ;;  %v911_v28 = vpop.f32.mrb[49].mxu1 }
 0x154   : > { %1486 = vst.msk [vmem:[%s2672_s12 + $0xb8] sm:$0xff] %vm2668_vm5, %v2183_v21  ;;  %1518 = vst.msk [vmem:[%s2672_s12 + $0x1b8] sm:$0xff] %vm2668_vm5, %v2215_v22  ;;  %v752_v29 = vadd.f32 %v751_v27, %v2656_v54  ;;  %v912_v30 = vadd.f32 %v911_v28, %v2656_v54  ;;  %v753_v31 = vpop.f32.mrb[50].mxu0  ;;  %v913_v32 = vpop.f32.mrb[50].mxu1 }
 0x155   : > { %v996_v33 = vmax.f32 %v750_v25, 0.0  ;;  %v1060_v34 = vmax.f32 %v910_v26, 0.0  ;;  %v754_v35 = vadd.f32 %v753_v31, %v2654_v53  ;;  %v914_v36 = vadd.f32 %v913_v32, %v2654_v53  ;;  %v755_v37 = vpop.f32.mrb[51].mxu0  ;;  %v915_v38 = vpop.f32.mrb[51].mxu1 }
 0x156   : > { %v997_v39 = vmax.f32 %v752_v29, 0.0  ;;  %v1061_v40 = vmax.f32 %v912_v30, 0.0  ;;  %v756_v41 = vadd.f32 %v755_v37, %v2656_v54  ;;  %v916_v42 = vadd.f32 %v915_v38, %v2656_v54 }
 0x157   : > { %v998_v43 = vmax.f32 %v754_v35, 0.0  ;;  %v1062_v44 = vmax.f32 %v914_v36, 0.0 }
 0x158   : > { %v2184_v45 = vpack.c.bf16 %v997_v39, %v996_v33  ;;  %v2216_v46 = vpack.c.bf16 %v1061_v40, %v1060_v34  ;;  %v999_v47 = vmax.f32 %v756_v41, 0.0  ;;  %v1063_v48 = vmax.f32 %v916_v42, 0.0 }
 0x15a   : > { %1487 = vst.msk [vmem:[%s2672_s12 + $0xc0] sm:$0xff] %vm2668_vm5, %v2184_v45  ;;  %1519 = vst.msk [vmem:[%s2672_s12 + $0x1c0] sm:$0xff] %vm2668_vm5, %v2216_v46  ;;  %v2185_v49 = vpack.c.bf16 %v999_v47, %v998_v43  ;;  %v2217_v50 = vpack.c.bf16 %v1063_v48, %v1062_v44  ;;  %v759_v51 = vpop.f32.mrb[52].mxu0  ;;  %v919_v52 = vpop.f32.mrb[52].mxu1 }
 0x15b   : > { %v760_v55 = vadd.f32 %v759_v51, %v2654_v53  ;;  %v920_v56 = vadd.f32 %v919_v52, %v2654_v53  ;;  %v761_v57 = vpop.f32.mrb[53].mxu0  ;;  %v921_v58 = vpop.f32.mrb[53].mxu1 }
 0x15c   : > { %1488 = vst.msk [vmem:[%s2672_s12 + $0xc8] sm:$0xff] %vm2668_vm5, %v2185_v49  ;;  %1520 = vst.msk [vmem:[%s2672_s12 + $0x1c8] sm:$0xff] %vm2668_vm5, %v2217_v50  ;;  %v762_v59 = vadd.f32 %v761_v57, %v2656_v54  ;;  %v922_v60 = vadd.f32 %v921_v58, %v2656_v54  ;;  %v763_v61 = vpop.f32.mrb[54].mxu0  ;;  %v923_v62 = vpop.f32.mrb[54].mxu1 }
 0x15d   : > { %v1000_v63 = vmax.f32 %v760_v55, 0.0  ;;  %v1064_v0 = vmax.f32 %v920_v56, 0.0  ;;  %v764_v1 = vadd.f32 %v763_v61, %v2654_v53  ;;  %v924_v2 = vadd.f32 %v923_v62, %v2654_v53  ;;  %v765_v3 = vpop.f32.mrb[55].mxu0  ;;  %v925_v4 = vpop.f32.mrb[55].mxu1 }
 0x15e   : > { %v1001_v5 = vmax.f32 %v762_v59, 0.0  ;;  %v1065_v6 = vmax.f32 %v922_v60, 0.0  ;;  %v766_v7 = vadd.f32 %v765_v3, %v2656_v54  ;;  %v926_v8 = vadd.f32 %v925_v4, %v2656_v54 }
 0x15f   : > { %v1002_v9 = vmax.f32 %v764_v1, 0.0  ;;  %v1066_v10 = vmax.f32 %v924_v2, 0.0 }
 0x160   : > { %v2186_v12 = vpack.c.bf16 %v1001_v5, %v1000_v63  ;;  %v2218_v13 = vpack.c.bf16 %v1065_v6, %v1064_v0  ;;  %v1003_v14 = vmax.f32 %v766_v7, 0.0  ;;  %v1067_v15 = vmax.f32 %v926_v8, 0.0 }
 0x162   : > { %1489 = vst.msk [vmem:[%s2672_s12 + $0xd0] sm:$0xff] %vm2668_vm5, %v2186_v12  ;;  %1521 = vst.msk [vmem:[%s2672_s12 + $0x1d0] sm:$0xff] %vm2668_vm5, %v2218_v13  ;;  %v2187_v16 = vpack.c.bf16 %v1003_v14, %v1002_v9  ;;  %v2219_v17 = vpack.c.bf16 %v1067_v15, %v1066_v10  ;;  %v769_v18 = vpop.f32.mrb[56].mxu0  ;;  %v929_v19 = vpop.f32.mrb[56].mxu1 }
 0x163   : > { %v770_v20 = vadd.f32 %v769_v18, %v2654_v53  ;;  %v930_v21 = vadd.f32 %v929_v19, %v2654_v53  ;;  %v771_v22 = vpop.f32.mrb[57].mxu0  ;;  %v931_v23 = vpop.f32.mrb[57].mxu1 }
 0x164   : > { %1490 = vst.msk [vmem:[%s2672_s12 + $0xd8] sm:$0xff] %vm2668_vm5, %v2187_v16  ;;  %1522 = vst.msk [vmem:[%s2672_s12 + $0x1d8] sm:$0xff] %vm2668_vm5, %v2219_v17  ;;  %v772_v24 = vadd.f32 %v771_v22, %v2656_v54  ;;  %v932_v25 = vadd.f32 %v931_v23, %v2656_v54  ;;  %v773_v26 = vpop.f32.mrb[58].mxu0  ;;  %v933_v27 = vpop.f32.mrb[58].mxu1 }
 0x165   : > { %v1004_v28 = vmax.f32 %v770_v20, 0.0  ;;  %v1068_v29 = vmax.f32 %v930_v21, 0.0  ;;  %v774_v30 = vadd.f32 %v773_v26, %v2654_v53  ;;  %v934_v31 = vadd.f32 %v933_v27, %v2654_v53  ;;  %v775_v32 = vpop.f32.mrb[59].mxu0  ;;  %v935_v33 = vpop.f32.mrb[59].mxu1 }
 0x166   : > { %v1005_v34 = vmax.f32 %v772_v24, 0.0  ;;  %v1069_v35 = vmax.f32 %v932_v25, 0.0  ;;  %v776_v36 = vadd.f32 %v775_v32, %v2656_v54  ;;  %v936_v37 = vadd.f32 %v935_v33, %v2656_v54 }
 0x167   : > { %v1006_v38 = vmax.f32 %v774_v30, 0.0  ;;  %v1070_v39 = vmax.f32 %v934_v31, 0.0 }
 0x168   : > { %v2188_v40 = vpack.c.bf16 %v1005_v34, %v1004_v28  ;;  %v2220_v41 = vpack.c.bf16 %v1069_v35, %v1068_v29  ;;  %v1007_v42 = vmax.f32 %v776_v36, 0.0  ;;  %v1071_v43 = vmax.f32 %v936_v37, 0.0 }
 0x16a   : > { %1491 = vst.msk [vmem:[%s2672_s12 + $0xe0] sm:$0xff] %vm2668_vm5, %v2188_v40  ;;  %1523 = vst.msk [vmem:[%s2672_s12 + $0x1e0] sm:$0xff] %vm2668_vm5, %v2220_v41  ;;  %v2189_v44 = vpack.c.bf16 %v1007_v42, %v1006_v38  ;;  %v2221_v45 = vpack.c.bf16 %v1071_v43, %v1070_v39  ;;  %v779_v46 = vpop.f32.mrb[60].mxu0  ;;  %v939_v47 = vpop.f32.mrb[60].mxu1 }
 0x16b   : > { %v780_v48 = vadd.f32 %v779_v46, %v2654_v53  ;;  %v940_v49 = vadd.f32 %v939_v47, %v2654_v53  ;;  %v781_v50 = vpop.f32.mrb[61].mxu0  ;;  %v941_v51 = vpop.f32.mrb[61].mxu1 }
 0x16c   : > { %1492 = vst.msk [vmem:[%s2672_s12 + $0xe8] sm:$0xff] %vm2668_vm5, %v2189_v44  ;;  %1524 = vst.msk [vmem:[%s2672_s12 + $0x1e8] sm:$0xff] %vm2668_vm5, %v2221_v45  ;;  %v782_v52 = vadd.f32 %v781_v50, %v2656_v54  ;;  %v942_v55 = vadd.f32 %v941_v51, %v2656_v54  ;;  %v783_v56 = vpop.f32.mrb[62].mxu0  ;;  %v943_v57 = vpop.f32.mrb[62].mxu1 }
 0x16d   : > { %v1008_v58 = vmax.f32 %v780_v48, 0.0  ;;  %v1072_v59 = vmax.f32 %v940_v49, 0.0  ;;  %v784_v60 = vadd.f32 %v783_v56, %v2654_v53  ;;  %v944_v61 = vadd.f32 %v943_v57, %v2654_v53  ;;  %v785_v62 = vpop.f32.mrb[63].mxu0  ;;  %v945_v63 = vpop.f32.mrb[63].mxu1 }
 0x16e   : > { %v1009_v0 = vmax.f32 %v782_v52, 0.0  ;;  %v1073_v1 = vmax.f32 %v942_v55, 0.0  ;;  %v786_v2 = vadd.f32 %v785_v62, %v2656_v54  ;;  %v946_v3 = vadd.f32 %v945_v63, %v2656_v54  ;;  %1533 = sbr.rel (!%p2511_p4) target bundleno = 445 (0x1bd), region = 36 }
 0x16f   : > { %v1010_v4 = vmax.f32 %v784_v60, 0.0  ;;  %v1074_v5 = vmax.f32 %v944_v61, 0.0 }
 0x170   : > { %v2190_v6 = vpack.c.bf16 %v1009_v0, %v1008_v58  ;;  %v2222_v7 = vpack.c.bf16 %v1073_v1, %v1072_v59  ;;  %v1011_v8 = vmax.f32 %v786_v2, 0.0  ;;  %v1075_v9 = vmax.f32 %v946_v3, 0.0 }
 0x172   : > { %1493 = vst.msk [vmem:[%s2672_s12 + $0xf0] sm:$0xff] %vm2668_vm5, %v2190_v6  ;;  %1525 = vst.msk [vmem:[%s2672_s12 + $0x1f0] sm:$0xff] %vm2668_vm5, %v2222_v7  ;;  %v2191_v53 = vpack.c.bf16 %v1011_v8, %v1010_v4  ;;  %v2223_v10 = vpack.c.bf16 %v1075_v9, %v1074_v5 }
 0x174   : > { %1494 = vst.msk [vmem:[%s2672_s12 + $0xf8] sm:$0xff] %vm2668_vm5, %v2191_v53  ;;  %1526 = vst.msk [vmem:[%s2672_s12 + $0x1f8] sm:$0xff] %vm2668_vm5, %v2223_v10 }
 0x175   : > { %s3208_s30 = smov (!%p1536_p8, %s1535_s30), 64 }
 0x176   : > { %s2224_s9 = sshll.u32 %s3208_s30, 7 }
 0x177   : > { %p2148_p9 = scmp.eq.s32.totalorder %s2224_s9, 0 }
 0x178   : > { %s2999_s10 = sshrl.u32 (!%p2148_p9), %s3208_s30, 6 }
 0x179   : > { %1546 = sbr.rel (%p2148_p9) target bundleno = 445 (0x1bd), region = 40  ;;  %p2149_p10 = scmp.le.s32.totalorder (!%p2148_p9), %s2999_s10, 0 }
 0x180   : > { %1952 = sbr.rel (%p2149_p10) target bundleno = 424 (0x1a8), region = 116  ;;  %s3199_s15 = smov (!%p2149_p10), %s2993_s8 }
 0x181   : > { %s3200_s20 = smov (!%p2149_p10), %s2672_s12  ;;  %s3008_s4 = smov (!%p2149_p10), 0  }
 0x182   : > { %s3010_s11 = smov (!%p2149_p10), 0  }
 0x187 LB: >> { %v1734_v54 = vld [vmem:[%s2438_s20] sm:$0xff]  ;;  %v1736_v11 = vld [vmem:[%s2438_s20 + $0x8] sm:$0xff]  ;;  %v1738_v12 = vld [vmem:[%s2438_s20 + $0x10] sm:$0xff]  ;;  %s1862_s14 = sadd.s32 1, %s2442_s4  ;;  %s1728_s11 = sadd.s32 1, %s2446_s11   ;;  %s2446_s11 = sphi %s3010_s11, %s1728_s11   ;;  %s2442_s4 = sphi %s3008_s4, %s3203_s4   ;;  %s2438_s20 = sphi %s3200_s20, %s3202_s20   ;;  %s2434_s15 = sphi %s3199_s15, %s3201_s15  }
 0x188   : >> { %1735 = vst [vmem:[%s2434_s15] sm:$0xff] %v1734_v54  ;;  %1737 = vst [vmem:[%s2434_s15 + $0x8] sm:$0xff] %v1736_v11  ;;  %v1740_v13 = vld [vmem:[%s2438_s20 + $0x18] sm:$0xff]  ;;  %v1742_v14 = vld [vmem:[%s2438_s20 + $0x20] sm:$0xff]  ;;  %p1863_p11 = scmp.ge.s32.totalorder %s1862_s14, %s2999_s10  ;;  %p1727_p12 = scmp.ge.s32.totalorder %s1728_s11, %s2999_s10 }
 0x189   : >> { %1739 = vst [vmem:[%s2434_s15 + $0x10] sm:$0xff] %v1738_v12  ;;  %v1744_v15 = vld [vmem:[%s2438_s20 + $0x28] sm:$0xff]  ;;  %1741 = vst [vmem:[%s2434_s15 + $0x18] sm:$0xff] %v1740_v13  ;;  %v1746_v16 = vld [vmem:[%s2438_s20 + $0x30] sm:$0xff] }
 0x18a   : >> { %1743 = vst [vmem:[%s2434_s15 + $0x20] sm:$0xff] %v1742_v14  ;;  %1745 = vst [vmem:[%s2434_s15 + $0x28] sm:$0xff] %v1744_v15  ;;  %v1748_v17 = vld [vmem:[%s2438_s20 + $0x38] sm:$0xff]  ;;  %v1750_v18 = vld [vmem:[%s2438_s20 + $0x40] sm:$0xff]  ;;  %s3210_s14 = smov (%p1863_p11, %s1862_s14), 0 }
 0x18b   : >> { %1747 = vst [vmem:[%s2434_s15 + $0x30] sm:$0xff] %v1746_v16  ;;  %1749 = vst [vmem:[%s2434_s15 + $0x38] sm:$0xff] %v1748_v17  ;;  %v1752_v19 = vld [vmem:[%s2438_s20 + $0x48] sm:$0xff]  ;;  %v1754_v20 = vld [vmem:[%s2438_s20 + $0x50] sm:$0xff]  ;;  %s2150_s17 = sshll.u32 %s3210_s14, 9  ;;  %s3203_s4 = smov %s3210_s14 }
 0x18c   : >> { %1751 = vst [vmem:[%s2434_s15 + $0x40] sm:$0xff] %v1750_v18  ;;  %v1756_v21 = vld [vmem:[%s2438_s20 + $0x58] sm:$0xff]  ;;  %1753 = vst [vmem:[%s2434_s15 + $0x48] sm:$0xff] %v1752_v19  ;;  %v1758_v22 = vld [vmem:[%s2438_s20 + $0x60] sm:$0xff]  ;;  %s3066_s18 = scalar_lea.vmem %s2672_s12, %s2150_s17 [#allocation2]   ;;  %s3069_s21 = scalar_lea.vmem %s2993_s8, %s2150_s17  }
 0x18d   : >> { %1755 = vst [vmem:[%s2434_s15 + $0x50] sm:$0xff] %v1754_v20  ;;  %1757 = vst [vmem:[%s2434_s15 + $0x58] sm:$0xff] %v1756_v21  ;;  %v1760_v23 = vld [vmem:[%s2438_s20 + $0x68] sm:$0xff]  ;;  %v1762_v24 = vld [vmem:[%s2438_s20 + $0x70] sm:$0xff] }
 0x18e   : >> { %1759 = vst [vmem:[%s2434_s15 + $0x60] sm:$0xff] %v1758_v22  ;;  %1761 = vst [vmem:[%s2434_s15 + $0x68] sm:$0xff] %v1760_v23  ;;  %v1764_v25 = vld [vmem:[%s2438_s20 + $0x78] sm:$0xff]  ;;  %v1766_v26 = vld [vmem:[%s2438_s20 + $0x80] sm:$0xff] }
 0x18f   : >> { %1763 = vst [vmem:[%s2434_s15 + $0x70] sm:$0xff] %v1762_v24  ;;  %v1768_v27 = vld [vmem:[%s2438_s20 + $0x88] sm:$0xff]  ;;  %1765 = vst [vmem:[%s2434_s15 + $0x78] sm:$0xff] %v1764_v25  ;;  %v1770_v28 = vld [vmem:[%s2438_s20 + $0x90] sm:$0xff] }
 0x190   : >> { %1767 = vst [vmem:[%s2434_s15 + $0x80] sm:$0xff] %v1766_v26  ;;  %1769 = vst [vmem:[%s2434_s15 + $0x88] sm:$0xff] %v1768_v27  ;;  %v1772_v29 = vld [vmem:[%s2438_s20 + $0x98] sm:$0xff]  ;;  %v1774_v30 = vld [vmem:[%s2438_s20 + $0xa0] sm:$0xff] }
 0x191   : >> { %1771 = vst [vmem:[%s2434_s15 + $0x90] sm:$0xff] %v1770_v28  ;;  %1773 = vst [vmem:[%s2434_s15 + $0x98] sm:$0xff] %v1772_v29  ;;  %v1776_v31 = vld [vmem:[%s2438_s20 + $0xa8] sm:$0xff]  ;;  %v1778_v32 = vld [vmem:[%s2438_s20 + $0xb0] sm:$0xff] }
 0x192   : >> { %1775 = vst [vmem:[%s2434_s15 + $0xa0] sm:$0xff] %v1774_v30  ;;  %v1780_v33 = vld [vmem:[%s2438_s20 + $0xb8] sm:$0xff]  ;;  %1777 = vst [vmem:[%s2434_s15 + $0xa8] sm:$0xff] %v1776_v31  ;;  %v1782_v34 = vld [vmem:[%s2438_s20 + $0xc0] sm:$0xff] }
 0x193   : >> { %1779 = vst [vmem:[%s2434_s15 + $0xb0] sm:$0xff] %v1778_v32  ;;  %1781 = vst [vmem:[%s2434_s15 + $0xb8] sm:$0xff] %v1780_v33  ;;  %v1784_v35 = vld [vmem:[%s2438_s20 + $0xc8] sm:$0xff]  ;;  %v1786_v36 = vld [vmem:[%s2438_s20 + $0xd0] sm:$0xff] }
 0x194   : >> { %1783 = vst [vmem:[%s2434_s15 + $0xc0] sm:$0xff] %v1782_v34  ;;  %1785 = vst [vmem:[%s2434_s15 + $0xc8] sm:$0xff] %v1784_v35  ;;  %v1788_v37 = vld [vmem:[%s2438_s20 + $0xd8] sm:$0xff]  ;;  %v1790_v38 = vld [vmem:[%s2438_s20 + $0xe0] sm:$0xff] }
 0x195   : >> { %1787 = vst [vmem:[%s2434_s15 + $0xd0] sm:$0xff] %v1786_v36  ;;  %v1792_v39 = vld [vmem:[%s2438_s20 + $0xe8] sm:$0xff]  ;;  %1789 = vst [vmem:[%s2434_s15 + $0xd8] sm:$0xff] %v1788_v37  ;;  %v1794_v40 = vld [vmem:[%s2438_s20 + $0xf0] sm:$0xff] }
 0x196   : >> { %1791 = vst [vmem:[%s2434_s15 + $0xe0] sm:$0xff] %v1790_v38  ;;  %1793 = vst [vmem:[%s2434_s15 + $0xe8] sm:$0xff] %v1792_v39  ;;  %v1796_v41 = vld [vmem:[%s2438_s20 + $0xf8] sm:$0xff]  ;;  %v1798_v42 = vld [vmem:[%s2438_s20 + $0x100] sm:$0xff] }
 0x197   : >> { %1795 = vst [vmem:[%s2434_s15 + $0xf0] sm:$0xff] %v1794_v40  ;;  %1797 = vst [vmem:[%s2434_s15 + $0xf8] sm:$0xff] %v1796_v41  ;;  %v1800_v43 = vld [vmem:[%s2438_s20 + $0x108] sm:$0xff]  ;;  %v1802_v44 = vld [vmem:[%s2438_s20 + $0x110] sm:$0xff] }
 0x198   : >> { %1799 = vst [vmem:[%s2434_s15 + $0x100] sm:$0xff] %v1798_v42  ;;  %v1804_v45 = vld [vmem:[%s2438_s20 + $0x118] sm:$0xff]  ;;  %1801 = vst [vmem:[%s2434_s15 + $0x108] sm:$0xff] %v1800_v43  ;;  %v1806_v46 = vld [vmem:[%s2438_s20 + $0x120] sm:$0xff] }
 0x199   : >> { %1803 = vst [vmem:[%s2434_s15 + $0x110] sm:$0xff] %v1802_v44  ;;  %1805 = vst [vmem:[%s2434_s15 + $0x118] sm:$0xff] %v1804_v45  ;;  %v1808_v47 = vld [vmem:[%s2438_s20 + $0x128] sm:$0xff]  ;;  %v1810_v48 = vld [vmem:[%s2438_s20 + $0x130] sm:$0xff] }
 0x19a   : >> { %1807 = vst [vmem:[%s2434_s15 + $0x120] sm:$0xff] %v1806_v46  ;;  %1809 = vst [vmem:[%s2434_s15 + $0x128] sm:$0xff] %v1808_v47  ;;  %v1812_v49 = vld [vmem:[%s2438_s20 + $0x138] sm:$0xff]  ;;  %v1814_v50 = vld [vmem:[%s2438_s20 + $0x140] sm:$0xff] }
 0x19b   : >> { %1811 = vst [vmem:[%s2434_s15 + $0x130] sm:$0xff] %v1810_v48  ;;  %v1816_v51 = vld [vmem:[%s2438_s20 + $0x148] sm:$0xff]  ;;  %1813 = vst [vmem:[%s2434_s15 + $0x138] sm:$0xff] %v1812_v49  ;;  %v1818_v52 = vld [vmem:[%s2438_s20 + $0x150] sm:$0xff] }
 0x19c   : >> { %1815 = vst [vmem:[%s2434_s15 + $0x140] sm:$0xff] %v1814_v50  ;;  %1817 = vst [vmem:[%s2434_s15 + $0x148] sm:$0xff] %v1816_v51  ;;  %v1820_v55 = vld [vmem:[%s2438_s20 + $0x158] sm:$0xff]  ;;  %v1822_v56 = vld [vmem:[%s2438_s20 + $0x160] sm:$0xff] }
 0x19d   : >> { %1819 = vst [vmem:[%s2434_s15 + $0x150] sm:$0xff] %v1818_v52  ;;  %1821 = vst [vmem:[%s2434_s15 + $0x158] sm:$0xff] %v1820_v55  ;;  %v1824_v57 = vld [vmem:[%s2438_s20 + $0x168] sm:$0xff]  ;;  %v1826_v58 = vld [vmem:[%s2438_s20 + $0x170] sm:$0xff] }
 0x19e   : >> { %1823 = vst [vmem:[%s2434_s15 + $0x160] sm:$0xff] %v1822_v56  ;;  %v1828_v59 = vld [vmem:[%s2438_s20 + $0x178] sm:$0xff]  ;;  %1825 = vst [vmem:[%s2434_s15 + $0x168] sm:$0xff] %v1824_v57  ;;  %v1830_v60 = vld [vmem:[%s2438_s20 + $0x180] sm:$0xff] }
 0x19f   : >> { %1827 = vst [vmem:[%s2434_s15 + $0x170] sm:$0xff] %v1826_v58  ;;  %1829 = vst [vmem:[%s2434_s15 + $0x178] sm:$0xff] %v1828_v59  ;;  %v1832_v61 = vld [vmem:[%s2438_s20 + $0x188] sm:$0xff]  ;;  %v1834_v62 = vld [vmem:[%s2438_s20 + $0x190] sm:$0xff] }
 0x1a0   : >> { %1831 = vst [vmem:[%s2434_s15 + $0x180] sm:$0xff] %v1830_v60  ;;  %1833 = vst [vmem:[%s2434_s15 + $0x188] sm:$0xff] %v1832_v61  ;;  %v1836_v63 = vld [vmem:[%s2438_s20 + $0x198] sm:$0xff]  ;;  %v1838_v0 = vld [vmem:[%s2438_s20 + $0x1a0] sm:$0xff] }
 0x1a1   : >> { %1835 = vst [vmem:[%s2434_s15 + $0x190] sm:$0xff] %v1834_v62  ;;  %v1840_v1 = vld [vmem:[%s2438_s20 + $0x1a8] sm:$0xff]  ;;  %1837 = vst [vmem:[%s2434_s15 + $0x198] sm:$0xff] %v1836_v63  ;;  %v1842_v2 = vld [vmem:[%s2438_s20 + $0x1b0] sm:$0xff]  ;;  %1730 = sbr.rel (!%p1727_p12) target bundleno = 391 (0x187), region = 122 }
 0x1a2   : >> { %1839 = vst [vmem:[%s2434_s15 + $0x1a0] sm:$0xff] %v1838_v0  ;;  %1841 = vst [vmem:[%s2434_s15 + $0x1a8] sm:$0xff] %v1840_v1  ;;  %v1844_v3 = vld [vmem:[%s2438_s20 + $0x1b8] sm:$0xff]  ;;  %v1846_v4 = vld [vmem:[%s2438_s20 + $0x1c0] sm:$0xff] }
 0x1a3   : >> { %1843 = vst [vmem:[%s2434_s15 + $0x1b0] sm:$0xff] %v1842_v2  ;;  %1845 = vst [vmem:[%s2434_s15 + $0x1b8] sm:$0xff] %v1844_v3  ;;  %v1848_v5 = vld [vmem:[%s2438_s20 + $0x1c8] sm:$0xff]  ;;  %v1850_v6 = vld [vmem:[%s2438_s20 + $0x1d0] sm:$0xff] }
 0x1a4   : >> { %1847 = vst [vmem:[%s2434_s15 + $0x1c0] sm:$0xff] %v1846_v4  ;;  %v1852_v7 = vld [vmem:[%s2438_s20 + $0x1d8] sm:$0xff]  ;;  %1849 = vst [vmem:[%s2434_s15 + $0x1c8] sm:$0xff] %v1848_v5  ;;  %v1854_v8 = vld [vmem:[%s2438_s20 + $0x1e0] sm:$0xff] }
 0x1a5   : >> { %1851 = vst [vmem:[%s2434_s15 + $0x1d0] sm:$0xff] %v1850_v6  ;;  %1853 = vst [vmem:[%s2434_s15 + $0x1d8] sm:$0xff] %v1852_v7  ;;  %v1856_v9 = vld [vmem:[%s2438_s20 + $0x1e8] sm:$0xff]  ;;  %v1858_v53 = vld [vmem:[%s2438_s20 + $0x1f0] sm:$0xff] }
 0x1a6   : >> { %1855 = vst [vmem:[%s2434_s15 + $0x1e0] sm:$0xff] %v1854_v8  ;;  %1857 = vst [vmem:[%s2434_s15 + $0x1e8] sm:$0xff] %v1856_v9  ;;  %v1860_v10 = vld [vmem:[%s2438_s20 + $0x1f8] sm:$0xff]  ;;  %s3202_s20 = smov %s3066_s18 }
 0x1a7   : >> { %1859 = vst [vmem:[%s2434_s15 + $0x1f0] sm:$0xff] %v1858_v53  ;;  %1861 = vst [vmem:[%s2434_s15 + $0x1f8] sm:$0xff] %v1860_v10  ;;  %s3201_s15 = smov %s3069_s21 }
 0x1a8 PF: > { %s3174_s22 = sand.u32 63, %s3208_s30   ;;  %s2227_s23 = sshll.u32 %s2999_s10, 9 }
 0x1a9   : > { %s1873_s24 = scalar_lea.vmem %s2672_s12, %s2227_s23 [#allocation2]   ;;  %s1875_s25 = scalar_lea.vmem %s2993_s8, %s2227_s23  }
 0x1aa   : > { %p2155_p13 = scmp.le.s32.totalorder %s3174_s22, 0 }
 0x1ab   : > { %s2448_s26 = smov (!%p2155_p13), %s1875_s25   ;;  %s2452_s27 = smov (!%p2155_p13), %s1873_s24  }
 0x1ac   : > { %1966 = sbr.rel (%p2155_p13) target bundleno = 445 (0x1bd), region = 127  ;;  %s2456_s28 = smov (!%p2155_p13), 0  }
 0x1ad   : > { %s2460_s29 = smov (!%p2155_p13), 0  }
 0x1b3 LB: >> { %v1885_v54 = vld [vmem:[%s2454_s27] sm:$0xff]  ;;  %s1887_s30 = sadd.s32 1, %s2458_s28  ;;  %s1879_s29 = sadd.s32 1, %s2462_s29   ;;  %s2462_s29 = sphi %s2460_s29, %s1879_s29   ;;  %s2458_s28 = sphi %s2456_s28, %s2457_s28   ;;  %s2454_s27 = sphi %s2452_s27, %s1892_s27   ;;  %s2450_s26 = sphi %s2448_s26, %s1893_s26  }
 0x1b4   : >> { %1886 = vst [vmem:[%s2450_s26] sm:$0xff] %v1885_v54  ;;  %p1888_p0 = scmp.ge.s32.totalorder %s1887_s30, %s3174_s22  ;;  %p1878_p1 = scmp.ge.s32.totalorder %s1879_s29, %s3174_s22 }
 0x1b6   : >> { %s3212_s30 = smov (%p1888_p0, %s1887_s30), 0  ;;  %1881 = sbr.rel (!%p1878_p1) target bundleno = 435 (0x1b3), region = 133 }
 0x1b7   : >> { %s2156_s12 = sshll.u32 %s3212_s30, 3  ;;  %s2457_s28 = smov %s3212_s30  }
 0x1b8   : >> { %s1892_s27 = scalar_lea.vmem %s1873_s24, %s2156_s12 [#allocation2]   ;;  %s1893_s26 = scalar_lea.vmem %s1875_s25, %s2156_s12  }
 0x1bd PF: > { %p10_p2 = scmp.ge.s32.totalorder %s2501_s16, 6   ;;  %s3204_s12 = smov %s2426_s13 }
 0x1be   : > { %s3205_s13 = smov %s2509_s19  ;;  %s3206_s14 = smov %s2501_s16 }
 0x1bf   :  { %12 = sbr.rel (!%p10_p2) target bundleno = 2 (0x2), region = 144 }

// kernel: net_forward.6
= control target key start
LH: loop header
LB: loop body
LE: loop exit
PB: predicated region body
PF: predicated region fallthrough
CT: control target
= control target key end

     0   :  { %s609_s15 = smov 0   ;;  %s824_s0 = inlined_call_operand.vmem [shape: bf16[2,196,200], index: 0, kind: input, shape index: {}]   ;;  %s825_s1 = inlined_call_operand.vmem [shape: bf16[2,196,200], index: 1, kind: input, shape index: {}]   ;;  %s826_s2 = inlined_call_operand.vmem [shape: bf16[2,196,200], index: 2, kind: input, shape index: {}]   ;;  %s827_s3 = inlined_call_operand.vmem [shape: bf16[2,196,200], index: 3, kind: input, shape index: {}]   ;;  %s828_s4 = inlined_call_operand.vmem [shape: bf16[2,196,200], index: 4, kind: output, shape index: {}]  }
   0x1 LB: > { %s555_s16 = sadd.s32 4294967295, %s582_s15   ;;  %p559_p0 = scmp.ge.s32.totalorder %s582_s15, 1  ;;  %s582_s15 = sphi %s609_s15, %s14_s15  }
   0x2   : > { %p192_p1 = scmp.lt.s32.totalorder %s582_s15, 3 }
   0x4   : > { %p193_p2 = pnand %p559_p0, %p192_p1 }
   0x5   : > { %p233_p3 = scmp.lt.s32.totalorder (!%p193_p2), %s555_s16, 1  ;;  %vm433_vm0 = vcmask (!%p193_p2), 1043456   ;;  %vm434_vm1 = vcmask (!%p193_p2), 588804   ;;  %vm460_vm3 = vcmask (!%p193_p2), 1041408   ;;  %vm461_vm4 = vcmask (!%p193_p2), 586756  }
   0x6   : > { %196 = sbr.rel (%p193_p2) target bundleno = 60 (0x3c), region = 36  ;;  %vm627_vm2 = vmor (!%p193_p2), %vm434_vm1, %vm433_vm0 }
   0x7   : > { %vm462_vm5 = vmor (!%p193_p2), %vm461_vm4, %vm460_vm3 }
   0xd   : > { %s832_s16 = smov (!%p233_p3, %s555_s16), 1 }
   0xe   : > { %s567_s17 = smul.u32 200, %s832_s16 }
  0x10   : > { %s620_s20 = scalar_lea.vmem %s824_s0, %s567_s17  ;;  %s625_s23 = scalar_lea.vmem %s825_s1, %s567_s17 }
  0x11   : > { %s634_s26 = scalar_lea.vmem %s826_s2, %s567_s17  ;;  %s639_s29 = scalar_lea.vmem %s827_s3, %s567_s17  ;;  %v258_v1 = vld [vmem:[%s620_s20] sm:$0xff]  ;;  %v259_v3 = vld [vmem:[%s620_s20 + $0x8] sm:$0xff]  ;;  %v260_v12 = vld [vmem:[%s620_s20 + $0x10] sm:$0xff] }
  0x12   : > { %v283_v2 = vld [vmem:[%s625_s23] sm:$0xff]  ;;  %v284_v7 = vld [vmem:[%s625_s23 + $0x8] sm:$0xff]  ;;  %s653_s6 = scalar_lea.vmem %s828_s4, %s567_s17  ;;  %v285_v14 = vld [vmem:[%s625_s23 + $0x10] sm:$0xff] }
  0x13   : > { %v308_v4 = vmax.bf16 %v283_v2, %v258_v1  ;;  %v333_v5 = vld [vmem:[%s634_s26] sm:$0xff]  ;;  %v309_v9 = vmax.bf16 %v284_v7, %v259_v3  ;;  %v334_v10 = vld [vmem:[%s634_s26 + $0x8] sm:$0xff]  ;;  %v335_v15 = vld [vmem:[%s634_s26 + $0x10] sm:$0xff]  ;;  %v310_v18 = vmax.bf16 %v285_v14, %v260_v12 }
  0x14   : > { %v358_v6 = vld [vmem:[%s639_s29] sm:$0xff]  ;;  %v359_v11 = vld [vmem:[%s639_s29 + $0x8] sm:$0xff]  ;;  %v360_v16 = vld [vmem:[%s639_s29 + $0x10] sm:$0xff] }
  0x15   : > { %v383_v8 = vmax.bf16 %v358_v6, %v333_v5  ;;  %v384_v13 = vmax.bf16 %v359_v11, %v334_v10  ;;  %v385_v19 = vmax.bf16 %v360_v16, %v335_v15  ;;  %v261_v20 = vld [vmem:[%s620_s20 + $0x18] sm:$0xff]  ;;  %v262_v26 = vld [vmem:[%s620_s20 + $0x20] sm:$0xff]  ;;  %v263_v33 = vld [vmem:[%s620_s20 + $0x28] sm:$0xff] }
  0x16   : > { %v286_v21 = vld [vmem:[%s625_s23 + $0x18] sm:$0xff]  ;;  %v287_v27 = vld [vmem:[%s625_s23 + $0x20] sm:$0xff]  ;;  %v288_v35 = vld [vmem:[%s625_s23 + $0x28] sm:$0xff] }
  0x17   : > { %v408_v17 = vmax.bf16 %v383_v8, %v308_v4  ;;  %v336_v22 = vld [vmem:[%s634_s26 + $0x18] sm:$0xff]  ;;  %v409_v23 = vmax.bf16 %v384_v13, %v309_v9  ;;  %v311_v24 = vmax.bf16 %v286_v21, %v261_v20  ;;  %v410_v28 = vmax.bf16 %v385_v19, %v310_v18  ;;  %v337_v31 = vld [vmem:[%s634_s26 + $0x20] sm:$0xff]  ;;  %v338_v36 = vld [vmem:[%s634_s26 + $0x28] sm:$0xff] }
  0x18   : > { %v361_v25 = vld [vmem:[%s639_s29 + $0x18] sm:$0xff]  ;;  %v312_v30 = vmax.bf16 %v287_v27, %v262_v26  ;;  %v362_v32 = vld [vmem:[%s639_s29 + $0x20] sm:$0xff]  ;;  %v363_v37 = vld [vmem:[%s639_s29 + $0x28] sm:$0xff]  ;;  %v313_v39 = vmax.bf16 %v288_v35, %v263_v33 }
  0x19   : > { %436 = vst.msk [vmem:[%s653_s6] sm:$0xff] %vm627_vm2, %v408_v17  ;;  %v386_v29 = vmax.bf16 %v361_v25, %v336_v22  ;;  %437 = vst.msk [vmem:[%s653_s6 + $0x8] sm:$0xff] %vm627_vm2, %v409_v23  ;;  %v387_v34 = vmax.bf16 %v362_v32, %v337_v31  ;;  %v388_v40 = vmax.bf16 %v363_v37, %v338_v36  ;;  %v264_v41 = vld [vmem:[%s620_s20 + $0x30] sm:$0xff]  ;;  %v265_v47 = vld [vmem:[%s620_s20 + $0x38] sm:$0xff] }
  0x1a   : > { %438 = vst.msk [vmem:[%s653_s6 + $0x10] sm:$0xff] %vm627_vm2, %v410_v28  ;;  %v289_v42 = vld [vmem:[%s625_s23 + $0x30] sm:$0xff]  ;;  %v290_v48 = vld [vmem:[%s625_s23 + $0x38] sm:$0xff]  ;;  %v266_v54 = vld [vmem:[%s620_s20 + $0x40] sm:$0xff] }
  0x1b   : > { %v411_v38 = vmax.bf16 %v386_v29, %v311_v24  ;;  %v339_v43 = vld [vmem:[%s634_s26 + $0x30] sm:$0xff]  ;;  %v412_v44 = vmax.bf16 %v387_v34, %v312_v30  ;;  %v314_v45 = vmax.bf16 %v289_v42, %v264_v41  ;;  %v413_v49 = vmax.bf16 %v388_v40, %v313_v39  ;;  %v340_v52 = vld [vmem:[%s634_s26 + $0x38] sm:$0xff]  ;;  %v291_v56 = vld [vmem:[%s625_s23 + $0x40] sm:$0xff] }
  0x1c   : > { %v364_v46 = vld [vmem:[%s639_s29 + $0x30] sm:$0xff]  ;;  %v315_v51 = vmax.bf16 %v290_v48, %v265_v47  ;;  %v365_v53 = vld [vmem:[%s639_s29 + $0x38] sm:$0xff]  ;;  %v341_v57 = vld [vmem:[%s634_s26 + $0x40] sm:$0xff]  ;;  %v316_v60 = vmax.bf16 %v291_v56, %v266_v54 }
  0x1d   : > { %439 = vst.msk [vmem:[%s653_s6 + $0x18] sm:$0xff] %vm627_vm2, %v411_v38  ;;  %v389_v50 = vmax.bf16 %v364_v46, %v339_v43  ;;  %440 = vst.msk [vmem:[%s653_s6 + $0x20] sm:$0xff] %vm627_vm2, %v412_v44  ;;  %v390_v55 = vmax.bf16 %v365_v53, %v340_v52  ;;  %v366_v58 = vld [vmem:[%s639_s29 + $0x40] sm:$0xff]  ;;  %v267_v62 = vld [vmem:[%s620_s20 + $0x48] sm:$0xff] }
  0x1e   : > { %441 = vst.msk [vmem:[%s653_s6 + $0x28] sm:$0xff] %vm627_vm2, %v413_v49  ;;  %v391_v61 = vmax.bf16 %v366_v58, %v341_v57  ;;  %v292_v63 = vld [vmem:[%s625_s23 + $0x48] sm:$0xff]  ;;  %v268_v5 = vld [vmem:[%s620_s20 + $0x50] sm:$0xff]  ;;  %v269_v12 = vld [vmem:[%s620_s20 + $0x58] sm:$0xff] }
  0x1f   : > { %v414_v59 = vmax.bf16 %v389_v50, %v314_v45  ;;  %v342_v1 = vld [vmem:[%s634_s26 + $0x48] sm:$0xff]  ;;  %v415_v2 = vmax.bf16 %v390_v55, %v315_v51  ;;  %v317_v3 = vmax.bf16 %v292_v63, %v267_v62  ;;  %v293_v6 = vld [vmem:[%s625_s23 + $0x50] sm:$0xff]  ;;  %v294_v14 = vld [vmem:[%s625_s23 + $0x58] sm:$0xff] }
  0x20   : > { %v367_v4 = vld [vmem:[%s639_s29 + $0x48] sm:$0xff]  ;;  %v416_v7 = vmax.bf16 %v391_v61, %v316_v60  ;;  %v318_v9 = vmax.bf16 %v293_v6, %v268_v5  ;;  %v343_v10 = vld [vmem:[%s634_s26 + $0x50] sm:$0xff]  ;;  %v344_v15 = vld [vmem:[%s634_s26 + $0x58] sm:$0xff]  ;;  %v319_v18 = vmax.bf16 %v294_v14, %v269_v12 }
  0x21   : > { %442 = vst.msk [vmem:[%s653_s6 + $0x30] sm:$0xff] %vm627_vm2, %v414_v59  ;;  %v392_v8 = vmax.bf16 %v367_v4, %v342_v1  ;;  %v368_v11 = vld [vmem:[%s639_s29 + $0x50] sm:$0xff]  ;;  %443 = vst.msk [vmem:[%s653_s6 + $0x38] sm:$0xff] %vm627_vm2, %v415_v2  ;;  %v369_v16 = vld [vmem:[%s639_s29 + $0x58] sm:$0xff] }
  0x22   : > { %v393_v13 = vmax.bf16 %v368_v11, %v343_v10  ;;  %444 = vst.msk [vmem:[%s653_s6 + $0x40] sm:$0xff] %vm627_vm2, %v416_v7  ;;  %v394_v19 = vmax.bf16 %v369_v16, %v344_v15  ;;  %v270_v20 = vld [vmem:[%s620_s20 + $0x60] sm:$0xff]  ;;  %v271_v26 = vld [vmem:[%s620_s20 + $0x68] sm:$0xff]  ;;  %v272_v33 = vld [vmem:[%s620_s20 + $0x70] sm:$0xff] }
  0x23   : > { %v417_v17 = vmax.bf16 %v392_v8, %v317_v3  ;;  %v295_v21 = vld [vmem:[%s625_s23 + $0x60] sm:$0xff]  ;;  %v296_v27 = vld [vmem:[%s625_s23 + $0x68] sm:$0xff]  ;;  %v297_v35 = vld [vmem:[%s625_s23 + $0x70] sm:$0xff] }
  0x24   : > { %v345_v22 = vld [vmem:[%s634_s26 + $0x60] sm:$0xff]  ;;  %v418_v23 = vmax.bf16 %v393_v13, %v318_v9  ;;  %v320_v24 = vmax.bf16 %v295_v21, %v270_v20  ;;  %v419_v28 = vmax.bf16 %v394_v19, %v319_v18  ;;  %v321_v30 = vmax.bf16 %v296_v27, %v271_v26  ;;  %v346_v31 = vld [vmem:[%s634_s26 + $0x68] sm:$0xff]  ;;  %v347_v36 = vld [vmem:[%s634_s26 + $0x70] sm:$0xff] }
  0x25   : > { %v370_v25 = vld [vmem:[%s639_s29 + $0x60] sm:$0xff]  ;;  %445 = vst.msk [vmem:[%s653_s6 + $0x48] sm:$0xff] %vm627_vm2, %v417_v17  ;;  %v371_v32 = vld [vmem:[%s639_s29 + $0x68] sm:$0xff]  ;;  %v372_v37 = vld [vmem:[%s639_s29 + $0x70] sm:$0xff]  ;;  %v322_v39 = vmax.bf16 %v297_v35, %v272_v33 }
  0x26   : > { %v395_v29 = vmax.bf16 %v370_v25, %v345_v22  ;;  %446 = vst.msk [vmem:[%s653_s6 + $0x50] sm:$0xff] %vm627_vm2, %v418_v23  ;;  %v396_v34 = vmax.bf16 %v371_v32, %v346_v31  ;;  %447 = vst.msk [vmem:[%s653_s6 + $0x58] sm:$0xff] %vm627_vm2, %v419_v28  ;;  %v397_v40 = vmax.bf16 %v372_v37, %v347_v36  ;;  %v273_v41 = vld [vmem:[%s620_s20 + $0x78] sm:$0xff]  ;;  %v274_v47 = vld [vmem:[%s620_s20 + $0x80] sm:$0xff] }
  0x27   : > { %v298_v42 = vld [vmem:[%s625_s23 + $0x78] sm:$0xff]  ;;  %v299_v48 = vld [vmem:[%s625_s23 + $0x80] sm:$0xff]  ;;  %v275_v54 = vld [vmem:[%s620_s20 + $0x88] sm:$0xff] }
  0x28   : > { %v420_v38 = vmax.bf16 %v395_v29, %v320_v24  ;;  %v348_v43 = vld [vmem:[%s634_s26 + $0x78] sm:$0xff]  ;;  %v421_v44 = vmax.bf16 %v396_v34, %v321_v30  ;;  %v323_v45 = vmax.bf16 %v298_v42, %v273_v41  ;;  %v422_v49 = vmax.bf16 %v397_v40, %v322_v39  ;;  %v349_v52 = vld [vmem:[%s634_s26 + $0x80] sm:$0xff]  ;;  %v300_v56 = vld [vmem:[%s625_s23 + $0x88] sm:$0xff] }
  0x29   : > { %v373_v46 = vld [vmem:[%s639_s29 + $0x78] sm:$0xff]  ;;  %v324_v51 = vmax.bf16 %v299_v48, %v274_v47  ;;  %v374_v53 = vld [vmem:[%s639_s29 + $0x80] sm:$0xff]  ;;  %v350_v57 = vld [vmem:[%s634_s26 + $0x88] sm:$0xff]  ;;  %v325_v60 = vmax.bf16 %v300_v56, %v275_v54 }
  0x2a   : > { %448 = vst.msk [vmem:[%s653_s6 + $0x60] sm:$0xff] %vm627_vm2, %v420_v38  ;;  %v398_v50 = vmax.bf16 %v373_v46, %v348_v43  ;;  %449 = vst.msk [vmem:[%s653_s6 + $0x68] sm:$0xff] %vm627_vm2, %v421_v44  ;;  %v399_v55 = vmax.bf16 %v374_v53, %v349_v52  ;;  %v375_v58 = vld [vmem:[%s639_s29 + $0x88] sm:$0xff]  ;;  %v276_v62 = vld [vmem:[%s620_s20 + $0x90] sm:$0xff] }
  0x2b   : > { %450 = vst.msk [vmem:[%s653_s6 + $0x70] sm:$0xff] %vm627_vm2, %v422_v49  ;;  %v400_v61 = vmax.bf16 %v375_v58, %v350_v57  ;;  %v301_v63 = vld [vmem:[%s625_s23 + $0x90] sm:$0xff]  ;;  %v277_v5 = vld [vmem:[%s620_s20 + $0x98] sm:$0xff]  ;;  %v278_v12 = vld [vmem:[%s620_s20 + $0xa0] sm:$0xff] }
  0x2c   : > { %v423_v59 = vmax.bf16 %v398_v50, %v323_v45  ;;  %v351_v1 = vld [vmem:[%s634_s26 + $0x90] sm:$0xff]  ;;  %v424_v2 = vmax.bf16 %v399_v55, %v324_v51  ;;  %v326_v3 = vmax.bf16 %v301_v63, %v276_v62  ;;  %v302_v6 = vld [vmem:[%s625_s23 + $0x98] sm:$0xff]  ;;  %v303_v14 = vld [vmem:[%s625_s23 + $0xa0] sm:$0xff] }
  0x2d   : > { %v376_v4 = vld [vmem:[%s639_s29 + $0x90] sm:$0xff]  ;;  %v425_v7 = vmax.bf16 %v400_v61, %v325_v60  ;;  %v327_v9 = vmax.bf16 %v302_v6, %v277_v5  ;;  %v352_v10 = vld [vmem:[%s634_s26 + $0x98] sm:$0xff]  ;;  %v353_v15 = vld [vmem:[%s634_s26 + $0xa0] sm:$0xff]  ;;  %v328_v18 = vmax.bf16 %v303_v14, %v278_v12 }
  0x2e   : > { %451 = vst.msk [vmem:[%s653_s6 + $0x78] sm:$0xff] %vm627_vm2, %v423_v59  ;;  %v401_v8 = vmax.bf16 %v376_v4, %v351_v1  ;;  %v377_v11 = vld [vmem:[%s639_s29 + $0x98] sm:$0xff]  ;;  %452 = vst.msk [vmem:[%s653_s6 + $0x80] sm:$0xff] %vm627_vm2, %v424_v2  ;;  %v378_v16 = vld [vmem:[%s639_s29 + $0xa0] sm:$0xff] }
  0x2f   : > { %v402_v13 = vmax.bf16 %v377_v11, %v352_v10  ;;  %453 = vst.msk [vmem:[%s653_s6 + $0x88] sm:$0xff] %vm627_vm2, %v425_v7  ;;  %v403_v19 = vmax.bf16 %v378_v16, %v353_v15  ;;  %v279_v20 = vld [vmem:[%s620_s20 + $0xa8] sm:$0xff]  ;;  %v280_v26 = vld [vmem:[%s620_s20 + $0xb0] sm:$0xff]  ;;  %v281_v33 = vld [vmem:[%s620_s20 + $0xb8] sm:$0xff] }
  0x30   : > { %v426_v17 = vmax.bf16 %v401_v8, %v326_v3  ;;  %v304_v21 = vld [vmem:[%s625_s23 + $0xa8] sm:$0xff]  ;;  %v305_v27 = vld [vmem:[%s625_s23 + $0xb0] sm:$0xff]  ;;  %v306_v35 = vld [vmem:[%s625_s23 + $0xb8] sm:$0xff] }
  0x31   : > { %v354_v22 = vld [vmem:[%s634_s26 + $0xa8] sm:$0xff]  ;;  %v427_v23 = vmax.bf16 %v402_v13, %v327_v9  ;;  %v329_v24 = vmax.bf16 %v304_v21, %v279_v20  ;;  %v428_v28 = vmax.bf16 %v403_v19, %v328_v18  ;;  %v330_v30 = vmax.bf16 %v305_v27, %v280_v26  ;;  %v355_v31 = vld [vmem:[%s634_s26 + $0xb0] sm:$0xff]  ;;  %v356_v36 = vld [vmem:[%s634_s26 + $0xb8] sm:$0xff] }
  0x32   : > { %v379_v25 = vld [vmem:[%s639_s29 + $0xa8] sm:$0xff]  ;;  %454 = vst.msk [vmem:[%s653_s6 + $0x90] sm:$0xff] %vm627_vm2, %v426_v17  ;;  %v380_v32 = vld [vmem:[%s639_s29 + $0xb0] sm:$0xff]  ;;  %v381_v37 = vld [vmem:[%s639_s29 + $0xb8] sm:$0xff]  ;;  %v331_v39 = vmax.bf16 %v306_v35, %v281_v33 }
  0x33   : > { %v404_v29 = vmax.bf16 %v379_v25, %v354_v22  ;;  %455 = vst.msk [vmem:[%s653_s6 + $0x98] sm:$0xff] %vm627_vm2, %v427_v23  ;;  %v405_v34 = vmax.bf16 %v380_v32, %v355_v31  ;;  %456 = vst.msk [vmem:[%s653_s6 + $0xa0] sm:$0xff] %vm627_vm2, %v428_v28  ;;  %v406_v40 = vmax.bf16 %v381_v37, %v356_v36  ;;  %v282_v41 = vld [vmem:[%s620_s20 + $0xc0] sm:$0x33] }
  0x34   : > { %v307_v42 = vld [vmem:[%s625_s23 + $0xc0] sm:$0x33] }
  0x35   : > { %v429_v38 = vmax.bf16 %v404_v29, %v329_v24  ;;  %v357_v43 = vld [vmem:[%s634_s26 + $0xc0] sm:$0x33]  ;;  %v430_v44 = vmax.bf16 %v405_v34, %v330_v30  ;;  %v332_v45 = vmax.bf16 %v307_v42, %v282_v41  ;;  %v431_v47 = vmax.bf16 %v406_v40, %v331_v39 }
  0x36   : > { %v382_v46 = vld [vmem:[%s639_s29 + $0xc0] sm:$0x33] }
  0x37   : > { %457 = vst.msk [vmem:[%s653_s6 + $0xa8] sm:$0xff] %vm627_vm2, %v429_v38  ;;  %v407_v48 = vmax.bf16 %v382_v46, %v357_v43  ;;  %458 = vst.msk [vmem:[%s653_s6 + $0xb0] sm:$0xff] %vm627_vm2, %v430_v44 }
  0x38   : > { %459 = vst.msk [vmem:[%s653_s6 + $0xb8] sm:$0xff] %vm627_vm2, %v431_v47 }
  0x39   : > { %v432_v49 = vmax.bf16 %v407_v48, %v332_v45 }
  0x3b   : > { %463 = vst.msk [vmem:[%s653_s6 + $0xc0] sm:$0x33] %vm462_vm5, %v432_v49 }
  0x3c PF: > { %s14_s15 = sadd.s32 1, %s582_s15  }
  0x3d   : > { %p11_p4 = scmp.ge.s32.totalorder %s14_s15, 4  }
  0x3f   :  { %13 = sbr.rel (!%p11_p4) target bundleno = 1 (0x1), region = 75 }

// kernel: net_forward.7
= control target key start
LH: loop header
LB: loop body
LE: loop exit
PB: predicated region body
PF: predicated region fallthrough
CT: control target
= control target key end

     0   :  { %vm5589_vm0 = vcmask 1043456   ;;  %vm5549_vm1 = vcmask 64512   ;;  %vm8439_vm2 = vcmask 125952   ;;  %s15186_s1 = inlined_call_operand.vmem [shape: bf16[5000,16], index: 1, kind: input, shape index: {}]   ;;  %s15187_s0 = inlined_call_operand.vmem [shape: bf16[200,5000], index: 0, kind: input, shape index: {}]   ;;  %s15188_s2 = inlined_call_operand.vmem [shape: f32[1,16], index: 2, kind: input, shape index: {}]   ;;  %s15189_s3 = inlined_call_operand.vmem [shape: bf16[200,16], index: 3, kind: output, shape index: {}]  }
   0x1   :  { %v11153_v0 = vld [vmem:[%s15186_s1 + $0x40] sm:$0xff]   ;;  %v11157_v4 = vld [vmem:[%s15186_s1 + $0x48] sm:$0xff]   ;;  %v11161_v8 = vld [vmem:[%s15186_s1 + $0x50] sm:$0xff]  }
   0x2   :  { %v11154_v1 = vld [vmem:[%s15186_s1] sm:$0xff]   ;;  %9366 = vmatprep.subr.bf16.mxu0 %v11153_v0  ;;  %v11158_v5 = vld [vmem:[%s15186_s1 + $0x8] sm:$0xff]   ;;  %v11162_v9 = vld [vmem:[%s15186_s1 + $0x10] sm:$0xff]  }
   0x3   :  { %v11155_v2 = vld [vmem:[%s15186_s1 + $0xc0] sm:$0xff]   ;;  %9367 = vmatpush3.bf16.msra.mxu0 %v11154_v1  ;;  %v11159_v6 = vld [vmem:[%s15186_s1 + $0xc8] sm:$0xff]   ;;  %v11163_v10 = vld [vmem:[%s15186_s1 + $0xd0] sm:$0xff]  }
   0x4   :  { %v11156_v3 = vld [vmem:[%s15186_s1 + $0x80] sm:$0xff]   ;;  %9460 = vmatprep.subr.bf16.mxu1 %v11155_v2  ;;  %9368 = vmatprep.subr.bf16.mxu0 %v11157_v4  ;;  %v11160_v7 = vld [vmem:[%s15186_s1 + $0x88] sm:$0xff]   ;;  %v11164_v11 = vld [vmem:[%s15186_s1 + $0x90] sm:$0xff]  }
   0x5   :  { %9461 = vmatpush3.bf16.msra.mxu1 %v11156_v3  ;;  %v11165_v12 = vld [vmem:[%s15186_s1 + $0x58] sm:$0xff]   ;;  %v11169_v16 = vld [vmem:[%s15186_s1 + $0x60] sm:$0xff]   ;;  %v11173_v20 = vld [vmem:[%s15186_s1 + $0x68] sm:$0xff]  }
   0x6   :  { %9462 = vmatprep.subr.bf16.mxu1 %v11159_v6  ;;  %v11166_v13 = vld [vmem:[%s15186_s1 + $0x18] sm:$0xff]   ;;  %v11170_v17 = vld [vmem:[%s15186_s1 + $0x20] sm:$0xff]   ;;  %v11174_v21 = vld [vmem:[%s15186_s1 + $0x28] sm:$0xff]  }
   0x7   :  { %9369 = vmatpush3.bf16.msra.mxu0 %v11158_v5  ;;  %v11167_v14 = vld [vmem:[%s15186_s1 + $0xd8] sm:$0xff]   ;;  %v11171_v18 = vld [vmem:[%s15186_s1 + $0xe0] sm:$0xff]   ;;  %v11175_v22 = vld [vmem:[%s15186_s1 + $0xe8] sm:$0xff]  }
   0x8   :  { %9370 = vmatprep.subr.bf16.mxu0 %v11161_v8  ;;  %v11168_v15 = vld [vmem:[%s15186_s1 + $0x98] sm:$0xff]   ;;  %v11172_v19 = vld [vmem:[%s15186_s1 + $0xa0] sm:$0xff]   ;;  %v11176_v23 = vld [vmem:[%s15186_s1 + $0xa8] sm:$0xff]  }
   0x9   :  { %9463 = vmatpush3.bf16.msra.mxu1 %v11160_v7  ;;  %v11177_v24 = vld [vmem:[%s15186_s1 + $0x70] sm:$0xff]   ;;  %v11181_v28 = vld [vmem:[%s15186_s1 + $0x78] sm:$0xff]   ;;  %v15_v31 = vld [vmem:[%s15187_s0] sm:$0xff] }
   0xa   :  { %9464 = vmatprep.subr.bf16.mxu1 %v11163_v10  ;;  %v11178_v25 = vld [vmem:[%s15186_s1 + $0x30] sm:$0xff]   ;;  %v11182_v29 = vld [vmem:[%s15186_s1 + $0x38] sm:$0xff]   ;;  %v35_v32 = vld [vmem:[%s15187_s0 + $0xa0] sm:$0xff] }
   0xb   :  { %9371 = vmatpush3.bf16.msra.mxu0 %v11162_v9  ;;  %v11179_v26 = vld [vmem:[%s15186_s1 + $0xf0] sm:$0xff]   ;;  %v11183_v30 = vld [vmem:[%s15186_s1 + $0xf8] sm:$0xff]   ;;  %v8470_v33 = vcombine.low %v15_v31, %v35_v32  ;;  %v8471_v34 = vcombine.high %v15_v31, %v35_v32  ;;  %v11185_v36 = vld [vmem:[%s15186_s1 + $0x140] sm:$0xff]  }
   0xc   :  { %9372 = vmatprep.subr.bf16.mxu0 %v11165_v12  ;;  %v11180_v27 = vld [vmem:[%s15186_s1 + $0xb0] sm:$0xff]   ;;  %v11184_v35 = vld [vmem:[%s15186_s1 + $0xb8] sm:$0xff]   ;;  %v16_v37 = vld [vmem:[%s15187_s0 + $0x8] sm:$0xff] }
   0xd   :  { %9465 = vmatpush3.bf16.msra.mxu1 %v11164_v11  ;;  %5625 = vmatprep.mubr.bf16.mxu0 %v8471_v34  ;;  %v36_v38 = vld [vmem:[%s15187_s0 + $0xa8] sm:$0xff]  ;;  %v11186_v41 = vld [vmem:[%s15186_s1 + $0x100] sm:$0xff]   ;;  %v11193_v0 = vld [vmem:[%s15186_s1 + $0x150] sm:$0xff]  }
   0xe   :  { %9466 = vmatprep.subr.bf16.mxu1 %v11167_v14  ;;  %v8472_v39 = vcombine.low %v16_v37, %v36_v38  ;;  %v8473_v40 = vcombine.high %v16_v37, %v36_v38  ;;  %v11187_v42 = vld [vmem:[%s15186_s1 + $0x1c0] sm:$0xff]   ;;  %v56_v47 = vld [vmem:[%s15187_s0 + $0x148] sm:$0xff]  ;;  %v11194_v4 = vld [vmem:[%s15186_s1 + $0x110] sm:$0xff]  }
   0xf   :  { %9373 = vmatpush3.bf16.msra.mxu0 %v11166_v13  ;;  %v11188_v43 = vld [vmem:[%s15186_s1 + $0x180] sm:$0xff]   ;;  %v76_v48 = vld [vmem:[%s15187_s0 + $0x1e8] sm:$0xff]  ;;  %v11195_v6 = vld [vmem:[%s15186_s1 + $0x1d0] sm:$0xff]  }
  0x10   :  { %9374 = vmatprep.subr.bf16.mxu0 %v11169_v16  ;;  %5761 = vmatprep.mubr.bf16.mxu1 %v8473_v40  ;;  %v55_v44 = vld [vmem:[%s15187_s0 + $0x140] sm:$0xff]  ;;  %v8513_v50 = vcombine.high %v56_v47, %v76_v48  ;;  %v11189_v51 = vld [vmem:[%s15186_s1 + $0x148] sm:$0xff]   ;;  %v8512_v57 = vcombine.low %v56_v47, %v76_v48  ;;  %v11196_v7 = vld [vmem:[%s15186_s1 + $0x190] sm:$0xff]  }
  0x11   :  { %9467 = vmatpush3.bf16.msra.mxu1 %v11168_v15  ;;  %v75_v45 = vld [vmem:[%s15187_s0 + $0x1e0] sm:$0xff]  ;;  %v11190_v52 = vld [vmem:[%s15186_s1 + $0x108] sm:$0xff]   ;;  %v11197_v10 = vld [vmem:[%s15186_s1 + $0x158] sm:$0xff]  }
  0x12   :  { %9468 = vmatprep.subr.bf16.mxu1 %v11171_v18  ;;  %v8511_v46 = vcombine.high %v55_v44, %v75_v45  ;;  %v8510_v49 = vcombine.low %v55_v44, %v75_v45  ;;  %v95_v53 = vld [vmem:[%s15187_s0 + $0x280] sm:$0xff]  ;;  %v96_v55 = vld [vmem:[%s15187_s0 + $0x288] sm:$0xff]  ;;  %v11198_v13 = vld [vmem:[%s15186_s1 + $0x118] sm:$0xff]  }
  0x13   :  { %9375 = vmatpush3.bf16.msra.mxu0 %v11170_v17  ;;  %v115_v54 = vld [vmem:[%s15187_s0 + $0x320] sm:$0xff]  ;;  %v116_v56 = vld [vmem:[%s15187_s0 + $0x328] sm:$0xff]  ;;  %v11199_v14 = vld [vmem:[%s15186_s1 + $0x1d8] sm:$0xff]  }
  0x14   :  { %9376 = vmatprep.subr.bf16.mxu0 %v11173_v20  ;;  %v8551_v58 = vcombine.high %v95_v53, %v115_v54  ;;  %v11191_v59 = vld [vmem:[%s15186_s1 + $0x1c8] sm:$0xff]   ;;  %v8553_v60 = vcombine.high %v96_v55, %v116_v56  ;;  %v135_v62 = vld [vmem:[%s15187_s0 + $0x3c0] sm:$0xff]  ;;  %v8550_v1 = vcombine.low %v95_v53, %v115_v54  ;;  %v8552_v8 = vcombine.low %v96_v55, %v116_v56  ;;  %v11200_v16 = vld [vmem:[%s15186_s1 + $0x198] sm:$0xff]  }
  0x15   :  { %9469 = vmatpush3.bf16.msra.mxu1 %v11172_v19  ;;  %v11192_v61 = vld [vmem:[%s15186_s1 + $0x188] sm:$0xff]   ;;  %v155_v63 = vld [vmem:[%s15187_s0 + $0x460] sm:$0xff]  ;;  %v11209_v40 = vld [vmem:[%s15186_s1 + $0x170] sm:$0xff]  }
  0x16   :  { %9470 = vmatprep.subr.bf16.mxu1 %v11175_v22  ;;  %v136_v2 = vld [vmem:[%s15187_s0 + $0x3c8] sm:$0xff]  ;;  %v8591_v5 = vcombine.high %v135_v62, %v155_v63  ;;  %v175_v11 = vld [vmem:[%s15187_s0 + $0x500] sm:$0xff]  ;;  %v8590_v15 = vcombine.low %v135_v62, %v155_v63  ;;  %v11212_v48 = vld [vmem:[%s15186_s1 + $0x1b0] sm:$0xff]  }
  0x17   :  { %9377 = vmatpush3.bf16.msra.mxu0 %v11174_v21  ;;  %v156_v3 = vld [vmem:[%s15187_s0 + $0x468] sm:$0xff]  ;;  %v195_v12 = vld [vmem:[%s15187_s0 + $0x5a0] sm:$0xff]  ;;  %v11214_v53 = vld [vmem:[%s15186_s1 + $0x138] sm:$0xff]  }
  0x18   :  { %9378 = vmatprep.subr.bf16.mxu0 %v11177_v24  ;;  %v8593_v9 = vcombine.high %v136_v2, %v156_v3  ;;  %v8631_v17 = vcombine.high %v175_v11, %v195_v12  ;;  %v176_v18 = vld [vmem:[%s15187_s0 + $0x508] sm:$0xff]  ;;  %v8592_v20 = vcombine.low %v136_v2, %v156_v3  ;;  %v11201_v21 = vld [vmem:[%s15186_s1 + $0x160] sm:$0xff]   ;;  %v11217_v56 = vld [vmem:[%s15186_s1 + $0x1f8] sm:$0xff]  }
  0x19   :  { %9471 = vmatpush3.bf16.msra.mxu1 %v11176_v23  ;;  %v196_v19 = vld [vmem:[%s15187_s0 + $0x5a8] sm:$0xff]  ;;  %v11202_v23 = vld [vmem:[%s15186_s1 + $0x120] sm:$0xff]  }
  0x1a   :  { %9472 = vmatprep.subr.bf16.mxu1 %v11179_v26  ;;  %v8633_v22 = vcombine.high %v176_v18, %v196_v19  ;;  %v215_v24 = vld [vmem:[%s15187_s0 + $0x640] sm:$0xff]  ;;  %v11205_v32 = vld [vmem:[%s15186_s1 + $0x168] sm:$0xff]   ;;  %v8632_v34 = vcombine.low %v176_v18, %v196_v19 }
  0x1b   :  { %9379 = vmatpush3.bf16.msra.mxu0 %v11178_v25  ;;  %v235_v25 = vld [vmem:[%s15187_s0 + $0x6e0] sm:$0xff]  ;;  %v11208_v38 = vld [vmem:[%s15186_s1 + $0x1a8] sm:$0xff]  }
  0x1c   :  { %9380 = vmatprep.subr.bf16.mxu0 %v11181_v28  ;;  %v11203_v26 = vld [vmem:[%s15186_s1 + $0x1e0] sm:$0xff]   ;;  %v8630_v28 = vcombine.low %v175_v11, %v195_v12  ;;  %v8671_v31 = vcombine.high %v215_v24, %v235_v25  ;;  %v256_v44 = vld [vmem:[%s15187_s0 + $0x788] sm:$0xff] }
  0x1d   :  { %9473 = vmatpush3.bf16.msra.mxu1 %v11180_v27  ;;  %v11204_v27 = vld [vmem:[%s15186_s1 + $0x1a0] sm:$0xff]   ;;  %v276_v45 = vld [vmem:[%s15187_s0 + $0x828] sm:$0xff] }
  0x1e   :  { %9474 = vmatprep.subr.bf16.mxu1 %v11183_v30  ;;  %v236_v30 = vld [vmem:[%s15187_s0 + $0x6e8] sm:$0xff]  ;;  %v255_v37 = vld [vmem:[%s15187_s0 + $0x780] sm:$0xff] }
  0x1f   :  { %9381 = vmatpush3.bf16.msra.mxu0 %v11182_v29  ;;  %v216_v29 = vld [vmem:[%s15187_s0 + $0x648] sm:$0xff]  ;;  %v335_v63 = vld [vmem:[%s15187_s0 + $0xa00] sm:$0xff] }
  0x20   :  { %9554 = vmatprep.subr.bf16.mxu0 %v11185_v36  ;;  %v8673_v36 = vcombine.high %v216_v29, %v236_v30  ;;  %v8672_v47 = vcombine.low %v216_v29, %v236_v30  ;;  %v296_v55 = vld [vmem:[%s15187_s0 + $0x8c8] sm:$0xff] }
  0x21   :  { %9475 = vmatpush3.bf16.msra.mxu1 %v11184_v35  ;;  %v11207_v35 = vld [vmem:[%s15186_s1 + $0x1e8] sm:$0xff]  }
  0x22   :  { %5626 = vmatmul.mubr.bf16.vlgmr.msra.gmra.mrb[0].mxu0 %v8470_v33  ;;  %9648 = vmatprep.subr.bf16.mxu1 %v11187_v42  ;;  %v11206_v33 = vld [vmem:[%s15186_s1 + $0x128] sm:$0xff]   ;;  %v11210_v42 = vld [vmem:[%s15186_s1 + $0x130] sm:$0xff]  }
  0x23   :  { %9555 = vmatpush3.bf16.msra.mxu0 %v11186_v41  ;;  %5633 = vmatprep.mubr.bf16.mxu0 %v8511_v46  ;;  %v8670_v41 = vcombine.low %v215_v24, %v235_v25  ;;  %v11211_v46 = vld [vmem:[%s15186_s1 + $0x1f0] sm:$0xff]   ;;  %v336_v3 = vld [vmem:[%s15187_s0 + $0xa08] sm:$0xff]  ;;  %v455_v24 = vld [vmem:[%s15187_s0 + $0xdc0] sm:$0xff] }
  0x24   :  { %5762 = vmatmul.mubr.bf16.vlgmr.msra.gmra.mrb[0].mxu1 %v8472_v39  ;;  %9556 = vmatprep.subr.bf16.mxu0 %v11189_v51  ;;  %v275_v39 = vld [vmem:[%s15187_s0 + $0x820] sm:$0xff]  ;;  %v376_v12 = vld [vmem:[%s15187_s0 + $0xb48] sm:$0xff] }
  0x25   :  { %9649 = vmatpush3.bf16.msra.mxu1 %v11188_v43  ;;  %5769 = vmatprep.mubr.bf16.mxu1 %v8513_v50  ;;  %v8711_v43 = vcombine.high %v255_v37, %v275_v39  ;;  %v295_v50 = vld [vmem:[%s15187_s0 + $0x8c0] sm:$0xff]  ;;  %v8710_v54 = vcombine.low %v255_v37, %v275_v39  ;;  %v476_v29 = vld [vmem:[%s15187_s0 + $0xe68] sm:$0xff]  ;;  %v37_v39 = vld [vmem:[%s15187_s0 + $0xb0] sm:$0xff] }
  0x26   :  { %9650 = vmatprep.subr.bf16.mxu1 %v11191_v59  ;;  %v315_v51 = vld [vmem:[%s15187_s0 + $0x960] sm:$0xff]  ;;  %v11219_v59 = vld [vmem:[%s15186_s1 + $0x1b8] sm:$0xff]  }
  0x27   :  { %9557 = vmatpush3.bf16.msra.mxu0 %v11190_v52  ;;  %v11213_v52 = vld [vmem:[%s15186_s1 + $0x178] sm:$0xff]   ;;  %v8750_v2 = vcombine.low %v295_v50, %v315_v51  ;;  %v475_v25 = vld [vmem:[%s15187_s0 + $0xe60] sm:$0xff] }
  0x28   :  { %9558 = vmatprep.subr.bf16.mxu0 %v11193_v0  ;;  %v11223_v0 = vld [vmem:[%s15186_s1 + $0x2c0] sm:$0xff]  }
  0x29   :  { %9651 = vmatpush3.bf16.msra.mxu1 %v11192_v61  ;;  %v11221_v61 = vld [vmem:[%s15186_s1 + $0x240] sm:$0xff]  }
  0x2a   :  { %5634 = vmatmul.mubr.bf16.gmra.mrb[4].mxu0 %v8510_v49  ;;  %9652 = vmatprep.subr.bf16.mxu1 %v11195_v6  ;;  %v8713_v49 = vcombine.high %v256_v44, %v276_v45 }
  0x2b   :  { %5641 = vmatprep.mubr.bf16.mxu0 %v8551_v58  ;;  %9559 = vmatpush3.bf16.msra.mxu0 %v11194_v4  ;;  %v316_v58 = vld [vmem:[%s15187_s0 + $0x968] sm:$0xff] }
  0x2c   :  { %5770 = vmatmul.mubr.bf16.gmra.mrb[4].mxu1 %v8512_v57  ;;  %9560 = vmatprep.subr.bf16.mxu0 %v11197_v10  ;;  %v8751_v57 = vcombine.high %v295_v50, %v315_v51  ;;  %v8753_v62 = vcombine.high %v296_v55, %v316_v58  ;;  %v8752_v6 = vcombine.low %v296_v55, %v316_v58  ;;  %v58_v50 = vld [vmem:[%s15187_s0 + $0x158] sm:$0xff]  ;;  %v11224_v55 = vld [vmem:[%s15186_s1 + $0x280] sm:$0xff]   ;;  %v97_v58 = vld [vmem:[%s15187_s0 + $0x290] sm:$0xff] }
  0x2d   :  { %5777 = vmatprep.mubr.bf16.mxu1 %v8553_v60  ;;  %9653 = vmatpush3.bf16.msra.mxu1 %v11196_v7  ;;  %v8712_v60 = vcombine.low %v256_v44, %v276_v45 }
  0x2e   :  { %9654 = vmatprep.subr.bf16.mxu1 %v11199_v14 }
  0x2f   :  { %9561 = vmatpush3.bf16.msra.mxu0 %v11198_v13  ;;  %v396_v13 = vld [vmem:[%s15187_s0 + $0xbe8] sm:$0xff] }
  0x30   :  { %9562 = vmatprep.subr.bf16.mxu0 %v11201_v21  ;;  %v436_v21 = vld [vmem:[%s15187_s0 + $0xd28] sm:$0xff] }
  0x31   :  { %9655 = vmatpush3.bf16.msra.mxu1 %v11200_v16  ;;  %v415_v16 = vld [vmem:[%s15187_s0 + $0xc80] sm:$0xff] }
  0x32   :  { %5642 = vmatmul.mubr.bf16.gmra.mrb[8].mxu0 %v8550_v1  ;;  %9656 = vmatprep.subr.bf16.mxu1 %v11203_v26  ;;  %v355_v1 = vld [vmem:[%s15187_s0 + $0xaa0] sm:$0xff] }
  0x33   :  { %5649 = vmatprep.mubr.bf16.mxu0 %v8591_v5  ;;  %9563 = vmatpush3.bf16.msra.mxu0 %v11202_v23  ;;  %v8791_v4 = vcombine.high %v335_v63, %v355_v1  ;;  %v356_v5 = vld [vmem:[%s15187_s0 + $0xaa8] sm:$0xff]  ;;  %v8790_v10 = vcombine.low %v335_v63, %v355_v1  ;;  %v118_v63 = vld [vmem:[%s15187_s0 + $0x338] sm:$0xff] }
  0x34   :  { %5778 = vmatmul.mubr.bf16.gmra.mrb[8].mxu1 %v8552_v8  ;;  %9564 = vmatprep.subr.bf16.mxu0 %v11205_v32  ;;  %v8793_v7 = vcombine.high %v336_v3, %v356_v5  ;;  %v375_v8 = vld [vmem:[%s15187_s0 + $0xb40] sm:$0xff]  ;;  %v8792_v14 = vcombine.low %v336_v3, %v356_v5  ;;  %v11232_v5 = vld [vmem:[%s15186_s1 + $0x290] sm:$0xff]  }
  0x35   :  { %5785 = vmatprep.mubr.bf16.mxu1 %v8593_v9  ;;  %9657 = vmatpush3.bf16.msra.mxu1 %v11204_v27  ;;  %v395_v9 = vld [vmem:[%s15187_s0 + $0xbe0] sm:$0xff]  ;;  %v8911_v27 = vcombine.high %v455_v24, %v475_v25 }
  0x36   :  { %9658 = vmatprep.subr.bf16.mxu1 %v11207_v35  ;;  %v8831_v11 = vcombine.high %v375_v8, %v395_v9  ;;  %v8830_v18 = vcombine.low %v375_v8, %v395_v9  ;;  %v495_v32 = vld [vmem:[%s15187_s0 + $0xf00] sm:$0xff]  ;;  %v496_v35 = vld [vmem:[%s15187_s0 + $0xf08] sm:$0xff]  ;;  %v137_v9 = vld [vmem:[%s15187_s0 + $0x3d0] sm:$0xff] }
  0x37   :  { %9565 = vmatpush3.bf16.msra.mxu0 %v11206_v33  ;;  %v8910_v33 = vcombine.low %v455_v24, %v475_v25  ;;  %v8953_v37 = vcombine.high %v496_v35, %v496_v35  ;;  %v8952_v44 = vcombine.low %v496_v35, %v496_v35  ;;  %v11242_v24 = vld [vmem:[%s15186_s1 + $0x228] sm:$0xff]  }
  0x38   :  { %9566 = vmatprep.subr.bf16.mxu0 %v11209_v40  ;;  %v8950_v40 = vcombine.low %v495_v32, %v495_v32  ;;  %v11243_v25 = vld [vmem:[%s15186_s1 + $0x2e8] sm:$0xff]  }
  0x39   :  { %9659 = vmatpush3.bf16.msra.mxu1 %v11208_v38  ;;  %v17_v38 = vld [vmem:[%s15187_s0 + $0x10] sm:$0xff] }
  0x3a   :  { %5650 = vmatmul.mubr.bf16.gmra.mrb[12].mxu0 %v8590_v15  ;;  %9660 = vmatprep.subr.bf16.mxu1 %v11211_v46  ;;  %v8833_v15 = vcombine.high %v376_v12, %v396_v13  ;;  %v57_v46 = vld [vmem:[%s15187_s0 + $0x150] sm:$0xff] }
  0x3b   :  { %5657 = vmatprep.mubr.bf16.mxu0 %v8631_v17  ;;  %9567 = vmatpush3.bf16.msra.mxu0 %v11210_v42  ;;  %v435_v17 = vld [vmem:[%s15187_s0 + $0xd20] sm:$0xff]  ;;  %v8475_v42 = vcombine.high %v17_v38, %v37_v39 }
  0x3c   :  { %5786 = vmatmul.mubr.bf16.gmra.mrb[12].mxu1 %v8592_v20  ;;  %9568 = vmatprep.subr.bf16.mxu0 %v11213_v52  ;;  %v8871_v19 = vcombine.high %v415_v16, %v435_v17  ;;  %v416_v20 = vld [vmem:[%s15187_s0 + $0xc88] sm:$0xff]  ;;  %v8870_v26 = vcombine.low %v415_v16, %v435_v17  ;;  %v78_v52 = vld [vmem:[%s15187_s0 + $0x1f8] sm:$0xff] }
  0x3d   :  { %5793 = vmatprep.mubr.bf16.mxu1 %v8633_v22  ;;  %9661 = vmatpush3.bf16.msra.mxu1 %v11212_v48  ;;  %v8832_v22 = vcombine.low %v376_v12, %v396_v13  ;;  %v8873_v23 = vcombine.high %v416_v20, %v436_v21  ;;  %v8872_v30 = vcombine.low %v416_v20, %v436_v21  ;;  %v11235_v12 = vld [vmem:[%s15186_s1 + $0x2d8] sm:$0xff]   ;;  %v11239_v20 = vld [vmem:[%s15186_s1 + $0x2e0] sm:$0xff]   ;;  %v11241_v21 = vld [vmem:[%s15186_s1 + $0x268] sm:$0xff]  }
  0x3e   :  { %9662 = vmatprep.subr.bf16.mxu1 %v11217_v56  ;;  %v8474_v48 = vcombine.low %v17_v38, %v37_v39  ;;  %v8517_v56 = vcombine.high %v58_v50, %v78_v52  ;;  %v11236_v13 = vld [vmem:[%s15186_s1 + $0x298] sm:$0xff]   ;;  %v11248_v39 = vld [vmem:[%s15186_s1 + $0x2b0] sm:$0xff]  }
  0x3f   :  { %9569 = vmatpush3.bf16.msra.mxu0 %v11214_v53  ;;  %v11225_v53 = vld [vmem:[%s15186_s1 + $0x248] sm:$0xff]   ;;  %v158_v16 = vld [vmem:[%s15187_s0 + $0x478] sm:$0xff] }
  0x40   :  { %9742 = vmatprep.subr.bf16.mxu0 %v11221_v61  ;;  %v11229_v61 = vld [vmem:[%s15186_s1 + $0x250] sm:$0xff]  }
  0x41   :  { %9663 = vmatpush3.bf16.msra.mxu1 %v11219_v59  ;;  %v11227_v59 = vld [vmem:[%s15186_s1 + $0x2c8] sm:$0xff]  }
  0x42   :  { %5658 = vmatmul.mubr.bf16.gmra.mrb[16].mxu0 %v8630_v28  ;;  %9836 = vmatprep.subr.bf16.mxu1 %v11223_v0  ;;  %v456_v28 = vld [vmem:[%s15187_s0 + $0xdc8] sm:$0xff] }
  0x43   :  { %5665 = vmatprep.mubr.bf16.mxu0 %v8671_v31  ;;  %v8913_v31 = vcombine.high %v456_v28, %v476_v29  ;;  %v11228_v0 = vld [vmem:[%s15186_s1 + $0x288] sm:$0xff]  }
  0x44   :  { %5794 = vmatmul.mubr.bf16.gmra.mrb[16].mxu1 %v8632_v34  ;;  %v8951_v34 = vcombine.high %v495_v32, %v495_v32  ;;  %v198_v32 = vld [vmem:[%s15187_s0 + $0x5b8] sm:$0xff] }
  0x45   :  { %5801 = vmatprep.mubr.bf16.mxu1 %v8673_v36  ;;  %v8912_v36 = vcombine.low %v456_v28, %v476_v29  ;;  %v197_v28 = vld [vmem:[%s15187_s0 + $0x5b0] sm:$0xff]  ;;  %v11244_v29 = vld [vmem:[%s15186_s1 + $0x2a8] sm:$0xff]  }
  0x4a   :  { %5666 = vmatmul.mubr.bf16.gmra.mrb[20].mxu0 %v8670_v41  ;;  %v18_v41 = vld [vmem:[%s15187_s0 + $0x18] sm:$0xff] }
  0x4b   :  { %5673 = vmatprep.mubr.bf16.mxu0 %v8711_v43  ;;  %v38_v43 = vld [vmem:[%s15187_s0 + $0xb8] sm:$0xff] }
  0x4c   :  { %5802 = vmatmul.mubr.bf16.gmra.mrb[20].mxu1 %v8672_v47  ;;  %v8477_v45 = vcombine.high %v18_v41, %v38_v43  ;;  %v77_v47 = vld [vmem:[%s15187_s0 + $0x1f0] sm:$0xff] }
  0x4d   :  { %5809 = vmatprep.mubr.bf16.mxu1 %v8713_v49  ;;  %v11222_v49 = vld [vmem:[%s15186_s1 + $0x200] sm:$0xff]   ;;  %v8515_v51 = vcombine.high %v57_v46, %v77_v47  ;;  %v8514_v1 = vcombine.low %v57_v46, %v77_v47  ;;  %v11255_v46 = vld [vmem:[%s15186_s1 + $0x2b8] sm:$0xff]  }
  0x4e   :  { %v218_v47 = vld [vmem:[%s15187_s0 + $0x658] sm:$0xff] }
  0x52   :  { %5674 = vmatmul.mubr.bf16.gmra.mrb[24].mxu0 %v8710_v54  ;;  %v8476_v54 = vcombine.low %v18_v41, %v38_v43  ;;  %v11253_v41 = vld [vmem:[%s15186_s1 + $0x2f8] sm:$0xff]   ;;  %v217_v43 = vld [vmem:[%s15187_s0 + $0x650] sm:$0xff] }
  0x53   :  { %5681 = vmatprep.mubr.bf16.mxu0 %v8751_v57  ;;  %v11226_v57 = vld [vmem:[%s15186_s1 + $0x208] sm:$0xff]  }
  0x54   :  { %5810 = vmatmul.mubr.bf16.gmra.mrb[24].mxu1 %v8712_v60  ;;  %v117_v60 = vld [vmem:[%s15187_s0 + $0x330] sm:$0xff] }
  0x55   :  { %5817 = vmatprep.mubr.bf16.mxu1 %v8753_v62  ;;  %v98_v62 = vld [vmem:[%s15187_s0 + $0x298] sm:$0xff]  ;;  %v8555_v3 = vcombine.high %v97_v58, %v117_v60  ;;  %v8554_v17 = vcombine.low %v97_v58, %v117_v60 }
  0x56   :  { %v8557_v8 = vcombine.high %v98_v62, %v118_v63  ;;  %v258_v58 = vld [vmem:[%s15187_s0 + $0x798] sm:$0xff] }
  0x5a   :  { %5682 = vmatmul.mubr.bf16.gmra.mrb[28].mxu0 %v8750_v2  ;;  %v11230_v2 = vld [vmem:[%s15186_s1 + $0x210] sm:$0xff]  }
  0x5b   :  { %5689 = vmatprep.mubr.bf16.mxu0 %v8791_v4  ;;  %v11231_v4 = vld [vmem:[%s15186_s1 + $0x2d0] sm:$0xff]  }
  0x5c   :  { %5818 = vmatmul.mubr.bf16.gmra.mrb[28].mxu1 %v8752_v6  ;;  %v11233_v6 = vld [vmem:[%s15186_s1 + $0x258] sm:$0xff]  }
  0x5d   :  { %5825 = vmatprep.mubr.bf16.mxu1 %v8793_v7  ;;  %v8516_v7 = vcombine.low %v58_v50, %v78_v52  ;;  %v238_v50 = vld [vmem:[%s15187_s0 + $0x6f8] sm:$0xff] }
  0x5e   :  { %v8676_v60 = vcombine.low %v218_v47, %v238_v50 }
  0x62   :  { %5690 = vmatmul.mubr.bf16.gmra.mrb[32].mxu0 %v8790_v10  ;;  %v157_v10 = vld [vmem:[%s15187_s0 + $0x470] sm:$0xff] }
  0x63   :  { %5697 = vmatprep.mubr.bf16.mxu0 %v8831_v11  ;;  %v11234_v11 = vld [vmem:[%s15186_s1 + $0x218] sm:$0xff]  }
  0x64   :  { %5826 = vmatmul.mubr.bf16.gmra.mrb[32].mxu1 %v8792_v14  ;;  %v11237_v14 = vld [vmem:[%s15186_s1 + $0x260] sm:$0xff]  }
  0x65   :  { %5833 = vmatprep.mubr.bf16.mxu1 %v8833_v15  ;;  %v138_v15 = vld [vmem:[%s15187_s0 + $0x3d8] sm:$0xff] }
  0x66   :  { %v8596_v38 = vcombine.low %v138_v15, %v158_v16 }
  0x6a   :  { %5698 = vmatmul.mubr.bf16.gmra.mrb[36].mxu0 %v8830_v18  ;;  %v11238_v18 = vld [vmem:[%s15186_s1 + $0x220] sm:$0xff]  }
  0x6b   :  { %5705 = vmatprep.mubr.bf16.mxu0 %v8871_v19  ;;  %v8595_v19 = vcombine.high %v137_v9, %v157_v10 }
  0x6c   :  { %5834 = vmatmul.mubr.bf16.gmra.mrb[36].mxu1 %v8832_v22  ;;  %v11240_v22 = vld [vmem:[%s15186_s1 + $0x2a0] sm:$0xff]  }
  0x6d   :  { %5841 = vmatprep.mubr.bf16.mxu1 %v8873_v23  ;;  %v8556_v23 = vcombine.low %v98_v62, %v118_v63  ;;  %v297_v62 = vld [vmem:[%s15187_s0 + $0x8d0] sm:$0xff] }
  0x6e   :  { %v317_v63 = vld [vmem:[%s15187_s0 + $0x970] sm:$0xff] }
  0x72   :  { %5706 = vmatmul.mubr.bf16.gmra.mrb[40].mxu0 %v8870_v26  ;;  %v8597_v26 = vcombine.high %v138_v15, %v158_v16  ;;  %v397_v15 = vld [vmem:[%s15187_s0 + $0xbf0] sm:$0xff] }
  0x73   :  { %5713 = vmatprep.mubr.bf16.mxu0 %v8911_v27  ;;  %v177_v27 = vld [vmem:[%s15187_s0 + $0x510] sm:$0xff] }
  0x74   :  { %5842 = vmatmul.mubr.bf16.gmra.mrb[40].mxu1 %v8872_v30  ;;  %v11245_v30 = vld [vmem:[%s15186_s1 + $0x270] sm:$0xff]   ;;  %v8635_v35 = vcombine.high %v177_v27, %v197_v28 }
  0x75   :  { %5849 = vmatprep.mubr.bf16.mxu1 %v8913_v31  ;;  %v178_v31 = vld [vmem:[%s15187_s0 + $0x518] sm:$0xff] }
  0x76   :  { %v8636_v52 = vcombine.low %v178_v31, %v198_v32 }
  0x7a   :  { %5714 = vmatmul.mubr.bf16.gmra.mrb[44].mxu0 %v8910_v33  ;;  %v8594_v33 = vcombine.low %v137_v9, %v157_v10  ;;  %v338_v10 = vld [vmem:[%s15187_s0 + $0xa18] sm:$0xff] }
  0x7b   :  { %5721 = vmatprep.mubr.bf16.mxu0 %v8951_v34  ;;  %v11246_v34 = vld [vmem:[%s15186_s1 + $0x230] sm:$0xff]  }
  0x7c   :  { %5850 = vmatmul.mubr.bf16.gmra.mrb[44].mxu1 %v8912_v36  ;;  %v11247_v36 = vld [vmem:[%s15186_s1 + $0x2f0] sm:$0xff]  }
  0x7d   :  { %5857 = vmatprep.mubr.bf16.mxu1 %v8953_v37  ;;  %v11249_v37 = vld [vmem:[%s15186_s1 + $0x278] sm:$0xff]  }
  0x82   :  { %5722 = vmatmul.mubr.bf16.gmra.mrb[48].mxu0 %v8950_v40  ;;  %v11250_v40 = vld [vmem:[%s15186_s1 + $0x238] sm:$0xff]  }
  0x83   :  { %5897 = vmatprep.mubr.bf16.mxu0 %v8475_v42  ;;  %v8637_v42 = vcombine.high %v178_v31, %v198_v32  ;;  %v477_v31 = vld [vmem:[%s15187_s0 + $0xe70] sm:$0xff] }
  0x84   :  { %5858 = vmatmul.mubr.bf16.gmra.mrb[48].mxu1 %v8952_v44  ;;  %v237_v44 = vld [vmem:[%s15187_s0 + $0x6f0] sm:$0xff] }
  0x85   :  { %6033 = vmatprep.mubr.bf16.mxu1 %v8477_v45  ;;  %v11257_v45 = vld [vmem:[%s15186_s1 + $0x340] sm:$0xff]  }
  0x8a   :  { %5898 = vmatmul.mubr.bf16.vlgmr.msra.gmra.mrb[52].mxu0 %v8474_v48  ;;  %v8634_v48 = vcombine.low %v177_v27, %v197_v28  ;;  %v438_v27 = vld [vmem:[%s15187_s0 + $0xd38] sm:$0xff] }
  0x8b   :  { %9743 = vmatpush3.bf16.msra.mxu0 %v11222_v49  ;;  %5905 = vmatprep.mubr.bf16.mxu0 %v8515_v51  ;;  %v8675_v49 = vcombine.high %v217_v43, %v237_v44  ;;  %v11259_v51 = vld [vmem:[%s15186_s1 + $0x3c0] sm:$0xff]  }
  0x8c   :  { %9744 = vmatprep.subr.bf16.mxu0 %v11225_v53  ;;  %6034 = vmatmul.mubr.bf16.vlgmr.msra.gmra.mrb[52].mxu1 %v8476_v54  ;;  %v8677_v53 = vcombine.high %v218_v47, %v238_v50  ;;  %v257_v54 = vld [vmem:[%s15187_s0 + $0x790] sm:$0xff] }
  0x8d   :  { %9837 = vmatpush3.bf16.msra.mxu1 %v11224_v55  ;;  %6041 = vmatprep.mubr.bf16.mxu1 %v8517_v56  ;;  %v277_v55 = vld [vmem:[%s15187_s0 + $0x830] sm:$0xff]  ;;  %v8674_v56 = vcombine.low %v217_v43, %v237_v44  ;;  %v19_v44 = vld [vmem:[%s15187_s0 + $0x20] sm:$0xff] }
  0x8e   :  { %9838 = vmatprep.subr.bf16.mxu1 %v11227_v59  ;;  %v278_v59 = vld [vmem:[%s15187_s0 + $0x838] sm:$0xff] }
  0x8f   :  { %9745 = vmatpush3.bf16.msra.mxu0 %v11226_v57  ;;  %v8715_v57 = vcombine.high %v257_v54, %v277_v55 }
  0x90   :  { %9746 = vmatprep.subr.bf16.mxu0 %v11229_v61  ;;  %v8717_v61 = vcombine.high %v258_v58, %v278_v59 }
  0x91   :  { %9839 = vmatpush3.bf16.msra.mxu1 %v11228_v0  ;;  %v8714_v0 = vcombine.low %v257_v54, %v277_v55  ;;  %v11258_v55 = vld [vmem:[%s15186_s1 + $0x300] sm:$0xff]  }
  0x92   :  { %5906 = vmatmul.mubr.bf16.gmra.mrb[56].mxu0 %v8514_v1  ;;  %9840 = vmatprep.subr.bf16.mxu1 %v11231_v4  ;;  %v8755_v1 = vcombine.high %v297_v62, %v317_v63  ;;  %v8716_v4 = vcombine.low %v258_v58, %v278_v59  ;;  %v80_v58 = vld [vmem:[%s15187_s0 + $0x208] sm:$0xff] }
  0x93   :  { %5913 = vmatprep.mubr.bf16.mxu0 %v8555_v3  ;;  %9747 = vmatpush3.bf16.msra.mxu0 %v11230_v2  ;;  %v298_v2 = vld [vmem:[%s15187_s0 + $0x8d8] sm:$0xff]  ;;  %v11261_v59 = vld [vmem:[%s15186_s1 + $0x348] sm:$0xff]  }
  0x94   :  { %9748 = vmatprep.subr.bf16.mxu0 %v11233_v6  ;;  %6042 = vmatmul.mubr.bf16.gmra.mrb[56].mxu1 %v8516_v7  ;;  %v318_v3 = vld [vmem:[%s15187_s0 + $0x978] sm:$0xff]  ;;  %v337_v6 = vld [vmem:[%s15187_s0 + $0xa10] sm:$0xff] }
  0x95   :  { %6049 = vmatprep.mubr.bf16.mxu1 %v8557_v8  ;;  %9841 = vmatpush3.bf16.msra.mxu1 %v11232_v5  ;;  %v8757_v5 = vcombine.high %v298_v2, %v318_v3  ;;  %v357_v7 = vld [vmem:[%s15187_s0 + $0xab0] sm:$0xff]  ;;  %v8754_v8 = vcombine.low %v297_v62, %v317_v63  ;;  %v11262_v62 = vld [vmem:[%s15186_s1 + $0x308] sm:$0xff]  }
  0x96   :  { %9842 = vmatprep.subr.bf16.mxu1 %v11235_v12  ;;  %v8795_v9 = vcombine.high %v337_v6, %v357_v7  ;;  %v8756_v12 = vcombine.low %v298_v2, %v318_v3  ;;  %v8794_v16 = vcombine.low %v337_v6, %v357_v7  ;;  %v11263_v63 = vld [vmem:[%s15186_s1 + $0x3c8] sm:$0xff]   ;;  %v12169_v2 = vld [vmem:[%s15187_s0 + $0x340] sm:$0xff]  ;;  %v11265_v3 = vld [vmem:[%s15186_s1 + $0x350] sm:$0xff]  }
  0x97   :  { %9749 = vmatpush3.bf16.msra.mxu0 %v11234_v11  ;;  %v358_v11 = vld [vmem:[%s15187_s0 + $0xab8] sm:$0xff]  ;;  %v12182_v6 = vld [vmem:[%s15187_s0 + $0x2a8] sm:$0xff] }
  0x98   :  { %9750 = vmatprep.subr.bf16.mxu0 %v11237_v14  ;;  %v377_v14 = vld [vmem:[%s15187_s0 + $0xb50] sm:$0xff]  ;;  %v12187_v7 = vld [vmem:[%s15187_s0 + $0x348] sm:$0xff] }
  0x99   :  { %9843 = vmatpush3.bf16.msra.mxu1 %v11236_v13  ;;  %v8797_v13 = vcombine.high %v338_v10, %v358_v11 }
  0x9a   :  { %5914 = vmatmul.mubr.bf16.gmra.mrb[60].mxu0 %v8554_v17  ;;  %9844 = vmatprep.subr.bf16.mxu1 %v11239_v20  ;;  %v8835_v17 = vcombine.high %v377_v14, %v397_v15  ;;  %v8796_v20 = vcombine.low %v338_v10, %v358_v11  ;;  %v11264_v10 = vld [vmem:[%s15186_s1 + $0x388] sm:$0xff]   ;;  %v11266_v11 = vld [vmem:[%s15186_s1 + $0x310] sm:$0xff]  }
  0x9b   :  { %5921 = vmatprep.mubr.bf16.mxu0 %v8595_v19  ;;  %9751 = vmatpush3.bf16.msra.mxu0 %v11238_v18  ;;  %v378_v18 = vld [vmem:[%s15187_s0 + $0xb58] sm:$0xff] }
  0x9c   :  { %9752 = vmatprep.subr.bf16.mxu0 %v11241_v21  ;;  %6050 = vmatmul.mubr.bf16.gmra.mrb[60].mxu1 %v8556_v23  ;;  %v398_v19 = vld [vmem:[%s15187_s0 + $0xbf8] sm:$0xff]  ;;  %v437_v23 = vld [vmem:[%s15187_s0 + $0xd30] sm:$0xff] }
  0x9d   :  { %6057 = vmatprep.mubr.bf16.mxu1 %v8597_v26  ;;  %9845 = vmatpush3.bf16.msra.mxu1 %v11240_v22  ;;  %v8837_v21 = vcombine.high %v378_v18, %v398_v19  ;;  %v417_v22 = vld [vmem:[%s15187_s0 + $0xc90] sm:$0xff]  ;;  %v8836_v28 = vcombine.low %v378_v18, %v398_v19 }
  0x9e   :  { %9846 = vmatprep.subr.bf16.mxu1 %v11243_v25  ;;  %v418_v25 = vld [vmem:[%s15187_s0 + $0xc98] sm:$0xff]  ;;  %v8875_v26 = vcombine.high %v417_v22, %v437_v23  ;;  %v8874_v32 = vcombine.low %v417_v22, %v437_v23  ;;  %v11268_v23 = vld [vmem:[%s15186_s1 + $0x390] sm:$0xff]  }
  0x9f   :  { %9753 = vmatpush3.bf16.msra.mxu0 %v11242_v24  ;;  %v8834_v24 = vcombine.low %v377_v14, %v397_v15  ;;  %v11267_v15 = vld [vmem:[%s15186_s1 + $0x3d0] sm:$0xff]  }
  0xa0   :  { %9754 = vmatprep.subr.bf16.mxu0 %v11245_v30  ;;  %v457_v30 = vld [vmem:[%s15187_s0 + $0xdd0] sm:$0xff] }
  0xa1   :  { %9847 = vmatpush3.bf16.msra.mxu1 %v11244_v29  ;;  %v8877_v29 = vcombine.high %v418_v25, %v438_v27 }
  0xa2   :  { %5922 = vmatmul.mubr.bf16.gmra.mrb[64].mxu0 %v8594_v33  ;;  %9848 = vmatprep.subr.bf16.mxu1 %v11247_v36  ;;  %v8915_v33 = vcombine.high %v457_v30, %v477_v31  ;;  %v8876_v36 = vcombine.low %v418_v25, %v438_v27  ;;  %v12212_v27 = vld [vmem:[%s15187_s0 + $0x3e0] sm:$0xff] }
  0xa3   :  { %5929 = vmatprep.mubr.bf16.mxu0 %v8635_v35  ;;  %9755 = vmatpush3.bf16.msra.mxu0 %v11246_v34  ;;  %v458_v34 = vld [vmem:[%s15187_s0 + $0xdd8] sm:$0xff] }
  0xa4   :  { %9756 = vmatprep.subr.bf16.mxu0 %v11249_v37  ;;  %6058 = vmatmul.mubr.bf16.gmra.mrb[64].mxu1 %v8596_v38  ;;  %v478_v35 = vld [vmem:[%s15187_s0 + $0xe78] sm:$0xff]  ;;  %v497_v38 = vld [vmem:[%s15187_s0 + $0xf10] sm:$0xff] }
  0xa5   :  { %6065 = vmatprep.mubr.bf16.mxu1 %v8637_v42  ;;  %9849 = vmatpush3.bf16.msra.mxu1 %v11248_v39  ;;  %v8917_v37 = vcombine.high %v458_v34, %v478_v35  ;;  %v8914_v39 = vcombine.low %v457_v30, %v477_v31  ;;  %v8916_v42 = vcombine.low %v458_v34, %v478_v35  ;;  %v11273_v35 = vld [vmem:[%s15186_s1 + $0x360] sm:$0xff]  }
  0xa6   :  { %9850 = vmatprep.subr.bf16.mxu1 %v11253_v41  ;;  %v498_v41 = vld [vmem:[%s15187_s0 + $0xf18] sm:$0xff] }
  0xa7   :  { %9757 = vmatpush3.bf16.msra.mxu0 %v11250_v40  ;;  %v8955_v40 = vcombine.high %v497_v38, %v497_v38  ;;  %v8957_v43 = vcombine.high %v498_v41, %v498_v41  ;;  %v8956_v50 = vcombine.low %v498_v41, %v498_v41 }
  0xa8   :  { %9930 = vmatprep.subr.bf16.mxu0 %v11257_v45  ;;  %v39_v45 = vld [vmem:[%s15187_s0 + $0xc0] sm:$0xff] }
  0xa9   :  { %9851 = vmatpush3.bf16.msra.mxu1 %v11255_v46  ;;  %v8954_v46 = vcombine.low %v497_v38, %v497_v38  ;;  %v8479_v47 = vcombine.high %v19_v44, %v39_v45  ;;  %v8478_v54 = vcombine.low %v19_v44, %v39_v45  ;;  %v12239_v38 = vld [vmem:[%s15187_s0 + $0x488] sm:$0xff] }
  0xaa   :  { %5930 = vmatmul.mubr.bf16.gmra.mrb[68].mxu0 %v8634_v48  ;;  %10024 = vmatprep.subr.bf16.mxu1 %v11259_v51  ;;  %v20_v48 = vld [vmem:[%s15187_s0 + $0x28] sm:$0xff] }
  0xab   :  { %5937 = vmatprep.mubr.bf16.mxu0 %v8675_v49  ;;  %v40_v49 = vld [vmem:[%s15187_s0 + $0xc8] sm:$0xff] }
  0xac   :  { %6066 = vmatmul.mubr.bf16.gmra.mrb[68].mxu1 %v8636_v52  ;;  %v8481_v51 = vcombine.high %v20_v48, %v40_v49  ;;  %v59_v52 = vld [vmem:[%s15187_s0 + $0x160] sm:$0xff] }
  0xad   :  { %6073 = vmatprep.mubr.bf16.mxu1 %v8677_v53  ;;  %v79_v53 = vld [vmem:[%s15187_s0 + $0x200] sm:$0xff] }
  0xb2   :  { %5938 = vmatmul.mubr.bf16.gmra.mrb[72].mxu0 %v8674_v56  ;;  %v60_v56 = vld [vmem:[%s15187_s0 + $0x168] sm:$0xff] }
  0xb3   :  { %5945 = vmatprep.mubr.bf16.mxu0 %v8715_v57  ;;  %v8519_v57 = vcombine.high %v59_v52, %v79_v53  ;;  %v8520_v22 = vcombine.low %v60_v56, %v80_v58 }
  0xb4   :  { %6074 = vmatmul.mubr.bf16.gmra.mrb[72].mxu1 %v8676_v60  ;;  %v11260_v60 = vld [vmem:[%s15186_s1 + $0x380] sm:$0xff]  }
  0xb5   :  { %6081 = vmatprep.mubr.bf16.mxu1 %v8717_v61  ;;  %v8480_v61 = vcombine.low %v20_v48, %v40_v49  ;;  %v11277_v48 = vld [vmem:[%s15186_s1 + $0x368] sm:$0xff]  }
  0xba   :  { %5946 = vmatmul.mubr.bf16.gmra.mrb[76].mxu0 %v8714_v0  ;;  %v8521_v0 = vcombine.high %v60_v56, %v80_v58 }
  0xbb   :  { %5953 = vmatprep.mubr.bf16.mxu0 %v8755_v1  ;;  %v12164_v1 = vld [vmem:[%s15187_s0 + $0x2a0] sm:$0xff] }
  0xbc   :  { %6082 = vmatmul.mubr.bf16.gmra.mrb[76].mxu1 %v8716_v4  ;;  %v12177_v4 = vld [vmem:[%s15188_s2] ss:$0 sm:$0xff]  ;;  %v8559_v14 = vcombine.high %v12164_v1, %v12169_v2 }
  0xbd   :  { %6089 = vmatprep.mubr.bf16.mxu1 %v8757_v5 }
  0xc2   :  { %5954 = vmatmul.mubr.bf16.gmra.mrb[80].mxu0 %v8754_v8 }
  0xc3   :  { %5961 = vmatprep.mubr.bf16.mxu0 %v8795_v9  ;;  %v8518_v9 = vcombine.low %v59_v52, %v79_v53 }
  0xc4   :  { %6090 = vmatmul.mubr.bf16.gmra.mrb[80].mxu1 %v8756_v12 }
  0xc5   :  { %6097 = vmatprep.mubr.bf16.mxu1 %v8797_v13 }
  0xca   :  { %5962 = vmatmul.mubr.bf16.gmra.mrb[84].mxu0 %v8794_v16  ;;  %v11269_v16 = vld [vmem:[%s15186_s1 + $0x358] sm:$0xff]  }
  0xcb   :  { %5969 = vmatprep.mubr.bf16.mxu0 %v8835_v17 }
  0xcc   :  { %6098 = vmatmul.mubr.bf16.gmra.mrb[84].mxu1 %v8796_v20 }
  0xcd   :  { %6105 = vmatprep.mubr.bf16.mxu1 %v8837_v21 }
  0xd2   :  { %5970 = vmatmul.mubr.bf16.gmra.mrb[88].mxu0 %v8834_v24 }
  0xd3   :  { %5977 = vmatprep.mubr.bf16.mxu0 %v8875_v26  ;;  %v8561_v26 = vcombine.high %v12182_v6, %v12187_v7 }
  0xd4   :  { %6106 = vmatmul.mubr.bf16.gmra.mrb[88].mxu1 %v8836_v28  ;;  %v12217_v28 = vld [vmem:[%s15187_s0 + $0x480] sm:$0xff] }
  0xd5   :  { %6113 = vmatprep.mubr.bf16.mxu1 %v8877_v29  ;;  %v11270_v29 = vld [vmem:[%s15186_s1 + $0x318] sm:$0xff]  }
  0xda   :  { %5978 = vmatmul.mubr.bf16.gmra.mrb[92].mxu0 %v8874_v32  ;;  %v11271_v32 = vld [vmem:[%s15186_s1 + $0x3d8] sm:$0xff]  }
  0xdb   :  { %5985 = vmatprep.mubr.bf16.mxu0 %v8915_v33 }
  0xdc   :  { %6114 = vmatmul.mubr.bf16.gmra.mrb[92].mxu1 %v8876_v36 }
  0xdd   :  { %6121 = vmatprep.mubr.bf16.mxu1 %v8917_v37  ;;  %v12234_v37 = vld [vmem:[%s15187_s0 + $0x3e8] sm:$0xff] }
  0xde   :  { %v8601_v58 = vcombine.high %v12234_v37, %v12239_v38 }
  0xe2   :  { %5986 = vmatmul.mubr.bf16.gmra.mrb[96].mxu0 %v8914_v39  ;;  %v11272_v39 = vld [vmem:[%s15186_s1 + $0x398] sm:$0xff]  }
  0xe3   :  { %5993 = vmatprep.mubr.bf16.mxu0 %v8955_v40 }
  0xe4   :  { %6122 = vmatmul.mubr.bf16.gmra.mrb[96].mxu1 %v8916_v42  ;;  %v8558_v42 = vcombine.low %v12164_v1, %v12169_v2 }
  0xe5   :  { %6129 = vmatprep.mubr.bf16.mxu1 %v8957_v43  ;;  %v11274_v43 = vld [vmem:[%s15186_s1 + $0x320] sm:$0xff]  }
  0xea   :  { %5994 = vmatmul.mubr.bf16.gmra.mrb[100].mxu0 %v8954_v46  ;;  %v8599_v46 = vcombine.high %v12212_v27, %v12217_v28 }
  0xeb   :  { %6169 = vmatprep.mubr.bf16.mxu0 %v8479_v47  ;;  %v11275_v47 = vld [vmem:[%s15186_s1 + $0x3e0] sm:$0xff]  }
  0xec   :  { %6130 = vmatmul.mubr.bf16.gmra.mrb[100].mxu1 %v8956_v50 }
  0xed   :  { %6305 = vmatprep.mubr.bf16.mxu1 %v8481_v51 }
  0xf2   :  { %6170 = vmatmul.mubr.bf16.vlgmr.msra.gmra.mrb[104].mxu0 %v8478_v54  ;;  %v8560_v54 = vcombine.low %v12182_v6, %v12187_v7  ;;  %v12292_v6 = vld [vmem:[%s15187_s0 + $0x528] sm:$0xff] }
  0xf3   :  { %9931 = vmatpush3.bf16.msra.mxu0 %v11258_v55  ;;  %6177 = vmatprep.mubr.bf16.mxu0 %v8519_v57  ;;  %v11276_v55 = vld [vmem:[%s15186_s1 + $0x3a0] sm:$0xff]   ;;  %v12297_v7 = vld [vmem:[%s15187_s0 + $0x5c8] sm:$0xff] }
  0xf4   :  { %9932 = vmatprep.subr.bf16.mxu0 %v11261_v59  ;;  %6306 = vmatmul.mubr.bf16.vlgmr.msra.gmra.mrb[104].mxu1 %v8480_v61  ;;  %v12270_v59 = vld [vmem:[%s15187_s0 + $0x520] sm:$0xff]  ;;  %v11278_v61 = vld [vmem:[%s15186_s1 + $0x328] sm:$0xff]  }
  0xf5   :  { %v9382_v5 = vpop.f32.mrb[0].mxu0  ;;  %10025 = vmatpush3.bf16.msra.mxu1 %v11260_v60  ;;  %6313 = vmatprep.mubr.bf16.mxu1 %v8521_v0  ;;  %v12275_v60 = vld [vmem:[%s15187_s0 + $0x5c0] sm:$0xff]  ;;  %v11279_v0 = vld [vmem:[%s15186_s1 + $0x3e8] sm:$0xff]  }
  0xf6   :  { %v9383_v8 = vpop.f32.mrb[1].mxu0  ;;  %10026 = vmatprep.subr.bf16.mxu1 %v11263_v63 }
  0xf7   :  { %v9384_v12 = vadd.f32 %v9383_v8, %v9382_v5  ;;  %v9385_v13 = vpop.f32.mrb[2].mxu0  ;;  %9933 = vmatpush3.bf16.msra.mxu0 %v11262_v62  ;;  %v9476_v17 = vpop.f32.mrb[0].mxu1  ;;  %v11280_v8 = vld [vmem:[%s15186_s1 + $0x3a8] sm:$0xff]  }
  0xf8   :  { %v9386_v18 = vpop.f32.mrb[3].mxu0  ;;  %9934 = vmatprep.subr.bf16.mxu0 %v11265_v3  ;;  %v9477_v21 = vpop.f32.mrb[1].mxu1  ;;  %v11281_v3 = vld [vmem:[%s15186_s1 + $0x370] sm:$0xff]  }
  0xf9   :  { %v5628_v19 = vadd.f32 %v9384_v12, %v12177_v4  ;;  %v9387_v20 = vadd.f32 %v9386_v18, %v9385_v13  ;;  %v9478_v24 = vadd.f32 %v9477_v21, %v9476_v17  ;;  %v9479_v25 = vpop.f32.mrb[2].mxu1  ;;  %10027 = vmatpush3.bf16.msra.mxu1 %v11264_v10  ;;  %v11282_v12 = vld [vmem:[%s15186_s1 + $0x330] sm:$0xff]   ;;  %v11285_v17 = vld [vmem:[%s15186_s1 + $0x378] sm:$0xff]  }
  0xfa   :  { %6178 = vmatmul.mubr.bf16.gmra.mrb[108].mxu0 %v8518_v9  ;;  %v9480_v31 = vpop.f32.mrb[3].mxu1  ;;  %10028 = vmatprep.subr.bf16.mxu1 %v11267_v15  ;;  %v8639_v15 = vcombine.high %v12270_v59, %v12275_v60 }
  0xfb   :  { %v5631_v30 = vadd.f32 %v9387_v20, %v12177_v4  ;;  %6185 = vmatprep.mubr.bf16.mxu0 %v8559_v14  ;;  %9935 = vmatpush3.bf16.msra.mxu0 %v11266_v11  ;;  %v12226_v33 = vadd.f32 %v9478_v24, %v5628_v19  ;;  %v9481_v34 = vadd.f32 %v9480_v31, %v9479_v25  ;;  %v11284_v24 = vld [vmem:[%s15186_s1 + $0x3b0] sm:$0xff]   ;;  %v11286_v25 = vld [vmem:[%s15186_s1 + $0x338] sm:$0xff]  }
  0xfc   :  { %9936 = vmatprep.subr.bf16.mxu0 %v11269_v16  ;;  %6314 = vmatmul.mubr.bf16.gmra.mrb[108].mxu1 %v8520_v22  ;;  %v8598_v11 = vcombine.low %v12212_v27, %v12217_v28  ;;  %v11283_v16 = vld [vmem:[%s15186_s1 + $0x3f0] sm:$0xff]   ;;  %v8641_v28 = vcombine.high %v12292_v6, %v12297_v7  ;;  %v11289_v31 = vld [vmem:[%s15186_s1 + $0x3f8] sm:$0xff]  }
  0xfd   :  { %v9388_v36 = vpop.f32.mrb[4].mxu0  ;;  %v12244_v40 = vadd.f32 %v9481_v34, %v5631_v30  ;;  %6321 = vmatprep.mubr.bf16.mxu1 %v8561_v26  ;;  %10029 = vmatpush3.bf16.msra.mxu1 %v11268_v23  ;;  %v8600_v23 = vcombine.low %v12234_v37, %v12239_v38  ;;  %v12336_v30 = vld [vmem:[%s15187_s0 + $0x700] sm:$0xff] }
  0xfe   :  { %v9389_v41 = vpop.f32.mrb[5].mxu0  ;;  %10030 = vmatprep.subr.bf16.mxu1 %v11271_v32 }
  0xff   :  { %v9390_v44 = vadd.f32 %v9389_v41, %v9388_v36  ;;  %v9391_v45 = vpop.f32.mrb[6].mxu0  ;;  %9937 = vmatpush3.bf16.msra.mxu0 %v11270_v29  ;;  %v9482_v49 = vpop.f32.mrb[4].mxu1  ;;  %v12331_v29 = vld [vmem:[%s15187_s0 + $0x660] sm:$0xff] }
 0x100   :  { %v9392_v50 = vpop.f32.mrb[7].mxu0  ;;  %9938 = vmatprep.subr.bf16.mxu0 %v11273_v35  ;;  %v9483_v53 = vpop.f32.mrb[5].mxu1  ;;  %v11293_v35 = vld [vmem:[%s15186_s1 + $0x440] sm:$0xff]  }
 0x101   :  { %v5636_v51 = vadd.f32 %v9390_v44, %v12177_v4  ;;  %v9393_v52 = vadd.f32 %v9392_v50, %v9391_v45  ;;  %v9484_v56 = vadd.f32 %v9483_v53, %v9482_v49  ;;  %v9485_v57 = vpop.f32.mrb[6].mxu1  ;;  %10031 = vmatpush3.bf16.msra.mxu1 %v11272_v39  ;;  %v220_v39 = vld [vmem:[%s15187_s0 + $0x668] sm:$0xff]  ;;  %v11291_v44 = vld [vmem:[%s15186_s1 + $0x3b8] sm:$0xff]   ;;  %v11295_v49 = vld [vmem:[%s15186_s1 + $0x4c0] sm:$0xff]  }
 0x102   :  { %6186 = vmatmul.mubr.bf16.gmra.mrb[112].mxu0 %v8558_v42  ;;  %v9486_v63 = vpop.f32.mrb[7].mxu1  ;;  %10032 = vmatprep.subr.bf16.mxu1 %v11275_v47  ;;  %v8679_v47 = vcombine.high %v12331_v29, %v12336_v30 }
 0x103   :  { %v5639_v62 = vadd.f32 %v9393_v52, %v12177_v4  ;;  %6193 = vmatprep.mubr.bf16.mxu0 %v8599_v46  ;;  %9939 = vmatpush3.bf16.msra.mxu0 %v11274_v43  ;;  %v12284_v1 = vadd.f32 %v9484_v56, %v5636_v51  ;;  %v9487_v2 = vadd.f32 %v9486_v63, %v9485_v57 }
 0x104   :  { %9940 = vmatprep.subr.bf16.mxu0 %v11277_v48  ;;  %6322 = vmatmul.mubr.bf16.gmra.mrb[112].mxu1 %v8560_v54  ;;  %v8638_v43 = vcombine.low %v12270_v59, %v12275_v60  ;;  %v240_v48 = vld [vmem:[%s15187_s0 + $0x708] sm:$0xff]  ;;  %v259_v59 = vld [vmem:[%s15187_s0 + $0x7a0] sm:$0xff] }
 0x105   :  { %v9394_v5 = vpop.f32.mrb[8].mxu0  ;;  %v12302_v9 = vadd.f32 %v9487_v2, %v5639_v62  ;;  %6329 = vmatprep.mubr.bf16.mxu1 %v8601_v58  ;;  %10033 = vmatpush3.bf16.msra.mxu1 %v11276_v55  ;;  %v8640_v55 = vcombine.low %v12292_v6, %v12297_v7  ;;  %v8681_v58 = vcombine.high %v220_v39, %v240_v48  ;;  %v279_v62 = vld [vmem:[%s15187_s0 + $0x840] sm:$0xff] }
 0x106   :  { %v9395_v10 = vpop.f32.mrb[9].mxu0  ;;  %10034 = vmatprep.subr.bf16.mxu1 %v11279_v0  ;;  %v8678_v6 = vcombine.low %v12331_v29, %v12336_v30 }
 0x107   :  { %v9396_v13 = vadd.f32 %v9395_v10, %v9394_v5  ;;  %v9397_v14 = vpop.f32.mrb[10].mxu0  ;;  %9941 = vmatpush3.bf16.msra.mxu0 %v11278_v61  ;;  %v9488_v18 = vpop.f32.mrb[8].mxu1  ;;  %v8719_v10 = vcombine.high %v259_v59, %v279_v62 }
 0x108   :  { %v9398_v19 = vpop.f32.mrb[11].mxu0  ;;  %9942 = vmatprep.subr.bf16.mxu0 %v11281_v3  ;;  %v9489_v22 = vpop.f32.mrb[9].mxu1 }
 0x109   :  { %v5644_v20 = vadd.f32 %v9396_v13, %v12177_v4  ;;  %v9399_v21 = vadd.f32 %v9398_v19, %v9397_v14  ;;  %v9490_v26 = vadd.f32 %v9489_v22, %v9488_v18  ;;  %v9491_v27 = vpop.f32.mrb[10].mxu1  ;;  %10035 = vmatpush3.bf16.msra.mxu1 %v11280_v8  ;;  %v8680_v18 = vcombine.low %v220_v39, %v240_v48  ;;  %v299_v22 = vld [vmem:[%s15187_s0 + $0x8e0] sm:$0xff] }
 0x10a   :  { %6194 = vmatmul.mubr.bf16.gmra.mrb[116].mxu0 %v8598_v11  ;;  %v9492_v34 = vpop.f32.mrb[11].mxu1  ;;  %10036 = vmatprep.subr.bf16.mxu1 %v11283_v16  ;;  %v260_v11 = vld [vmem:[%s15187_s0 + $0x7a8] sm:$0xff] }
 0x10b   :  { %v5647_v32 = vadd.f32 %v9399_v21, %v12177_v4  ;;  %6201 = vmatprep.mubr.bf16.mxu0 %v8639_v15  ;;  %9943 = vmatpush3.bf16.msra.mxu0 %v11282_v12  ;;  %v12345_v36 = vadd.f32 %v9490_v26, %v5644_v20  ;;  %v9493_v37 = vadd.f32 %v9492_v34, %v9491_v27  ;;  %v280_v12 = vld [vmem:[%s15187_s0 + $0x848] sm:$0xff] }
 0x10c   :  { %9944 = vmatprep.subr.bf16.mxu0 %v11285_v17  ;;  %6330 = vmatmul.mubr.bf16.gmra.mrb[116].mxu1 %v8600_v23  ;;  %v8721_v21 = vcombine.high %v260_v11, %v280_v12 }
 0x10d   :  { %v9400_v38 = vpop.f32.mrb[12].mxu0  ;;  %v12350_v41 = vadd.f32 %v9493_v37, %v5647_v32  ;;  %6337 = vmatprep.mubr.bf16.mxu1 %v8641_v28  ;;  %10037 = vmatpush3.bf16.msra.mxu1 %v11284_v24  ;;  %v300_v37 = vld [vmem:[%s15187_s0 + $0x8e8] sm:$0xff] }
 0x10e   :  { %v9401_v42 = vpop.f32.mrb[13].mxu0  ;;  %10038 = vmatprep.subr.bf16.mxu1 %v11289_v31  ;;  %v8718_v31 = vcombine.low %v259_v59, %v279_v62 }
 0x10f   :  { %v9402_v45 = vadd.f32 %v9401_v42, %v9400_v38  ;;  %v9403_v46 = vpop.f32.mrb[14].mxu0  ;;  %9945 = vmatpush3.bf16.msra.mxu0 %v11286_v25  ;;  %v9494_v50 = vpop.f32.mrb[12].mxu1  ;;  %v319_v25 = vld [vmem:[%s15187_s0 + $0x980] sm:$0xff]  ;;  %v320_v38 = vld [vmem:[%s15187_s0 + $0x988] sm:$0xff] }
 0x110   :  { %v9404_v51 = vpop.f32.mrb[15].mxu0  ;;  %10118 = vmatprep.subr.bf16.mxu0 %v11293_v35  ;;  %v9495_v54 = vpop.f32.mrb[13].mxu1  ;;  %v8759_v35 = vcombine.high %v299_v22, %v319_v25  ;;  %v8758_v59 = vcombine.low %v299_v22, %v319_v25 }
 0x111   :  { %v5652_v52 = vadd.f32 %v9402_v45, %v12177_v4  ;;  %v9405_v53 = vadd.f32 %v9404_v51, %v9403_v46  ;;  %v9496_v56 = vadd.f32 %v9495_v54, %v9494_v50  ;;  %v9497_v57 = vpop.f32.mrb[14].mxu1  ;;  %10039 = vmatpush3.bf16.msra.mxu1 %v11291_v44  ;;  %v8720_v46 = vcombine.low %v260_v11, %v280_v12  ;;  %v339_v54 = vld [vmem:[%s15187_s0 + $0xa20] sm:$0xff] }
 0x112   :  { %6202 = vmatmul.mubr.bf16.gmra.mrb[120].mxu0 %v8638_v43  ;;  %v9498_v61 = vpop.f32.mrb[15].mxu1  ;;  %10212 = vmatprep.subr.bf16.mxu1 %v11295_v49  ;;  %v8761_v49 = vcombine.high %v300_v37, %v320_v38  ;;  %v8760_v11 = vcombine.low %v300_v37, %v320_v38 }
 0x113   :  { %v5655_v60 = vadd.f32 %v9405_v53, %v12177_v4  ;;  %6209 = vmatprep.mubr.bf16.mxu0 %v8679_v47  ;;  %v12375_v63 = vadd.f32 %v9496_v56, %v5652_v52  ;;  %v9499_v0 = vadd.f32 %v9498_v61, %v9497_v57 }
 0x114   :  { %6338 = vmatmul.mubr.bf16.gmra.mrb[120].mxu1 %v8640_v55  ;;  %v359_v55 = vld [vmem:[%s15187_s0 + $0xac0] sm:$0xff] }
 0x115   :  { %v9406_v2 = vpop.f32.mrb[16].mxu0  ;;  %v12377_v3 = vadd.f32 %v9499_v0, %v5655_v60  ;;  %6345 = vmatprep.mubr.bf16.mxu1 %v8681_v58  ;;  %v8799_v62 = vcombine.high %v339_v54, %v359_v55  ;;  %v340_v0 = vld [vmem:[%s15187_s0 + $0xa28] sm:$0xff] }
 0x116   :  { %v9407_v5 = vpop.f32.mrb[17].mxu0 }
 0x117   :  { %v9408_v7 = vadd.f32 %v9407_v5, %v9406_v2  ;;  %v9409_v8 = vpop.f32.mrb[18].mxu0  ;;  %v9500_v13 = vpop.f32.mrb[16].mxu1  ;;  %v360_v2 = vld [vmem:[%s15187_s0 + $0xac8] sm:$0xff] }
 0x118   :  { %v9410_v14 = vpop.f32.mrb[19].mxu0  ;;  %v9501_v17 = vpop.f32.mrb[17].mxu1 }
 0x119   :  { %v5660_v15 = vadd.f32 %v9408_v7, %v12177_v4  ;;  %v9411_v16 = vadd.f32 %v9410_v14, %v9409_v8  ;;  %v9502_v19 = vadd.f32 %v9501_v17, %v9500_v13  ;;  %v9503_v20 = vpop.f32.mrb[18].mxu1  ;;  %v8801_v14 = vcombine.high %v340_v0, %v360_v2 }
 0x11a   :  { %6210 = vmatmul.mubr.bf16.gmra.mrb[124].mxu0 %v8678_v6  ;;  %v9504_v24 = vpop.f32.mrb[19].mxu1 }
 0x11b   :  { %v5663_v23 = vadd.f32 %v9411_v16, %v12177_v4  ;;  %6217 = vmatprep.mubr.bf16.mxu0 %v8719_v10  ;;  %v12395_v26 = vadd.f32 %v9502_v19, %v5660_v15  ;;  %v9505_v27 = vadd.f32 %v9504_v24, %v9503_v20  ;;  %v379_v19 = vld [vmem:[%s15187_s0 + $0xb60] sm:$0xff]  ;;  %v8798_v24 = vcombine.low %v339_v54, %v359_v55 }
 0x11c   :  { %6346 = vmatmul.mubr.bf16.gmra.mrb[124].mxu1 %v8680_v18  ;;  %v399_v20 = vld [vmem:[%s15187_s0 + $0xc00] sm:$0xff] }
 0x11d   :  { %v9412_v28 = vpop.f32.mrb[20].mxu0  ;;  %v12397_v29 = vadd.f32 %v9505_v27, %v5663_v23  ;;  %6353 = vmatprep.mubr.bf16.mxu1 %v8721_v21  ;;  %v8838_v55 = vcombine.low %v379_v19, %v399_v20 }
 0x11e   :  { %v9413_v30 = vpop.f32.mrb[21].mxu0 }
 0x11f   :  { %v9414_v32 = vadd.f32 %v9413_v30, %v9412_v28  ;;  %v9415_v34 = vpop.f32.mrb[22].mxu0  ;;  %v9506_v39 = vpop.f32.mrb[20].mxu1  ;;  %v8839_v28 = vcombine.high %v379_v19, %v399_v20  ;;  %v380_v30 = vld [vmem:[%s15187_s0 + $0xb68] sm:$0xff] }
 0x120   :  { %v9416_v42 = vpop.f32.mrb[23].mxu0  ;;  %v9507_v45 = vpop.f32.mrb[21].mxu1 }
 0x121   :  { %v5668_v43 = vadd.f32 %v9414_v32, %v12177_v4  ;;  %v9417_v44 = vadd.f32 %v9416_v42, %v9415_v34  ;;  %v9508_v47 = vadd.f32 %v9507_v45, %v9506_v39  ;;  %v9509_v48 = vpop.f32.mrb[22].mxu1  ;;  %v8800_v39 = vcombine.low %v340_v0, %v360_v2  ;;  %v419_v45 = vld [vmem:[%s15187_s0 + $0xca0] sm:$0xff] }
 0x122   :  { %6218 = vmatmul.mubr.bf16.gmra.mrb[128].mxu0 %v8718_v31  ;;  %v9510_v51 = vpop.f32.mrb[23].mxu1  ;;  %v400_v31 = vld [vmem:[%s15187_s0 + $0xc08] sm:$0xff] }
 0x123   :  { %v5671_v50 = vadd.f32 %v9417_v44, %v12177_v4  ;;  %6225 = vmatprep.mubr.bf16.mxu0 %v8759_v35  ;;  %v12407_v52 = vadd.f32 %v9508_v47, %v5668_v43  ;;  %v9511_v53 = vadd.f32 %v9510_v51, %v9509_v48  ;;  %v8841_v44 = vcombine.high %v380_v30, %v400_v31  ;;  %v439_v48 = vld [vmem:[%s15187_s0 + $0xd40] sm:$0xff] }
 0x124   :  { %6354 = vmatmul.mubr.bf16.gmra.mrb[128].mxu1 %v8720_v46 }
 0x125   :  { %v9418_v56 = vpop.f32.mrb[24].mxu0  ;;  %v12415_v57 = vadd.f32 %v9511_v53, %v5671_v50  ;;  %6361 = vmatprep.mubr.bf16.mxu1 %v8761_v49 }
 0x126   :  { %v9419_v58 = vpop.f32.mrb[25].mxu0 }
 0x127   :  { %v9420_v60 = vadd.f32 %v9419_v58, %v9418_v56  ;;  %v9421_v61 = vpop.f32.mrb[26].mxu0  ;;  %v9512_v5 = vpop.f32.mrb[24].mxu1  ;;  %v420_v56 = vld [vmem:[%s15187_s0 + $0xca8] sm:$0xff] }
 0x128   :  { %v9422_v6 = vpop.f32.mrb[27].mxu0  ;;  %v9513_v10 = vpop.f32.mrb[25].mxu1 }
 0x129   :  { %v5676_v7 = vadd.f32 %v9420_v60, %v12177_v4  ;;  %v9423_v8 = vadd.f32 %v9422_v6, %v9421_v61  ;;  %v9514_v12 = vadd.f32 %v9513_v10, %v9512_v5  ;;  %v9515_v13 = vpop.f32.mrb[26].mxu1  ;;  %v8879_v60 = vcombine.high %v419_v45, %v439_v48  ;;  %v440_v61 = vld [vmem:[%s15187_s0 + $0xd48] sm:$0xff] }
 0x12a   :  { %6226 = vmatmul.mubr.bf16.gmra.mrb[132].mxu0 %v8758_v59  ;;  %v9516_v16 = vpop.f32.mrb[27].mxu1 }
 0x12b   :  { %v5679_v15 = vadd.f32 %v9423_v8, %v12177_v4  ;;  %6233 = vmatprep.mubr.bf16.mxu0 %v8799_v62  ;;  %v12425_v17 = vadd.f32 %v9514_v12, %v5676_v7  ;;  %v9517_v18 = vadd.f32 %v9516_v16, %v9515_v13  ;;  %v8840_v7 = vcombine.low %v380_v30, %v400_v31  ;;  %v459_v12 = vld [vmem:[%s15187_s0 + $0xde0] sm:$0xff]  ;;  %v480_v30 = vld [vmem:[%s15187_s0 + $0xe88] sm:$0xff] }
 0x12c   :  { %6362 = vmatmul.mubr.bf16.gmra.mrb[132].mxu1 %v8760_v11  ;;  %v8881_v11 = vcombine.high %v420_v56, %v440_v61 }
 0x12d   :  { %v9424_v21 = vpop.f32.mrb[28].mxu0  ;;  %v12433_v22 = vadd.f32 %v9517_v18, %v5679_v15  ;;  %6369 = vmatprep.mubr.bf16.mxu1 %v8801_v14  ;;  %v479_v15 = vld [vmem:[%s15187_s0 + $0xe80] sm:$0xff] }
 0x12e   :  { %v9425_v23 = vpop.f32.mrb[29].mxu0 }
 0x12f   :  { %v9426_v25 = vadd.f32 %v9425_v23, %v9424_v21  ;;  %v9427_v27 = vpop.f32.mrb[30].mxu0  ;;  %v9518_v32 = vpop.f32.mrb[28].mxu1  ;;  %v8878_v23 = vcombine.low %v419_v45, %v439_v48  ;;  %v499_v48 = vld [vmem:[%s15187_s0 + $0xf20] sm:$0xff] }
 0x130   :  { %v9428_v34 = vpop.f32.mrb[31].mxu0  ;;  %v9519_v38 = vpop.f32.mrb[29].mxu1 }
 0x131   :  { %v5684_v35 = vadd.f32 %v9426_v25, %v12177_v4  ;;  %v9429_v37 = vadd.f32 %v9428_v34, %v9427_v27  ;;  %v9520_v42 = vadd.f32 %v9519_v38, %v9518_v32  ;;  %v9521_v43 = vpop.f32.mrb[30].mxu1  ;;  %v8919_v27 = vcombine.high %v459_v12, %v479_v15 }
 0x132   :  { %6234 = vmatmul.mubr.bf16.gmra.mrb[136].mxu0 %v8798_v24  ;;  %v9522_v47 = vpop.f32.mrb[31].mxu1  ;;  %v8880_v38 = vcombine.low %v420_v56, %v440_v61 }
 0x133   :  { %v5687_v46 = vadd.f32 %v9429_v37, %v12177_v4  ;;  %6241 = vmatprep.mubr.bf16.mxu0 %v8839_v28  ;;  %v12449_v49 = vadd.f32 %v9520_v42, %v5684_v35  ;;  %v9523_v50 = vadd.f32 %v9522_v47, %v9521_v43  ;;  %v460_v28 = vld [vmem:[%s15187_s0 + $0xde8] sm:$0xff] }
 0x134   :  { %6370 = vmatmul.mubr.bf16.gmra.mrb[136].mxu1 %v8800_v39  ;;  %v8921_v43 = vcombine.high %v460_v28, %v480_v30 }
 0x135   :  { %v9430_v51 = vpop.f32.mrb[32].mxu0  ;;  %v12451_v53 = vadd.f32 %v9523_v50, %v5687_v46  ;;  %6377 = vmatprep.mubr.bf16.mxu1 %v8841_v44 }
 0x136   :  { %v9431_v54 = vpop.f32.mrb[33].mxu0 }
 0x137   :  { %v9432_v58 = vadd.f32 %v9431_v54, %v9430_v51  ;;  %v9433_v59 = vpop.f32.mrb[34].mxu0  ;;  %v9524_v62 = vpop.f32.mrb[32].mxu1 }
 0x138   :  { %v9434_v0 = vpop.f32.mrb[35].mxu0  ;;  %v9525_v6 = vpop.f32.mrb[33].mxu1 }
 0x139   :  { %v5692_v2 = vadd.f32 %v9432_v58, %v12177_v4  ;;  %v9435_v5 = vadd.f32 %v9434_v0, %v9433_v59  ;;  %v9526_v8 = vadd.f32 %v9525_v6, %v9524_v62  ;;  %v9527_v10 = vpop.f32.mrb[34].mxu1  ;;  %v8959_v59 = vcombine.high %v499_v48, %v499_v48 }
 0x13a   :  { %6242 = vmatmul.mubr.bf16.gmra.mrb[140].mxu0 %v8838_v55  ;;  %v9528_v14 = vpop.f32.mrb[35].mxu1  ;;  %v8918_v55 = vcombine.low %v459_v12, %v479_v15  ;;  %v8920_v6 = vcombine.low %v460_v28, %v480_v30  ;;  %v22_v28 = vld [vmem:[%s15187_s0 + $0x38] sm:$0xff] }
 0x13b   :  { %v5695_v13 = vadd.f32 %v9435_v5, %v12177_v4  ;;  %6249 = vmatprep.mubr.bf16.mxu0 %v8879_v60  ;;  %v12467_v16 = vadd.f32 %v9526_v8, %v5692_v2  ;;  %v9529_v18 = vadd.f32 %v9528_v14, %v9527_v10  ;;  %v500_v60 = vld [vmem:[%s15187_s0 + $0xf28] sm:$0xff]  ;;  %v42_v30 = vld [vmem:[%s15187_s0 + $0xd8] sm:$0xff] }
 0x13c   :  { %6378 = vmatmul.mubr.bf16.gmra.mrb[140].mxu1 %v8840_v7  ;;  %v8961_v10 = vcombine.high %v500_v60, %v500_v60 }
 0x13d   :  { %v9436_v19 = vpop.f32.mrb[36].mxu0  ;;  %v12469_v20 = vadd.f32 %v9529_v18, %v5695_v13  ;;  %6385 = vmatprep.mubr.bf16.mxu1 %v8881_v11  ;;  %v21_v13 = vld [vmem:[%s15187_s0 + $0x30] sm:$0xff] }
 0x13e   :  { %v9437_v21 = vpop.f32.mrb[37].mxu0  ;;  %v41_v18 = vld [vmem:[%s15187_s0 + $0xd0] sm:$0xff] }
 0x13f   :  { %v9438_v24 = vadd.f32 %v9437_v21, %v9436_v19  ;;  %v9439_v25 = vpop.f32.mrb[38].mxu0  ;;  %v9530_v31 = vpop.f32.mrb[36].mxu1 }
 0x140   :  { %v9440_v32 = vpop.f32.mrb[39].mxu0  ;;  %v9531_v37 = vpop.f32.mrb[37].mxu1 }
 0x141   :  { %v5700_v34 = vadd.f32 %v9438_v24, %v12177_v4  ;;  %v9441_v35 = vadd.f32 %v9440_v32, %v9439_v25  ;;  %v9532_v39 = vadd.f32 %v9531_v37, %v9530_v31  ;;  %v9533_v42 = vpop.f32.mrb[38].mxu1  ;;  %v8958_v24 = vcombine.low %v499_v48, %v499_v48  ;;  %v12513_v48 = vld [vmem:[%s15187_s0 + $0x170] sm:$0xff] }
 0x142   :  { %6250 = vmatmul.mubr.bf16.gmra.mrb[144].mxu0 %v8878_v23  ;;  %v9534_v45 = vpop.f32.mrb[39].mxu1 }
 0x143   :  { %v5703_v44 = vadd.f32 %v9441_v35, %v12177_v4  ;;  %6257 = vmatprep.mubr.bf16.mxu0 %v8919_v27  ;;  %v12479_v46 = vadd.f32 %v9532_v39, %v5700_v34  ;;  %v9535_v47 = vadd.f32 %v9534_v45, %v9533_v42  ;;  %v8483_v27 = vcombine.high %v21_v13, %v41_v18  ;;  %v11506_v34 = vld [vmem:[%s15188_s2] ss:$0 sm:$0xff] }
 0x144   :  { %6386 = vmatmul.mubr.bf16.gmra.mrb[144].mxu1 %v8880_v38  ;;  %v8960_v39 = vcombine.low %v500_v60, %v500_v60  ;;  %v8482_v60 = vcombine.low %v21_v13, %v41_v18  ;;  %v8484_v13 = vcombine.low %v22_v28, %v42_v30  ;;  %v11298_v18 = vld [vmem:[%s15186_s1 + $0x408] sm:$0xff]  }
 0x145   :  { %v9442_v50 = vpop.f32.mrb[40].mxu0  ;;  %v12484_v51 = vadd.f32 %v9535_v47, %v5703_v44  ;;  %6393 = vmatprep.mubr.bf16.mxu1 %v8921_v43  ;;  %v8485_v44 = vcombine.high %v22_v28, %v42_v30  ;;  %v11301_v30 = vld [vmem:[%s15186_s1 + $0x450] sm:$0xff]  }
 0x146   :  { %v9443_v54 = vpop.f32.mrb[41].mxu0 }
 0x147   :  { %v9444_v56 = vadd.f32 %v9443_v54, %v9442_v50  ;;  %v9445_v58 = vpop.f32.mrb[42].mxu0  ;;  %v9536_v61 = vpop.f32.mrb[40].mxu1 }
 0x148   :  { %v9446_v62 = vpop.f32.mrb[43].mxu0  ;;  %v9537_v5 = vpop.f32.mrb[41].mxu1 }
 0x149   :  { %v5708_v0 = vadd.f32 %v9444_v56, %v12177_v4  ;;  %v9447_v2 = vadd.f32 %v9446_v62, %v9445_v58  ;;  %v9538_v7 = vadd.f32 %v9537_v5, %v9536_v61  ;;  %v9539_v8 = vpop.f32.mrb[42].mxu1  ;;  %v11294_v61 = vld [vmem:[%s15186_s1 + $0x400] sm:$0xff]   ;;  %v12528_v62 = vld [vmem:[%s15187_s0 + $0x178] sm:$0xff] }
 0x14a   :  { %6258 = vmatmul.mubr.bf16.gmra.mrb[148].mxu0 %v8918_v55  ;;  %v9540_v12 = vpop.f32.mrb[43].mxu1  ;;  %v81_v55 = vld [vmem:[%s15187_s0 + $0x210] sm:$0xff] }
 0x14b   :  { %v5711_v11 = vadd.f32 %v9447_v2, %v12177_v4  ;;  %6265 = vmatprep.mubr.bf16.mxu0 %v8959_v59  ;;  %v12494_v14 = vadd.f32 %v9538_v7, %v5708_v0  ;;  %v9541_v15 = vadd.f32 %v9540_v12, %v9539_v8  ;;  %v8523_v5 = vcombine.high %v12513_v48, %v81_v55  ;;  %v11297_v7 = vld [vmem:[%s15186_s1 + $0x448] sm:$0xff]  }
 0x14c   :  { %6394 = vmatmul.mubr.bf16.gmra.mrb[148].mxu1 %v8920_v6  ;;  %v12534_v6 = vld [vmem:[%s15187_s0 + $0x218] sm:$0xff] }
 0x14d   :  { %v9448_v19 = vpop.f32.mrb[44].mxu0  ;;  %v12499_v21 = vadd.f32 %v9541_v15, %v5711_v11  ;;  %6401 = vmatprep.mubr.bf16.mxu1 %v8961_v10  ;;  %v11296_v15 = vld [vmem:[%s15186_s1 + $0x480] sm:$0xff]  }
 0x14e   :  { %v9449_v23 = vpop.f32.mrb[45].mxu0 }
 0x14f   :  { %v9450_v4 = vadd.f32 %v9449_v23, %v9448_v19  ;;  %v9451_v25 = vpop.f32.mrb[46].mxu0  ;;  %v9542_v31 = vpop.f32.mrb[44].mxu1 }
 0x150   :  { %v9452_v32 = vpop.f32.mrb[47].mxu0  ;;  %v9543_v38 = vpop.f32.mrb[45].mxu1 }
 0x151   :  { %v5716_v35 = vadd.f32 %v11506_v34, %v9450_v4  ;;  %v9453_v37 = vadd.f32 %v9452_v32, %v9451_v25  ;;  %v9544_v42 = vadd.f32 %v9543_v38, %v9542_v31  ;;  %v9545_v43 = vpop.f32.mrb[46].mxu1  ;;  %v12550_v4 = vld [vmem:[%s15187_s0 + $0x2b0] sm:$0xff]  ;;  %v8522_v38 = vcombine.low %v12513_v48, %v81_v55  ;;  %v11305_v48 = vld [vmem:[%s15186_s1 + $0x458] sm:$0xff]  }
 0x152   :  { %6266 = vmatmul.mubr.bf16.gmra.mrb[152].mxu0 %v8958_v24  ;;  %v9546_v47 = vpop.f32.mrb[47].mxu1  ;;  %v8525_v24 = vcombine.high %v12528_v62, %v12534_v6  ;;  %v12555_v25 = vld [vmem:[%s15187_s0 + $0x350] sm:$0xff] }
 0x153   :  { %v5719_v45 = vadd.f32 %v11506_v34, %v9453_v37  ;;  %6441 = vmatprep.mubr.bf16.mxu0 %v8483_v27  ;;  %v12515_v50 = vadd.f32 %v9544_v42, %v5716_v35  ;;  %v9547_v54 = vadd.f32 %v9546_v47, %v9545_v43  ;;  %v11299_v27 = vld [vmem:[%s15186_s1 + $0x4c8] sm:$0xff]   ;;  %v12573_v35 = vld [vmem:[%s15187_s0 + $0x358] sm:$0xff]  ;;  %v11302_v42 = vld [vmem:[%s15186_s1 + $0x410] sm:$0xff]  }
 0x154   :  { %6402 = vmatmul.mubr.bf16.gmra.mrb[152].mxu1 %v8960_v39  ;;  %v11300_v39 = vld [vmem:[%s15186_s1 + $0x488] sm:$0xff]   ;;  %v11303_v47 = vld [vmem:[%s15186_s1 + $0x4d0] sm:$0xff]  }
 0x155   :  { %v9454_v56 = vpop.f32.mrb[48].mxu0  ;;  %v12520_v58 = vadd.f32 %v9547_v54, %v5719_v45  ;;  %6577 = vmatprep.mubr.bf16.mxu1 %v8485_v44  ;;  %v8563_v45 = vcombine.high %v12550_v4, %v12555_v25 }
 0x156   :  { %v9455_v59 = vpop.f32.mrb[49].mxu0 }
 0x157   :  { %v9456_v0 = vadd.f32 %v9455_v59, %v9454_v56  ;;  %v9457_v2 = vpop.f32.mrb[50].mxu0  ;;  %v9548_v8 = vpop.f32.mrb[48].mxu1 }
 0x158   :  { %v9458_v10 = vpop.f32.mrb[51].mxu0  ;;  %v9549_v12 = vpop.f32.mrb[49].mxu1 }
 0x159   :  { %v5724_v11 = vadd.f32 %v11506_v34, %v9456_v0  ;;  %v9550_v19 = vadd.f32 %v9549_v12, %v9548_v8  ;;  %v9551_v23 = vpop.f32.mrb[50].mxu1  ;;  %v12568_v34 = vld [vmem:[%s15187_s0 + $0x2b8] sm:$0xff]  ;;  %v11304_v0 = vld [vmem:[%s15186_s1 + $0x490] sm:$0xff]  }
 0x15a   :  { %6442 = vmatmul.mubr.bf16.vlgmr.msra.gmra.mrb[156].mxu0 %v8482_v60  ;;  %v9552_v28 = vpop.f32.mrb[51].mxu1  ;;  %v8562_v23 = vcombine.low %v12550_v4, %v12555_v25  ;;  %v12637_v4 = vld [vmem:[%s15187_s0 + $0x498] sm:$0xff]  ;;  %v11310_v25 = vld [vmem:[%s15186_s1 + $0x420] sm:$0xff]  }
 0x15b   :  { %10119 = vmatpush3.bf16.msra.mxu0 %v11294_v61  ;;  %6449 = vmatprep.mubr.bf16.mxu0 %v8523_v5  ;;  %v12563_v31 = vadd.f32 %v9550_v19, %v5724_v11  ;;  %v8524_v61 = vcombine.low %v12528_v62, %v12534_v6  ;;  %v12606_v62 = vld [vmem:[%s15187_s0 + $0x490] sm:$0xff]  ;;  %v11306_v6 = vld [vmem:[%s15186_s1 + $0x418] sm:$0xff]  }
 0x15c   :  { %10120 = vmatprep.subr.bf16.mxu0 %v11297_v7  ;;  %6578 = vmatmul.mubr.bf16.vlgmr.msra.gmra.mrb[156].mxu1 %v8484_v13  ;;  %v8565_v7 = vcombine.high %v12568_v34, %v12573_v35  ;;  %v11307_v11 = vld [vmem:[%s15186_s1 + $0x4d8] sm:$0xff]  }
 0x15d   :  { %v9570_v32 = vpop.f32.mrb[52].mxu0  ;;  %10213 = vmatpush3.bf16.msra.mxu1 %v11296_v15  ;;  %6585 = vmatprep.mubr.bf16.mxu1 %v8525_v24  ;;  %v11309_v15 = vld [vmem:[%s15186_s1 + $0x460] sm:$0xff]   ;;  %v11308_v24 = vld [vmem:[%s15186_s1 + $0x498] sm:$0xff]  }
 0x15e   :  { %v9571_v37 = vpop.f32.mrb[53].mxu0  ;;  %10214 = vmatprep.subr.bf16.mxu1 %v11299_v27 }
 0x15f   :  { %v9572_v43 = vadd.f32 %v9571_v37, %v9570_v32  ;;  %v9573_v44 = vpop.f32.mrb[54].mxu0  ;;  %10121 = vmatpush3.bf16.msra.mxu0 %v11298_v18  ;;  %v9664_v54 = vpop.f32.mrb[52].mxu1  ;;  %v12632_v32 = vld [vmem:[%s15187_s0 + $0x3f8] sm:$0xff] }
 0x160   :  { %v9574_v55 = vpop.f32.mrb[55].mxu0  ;;  %10122 = vmatprep.subr.bf16.mxu0 %v11301_v30  ;;  %v9665_v60 = vpop.f32.mrb[53].mxu1 }
 0x161   :  { %v5900_v56 = vadd.f32 %v9572_v43, %v12226_v33  ;;  %v9575_v59 = vadd.f32 %v9574_v55, %v9573_v44  ;;  %v9666_v2 = vadd.f32 %v9665_v60, %v9664_v54  ;;  %v9667_v5 = vpop.f32.mrb[54].mxu1  ;;  %10215 = vmatpush3.bf16.msra.mxu1 %v11300_v39  ;;  %v12601_v33 = vld [vmem:[%s15187_s0 + $0x3f0] sm:$0xff]  ;;  %v11311_v39 = vld [vmem:[%s15186_s1 + $0x4e0] sm:$0xff]   ;;  %v8605_v55 = vcombine.high %v12632_v32, %v12637_v4 }
 0x162   :  { %6450 = vmatmul.mubr.bf16.gmra.mrb[160].mxu0 %v8522_v38  ;;  %v9668_v10 = vpop.f32.mrb[55].mxu1  ;;  %10216 = vmatprep.subr.bf16.mxu1 %v11303_v47  ;;  %v8603_v30 = vcombine.high %v12601_v33, %v12606_v62  ;;  %v8564_v47 = vcombine.low %v12568_v34, %v12573_v35  ;;  %v11315_v34 = vld [vmem:[%s15186_s1 + $0x4e8] sm:$0xff]  }
 0x163   :  { %v5903_v8 = vadd.f32 %v9575_v59, %v12244_v40  ;;  %6457 = vmatprep.mubr.bf16.mxu0 %v8563_v45  ;;  %10123 = vmatpush3.bf16.msra.mxu0 %v11302_v42  ;;  %v12615_v12 = vadd.f32 %v9666_v2, %v5900_v56  ;;  %v9669_v13 = vadd.f32 %v9668_v10, %v9667_v5  ;;  %v11313_v42 = vld [vmem:[%s15186_s1 + $0x468] sm:$0xff]   ;;  %v11312_v56 = vld [vmem:[%s15186_s1 + $0x4a0] sm:$0xff]   ;;  %v11317_v2 = vld [vmem:[%s15186_s1 + $0x470] sm:$0xff]  }
 0x164   :  { %10124 = vmatprep.subr.bf16.mxu0 %v11305_v48  ;;  %6586 = vmatmul.mubr.bf16.gmra.mrb[160].mxu1 %v8524_v61  ;;  %v11316_v10 = vld [vmem:[%s15186_s1 + $0x4a8] sm:$0xff]  }
 0x165   :  { %v9576_v18 = vpop.f32.mrb[56].mxu0  ;;  %v12620_v19 = vadd.f32 %v9669_v13, %v5903_v8  ;;  %6593 = vmatprep.mubr.bf16.mxu1 %v8565_v7  ;;  %10217 = vmatpush3.bf16.msra.mxu1 %v11304_v0  ;;  %v12668_v0 = vld [vmem:[%s15187_s0 + $0x530] sm:$0xff]  ;;  %v8602_v8 = vcombine.low %v12601_v33, %v12606_v62  ;;  %v12695_v33 = vld [vmem:[%s15187_s0 + $0x5d8] sm:$0xff] }
 0x166   :  { %v9577_v40 = vpop.f32.mrb[57].mxu0  ;;  %10218 = vmatprep.subr.bf16.mxu1 %v11307_v11  ;;  %v11318_v62 = vld [vmem:[%s15186_s1 + $0x430] sm:$0xff]  }
 0x167   :  { %v9578_v27 = vadd.f32 %v9577_v40, %v9576_v18  ;;  %v9579_v28 = vpop.f32.mrb[58].mxu0  ;;  %10125 = vmatpush3.bf16.msra.mxu0 %v11306_v6  ;;  %v9670_v37 = vpop.f32.mrb[56].mxu1  ;;  %v12690_v18 = vld [vmem:[%s15187_s0 + $0x538] sm:$0xff] }
 0x168   :  { %v9580_v38 = vpop.f32.mrb[59].mxu0  ;;  %10126 = vmatprep.subr.bf16.mxu0 %v11309_v15  ;;  %v9671_v45 = vpop.f32.mrb[57].mxu1 }
 0x169   :  { %v5908_v43 = vadd.f32 %v9578_v27, %v12284_v1  ;;  %v9581_v44 = vadd.f32 %v9580_v38, %v9579_v28  ;;  %v9672_v48 = vadd.f32 %v9671_v45, %v9670_v37  ;;  %v9673_v54 = vpop.f32.mrb[58].mxu1  ;;  %10219 = vmatpush3.bf16.msra.mxu1 %v11308_v24  ;;  %v11314_v1 = vld [vmem:[%s15186_s1 + $0x428] sm:$0xff]   ;;  %v11319_v24 = vld [vmem:[%s15186_s1 + $0x4f0] sm:$0xff]   ;;  %v11321_v27 = vld [vmem:[%s15186_s1 + $0x478] sm:$0xff]   ;;  %v8604_v37 = vcombine.low %v12632_v32, %v12637_v4 }
 0x16a   :  { %6458 = vmatmul.mubr.bf16.gmra.mrb[164].mxu0 %v8562_v23  ;;  %v9674_v60 = vpop.f32.mrb[59].mxu1  ;;  %10220 = vmatprep.subr.bf16.mxu1 %v11311_v39  ;;  %v11325_v32 = vld [vmem:[%s15186_s1 + $0x4f8] sm:$0xff]  }
 0x16b   :  { %v5911_v59 = vadd.f32 %v9581_v44, %v12302_v9  ;;  %6465 = vmatprep.mubr.bf16.mxu0 %v8603_v30  ;;  %10127 = vmatpush3.bf16.msra.mxu0 %v11310_v25  ;;  %v12663_v35 = vadd.f32 %v9672_v48, %v5908_v43  ;;  %v9675_v61 = vadd.f32 %v9674_v60, %v9673_v54  ;;  %v12673_v9 = vld [vmem:[%s15187_s0 + $0x5d0] sm:$0xff]  ;;  %v11329_v54 = vld [vmem:[%s15186_s1 + $0x540] sm:$0xff]  }
 0x16c   :  { %10128 = vmatprep.subr.bf16.mxu0 %v11313_v42  ;;  %6594 = vmatmul.mubr.bf16.gmra.mrb[164].mxu1 %v8564_v47  ;;  %v8643_v15 = vcombine.high %v12668_v0, %v12673_v9  ;;  %v8645_v42 = vcombine.high %v12690_v18, %v12695_v33  ;;  %v11320_v43 = vld [vmem:[%s15186_s1 + $0x4b0] sm:$0xff]   ;;  %v8642_v60 = vcombine.low %v12668_v0, %v12673_v9  ;;  %v11331_v0 = vld [vmem:[%s15186_s1 + $0x5c0] sm:$0xff]  }
 0x16d   :  { %v9582_v5 = vpop.f32.mrb[60].mxu0  ;;  %v12678_v7 = vadd.f32 %v9675_v61, %v5911_v59  ;;  %6601 = vmatprep.mubr.bf16.mxu1 %v8605_v55  ;;  %10221 = vmatpush3.bf16.msra.mxu1 %v11312_v56  ;;  %v221_v48 = vld [vmem:[%s15187_s0 + $0x670] sm:$0xff] }
 0x16e   :  { %v9583_v6 = vpop.f32.mrb[61].mxu0  ;;  %10222 = vmatprep.subr.bf16.mxu1 %v11315_v34 }
 0x16f   :  { %v9584_v11 = vadd.f32 %v9583_v6, %v9582_v5  ;;  %v9585_v13 = vpop.f32.mrb[62].mxu0  ;;  %10129 = vmatpush3.bf16.msra.mxu0 %v11314_v1  ;;  %v9676_v40 = vpop.f32.mrb[60].mxu1  ;;  %v11327_v1 = vld [vmem:[%s15186_s1 + $0x4b8] sm:$0xff]  }
 0x170   :  { %v9586_v23 = vpop.f32.mrb[63].mxu0  ;;  %10130 = vmatprep.subr.bf16.mxu0 %v11317_v2  ;;  %v9677_v25 = vpop.f32.mrb[61].mxu1  ;;  %v222_v5 = vld [vmem:[%s15187_s0 + $0x678] sm:$0xff] }
 0x171   :  { %v5916_v28 = vadd.f32 %v9584_v11, %v12345_v36  ;;  %v9587_v30 = vadd.f32 %v9586_v23, %v9585_v13  ;;  %v9678_v38 = vadd.f32 %v9677_v25, %v9676_v40  ;;  %v9679_v39 = vpop.f32.mrb[62].mxu1  ;;  %10223 = vmatpush3.bf16.msra.mxu1 %v11316_v10  ;;  %v11322_v36 = vld [vmem:[%s15186_s1 + $0x438] sm:$0xff]  }
 0x172   :  { %6466 = vmatmul.mubr.bf16.gmra.mrb[168].mxu0 %v8602_v8  ;;  %v9680_v45 = vpop.f32.mrb[63].mxu1  ;;  %10224 = vmatprep.subr.bf16.mxu1 %v11319_v24  ;;  %v242_v6 = vld [vmem:[%s15187_s0 + $0x718] sm:$0xff] }
 0x173   :  { %v5919_v44 = vadd.f32 %v9587_v30, %v12350_v41  ;;  %6473 = vmatprep.mubr.bf16.mxu0 %v8643_v15  ;;  %10131 = vmatpush3.bf16.msra.mxu0 %v11318_v62  ;;  %v12721_v4 = vadd.f32 %v9678_v38, %v5916_v28  ;;  %v9681_v47 = vadd.f32 %v9680_v45, %v9679_v39  ;;  %v241_v41 = vld [vmem:[%s15187_s0 + $0x710] sm:$0xff] }
 0x174   :  { %10132 = vmatprep.subr.bf16.mxu0 %v11321_v27  ;;  %6602 = vmatmul.mubr.bf16.gmra.mrb[168].mxu1 %v8604_v37  ;;  %v8683_v2 = vcombine.high %v221_v48, %v241_v41  ;;  %v8644_v15 = vcombine.low %v12690_v18, %v12695_v33  ;;  %v8685_v23 = vcombine.high %v222_v5, %v242_v6  ;;  %v281_v18 = vld [vmem:[%s15187_s0 + $0x850] sm:$0xff] }
 0x175   :  { %v9588_v55 = vpop.f32.mrb[64].mxu0  ;;  %v12732_v56 = vadd.f32 %v9681_v47, %v5919_v44  ;;  %6609 = vmatprep.mubr.bf16.mxu1 %v8645_v42  ;;  %10225 = vmatpush3.bf16.msra.mxu1 %v11320_v43  ;;  %v262_v43 = vld [vmem:[%s15187_s0 + $0x7b8] sm:$0xff] }
 0x176   :  { %v9589_v59 = vpop.f32.mrb[65].mxu0  ;;  %10226 = vmatprep.subr.bf16.mxu1 %v11325_v32  ;;  %v282_v44 = vld [vmem:[%s15187_s0 + $0x858] sm:$0xff] }
 0x177   :  { %v9590_v34 = vadd.f32 %v9589_v59, %v9588_v55  ;;  %v9591_v61 = vpop.f32.mrb[66].mxu0  ;;  %10133 = vmatpush3.bf16.msra.mxu0 %v11322_v36  ;;  %v9682_v9 = vpop.f32.mrb[64].mxu1  ;;  %v8684_v55 = vcombine.low %v222_v5, %v242_v6  ;;  %v8725_v59 = vcombine.high %v262_v43, %v282_v44 }
 0x178   :  { %v9592_v8 = vpop.f32.mrb[67].mxu0  ;;  %10306 = vmatprep.subr.bf16.mxu0 %v11329_v54  ;;  %v9683_v13 = vpop.f32.mrb[65].mxu1 }
 0x179   :  { %v5924_v10 = vadd.f32 %v9590_v34, %v12375_v63  ;;  %v9593_v11 = vadd.f32 %v9592_v8, %v9591_v61  ;;  %v9684_v62 = vadd.f32 %v9683_v13, %v9682_v9  ;;  %v9685_v40 = vpop.f32.mrb[66].mxu1  ;;  %10227 = vmatpush3.bf16.msra.mxu1 %v11327_v1  ;;  %v261_v63 = vld [vmem:[%s15187_s0 + $0x7b0] sm:$0xff]  ;;  %v322_v13 = vld [vmem:[%s15187_s0 + $0x998] sm:$0xff] }
 0x17a   :  { %6474 = vmatmul.mubr.bf16.gmra.mrb[172].mxu0 %v8642_v60  ;;  %v9686_v27 = vpop.f32.mrb[67].mxu1  ;;  %10400 = vmatprep.subr.bf16.mxu1 %v11331_v0  ;;  %v8723_v42 = vcombine.high %v261_v63, %v281_v18  ;;  %v8722_v9 = vcombine.low %v261_v63, %v281_v18 }
 0x17b   :  { %v5927_v24 = vadd.f32 %v9593_v11, %v12377_v3  ;;  %6481 = vmatprep.mubr.bf16.mxu0 %v8683_v2  ;;  %v12752_v28 = vadd.f32 %v9684_v62, %v5924_v10  ;;  %v9687_v30 = vadd.f32 %v9686_v27, %v9685_v40  ;;  %v8682_v3 = vcombine.low %v221_v48, %v241_v41  ;;  %v301_v2 = vld [vmem:[%s15187_s0 + $0x8f0] sm:$0xff]  ;;  %v302_v11 = vld [vmem:[%s15187_s0 + $0x8f8] sm:$0xff] }
 0x17c   :  { %6610 = vmatmul.mubr.bf16.gmra.mrb[172].mxu1 %v8644_v15  ;;  %v8724_v27 = vcombine.low %v262_v43, %v282_v44  ;;  %v8765_v18 = vcombine.high %v302_v11, %v322_v13 }
 0x17d   :  { %v9594_v33 = vpop.f32.mrb[68].mxu0  ;;  %v12760_v25 = vadd.f32 %v9687_v30, %v5927_v24  ;;  %6617 = vmatprep.mubr.bf16.mxu1 %v8685_v23 }
 0x17e   :  { %v9595_v37 = vpop.f32.mrb[69].mxu0 }
 0x17f   :  { %v9596_v38 = vadd.f32 %v9595_v37, %v9594_v33  ;;  %v9597_v39 = vpop.f32.mrb[70].mxu0  ;;  %v9688_v45 = vpop.f32.mrb[68].mxu1 }
 0x180   :  { %v9598_v36 = vpop.f32.mrb[71].mxu0  ;;  %v9689_v54 = vpop.f32.mrb[69].mxu1 }
 0x181   :  { %v5932_v32 = vadd.f32 %v9596_v38, %v12395_v26  ;;  %v9599_v47 = vadd.f32 %v9598_v36, %v9597_v39  ;;  %v9690_v48 = vadd.f32 %v9689_v54, %v9688_v45  ;;  %v9691_v41 = vpop.f32.mrb[70].mxu1  ;;  %v321_v26 = vld [vmem:[%s15187_s0 + $0x990] sm:$0xff]  ;;  %v362_v54 = vld [vmem:[%s15187_s0 + $0xad8] sm:$0xff] }
 0x182   :  { %6482 = vmatmul.mubr.bf16.gmra.mrb[176].mxu0 %v8682_v3  ;;  %v9692_v1 = vpop.f32.mrb[71].mxu1  ;;  %v8763_v10 = vcombine.high %v301_v2, %v321_v26  ;;  %v341_v39 = vld [vmem:[%s15187_s0 + $0xa30] sm:$0xff]  ;;  %v8762_v45 = vcombine.low %v301_v2, %v321_v26 }
 0x183   :  { %v5935_v60 = vadd.f32 %v9599_v47, %v12397_v29  ;;  %6489 = vmatprep.mubr.bf16.mxu0 %v8723_v42  ;;  %v12770_v34 = vadd.f32 %v9690_v48, %v5932_v32  ;;  %v9693_v61 = vadd.f32 %v9692_v1, %v9691_v41  ;;  %v342_v47 = vld [vmem:[%s15187_s0 + $0xa38] sm:$0xff]  ;;  %v8764_v1 = vcombine.low %v302_v11, %v322_v13 }
 0x184   :  { %6618 = vmatmul.mubr.bf16.gmra.mrb[176].mxu1 %v8684_v55  ;;  %v8805_v26 = vcombine.high %v342_v47, %v362_v54 }
 0x185   :  { %v9600_v5 = vpop.f32.mrb[72].mxu0  ;;  %v12778_v6 = vadd.f32 %v9693_v61, %v5935_v60  ;;  %6625 = vmatprep.mubr.bf16.mxu1 %v8725_v59 }
 0x186   :  { %v9601_v0 = vpop.f32.mrb[73].mxu0 }
 0x187   :  { %v9602_v29 = vadd.f32 %v9601_v0, %v9600_v5  ;;  %v9603_v8 = vpop.f32.mrb[74].mxu0  ;;  %v9694_v15 = vpop.f32.mrb[72].mxu1 }
 0x188   :  { %v9604_v62 = vpop.f32.mrb[75].mxu0  ;;  %v9695_v24 = vpop.f32.mrb[73].mxu1 }
 0x189   :  { %v5940_v40 = vadd.f32 %v9602_v29, %v12407_v52  ;;  %v9605_v23 = vadd.f32 %v9604_v62, %v9603_v8  ;;  %v9696_v30 = vadd.f32 %v9695_v24, %v9694_v15  ;;  %v9697_v63 = vpop.f32.mrb[74].mxu1  ;;  %v361_v52 = vld [vmem:[%s15187_s0 + $0xad0] sm:$0xff]  ;;  %v402_v24 = vld [vmem:[%s15187_s0 + $0xc18] sm:$0xff] }
 0x18a   :  { %6490 = vmatmul.mubr.bf16.gmra.mrb[180].mxu0 %v8722_v9  ;;  %v9698_v37 = vpop.f32.mrb[75].mxu1  ;;  %v8803_v32 = vcombine.high %v341_v39, %v361_v52  ;;  %v381_v8 = vld [vmem:[%s15187_s0 + $0xb70] sm:$0xff]  ;;  %v8802_v15 = vcombine.low %v341_v39, %v361_v52 }
 0x18b   :  { %v5943_v33 = vadd.f32 %v9605_v23, %v12415_v57  ;;  %6497 = vmatprep.mubr.bf16.mxu0 %v8763_v10  ;;  %v12788_v3 = vadd.f32 %v9696_v30, %v5940_v40  ;;  %v9699_v38 = vadd.f32 %v9698_v37, %v9697_v63  ;;  %v382_v23 = vld [vmem:[%s15187_s0 + $0xb78] sm:$0xff]  ;;  %v8804_v37 = vcombine.low %v342_v47, %v362_v54 }
 0x18c   :  { %6626 = vmatmul.mubr.bf16.gmra.mrb[180].mxu1 %v8724_v27  ;;  %v8845_v52 = vcombine.high %v382_v23, %v402_v24 }
 0x18d   :  { %v9606_v42 = vpop.f32.mrb[76].mxu0  ;;  %v12796_v43 = vadd.f32 %v9699_v38, %v5943_v33  ;;  %6633 = vmatprep.mubr.bf16.mxu1 %v8765_v18 }
 0x18e   :  { %v9607_v44 = vpop.f32.mrb[77].mxu0 }
 0x18f   :  { %v9608_v57 = vadd.f32 %v9607_v44, %v9606_v42  ;;  %v9609_v36 = vpop.f32.mrb[78].mxu0  ;;  %v9700_v55 = vpop.f32.mrb[76].mxu1 }
 0x190   :  { %v9610_v48 = vpop.f32.mrb[79].mxu0  ;;  %v9701_v60 = vpop.f32.mrb[77].mxu1 }
 0x191   :  { %v5948_v41 = vadd.f32 %v9608_v57, %v12425_v17  ;;  %v9611_v59 = vadd.f32 %v9610_v48, %v9609_v36  ;;  %v9702_v61 = vadd.f32 %v9701_v60, %v9700_v55  ;;  %v9703_v2 = vpop.f32.mrb[78].mxu1  ;;  %v401_v17 = vld [vmem:[%s15187_s0 + $0xc10] sm:$0xff]  ;;  %v442_v60 = vld [vmem:[%s15187_s0 + $0xd58] sm:$0xff] }
 0x192   :  { %6498 = vmatmul.mubr.bf16.gmra.mrb[184].mxu0 %v8762_v45  ;;  %v9704_v0 = vpop.f32.mrb[79].mxu1  ;;  %v8843_v40 = vcombine.high %v381_v8, %v401_v17  ;;  %v421_v36 = vld [vmem:[%s15187_s0 + $0xcb0] sm:$0xff]  ;;  %v8842_v55 = vcombine.low %v381_v8, %v401_v17 }
 0x193   :  { %v5951_v5 = vadd.f32 %v9611_v59, %v12433_v22  ;;  %6505 = vmatprep.mubr.bf16.mxu0 %v8803_v32  ;;  %v12806_v9 = vadd.f32 %v9702_v61, %v5948_v41  ;;  %v9705_v29 = vadd.f32 %v9704_v0, %v9703_v2  ;;  %v422_v59 = vld [vmem:[%s15187_s0 + $0xcb8] sm:$0xff]  ;;  %v8844_v0 = vcombine.low %v382_v23, %v402_v24 }
 0x194   :  { %6634 = vmatmul.mubr.bf16.gmra.mrb[184].mxu1 %v8764_v1  ;;  %v8885_v17 = vcombine.high %v422_v59, %v442_v60 }
 0x195   :  { %v9612_v10 = vpop.f32.mrb[80].mxu0  ;;  %v12814_v11 = vadd.f32 %v9705_v29, %v5951_v5  ;;  %6641 = vmatprep.mubr.bf16.mxu1 %v8805_v26 }
 0x196   :  { %v9613_v13 = vpop.f32.mrb[81].mxu0 }
 0x197   :  { %v9614_v22 = vadd.f32 %v9613_v13, %v9612_v10  ;;  %v9615_v62 = vpop.f32.mrb[82].mxu0  ;;  %v9706_v27 = vpop.f32.mrb[80].mxu1 }
 0x198   :  { %v9616_v30 = vpop.f32.mrb[83].mxu0  ;;  %v9707_v33 = vpop.f32.mrb[81].mxu1 }
 0x199   :  { %v5956_v63 = vadd.f32 %v9614_v22, %v12449_v49  ;;  %v9617_v18 = vadd.f32 %v9616_v30, %v9615_v62  ;;  %v9708_v38 = vadd.f32 %v9707_v33, %v9706_v27  ;;  %v9709_v39 = vpop.f32.mrb[82].mxu1  ;;  %v441_v49 = vld [vmem:[%s15187_s0 + $0xd50] sm:$0xff]  ;;  %v482_v33 = vld [vmem:[%s15187_s0 + $0xe98] sm:$0xff] }
 0x19a   :  { %6506 = vmatmul.mubr.bf16.gmra.mrb[188].mxu0 %v8802_v15  ;;  %v9710_v44 = vpop.f32.mrb[83].mxu1  ;;  %v8883_v41 = vcombine.high %v421_v36, %v441_v49  ;;  %v461_v62 = vld [vmem:[%s15187_s0 + $0xdf0] sm:$0xff]  ;;  %v8882_v27 = vcombine.low %v421_v36, %v441_v49 }
 0x19b   :  { %v5959_v42 = vadd.f32 %v9617_v18, %v12451_v53  ;;  %6513 = vmatprep.mubr.bf16.mxu0 %v8843_v40  ;;  %v12824_v45 = vadd.f32 %v9708_v38, %v5956_v63  ;;  %v9711_v57 = vadd.f32 %v9710_v44, %v9709_v39  ;;  %v462_v18 = vld [vmem:[%s15187_s0 + $0xdf8] sm:$0xff]  ;;  %v8884_v44 = vcombine.low %v422_v59, %v442_v60 }
 0x19c   :  { %6642 = vmatmul.mubr.bf16.gmra.mrb[188].mxu1 %v8804_v37  ;;  %v8925_v49 = vcombine.high %v462_v18, %v482_v33 }
 0x19d   :  { %v9618_v32 = vpop.f32.mrb[84].mxu0  ;;  %v12832_v47 = vadd.f32 %v9711_v57, %v5959_v42  ;;  %6649 = vmatprep.mubr.bf16.mxu1 %v8845_v52 }
 0x19e   :  { %v9619_v54 = vpop.f32.mrb[85].mxu0 }
 0x19f   :  { %v9620_v53 = vadd.f32 %v9619_v54, %v9618_v32  ;;  %v9621_v48 = vpop.f32.mrb[86].mxu0  ;;  %v9712_v1 = vpop.f32.mrb[84].mxu1 }
 0x1a0   :  { %v9622_v61 = vpop.f32.mrb[87].mxu0  ;;  %v9713_v5 = vpop.f32.mrb[85].mxu1 }
 0x1a1   :  { %v5964_v2 = vadd.f32 %v9620_v53, %v12467_v16  ;;  %v9623_v26 = vadd.f32 %v9622_v61, %v9621_v48  ;;  %v9714_v29 = vadd.f32 %v9713_v5, %v9712_v1  ;;  %v9715_v8 = vpop.f32.mrb[86].mxu1  ;;  %v481_v16 = vld [vmem:[%s15187_s0 + $0xe90] sm:$0xff] }
 0x1a2   :  { %6514 = vmatmul.mubr.bf16.gmra.mrb[192].mxu0 %v8842_v55  ;;  %v9716_v13 = vpop.f32.mrb[87].mxu1  ;;  %v8923_v63 = vcombine.high %v461_v62, %v481_v16  ;;  %v501_v48 = vld [vmem:[%s15187_s0 + $0xf30] sm:$0xff]  ;;  %v8922_v60 = vcombine.low %v461_v62, %v481_v16 }
 0x1a3   :  { %v5967_v10 = vadd.f32 %v9623_v26, %v12469_v20  ;;  %6521 = vmatprep.mubr.bf16.mxu0 %v8883_v41  ;;  %v12842_v15 = vadd.f32 %v9714_v29, %v5964_v2  ;;  %v9717_v22 = vadd.f32 %v9716_v13, %v9715_v8  ;;  %v8963_v2 = vcombine.high %v501_v48, %v501_v48 }
 0x1a4   :  { %6650 = vmatmul.mubr.bf16.gmra.mrb[192].mxu1 %v8844_v0 }
 0x1a5   :  { %v9624_v40 = vpop.f32.mrb[88].mxu0  ;;  %v12850_v23 = vadd.f32 %v9717_v22, %v5967_v10  ;;  %6657 = vmatprep.mubr.bf16.mxu1 %v8885_v17  ;;  %v8924_v17 = vcombine.low %v462_v18, %v482_v33  ;;  %v8962_v18 = vcombine.low %v501_v48, %v501_v48 }
 0x1a6   :  { %v9625_v24 = vpop.f32.mrb[89].mxu0 }
 0x1a7   :  { %v9626_v20 = vadd.f32 %v9625_v24, %v9624_v40  ;;  %v9627_v30 = vpop.f32.mrb[90].mxu0  ;;  %v9718_v37 = vpop.f32.mrb[88].mxu1 }
 0x1a8   :  { %v9628_v38 = vpop.f32.mrb[91].mxu0  ;;  %v9719_v42 = vpop.f32.mrb[89].mxu1 }
 0x1a9   :  { %v5972_v39 = vadd.f32 %v9626_v20, %v12479_v46  ;;  %v9629_v52 = vadd.f32 %v9628_v38, %v9627_v30  ;;  %v9720_v57 = vadd.f32 %v9719_v42, %v9718_v37  ;;  %v9721_v36 = vpop.f32.mrb[90].mxu1  ;;  %v24_v38 = vld [vmem:[%s15187_s0 + $0x48] sm:$0xff] }
 0x1aa   :  { %6522 = vmatmul.mubr.bf16.gmra.mrb[196].mxu0 %v8882_v27  ;;  %v9722_v54 = vpop.f32.mrb[91].mxu1  ;;  %v23_v27 = vld [vmem:[%s15187_s0 + $0x40] sm:$0xff] }
 0x1ab   :  { %v5975_v32 = vadd.f32 %v9629_v52, %v12484_v51  ;;  %6529 = vmatprep.mubr.bf16.mxu0 %v8923_v63  ;;  %v12860_v55 = vadd.f32 %v9720_v57, %v5972_v39  ;;  %v9723_v53 = vadd.f32 %v9722_v54, %v9721_v36  ;;  %v502_v51 = vld [vmem:[%s15187_s0 + $0xf38] sm:$0xff]  ;;  %v44_v39 = vld [vmem:[%s15187_s0 + $0xe8] sm:$0xff] }
 0x1ac   :  { %6658 = vmatmul.mubr.bf16.gmra.mrb[196].mxu1 %v8884_v44  ;;  %v8965_v22 = vcombine.high %v502_v51, %v502_v51 }
 0x1ad   :  { %v9630_v46 = vpop.f32.mrb[92].mxu0  ;;  %v12865_v41 = vadd.f32 %v9723_v53, %v5975_v32  ;;  %6665 = vmatprep.mubr.bf16.mxu1 %v8925_v49  ;;  %v8964_v49 = vcombine.low %v502_v51, %v502_v51  ;;  %v8489_v53 = vcombine.high %v24_v38, %v44_v39 }
 0x1ae   :  { %v9631_v59 = vpop.f32.mrb[93].mxu0 }
 0x1af   :  { %v9632_v1 = vadd.f32 %v9631_v59, %v9630_v46  ;;  %v9633_v61 = vpop.f32.mrb[94].mxu0  ;;  %v9724_v26 = vpop.f32.mrb[92].mxu1 }
 0x1b0   :  { %v9634_v5 = vpop.f32.mrb[95].mxu0  ;;  %v9725_v8 = vpop.f32.mrb[93].mxu1 }
 0x1b1   :  { %v5980_v0 = vadd.f32 %v9632_v1, %v12494_v14  ;;  %v9635_v29 = vadd.f32 %v9634_v5, %v9633_v61  ;;  %v9726_v10 = vadd.f32 %v9725_v8, %v9724_v26  ;;  %v9727_v13 = vpop.f32.mrb[94].mxu1  ;;  %v43_v14 = vld [vmem:[%s15187_s0 + $0xe0] sm:$0xff]  ;;  %v12906_v8 = vld [vmem:[%s15187_s0 + $0x188] sm:$0xff] }
 0x1b2   :  { %6530 = vmatmul.mubr.bf16.gmra.mrb[200].mxu0 %v8922_v60  ;;  %v9728_v16 = vpop.f32.mrb[95].mxu1  ;;  %v8487_v37 = vcombine.high %v23_v27, %v43_v14  ;;  %v63_v1 = vld [vmem:[%s15187_s0 + $0x180] sm:$0xff]  ;;  %v8486_v26 = vcombine.low %v23_v27, %v43_v14 }
 0x1b3   :  { %v5983_v62 = vadd.f32 %v9635_v29, %v12499_v21  ;;  %6537 = vmatprep.mubr.bf16.mxu0 %v8963_v2  ;;  %v12872_v40 = vadd.f32 %v9726_v10, %v5980_v0  ;;  %v9729_v24 = vadd.f32 %v9728_v16, %v9727_v13  ;;  %v11330_v0 = vld [vmem:[%s15186_s1 + $0x500] sm:$0xff]  }
 0x1b4   :  { %6666 = vmatmul.mubr.bf16.gmra.mrb[200].mxu1 %v8924_v17  ;;  %v12911_v17 = vld [vmem:[%s15187_s0 + $0x228] sm:$0xff] }
 0x1b5   :  { %v9636_v20 = vpop.f32.mrb[96].mxu0  ;;  %v12880_v30 = vadd.f32 %v9729_v24, %v5983_v62  ;;  %6673 = vmatprep.mubr.bf16.mxu1 %v8965_v22  ;;  %v11333_v22 = vld [vmem:[%s15186_s1 + $0x548] sm:$0xff]   ;;  %v8488_v24 = vcombine.low %v24_v38, %v44_v39  ;;  %v12938_v38 = vld [vmem:[%s15187_s0 + $0x360] sm:$0xff]  ;;  %v11337_v39 = vld [vmem:[%s15186_s1 + $0x550] sm:$0xff]  }
 0x1b6   :  { %v9637_v63 = vpop.f32.mrb[97].mxu0 }
 0x1b7   :  { %v9638_v21 = vadd.f32 %v9637_v63, %v9636_v20  ;;  %v9639_v33 = vpop.f32.mrb[98].mxu0  ;;  %v9730_v52 = vpop.f32.mrb[96].mxu1  ;;  %v11332_v20 = vld [vmem:[%s15186_s1 + $0x580] sm:$0xff]   ;;  %v8529_v63 = vcombine.high %v12906_v8, %v12911_v17 }
 0x1b8   :  { %v9640_v42 = vpop.f32.mrb[99].mxu0  ;;  %v9731_v36 = vpop.f32.mrb[97].mxu1 }
 0x1b9   :  { %v5988_v44 = vadd.f32 %v9638_v21, %v12515_v50  ;;  %v9641_v57 = vadd.f32 %v9640_v42, %v9639_v33  ;;  %v9732_v32 = vadd.f32 %v9731_v36, %v9730_v52  ;;  %v9733_v54 = vpop.f32.mrb[98].mxu1  ;;  %v83_v50 = vld [vmem:[%s15187_s0 + $0x220] sm:$0xff]  ;;  %v11334_v21 = vld [vmem:[%s15186_s1 + $0x508] sm:$0xff]  }
 0x1ba   :  { %6538 = vmatmul.mubr.bf16.gmra.mrb[204].mxu0 %v8962_v18  ;;  %v9734_v46 = vpop.f32.mrb[99].mxu1  ;;  %v8527_v29 = vcombine.high %v63_v1, %v83_v50 }
 0x1bb   :  { %v5991_v48 = vadd.f32 %v9641_v57, %v12520_v58  ;;  %6713 = vmatprep.mubr.bf16.mxu0 %v8487_v37  ;;  %v12890_v59 = vadd.f32 %v9732_v32, %v5988_v44  ;;  %v9735_v60 = vadd.f32 %v9734_v46, %v9733_v54  ;;  %v12933_v37 = vld [vmem:[%s15187_s0 + $0x2c0] sm:$0xff]  ;;  %v8526_v44 = vcombine.low %v63_v1, %v83_v50  ;;  %v11336_v57 = vld [vmem:[%s15186_s1 + $0x588] sm:$0xff]   ;;  %v11339_v1 = vld [vmem:[%s15186_s1 + $0x5d0] sm:$0xff]  }
 0x1bc   :  { %6674 = vmatmul.mubr.bf16.gmra.mrb[204].mxu1 %v8964_v49  ;;  %v8567_v32 = vcombine.high %v12933_v37, %v12938_v38  ;;  %v12951_v54 = vld [vmem:[%s15187_s0 + $0x2c8] sm:$0xff]  ;;  %v11341_v50 = vld [vmem:[%s15186_s1 + $0x558] sm:$0xff]  }
 0x1bd   :  { %v9642_v61 = vpop.f32.mrb[100].mxu0  ;;  %v12898_v2 = vadd.f32 %v9735_v60, %v5991_v48  ;;  %6849 = vmatprep.mubr.bf16.mxu1 %v8489_v53  ;;  %v12956_v53 = vld [vmem:[%s15187_s0 + $0x368] sm:$0xff]  ;;  %v11338_v48 = vld [vmem:[%s15186_s1 + $0x510] sm:$0xff]  }
 0x1be   :  { %v9643_v51 = vpop.f32.mrb[101].mxu0 }
 0x1bf   :  { %v9644_v58 = vadd.f32 %v9643_v51, %v9642_v61  ;;  %v9645_v5 = vpop.f32.mrb[102].mxu0  ;;  %v9736_v10 = vpop.f32.mrb[100].mxu1 }
 0x1c0   :  { %v9646_v13 = vpop.f32.mrb[103].mxu0  ;;  %v9737_v16 = vpop.f32.mrb[101].mxu1 }
 0x1c1   :  { %v5996_v62 = vadd.f32 %v9644_v58, %v12563_v31  ;;  %v9738_v27 = vadd.f32 %v9737_v16, %v9736_v10  ;;  %v9739_v14 = vpop.f32.mrb[102].mxu1  ;;  %v11335_v31 = vld [vmem:[%s15186_s1 + $0x5c8] sm:$0xff]   ;;  %v8528_v58 = vcombine.low %v12906_v8, %v12911_v17  ;;  %v11340_v10 = vld [vmem:[%s15186_s1 + $0x590] sm:$0xff]   ;;  %v11343_v8 = vld [vmem:[%s15186_s1 + $0x5d8] sm:$0xff]  }
 0x1c2   :  { %6714 = vmatmul.mubr.bf16.vlgmr.msra.gmra.mrb[208].mxu0 %v8486_v26  ;;  %v9740_v18 = vpop.f32.mrb[103].mxu1  ;;  %v12987_v16 = vld [vmem:[%s15187_s0 + $0x400] sm:$0xff] }
 0x1c3   :  { %10307 = vmatpush3.bf16.msra.mxu0 %v11330_v0  ;;  %6721 = vmatprep.mubr.bf16.mxu0 %v8527_v29  ;;  %v12928_v33 = vadd.f32 %v9738_v27, %v5996_v62  ;;  %v8569_v29 = vcombine.high %v12951_v54, %v12956_v53  ;;  %v11344_v18 = vld [vmem:[%s15186_s1 + $0x598] sm:$0xff]  }
 0x1c4   :  { %10308 = vmatprep.subr.bf16.mxu0 %v11333_v22  ;;  %6850 = vmatmul.mubr.bf16.vlgmr.msra.gmra.mrb[208].mxu1 %v8488_v24  ;;  %v11345_v24 = vld [vmem:[%s15186_s1 + $0x560] sm:$0xff]  }
 0x1c5   :  { %v9758_v52 = vpop.f32.mrb[104].mxu0  ;;  %10401 = vmatpush3.bf16.msra.mxu1 %v11332_v20  ;;  %6857 = vmatprep.mubr.bf16.mxu1 %v8529_v63  ;;  %v8566_v63 = vcombine.low %v12933_v37, %v12938_v38  ;;  %v13014_v37 = vld [vmem:[%s15187_s0 + $0x4a8] sm:$0xff]  ;;  %v11346_v38 = vld [vmem:[%s15186_s1 + $0x520] sm:$0xff]  }
 0x1c6   :  { %v9759_v42 = vpop.f32.mrb[105].mxu0  ;;  %10402 = vmatprep.subr.bf16.mxu1 %v11335_v31 }
 0x1c7   :  { %v9760_v36 = vadd.f32 %v9759_v42, %v9758_v52  ;;  %v9761_v49 = vpop.f32.mrb[106].mxu0  ;;  %10309 = vmatpush3.bf16.msra.mxu0 %v11334_v21  ;;  %v9852_v46 = vpop.f32.mrb[104].mxu1  ;;  %v13009_v52 = vld [vmem:[%s15187_s0 + $0x408] sm:$0xff] }
 0x1c8   :  { %v9762_v60 = vpop.f32.mrb[107].mxu0  ;;  %10310 = vmatprep.subr.bf16.mxu0 %v11337_v39  ;;  %v9853_v26 = vpop.f32.mrb[105].mxu1 }
 0x1c9   :  { %v6172_v61 = vadd.f32 %v9760_v36, %v12615_v12  ;;  %v9763_v51 = vadd.f32 %v9762_v60, %v9761_v49  ;;  %v9854_v5 = vadd.f32 %v9853_v26, %v9852_v46  ;;  %v9855_v0 = vpop.f32.mrb[106].mxu1  ;;  %10403 = vmatpush3.bf16.msra.mxu1 %v11336_v57  ;;  %v11342_v12 = vld [vmem:[%s15186_s1 + $0x518] sm:$0xff]   ;;  %v11347_v57 = vld [vmem:[%s15186_s1 + $0x5e0] sm:$0xff]   ;;  %v11349_v36 = vld [vmem:[%s15186_s1 + $0x568] sm:$0xff]   ;;  %v8568_v46 = vcombine.low %v12951_v54, %v12956_v53 }
 0x1ca   :  { %6722 = vmatmul.mubr.bf16.gmra.mrb[212].mxu0 %v8526_v44  ;;  %v9856_v22 = vpop.f32.mrb[107].mxu1  ;;  %10404 = vmatprep.subr.bf16.mxu1 %v11339_v1  ;;  %v11351_v54 = vld [vmem:[%s15186_s1 + $0x5e8] sm:$0xff]  }
 0x1cb   :  { %v6175_v13 = vadd.f32 %v9763_v51, %v12620_v19  ;;  %6729 = vmatprep.mubr.bf16.mxu0 %v8567_v32  ;;  %10311 = vmatpush3.bf16.msra.mxu0 %v11338_v48  ;;  %v12982_v17 = vadd.f32 %v9854_v5, %v6172_v61  ;;  %v9857_v62 = vadd.f32 %v9856_v22, %v9855_v0  ;;  %v12992_v19 = vld [vmem:[%s15187_s0 + $0x4a0] sm:$0xff]  ;;  %v11353_v0 = vld [vmem:[%s15186_s1 + $0x570] sm:$0xff]  }
 0x1cc   :  { %10312 = vmatprep.subr.bf16.mxu0 %v11341_v50  ;;  %6858 = vmatmul.mubr.bf16.gmra.mrb[212].mxu1 %v8528_v58  ;;  %v8607_v39 = vcombine.high %v12987_v16, %v12992_v19  ;;  %v8609_v50 = vcombine.high %v13009_v52, %v13014_v37  ;;  %v11348_v61 = vld [vmem:[%s15186_s1 + $0x5a0] sm:$0xff]   ;;  %v8606_v22 = vcombine.low %v12987_v16, %v12992_v19  ;;  %v13072_v16 = vld [vmem:[%s15187_s0 + $0x5e8] sm:$0xff]  ;;  %v11354_v19 = vld [vmem:[%s15186_s1 + $0x530] sm:$0xff]  }
 0x1cd   :  { %v9764_v27 = vpop.f32.mrb[108].mxu0  ;;  %v12997_v14 = vadd.f32 %v9857_v62, %v6175_v13  ;;  %6865 = vmatprep.mubr.bf16.mxu1 %v8569_v29  ;;  %10405 = vmatpush3.bf16.msra.mxu1 %v11340_v10  ;;  %v13045_v5 = vld [vmem:[%s15187_s0 + $0x540] sm:$0xff] }
 0x1ce   :  { %v9765_v20 = vpop.f32.mrb[109].mxu0  ;;  %10406 = vmatprep.subr.bf16.mxu1 %v11343_v8 }
 0x1cf   :  { %v9766_v21 = vadd.f32 %v9765_v20, %v9764_v27  ;;  %v9767_v31 = vpop.f32.mrb[110].mxu0  ;;  %10313 = vmatpush3.bf16.msra.mxu0 %v11342_v12  ;;  %v9858_v42 = vpop.f32.mrb[108].mxu1  ;;  %v11352_v12 = vld [vmem:[%s15186_s1 + $0x5a8] sm:$0xff]  }
 0x1d0   :  { %v9768_v44 = vpop.f32.mrb[111].mxu0  ;;  %10314 = vmatprep.subr.bf16.mxu0 %v11345_v24  ;;  %v9859_v48 = vpop.f32.mrb[109].mxu1  ;;  %v13067_v27 = vld [vmem:[%s15187_s0 + $0x548] sm:$0xff] }
 0x1d1   :  { %v6180_v49 = vadd.f32 %v9766_v21, %v12663_v35  ;;  %v9769_v32 = vadd.f32 %v9768_v44, %v9767_v31  ;;  %v9860_v60 = vadd.f32 %v9859_v48, %v9858_v42  ;;  %v9861_v1 = vpop.f32.mrb[110].mxu1  ;;  %10407 = vmatpush3.bf16.msra.mxu1 %v11344_v18  ;;  %v11350_v35 = vld [vmem:[%s15186_s1 + $0x528] sm:$0xff]   ;;  %v11355_v18 = vld [vmem:[%s15186_s1 + $0x5f0] sm:$0xff]   ;;  %v11357_v21 = vld [vmem:[%s15186_s1 + $0x578] sm:$0xff]   ;;  %v8608_v42 = vcombine.low %v13009_v52, %v13014_v37 }
 0x1d2   :  { %6730 = vmatmul.mubr.bf16.gmra.mrb[216].mxu0 %v8566_v63  ;;  %v9862_v26 = vpop.f32.mrb[111].mxu1  ;;  %10408 = vmatprep.subr.bf16.mxu1 %v11347_v57  ;;  %v11361_v52 = vld [vmem:[%s15186_s1 + $0x5f8] sm:$0xff]  }
 0x1d3   :  { %v6183_v51 = vadd.f32 %v9769_v32, %v12678_v7  ;;  %6737 = vmatprep.mubr.bf16.mxu0 %v8607_v39  ;;  %10315 = vmatpush3.bf16.msra.mxu0 %v11346_v38  ;;  %v13040_v53 = vadd.f32 %v9860_v60, %v6180_v49  ;;  %v9863_v58 = vadd.f32 %v9862_v26, %v9861_v1  ;;  %v13050_v7 = vld [vmem:[%s15187_s0 + $0x5e0] sm:$0xff]  ;;  %v11356_v49 = vld [vmem:[%s15186_s1 + $0x5b0] sm:$0xff]  }
 0x1d4   :  { %10316 = vmatprep.subr.bf16.mxu0 %v11349_v36  ;;  %6866 = vmatmul.mubr.bf16.gmra.mrb[216].mxu1 %v8568_v46  ;;  %v8647_v24 = vcombine.high %v13045_v5, %v13050_v7  ;;  %v8649_v36 = vcombine.high %v13067_v27, %v13072_v16  ;;  %v223_v60 = vld [vmem:[%s15187_s0 + $0x680] sm:$0xff]  ;;  %v8646_v26 = vcombine.low %v13045_v5, %v13050_v7 }
 0x1d5   :  { %v9770_v29 = vpop.f32.mrb[112].mxu0  ;;  %v13055_v10 = vadd.f32 %v9863_v58, %v6183_v51  ;;  %6873 = vmatprep.mubr.bf16.mxu1 %v8609_v50  ;;  %10409 = vmatpush3.bf16.msra.mxu1 %v11348_v61  ;;  %v11365_v1 = vld [vmem:[%s15186_s1 + $0x640] sm:$0xff]  }
 0x1d6   :  { %v9771_v13 = vpop.f32.mrb[113].mxu0  ;;  %10410 = vmatprep.subr.bf16.mxu1 %v11351_v54  ;;  %v11367_v5 = vld [vmem:[%s15186_s1 + $0x6c0] sm:$0xff]  }
 0x1d7   :  { %v9772_v8 = vadd.f32 %v9771_v13, %v9770_v29  ;;  %v9773_v62 = vpop.f32.mrb[114].mxu0  ;;  %10317 = vmatpush3.bf16.msra.mxu0 %v11350_v35  ;;  %v9864_v20 = vpop.f32.mrb[112].mxu1  ;;  %v11364_v35 = vld [vmem:[%s15186_s1 + $0x5b8] sm:$0xff]   ;;  %v224_v29 = vld [vmem:[%s15187_s0 + $0x688] sm:$0xff] }
 0x1d8   :  { %v9774_v63 = vpop.f32.mrb[115].mxu0  ;;  %10318 = vmatprep.subr.bf16.mxu0 %v11353_v0  ;;  %v9865_v38 = vpop.f32.mrb[113].mxu1  ;;  %v244_v13 = vld [vmem:[%s15187_s0 + $0x728] sm:$0xff] }
 0x1d9   :  { %v6188_v31 = vadd.f32 %v9772_v8, %v12721_v4  ;;  %v9775_v39 = vadd.f32 %v9774_v63, %v9773_v62  ;;  %v9866_v44 = vadd.f32 %v9865_v38, %v9864_v20  ;;  %v9867_v57 = vpop.f32.mrb[114].mxu1  ;;  %10411 = vmatpush3.bf16.msra.mxu1 %v11352_v12  ;;  %v11358_v4 = vld [vmem:[%s15186_s1 + $0x538] sm:$0xff]   ;;  %v8689_v63 = vcombine.high %v224_v29, %v244_v13 }
 0x1da   :  { %6738 = vmatmul.mubr.bf16.gmra.mrb[220].mxu0 %v8606_v22  ;;  %v9868_v48 = vpop.f32.mrb[115].mxu1  ;;  %10412 = vmatprep.subr.bf16.mxu1 %v11355_v18 }
 0x1db   :  { %v6191_v32 = vadd.f32 %v9775_v39, %v12732_v56  ;;  %6745 = vmatprep.mubr.bf16.mxu0 %v8647_v24  ;;  %10319 = vmatpush3.bf16.msra.mxu0 %v11354_v19  ;;  %v13098_v37 = vadd.f32 %v9866_v44, %v6188_v31  ;;  %v9869_v46 = vadd.f32 %v9868_v48, %v9867_v57  ;;  %v243_v56 = vld [vmem:[%s15187_s0 + $0x720] sm:$0xff] }
 0x1dc   :  { %10320 = vmatprep.subr.bf16.mxu0 %v11357_v21  ;;  %6874 = vmatmul.mubr.bf16.gmra.mrb[220].mxu1 %v8608_v42  ;;  %v8687_v0 = vcombine.high %v223_v60, %v243_v56  ;;  %v8648_v24 = vcombine.low %v13067_v27, %v13072_v16  ;;  %v283_v27 = vld [vmem:[%s15187_s0 + $0x860] sm:$0xff] }
 0x1dd   :  { %v9776_v50 = vpop.f32.mrb[116].mxu0  ;;  %v13109_v61 = vadd.f32 %v9869_v46, %v6191_v32  ;;  %6881 = vmatprep.mubr.bf16.mxu1 %v8649_v36  ;;  %10413 = vmatpush3.bf16.msra.mxu1 %v11356_v49  ;;  %v264_v49 = vld [vmem:[%s15187_s0 + $0x7c8] sm:$0xff] }
 0x1de   :  { %v9777_v51 = vpop.f32.mrb[117].mxu0  ;;  %10414 = vmatprep.subr.bf16.mxu1 %v11361_v52  ;;  %v284_v32 = vld [vmem:[%s15187_s0 + $0x868] sm:$0xff] }
 0x1df   :  { %v9778_v54 = vadd.f32 %v9777_v51, %v9776_v50  ;;  %v9779_v58 = vpop.f32.mrb[118].mxu0  ;;  %10321 = vmatpush3.bf16.msra.mxu0 %v11358_v4  ;;  %v9870_v7 = vpop.f32.mrb[116].mxu1  ;;  %v8688_v50 = vcombine.low %v224_v29, %v244_v13  ;;  %v8729_v51 = vcombine.high %v264_v49, %v284_v32 }
 0x1e0   :  { %v9780_v22 = vpop.f32.mrb[119].mxu0  ;;  %10494 = vmatprep.subr.bf16.mxu0 %v11365_v1  ;;  %v9871_v62 = vpop.f32.mrb[117].mxu1 }
 0x1e1   :  { %v6196_v12 = vadd.f32 %v9778_v54, %v12752_v28  ;;  %v9781_v8 = vadd.f32 %v9780_v22, %v9779_v58  ;;  %v9872_v19 = vadd.f32 %v9871_v62, %v9870_v7  ;;  %v9873_v20 = vpop.f32.mrb[118].mxu1  ;;  %10415 = vmatpush3.bf16.msra.mxu1 %v11364_v35  ;;  %v263_v28 = vld [vmem:[%s15187_s0 + $0x7c0] sm:$0xff]  ;;  %v324_v62 = vld [vmem:[%s15187_s0 + $0x9a8] sm:$0xff] }
 0x1e2   :  { %6746 = vmatmul.mubr.bf16.gmra.mrb[224].mxu0 %v8646_v26  ;;  %v9874_v21 = vpop.f32.mrb[119].mxu1  ;;  %10588 = vmatprep.subr.bf16.mxu1 %v11367_v5  ;;  %v8727_v36 = vcombine.high %v263_v28, %v283_v27  ;;  %v8726_v7 = vcombine.low %v263_v28, %v283_v27 }
 0x1e3   :  { %v6199_v18 = vadd.f32 %v9781_v8, %v12760_v25  ;;  %6753 = vmatprep.mubr.bf16.mxu0 %v8687_v0  ;;  %v13129_v31 = vadd.f32 %v9872_v19, %v6196_v12  ;;  %v9875_v39 = vadd.f32 %v9874_v21, %v9873_v20  ;;  %v8686_v25 = vcombine.low %v223_v60, %v243_v56  ;;  %v303_v0 = vld [vmem:[%s15187_s0 + $0x900] sm:$0xff]  ;;  %v304_v8 = vld [vmem:[%s15187_s0 + $0x908] sm:$0xff] }
 0x1e4   :  { %6882 = vmatmul.mubr.bf16.gmra.mrb[224].mxu1 %v8648_v24  ;;  %v8728_v21 = vcombine.low %v264_v49, %v284_v32  ;;  %v8769_v27 = vcombine.high %v304_v8, %v324_v62 }
 0x1e5   :  { %v9782_v16 = vpop.f32.mrb[120].mxu0  ;;  %v13137_v38 = vadd.f32 %v9875_v39, %v6199_v18  ;;  %6889 = vmatprep.mubr.bf16.mxu1 %v8689_v63 }
 0x1e6   :  { %v9783_v42 = vpop.f32.mrb[121].mxu0 }
 0x1e7   :  { %v9784_v44 = vadd.f32 %v9783_v42, %v9782_v16  ;;  %v9785_v57 = vpop.f32.mrb[122].mxu0  ;;  %v9876_v48 = vpop.f32.mrb[120].mxu1 }
 0x1e8   :  { %v9786_v4 = vpop.f32.mrb[123].mxu0  ;;  %v9877_v1 = vpop.f32.mrb[121].mxu1 }
 0x1e9   :  { %v6204_v52 = vadd.f32 %v9784_v44, %v12770_v34  ;;  %v9787_v46 = vadd.f32 %v9786_v4, %v9785_v57  ;;  %v9878_v60 = vadd.f32 %v9877_v1, %v9876_v48  ;;  %v9879_v56 = vpop.f32.mrb[122].mxu1  ;;  %v323_v34 = vld [vmem:[%s15187_s0 + $0x9a0] sm:$0xff]  ;;  %v364_v1 = vld [vmem:[%s15187_s0 + $0xae8] sm:$0xff] }
 0x1ea   :  { %6754 = vmatmul.mubr.bf16.gmra.mrb[228].mxu0 %v8686_v25  ;;  %v9880_v35 = vpop.f32.mrb[123].mxu1  ;;  %v8767_v12 = vcombine.high %v303_v0, %v323_v34  ;;  %v343_v57 = vld [vmem:[%s15187_s0 + $0xa40] sm:$0xff]  ;;  %v8766_v48 = vcombine.low %v303_v0, %v323_v34 }
 0x1eb   :  { %v6207_v26 = vadd.f32 %v9787_v46, %v12778_v6  ;;  %6761 = vmatprep.mubr.bf16.mxu0 %v8727_v36  ;;  %v13147_v54 = vadd.f32 %v9878_v60, %v6204_v52  ;;  %v9881_v58 = vadd.f32 %v9880_v35, %v9879_v56  ;;  %v344_v46 = vld [vmem:[%s15187_s0 + $0xa48] sm:$0xff]  ;;  %v8768_v35 = vcombine.low %v304_v8, %v324_v62 }
 0x1ec   :  { %6890 = vmatmul.mubr.bf16.gmra.mrb[228].mxu1 %v8688_v50  ;;  %v8809_v34 = vcombine.high %v344_v46, %v364_v1 }
 0x1ed   :  { %v9788_v29 = vpop.f32.mrb[124].mxu0  ;;  %v13155_v13 = vadd.f32 %v9881_v58, %v6207_v26  ;;  %6897 = vmatprep.mubr.bf16.mxu1 %v8729_v51 }
 0x1ee   :  { %v9789_v5 = vpop.f32.mrb[125].mxu0 }
 0x1ef   :  { %v9790_v6 = vadd.f32 %v9789_v5, %v9788_v29  ;;  %v9791_v22 = vpop.f32.mrb[126].mxu0  ;;  %v9882_v24 = vpop.f32.mrb[124].mxu1 }
 0x1f0   :  { %v9792_v19 = vpop.f32.mrb[127].mxu0  ;;  %v9883_v18 = vpop.f32.mrb[125].mxu1 }
 0x1f1   :  { %v6212_v20 = vadd.f32 %v9790_v6, %v12788_v3  ;;  %v9793_v63 = vadd.f32 %v9792_v19, %v9791_v22  ;;  %v9884_v39 = vadd.f32 %v9883_v18, %v9882_v24  ;;  %v9885_v28 = vpop.f32.mrb[126].mxu1  ;;  %v363_v3 = vld [vmem:[%s15187_s0 + $0xae0] sm:$0xff]  ;;  %v404_v18 = vld [vmem:[%s15187_s0 + $0xc28] sm:$0xff] }
 0x1f2   :  { %6762 = vmatmul.mubr.bf16.gmra.mrb[232].mxu0 %v8726_v7  ;;  %v9886_v42 = vpop.f32.mrb[127].mxu1  ;;  %v8807_v52 = vcombine.high %v343_v57, %v363_v3  ;;  %v383_v22 = vld [vmem:[%s15187_s0 + $0xb80] sm:$0xff]  ;;  %v8806_v24 = vcombine.low %v343_v57, %v363_v3 }
 0x1f3   :  { %v6215_v16 = vadd.f32 %v9793_v63, %v12796_v43  ;;  %6769 = vmatprep.mubr.bf16.mxu0 %v8767_v12  ;;  %v13165_v25 = vadd.f32 %v9884_v39, %v6212_v20  ;;  %v9887_v44 = vadd.f32 %v9886_v42, %v9885_v28  ;;  %v384_v63 = vld [vmem:[%s15187_s0 + $0xb88] sm:$0xff]  ;;  %v8808_v42 = vcombine.low %v344_v46, %v364_v1 }
 0x1f4   :  { %6898 = vmatmul.mubr.bf16.gmra.mrb[232].mxu1 %v8728_v21  ;;  %v8849_v3 = vcombine.high %v384_v63, %v404_v18 }
 0x1f5   :  { %v9794_v36 = vpop.f32.mrb[128].mxu0  ;;  %v13173_v49 = vadd.f32 %v9887_v44, %v6215_v16  ;;  %6905 = vmatprep.mubr.bf16.mxu1 %v8769_v27 }
 0x1f6   :  { %v9795_v32 = vpop.f32.mrb[129].mxu0 }
 0x1f7   :  { %v9796_v43 = vadd.f32 %v9795_v32, %v9794_v36  ;;  %v9797_v4 = vpop.f32.mrb[130].mxu0  ;;  %v9888_v50 = vpop.f32.mrb[128].mxu1 }
 0x1f8   :  { %v9798_v60 = vpop.f32.mrb[131].mxu0  ;;  %v9889_v26 = vpop.f32.mrb[129].mxu1 }
 0x1f9   :  { %v6220_v56 = vadd.f32 %v9796_v43, %v12806_v9  ;;  %v9799_v51 = vadd.f32 %v9798_v60, %v9797_v4  ;;  %v9890_v58 = vadd.f32 %v9889_v26, %v9888_v50  ;;  %v9891_v0 = vpop.f32.mrb[130].mxu1  ;;  %v403_v9 = vld [vmem:[%s15187_s0 + $0xc20] sm:$0xff]  ;;  %v444_v26 = vld [vmem:[%s15187_s0 + $0xd68] sm:$0xff] }
 0x1fa   :  { %6770 = vmatmul.mubr.bf16.gmra.mrb[236].mxu0 %v8766_v48  ;;  %v9892_v5 = vpop.f32.mrb[131].mxu1  ;;  %v8847_v20 = vcombine.high %v383_v22, %v403_v9  ;;  %v423_v4 = vld [vmem:[%s15187_s0 + $0xcc0] sm:$0xff]  ;;  %v8846_v50 = vcombine.low %v383_v22, %v403_v9 }
 0x1fb   :  { %v6223_v29 = vadd.f32 %v9799_v51, %v12814_v11  ;;  %6777 = vmatprep.mubr.bf16.mxu0 %v8807_v52  ;;  %v13183_v7 = vadd.f32 %v9890_v58, %v6220_v56  ;;  %v9893_v6 = vadd.f32 %v9892_v5, %v9891_v0  ;;  %v424_v51 = vld [vmem:[%s15187_s0 + $0xcc8] sm:$0xff]  ;;  %v8848_v5 = vcombine.low %v384_v63, %v404_v18 }
 0x1fc   :  { %6906 = vmatmul.mubr.bf16.gmra.mrb[236].mxu1 %v8768_v35  ;;  %v8889_v9 = vcombine.high %v424_v51, %v444_v26 }
 0x1fd   :  { %v9800_v12 = vpop.f32.mrb[132].mxu0  ;;  %v13191_v8 = vadd.f32 %v9893_v6, %v6223_v29  ;;  %6913 = vmatprep.mubr.bf16.mxu1 %v8809_v34 }
 0x1fe   :  { %v9801_v62 = vpop.f32.mrb[133].mxu0 }
 0x1ff   :  { %v9802_v11 = vadd.f32 %v9801_v62, %v9800_v12  ;;  %v9803_v19 = vpop.f32.mrb[134].mxu0  ;;  %v9894_v21 = vpop.f32.mrb[132].mxu1 }
 0x200   :  { %v9804_v39 = vpop.f32.mrb[135].mxu0  ;;  %v9895_v16 = vpop.f32.mrb[133].mxu1 }
 0x201   :  { %v6228_v28 = vadd.f32 %v9802_v11, %v12824_v45  ;;  %v9805_v27 = vadd.f32 %v9804_v39, %v9803_v19  ;;  %v9896_v44 = vadd.f32 %v9895_v16, %v9894_v21  ;;  %v9897_v57 = vpop.f32.mrb[134].mxu1  ;;  %v443_v45 = vld [vmem:[%s15187_s0 + $0xd60] sm:$0xff]  ;;  %v484_v16 = vld [vmem:[%s15187_s0 + $0xea8] sm:$0xff] }
 0x202   :  { %6778 = vmatmul.mubr.bf16.gmra.mrb[240].mxu0 %v8806_v24  ;;  %v9898_v32 = vpop.f32.mrb[135].mxu1  ;;  %v8887_v56 = vcombine.high %v423_v4, %v443_v45  ;;  %v463_v19 = vld [vmem:[%s15187_s0 + $0xe00] sm:$0xff]  ;;  %v8886_v21 = vcombine.low %v423_v4, %v443_v45 }
 0x203   :  { %v6231_v36 = vadd.f32 %v9805_v27, %v12832_v47  ;;  %6785 = vmatprep.mubr.bf16.mxu0 %v8847_v20  ;;  %v13201_v48 = vadd.f32 %v9896_v44, %v6228_v28  ;;  %v9899_v43 = vadd.f32 %v9898_v32, %v9897_v57  ;;  %v464_v27 = vld [vmem:[%s15187_s0 + $0xe08] sm:$0xff]  ;;  %v8888_v32 = vcombine.low %v424_v51, %v444_v26 }
 0x204   :  { %6914 = vmatmul.mubr.bf16.gmra.mrb[240].mxu1 %v8808_v42  ;;  %v8929_v45 = vcombine.high %v464_v27, %v484_v16 }
 0x205   :  { %v9806_v52 = vpop.f32.mrb[136].mxu0  ;;  %v13209_v46 = vadd.f32 %v9899_v43, %v6231_v36  ;;  %6921 = vmatprep.mubr.bf16.mxu1 %v8849_v3 }
 0x206   :  { %v9807_v1 = vpop.f32.mrb[137].mxu0 }
 0x207   :  { %v9808_v47 = vadd.f32 %v9807_v1, %v9806_v52  ;;  %v9809_v60 = vpop.f32.mrb[138].mxu0  ;;  %v9900_v35 = vpop.f32.mrb[136].mxu1 }
 0x208   :  { %v9810_v58 = vpop.f32.mrb[139].mxu0  ;;  %v9901_v29 = vpop.f32.mrb[137].mxu1 }
 0x209   :  { %v6236_v0 = vadd.f32 %v9808_v47, %v12842_v15  ;;  %v9811_v34 = vadd.f32 %v9810_v58, %v9809_v60  ;;  %v9902_v6 = vadd.f32 %v9901_v29, %v9900_v35  ;;  %v9903_v22 = vpop.f32.mrb[138].mxu1  ;;  %v483_v15 = vld [vmem:[%s15187_s0 + $0xea0] sm:$0xff] }
 0x20a   :  { %6786 = vmatmul.mubr.bf16.gmra.mrb[244].mxu0 %v8846_v50  ;;  %v9904_v62 = vpop.f32.mrb[139].mxu1  ;;  %v8927_v28 = vcombine.high %v463_v19, %v483_v15  ;;  %v503_v60 = vld [vmem:[%s15187_s0 + $0xf40] sm:$0xff]  ;;  %v8926_v26 = vcombine.low %v463_v19, %v483_v15 }
 0x20b   :  { %v6239_v12 = vadd.f32 %v9811_v34, %v12850_v23  ;;  %6793 = vmatprep.mubr.bf16.mxu0 %v8887_v56  ;;  %v13219_v24 = vadd.f32 %v9902_v6, %v6236_v0  ;;  %v9905_v11 = vadd.f32 %v9904_v62, %v9903_v22  ;;  %v8967_v0 = vcombine.high %v503_v60, %v503_v60 }
 0x20c   :  { %6922 = vmatmul.mubr.bf16.gmra.mrb[244].mxu1 %v8848_v5 }
 0x20d   :  { %v9812_v20 = vpop.f32.mrb[140].mxu0  ;;  %v13227_v63 = vadd.f32 %v9905_v11, %v6239_v12  ;;  %6929 = vmatprep.mubr.bf16.mxu1 %v8889_v9  ;;  %v8928_v9 = vcombine.low %v464_v27, %v484_v16  ;;  %v8966_v27 = vcombine.low %v503_v60, %v503_v60 }
 0x20e   :  { %v9813_v18 = vpop.f32.mrb[141].mxu0 }
 0x20f   :  { %v9814_v23 = vadd.f32 %v9813_v18, %v9812_v20  ;;  %v9815_v39 = vpop.f32.mrb[142].mxu0  ;;  %v9906_v42 = vpop.f32.mrb[140].mxu1 }
 0x210   :  { %v9816_v44 = vpop.f32.mrb[143].mxu0  ;;  %v9907_v36 = vpop.f32.mrb[141].mxu1 }
 0x211   :  { %v6244_v57 = vadd.f32 %v9814_v23, %v12860_v55  ;;  %v9817_v3 = vadd.f32 %v9816_v44, %v9815_v39  ;;  %v9908_v43 = vadd.f32 %v9907_v36, %v9906_v42  ;;  %v9909_v4 = vpop.f32.mrb[142].mxu1  ;;  %v26_v44 = vld [vmem:[%s15187_s0 + $0x58] sm:$0xff] }
 0x212   :  { %6794 = vmatmul.mubr.bf16.gmra.mrb[248].mxu0 %v8886_v21  ;;  %v9910_v1 = vpop.f32.mrb[143].mxu1  ;;  %v25_v21 = vld [vmem:[%s15187_s0 + $0x50] sm:$0xff] }
 0x213   :  { %v6247_v52 = vadd.f32 %v9817_v3, %v12865_v41  ;;  %6801 = vmatprep.mubr.bf16.mxu0 %v8927_v28  ;;  %v13237_v50 = vadd.f32 %v9908_v43, %v6244_v57  ;;  %v9911_v47 = vadd.f32 %v9910_v1, %v9909_v4  ;;  %v504_v41 = vld [vmem:[%s15187_s0 + $0xf48] sm:$0xff]  ;;  %v46_v57 = vld [vmem:[%s15187_s0 + $0xf8] sm:$0xff] }
 0x214   :  { %6930 = vmatmul.mubr.bf16.gmra.mrb[248].mxu1 %v8888_v32  ;;  %v8969_v11 = vcombine.high %v504_v41, %v504_v41 }
 0x215   :  { %v9818_v55 = vpop.f32.mrb[144].mxu0  ;;  %v13242_v56 = vadd.f32 %v9911_v47, %v6247_v52  ;;  %6937 = vmatprep.mubr.bf16.mxu1 %v8929_v45  ;;  %v8968_v45 = vcombine.low %v504_v41, %v504_v41  ;;  %v8493_v47 = vcombine.high %v26_v44, %v46_v57 }
 0x216   :  { %v9819_v51 = vpop.f32.mrb[145].mxu0 }
 0x217   :  { %v9820_v35 = vadd.f32 %v9819_v51, %v9818_v55  ;;  %v9821_v58 = vpop.f32.mrb[146].mxu0  ;;  %v9912_v34 = vpop.f32.mrb[144].mxu1 }
 0x218   :  { %v9822_v29 = vpop.f32.mrb[147].mxu0  ;;  %v9913_v22 = vpop.f32.mrb[145].mxu1 }
 0x219   :  { %v6252_v5 = vadd.f32 %v9820_v35, %v12872_v40  ;;  %v9823_v6 = vadd.f32 %v9822_v29, %v9821_v58  ;;  %v9914_v12 = vadd.f32 %v9913_v22, %v9912_v34  ;;  %v9915_v62 = vpop.f32.mrb[146].mxu1  ;;  %v45_v40 = vld [vmem:[%s15187_s0 + $0xf0] sm:$0xff]  ;;  %v13283_v22 = vld [vmem:[%s15187_s0 + $0x198] sm:$0xff] }
 0x21a   :  { %6802 = vmatmul.mubr.bf16.gmra.mrb[252].mxu0 %v8926_v26  ;;  %v9916_v15 = vpop.f32.mrb[147].mxu1  ;;  %v8491_v42 = vcombine.high %v25_v21, %v45_v40  ;;  %v65_v35 = vld [vmem:[%s15187_s0 + $0x190] sm:$0xff]  ;;  %v8490_v34 = vcombine.low %v25_v21, %v45_v40 }
 0x21b   :  { %v6255_v19 = vadd.f32 %v9823_v6, %v12880_v30  ;;  %6809 = vmatprep.mubr.bf16.mxu0 %v8967_v0  ;;  %v13249_v20 = vadd.f32 %v9914_v12, %v6252_v5  ;;  %v9917_v18 = vadd.f32 %v9916_v15, %v9915_v62  ;;  %v11366_v5 = vld [vmem:[%s15186_s1 + $0x600] sm:$0xff]  }
 0x21c   :  { %6938 = vmatmul.mubr.bf16.gmra.mrb[252].mxu1 %v8928_v9  ;;  %v13288_v9 = vld [vmem:[%s15187_s0 + $0x238] sm:$0xff] }
 0x21d   :  { %v9824_v23 = vpop.f32.mrb[148].mxu0  ;;  %v13257_v39 = vadd.f32 %v9917_v18, %v6255_v19  ;;  %6945 = vmatprep.mubr.bf16.mxu1 %v8969_v11  ;;  %v11369_v11 = vld [vmem:[%s15186_s1 + $0x648] sm:$0xff]   ;;  %v8492_v18 = vcombine.low %v26_v44, %v46_v57  ;;  %v13315_v44 = vld [vmem:[%s15187_s0 + $0x370] sm:$0xff] }
 0x21e   :  { %v9825_v28 = vpop.f32.mrb[149].mxu0  ;;  %v11373_v57 = vld [vmem:[%s15186_s1 + $0x650] sm:$0xff]  }
 0x21f   :  { %v9826_v30 = vadd.f32 %v9825_v28, %v9824_v23  ;;  %v9827_v16 = vpop.f32.mrb[150].mxu0  ;;  %v9918_v3 = vpop.f32.mrb[148].mxu1  ;;  %v11368_v23 = vld [vmem:[%s15186_s1 + $0x680] sm:$0xff]   ;;  %v8533_v28 = vcombine.high %v13283_v22, %v13288_v9 }
 0x220   :  { %v9828_v36 = vpop.f32.mrb[151].mxu0  ;;  %v9919_v4 = vpop.f32.mrb[149].mxu1 }
 0x221   :  { %v6260_v32 = vadd.f32 %v9826_v30, %v12890_v59  ;;  %v9829_v43 = vadd.f32 %v9828_v36, %v9827_v16  ;;  %v9920_v52 = vadd.f32 %v9919_v4, %v9918_v3  ;;  %v9921_v1 = vpop.f32.mrb[150].mxu1  ;;  %v85_v59 = vld [vmem:[%s15187_s0 + $0x230] sm:$0xff]  ;;  %v11370_v30 = vld [vmem:[%s15186_s1 + $0x608] sm:$0xff]  }
 0x222   :  { %6810 = vmatmul.mubr.bf16.gmra.mrb[0].mxu0 %v8966_v27  ;;  %v9922_v55 = vpop.f32.mrb[151].mxu1  ;;  %v8531_v6 = vcombine.high %v65_v35, %v85_v59 }
 0x223   :  { %v6263_v60 = vadd.f32 %v9829_v43, %v12898_v2  ;;  %6985 = vmatprep.mubr.bf16.mxu0 %v8491_v42  ;;  %v13267_v51 = vadd.f32 %v9920_v52, %v6260_v32  ;;  %v9923_v26 = vadd.f32 %v9922_v55, %v9921_v1  ;;  %v13310_v42 = vld [vmem:[%s15187_s0 + $0x2d0] sm:$0xff]  ;;  %v8530_v32 = vcombine.low %v65_v35, %v85_v59  ;;  %v11372_v43 = vld [vmem:[%s15186_s1 + $0x688] sm:$0xff]   ;;  %v13328_v1 = vld [vmem:[%s15187_s0 + $0x2d8] sm:$0xff] }
 0x224   :  { %6946 = vmatmul.mubr.bf16.gmra.mrb[0].mxu1 %v8968_v45  ;;  %v8571_v52 = vcombine.high %v13310_v42, %v13315_v44  ;;  %v11375_v35 = vld [vmem:[%s15186_s1 + $0x6d0] sm:$0xff]   ;;  %v11377_v59 = vld [vmem:[%s15186_s1 + $0x658] sm:$0xff]  }
 0x225   :  { %v9830_v58 = vpop.f32.mrb[152].mxu0  ;;  %v13275_v0 = vadd.f32 %v9923_v26, %v6263_v60  ;;  %7121 = vmatprep.mubr.bf16.mxu1 %v8493_v47  ;;  %v13333_v47 = vld [vmem:[%s15187_s0 + $0x378] sm:$0xff]  ;;  %v11374_v60 = vld [vmem:[%s15186_s1 + $0x610] sm:$0xff]  }
 0x226   :  { %v9831_v41 = vpop.f32.mrb[153].mxu0 }
 0x227   :  { %v9832_v2 = vadd.f32 %v9831_v41, %v9830_v58  ;;  %v9833_v29 = vpop.f32.mrb[154].mxu0  ;;  %v9924_v12 = vpop.f32.mrb[152].mxu1 }
 0x228   :  { %v9834_v62 = vpop.f32.mrb[155].mxu0  ;;  %v9925_v15 = vpop.f32.mrb[153].mxu1 }
 0x229   :  { %v6268_v19 = vadd.f32 %v9832_v2, %v12928_v33  ;;  %v9926_v21 = vadd.f32 %v9925_v15, %v9924_v12  ;;  %v9927_v40 = vpop.f32.mrb[154].mxu1  ;;  %v11371_v33 = vld [vmem:[%s15186_s1 + $0x6c8] sm:$0xff]   ;;  %v8532_v2 = vcombine.low %v13283_v22, %v13288_v9  ;;  %v11376_v12 = vld [vmem:[%s15186_s1 + $0x690] sm:$0xff]   ;;  %v11379_v22 = vld [vmem:[%s15186_s1 + $0x6d8] sm:$0xff]  }
 0x22a   :  { %6986 = vmatmul.mubr.bf16.vlgmr.msra.gmra.mrb[4].mxu0 %v8490_v34  ;;  %v9928_v27 = vpop.f32.mrb[155].mxu1  ;;  %v13364_v15 = vld [vmem:[%s15187_s0 + $0x410] sm:$0xff] }
 0x22b   :  { %10495 = vmatpush3.bf16.msra.mxu0 %v11366_v5  ;;  %6993 = vmatprep.mubr.bf16.mxu0 %v8531_v6  ;;  %v13305_v16 = vadd.f32 %v9926_v21, %v6268_v19  ;;  %v8573_v6 = vcombine.high %v13328_v1, %v13333_v47  ;;  %v11380_v27 = vld [vmem:[%s15186_s1 + $0x698] sm:$0xff]  }
 0x22c   :  { %10496 = vmatprep.subr.bf16.mxu0 %v11369_v11  ;;  %7122 = vmatmul.mubr.bf16.vlgmr.msra.gmra.mrb[4].mxu1 %v8492_v18  ;;  %v11381_v18 = vld [vmem:[%s15186_s1 + $0x660] sm:$0xff]  }
 0x22d   :  { %v9946_v3 = vpop.f32.mrb[156].mxu0  ;;  %10589 = vmatpush3.bf16.msra.mxu1 %v11368_v23  ;;  %7129 = vmatprep.mubr.bf16.mxu1 %v8533_v28  ;;  %v8570_v28 = vcombine.low %v13310_v42, %v13315_v44  ;;  %v13391_v42 = vld [vmem:[%s15187_s0 + $0x4b8] sm:$0xff]  ;;  %v11382_v44 = vld [vmem:[%s15186_s1 + $0x620] sm:$0xff]  }
 0x22e   :  { %v9947_v36 = vpop.f32.mrb[157].mxu0  ;;  %10590 = vmatprep.subr.bf16.mxu1 %v11371_v33 }
 0x22f   :  { %v9948_v4 = vadd.f32 %v9947_v36, %v9946_v3  ;;  %v9949_v45 = vpop.f32.mrb[158].mxu0  ;;  %10497 = vmatpush3.bf16.msra.mxu0 %v11370_v30  ;;  %v10040_v55 = vpop.f32.mrb[156].mxu1  ;;  %v13386_v3 = vld [vmem:[%s15187_s0 + $0x418] sm:$0xff] }
 0x230   :  { %v9950_v26 = vpop.f32.mrb[159].mxu0  ;;  %10498 = vmatprep.subr.bf16.mxu0 %v11373_v57  ;;  %v10041_v34 = vpop.f32.mrb[157].mxu1 }
 0x231   :  { %v6444_v58 = vadd.f32 %v9948_v4, %v12982_v17  ;;  %v9951_v41 = vadd.f32 %v9950_v26, %v9949_v45  ;;  %v10042_v29 = vadd.f32 %v10041_v34, %v10040_v55  ;;  %v10043_v5 = vpop.f32.mrb[158].mxu1  ;;  %10591 = vmatpush3.bf16.msra.mxu1 %v11372_v43  ;;  %v11378_v17 = vld [vmem:[%s15186_s1 + $0x618] sm:$0xff]   ;;  %v11383_v43 = vld [vmem:[%s15186_s1 + $0x6e0] sm:$0xff]   ;;  %v11385_v4 = vld [vmem:[%s15186_s1 + $0x668] sm:$0xff]   ;;  %v8572_v55 = vcombine.low %v13328_v1, %v13333_v47 }
 0x232   :  { %6994 = vmatmul.mubr.bf16.gmra.mrb[8].mxu0 %v8530_v32  ;;  %v10044_v11 = vpop.f32.mrb[159].mxu1  ;;  %10592 = vmatprep.subr.bf16.mxu1 %v11375_v35  ;;  %v11387_v1 = vld [vmem:[%s15186_s1 + $0x6e8] sm:$0xff]  }
 0x233   :  { %v6447_v62 = vadd.f32 %v9951_v41, %v12997_v14  ;;  %7001 = vmatprep.mubr.bf16.mxu0 %v8571_v52  ;;  %10499 = vmatpush3.bf16.msra.mxu0 %v11374_v60  ;;  %v13359_v9 = vadd.f32 %v10042_v29, %v6444_v58  ;;  %v10045_v19 = vadd.f32 %v10044_v11, %v10043_v5  ;;  %v13369_v14 = vld [vmem:[%s15187_s0 + $0x4b0] sm:$0xff]  ;;  %v11384_v58 = vld [vmem:[%s15186_s1 + $0x6a0] sm:$0xff]  }
 0x234   :  { %10500 = vmatprep.subr.bf16.mxu0 %v11377_v59  ;;  %7130 = vmatmul.mubr.bf16.gmra.mrb[8].mxu1 %v8532_v2  ;;  %v8611_v57 = vcombine.high %v13364_v15, %v13369_v14  ;;  %v8613_v59 = vcombine.high %v13386_v3, %v13391_v42  ;;  %v13422_v29 = vld [vmem:[%s15187_s0 + $0x550] sm:$0xff]  ;;  %v8610_v11 = vcombine.low %v13364_v15, %v13369_v14  ;;  %v13449_v15 = vld [vmem:[%s15187_s0 + $0x5f8] sm:$0xff] }
 0x235   :  { %v9952_v21 = vpop.f32.mrb[160].mxu0  ;;  %v13374_v40 = vadd.f32 %v10045_v19, %v6447_v62  ;;  %7137 = vmatprep.mubr.bf16.mxu1 %v8573_v6  ;;  %10593 = vmatpush3.bf16.msra.mxu1 %v11376_v12  ;;  %v11389_v5 = vld [vmem:[%s15186_s1 + $0x670] sm:$0xff]  }
 0x236   :  { %v9953_v23 = vpop.f32.mrb[161].mxu0  ;;  %10594 = vmatprep.subr.bf16.mxu1 %v11379_v22  ;;  %v11390_v14 = vld [vmem:[%s15186_s1 + $0x630] sm:$0xff]  }
 0x237   :  { %v9954_v30 = vadd.f32 %v9953_v23, %v9952_v21  ;;  %v9955_v33 = vpop.f32.mrb[162].mxu0  ;;  %10501 = vmatpush3.bf16.msra.mxu0 %v11378_v17  ;;  %v10046_v36 = vpop.f32.mrb[160].mxu1  ;;  %v11388_v17 = vld [vmem:[%s15186_s1 + $0x6a8] sm:$0xff]   ;;  %v13444_v21 = vld [vmem:[%s15187_s0 + $0x558] sm:$0xff] }
 0x238   :  { %v9956_v32 = vpop.f32.mrb[163].mxu0  ;;  %10502 = vmatprep.subr.bf16.mxu0 %v11381_v18  ;;  %v10047_v60 = vpop.f32.mrb[161].mxu1 }
 0x239   :  { %v6452_v45 = vadd.f32 %v9954_v30, %v13040_v53  ;;  %v9957_v52 = vadd.f32 %v9956_v32, %v9955_v33  ;;  %v10048_v26 = vadd.f32 %v10047_v60, %v10046_v36  ;;  %v10049_v35 = vpop.f32.mrb[162].mxu1  ;;  %10595 = vmatpush3.bf16.msra.mxu1 %v11380_v27  ;;  %v11386_v53 = vld [vmem:[%s15186_s1 + $0x628] sm:$0xff]   ;;  %v11391_v27 = vld [vmem:[%s15186_s1 + $0x6f0] sm:$0xff]   ;;  %v11393_v30 = vld [vmem:[%s15186_s1 + $0x678] sm:$0xff]   ;;  %v8612_v36 = vcombine.low %v13386_v3, %v13391_v42 }
 0x23a   :  { %7002 = vmatmul.mubr.bf16.gmra.mrb[12].mxu0 %v8570_v28  ;;  %v10050_v34 = vpop.f32.mrb[163].mxu1  ;;  %10596 = vmatprep.subr.bf16.mxu1 %v11383_v43  ;;  %v11397_v3 = vld [vmem:[%s15186_s1 + $0x6f8] sm:$0xff]  }
 0x23b   :  { %v6455_v41 = vadd.f32 %v9957_v52, %v13055_v10  ;;  %7009 = vmatprep.mubr.bf16.mxu0 %v8611_v57  ;;  %10503 = vmatpush3.bf16.msra.mxu0 %v11382_v44  ;;  %v13417_v47 = vadd.f32 %v10048_v26, %v6452_v45  ;;  %v10051_v2 = vadd.f32 %v10050_v34, %v10049_v35  ;;  %v13427_v10 = vld [vmem:[%s15187_s0 + $0x5f0] sm:$0xff]  ;;  %v11401_v35 = vld [vmem:[%s15186_s1 + $0x740] sm:$0xff]  }
 0x23c   :  { %10504 = vmatprep.subr.bf16.mxu0 %v11385_v4  ;;  %7138 = vmatmul.mubr.bf16.gmra.mrb[12].mxu1 %v8572_v55  ;;  %v8651_v18 = vcombine.high %v13422_v29, %v13427_v10  ;;  %v8653_v4 = vcombine.high %v13444_v21, %v13449_v15  ;;  %v11392_v45 = vld [vmem:[%s15186_s1 + $0x6b0] sm:$0xff]   ;;  %v8650_v34 = vcombine.low %v13422_v29, %v13427_v10  ;;  %v11403_v29 = vld [vmem:[%s15186_s1 + $0x7c0] sm:$0xff]  }
 0x23d   :  { %v9958_v6 = vpop.f32.mrb[164].mxu0  ;;  %v13432_v12 = vadd.f32 %v10051_v2, %v6455_v41  ;;  %7145 = vmatprep.mubr.bf16.mxu1 %v8613_v59  ;;  %10597 = vmatpush3.bf16.msra.mxu1 %v11384_v58  ;;  %v225_v26 = vld [vmem:[%s15187_s0 + $0x690] sm:$0xff] }
 0x23e   :  { %v9959_v62 = vpop.f32.mrb[165].mxu0  ;;  %10598 = vmatprep.subr.bf16.mxu1 %v11387_v1 }
 0x23f   :  { %v9960_v22 = vadd.f32 %v9959_v62, %v9958_v6  ;;  %v9961_v19 = vpop.f32.mrb[166].mxu0  ;;  %10505 = vmatpush3.bf16.msra.mxu0 %v11386_v53  ;;  %v10052_v23 = vpop.f32.mrb[164].mxu1  ;;  %v11400_v53 = vld [vmem:[%s15186_s1 + $0x6b8] sm:$0xff]  }
 0x240   :  { %v9962_v28 = vpop.f32.mrb[167].mxu0  ;;  %10506 = vmatprep.subr.bf16.mxu0 %v11389_v5  ;;  %v10053_v44 = vpop.f32.mrb[165].mxu1  ;;  %v226_v6 = vld [vmem:[%s15187_s0 + $0x698] sm:$0xff] }
 0x241   :  { %v6460_v33 = vadd.f32 %v9960_v22, %v13098_v37  ;;  %v9963_v57 = vadd.f32 %v9962_v28, %v9961_v19  ;;  %v10054_v32 = vadd.f32 %v10053_v44, %v10052_v23  ;;  %v10055_v43 = vpop.f32.mrb[166].mxu1  ;;  %10599 = vmatpush3.bf16.msra.mxu1 %v11388_v17  ;;  %v11394_v37 = vld [vmem:[%s15186_s1 + $0x638] sm:$0xff]  }
 0x242   :  { %7010 = vmatmul.mubr.bf16.gmra.mrb[16].mxu0 %v8610_v11  ;;  %v10056_v60 = vpop.f32.mrb[167].mxu1  ;;  %10600 = vmatprep.subr.bf16.mxu1 %v11391_v27  ;;  %v246_v62 = vld [vmem:[%s15187_s0 + $0x738] sm:$0xff] }
 0x243   :  { %v6463_v52 = vadd.f32 %v9963_v57, %v13109_v61  ;;  %7017 = vmatprep.mubr.bf16.mxu0 %v8651_v18  ;;  %10507 = vmatpush3.bf16.msra.mxu0 %v11390_v14  ;;  %v13475_v42 = vadd.f32 %v10054_v32, %v6460_v33  ;;  %v10057_v55 = vadd.f32 %v10056_v60, %v10055_v43  ;;  %v245_v61 = vld [vmem:[%s15187_s0 + $0x730] sm:$0xff] }
 0x244   :  { %10508 = vmatprep.subr.bf16.mxu0 %v11393_v30  ;;  %7146 = vmatmul.mubr.bf16.gmra.mrb[16].mxu1 %v8612_v36  ;;  %v8691_v5 = vcombine.high %v225_v26, %v245_v61  ;;  %v8652_v18 = vcombine.low %v13444_v21, %v13449_v15  ;;  %v8693_v28 = vcombine.high %v226_v6, %v246_v62  ;;  %v285_v21 = vld [vmem:[%s15187_s0 + $0x870] sm:$0xff] }
 0x245   :  { %v9964_v59 = vpop.f32.mrb[168].mxu0  ;;  %v13486_v58 = vadd.f32 %v10057_v55, %v6463_v52  ;;  %7153 = vmatprep.mubr.bf16.mxu1 %v8653_v4  ;;  %10601 = vmatpush3.bf16.msra.mxu1 %v11392_v45  ;;  %v266_v45 = vld [vmem:[%s15187_s0 + $0x7d8] sm:$0xff] }
 0x246   :  { %v9965_v41 = vpop.f32.mrb[169].mxu0  ;;  %10602 = vmatprep.subr.bf16.mxu1 %v11397_v3  ;;  %v286_v52 = vld [vmem:[%s15187_s0 + $0x878] sm:$0xff] }
 0x247   :  { %v9966_v1 = vadd.f32 %v9965_v41, %v9964_v59  ;;  %v9967_v2 = vpop.f32.mrb[170].mxu0  ;;  %10509 = vmatpush3.bf16.msra.mxu0 %v11394_v37  ;;  %v10058_v10 = vpop.f32.mrb[168].mxu1  ;;  %v8692_v59 = vcombine.low %v226_v6, %v246_v62  ;;  %v8733_v41 = vcombine.high %v266_v45, %v286_v52 }
 0x248   :  { %v9968_v11 = vpop.f32.mrb[171].mxu0  ;;  %10682 = vmatprep.subr.bf16.mxu0 %v11401_v35  ;;  %v10059_v19 = vpop.f32.mrb[169].mxu1 }
 0x249   :  { %v6468_v17 = vadd.f32 %v9966_v1, %v13129_v31  ;;  %v9969_v22 = vadd.f32 %v9968_v11, %v9967_v2  ;;  %v10060_v14 = vadd.f32 %v10059_v19, %v10058_v10  ;;  %v10061_v23 = vpop.f32.mrb[170].mxu1  ;;  %10603 = vmatpush3.bf16.msra.mxu1 %v11400_v53  ;;  %v265_v31 = vld [vmem:[%s15187_s0 + $0x7d0] sm:$0xff]  ;;  %v326_v19 = vld [vmem:[%s15187_s0 + $0x9b8] sm:$0xff] }
 0x24a   :  { %7018 = vmatmul.mubr.bf16.gmra.mrb[20].mxu0 %v8650_v34  ;;  %v10062_v30 = vpop.f32.mrb[171].mxu1  ;;  %10776 = vmatprep.subr.bf16.mxu1 %v11403_v29  ;;  %v8731_v4 = vcombine.high %v265_v31, %v285_v21  ;;  %v8730_v10 = vcombine.low %v265_v31, %v285_v21 }
 0x24b   :  { %v6471_v27 = vadd.f32 %v9969_v22, %v13137_v38  ;;  %7025 = vmatprep.mubr.bf16.mxu0 %v8691_v5  ;;  %v13506_v33 = vadd.f32 %v10060_v14, %v6468_v17  ;;  %v10063_v57 = vadd.f32 %v10062_v30, %v10061_v23  ;;  %v8690_v38 = vcombine.low %v225_v26, %v245_v61  ;;  %v305_v5 = vld [vmem:[%s15187_s0 + $0x910] sm:$0xff]  ;;  %v306_v22 = vld [vmem:[%s15187_s0 + $0x918] sm:$0xff] }
 0x24c   :  { %7154 = vmatmul.mubr.bf16.gmra.mrb[20].mxu1 %v8652_v18  ;;  %v8732_v30 = vcombine.low %v266_v45, %v286_v52  ;;  %v8773_v21 = vcombine.high %v306_v22, %v326_v19 }
 0x24d   :  { %v9970_v15 = vpop.f32.mrb[172].mxu0  ;;  %v13514_v44 = vadd.f32 %v10063_v57, %v6471_v27  ;;  %7161 = vmatprep.mubr.bf16.mxu1 %v8693_v28 }
 0x24e   :  { %v9971_v36 = vpop.f32.mrb[173].mxu0 }
 0x24f   :  { %v9972_v32 = vadd.f32 %v9971_v36, %v9970_v15  ;;  %v9973_v43 = vpop.f32.mrb[174].mxu0  ;;  %v10064_v60 = vpop.f32.mrb[172].mxu1 }
 0x250   :  { %v9974_v37 = vpop.f32.mrb[175].mxu0  ;;  %v10065_v35 = vpop.f32.mrb[173].mxu1 }
 0x251   :  { %v6476_v3 = vadd.f32 %v9972_v32, %v13147_v54  ;;  %v9975_v55 = vadd.f32 %v9974_v37, %v9973_v43  ;;  %v10066_v26 = vadd.f32 %v10065_v35, %v10064_v60  ;;  %v10067_v61 = vpop.f32.mrb[174].mxu1  ;;  %v325_v54 = vld [vmem:[%s15187_s0 + $0x9b0] sm:$0xff]  ;;  %v366_v35 = vld [vmem:[%s15187_s0 + $0xaf8] sm:$0xff] }
 0x252   :  { %7026 = vmatmul.mubr.bf16.gmra.mrb[24].mxu0 %v8690_v38  ;;  %v10068_v53 = vpop.f32.mrb[175].mxu1  ;;  %v8771_v17 = vcombine.high %v305_v5, %v325_v54  ;;  %v345_v43 = vld [vmem:[%s15187_s0 + $0xa50] sm:$0xff]  ;;  %v8770_v60 = vcombine.low %v305_v5, %v325_v54 }
 0x253   :  { %v6479_v34 = vadd.f32 %v9975_v55, %v13155_v13  ;;  %7033 = vmatprep.mubr.bf16.mxu0 %v8731_v4  ;;  %v13524_v1 = vadd.f32 %v10066_v26, %v6476_v3  ;;  %v10069_v2 = vadd.f32 %v10068_v53, %v10067_v61  ;;  %v346_v55 = vld [vmem:[%s15187_s0 + $0xa58] sm:$0xff]  ;;  %v8772_v53 = vcombine.low %v306_v22, %v326_v19 }
 0x254   :  { %7162 = vmatmul.mubr.bf16.gmra.mrb[24].mxu1 %v8692_v59  ;;  %v8813_v54 = vcombine.high %v346_v55, %v366_v35 }
 0x255   :  { %v9976_v6 = vpop.f32.mrb[176].mxu0  ;;  %v13532_v62 = vadd.f32 %v10069_v2, %v6479_v34  ;;  %7169 = vmatprep.mubr.bf16.mxu1 %v8733_v41 }
 0x256   :  { %v9977_v29 = vpop.f32.mrb[177].mxu0 }
 0x257   :  { %v9978_v13 = vadd.f32 %v9977_v29, %v9976_v6  ;;  %v9979_v11 = vpop.f32.mrb[178].mxu0  ;;  %v10070_v18 = vpop.f32.mrb[176].mxu1 }
 0x258   :  { %v9980_v14 = vpop.f32.mrb[179].mxu0  ;;  %v10071_v27 = vpop.f32.mrb[177].mxu1 }
 0x259   :  { %v6484_v23 = vadd.f32 %v9978_v13, %v13165_v25  ;;  %v9981_v28 = vadd.f32 %v9980_v14, %v9979_v11  ;;  %v10072_v57 = vadd.f32 %v10071_v27, %v10070_v18  ;;  %v10073_v31 = vpop.f32.mrb[178].mxu1  ;;  %v365_v25 = vld [vmem:[%s15187_s0 + $0xaf0] sm:$0xff]  ;;  %v406_v27 = vld [vmem:[%s15187_s0 + $0xc38] sm:$0xff] }
 0x25a   :  { %7034 = vmatmul.mubr.bf16.gmra.mrb[28].mxu0 %v8730_v10  ;;  %v10074_v36 = vpop.f32.mrb[179].mxu1  ;;  %v8811_v3 = vcombine.high %v345_v43, %v365_v25  ;;  %v385_v11 = vld [vmem:[%s15187_s0 + $0xb90] sm:$0xff]  ;;  %v8810_v18 = vcombine.low %v345_v43, %v365_v25 }
 0x25b   :  { %v6487_v15 = vadd.f32 %v9981_v28, %v13173_v49  ;;  %7041 = vmatprep.mubr.bf16.mxu0 %v8771_v17  ;;  %v13542_v38 = vadd.f32 %v10072_v57, %v6484_v23  ;;  %v10075_v32 = vadd.f32 %v10074_v36, %v10073_v31  ;;  %v386_v28 = vld [vmem:[%s15187_s0 + $0xb98] sm:$0xff]  ;;  %v8812_v36 = vcombine.low %v346_v55, %v366_v35 }
 0x25c   :  { %7170 = vmatmul.mubr.bf16.gmra.mrb[28].mxu1 %v8732_v30  ;;  %v8853_v25 = vcombine.high %v386_v28, %v406_v27 }
 0x25d   :  { %v9982_v4 = vpop.f32.mrb[180].mxu0  ;;  %v13550_v45 = vadd.f32 %v10075_v32, %v6487_v15  ;;  %7177 = vmatprep.mubr.bf16.mxu1 %v8773_v21 }
 0x25e   :  { %v9983_v52 = vpop.f32.mrb[181].mxu0 }
 0x25f   :  { %v9984_v49 = vadd.f32 %v9983_v52, %v9982_v4  ;;  %v9985_v37 = vpop.f32.mrb[182].mxu0  ;;  %v10076_v59 = vpop.f32.mrb[180].mxu1 }
 0x260   :  { %v9986_v26 = vpop.f32.mrb[183].mxu0  ;;  %v10077_v34 = vpop.f32.mrb[181].mxu1 }
 0x261   :  { %v6492_v61 = vadd.f32 %v9984_v49, %v13183_v7  ;;  %v9987_v41 = vadd.f32 %v9986_v26, %v9985_v37  ;;  %v10078_v2 = vadd.f32 %v10077_v34, %v10076_v59  ;;  %v10079_v5 = vpop.f32.mrb[182].mxu1  ;;  %v405_v7 = vld [vmem:[%s15187_s0 + $0xc30] sm:$0xff]  ;;  %v446_v34 = vld [vmem:[%s15187_s0 + $0xd78] sm:$0xff] }
 0x262   :  { %7042 = vmatmul.mubr.bf16.gmra.mrb[32].mxu0 %v8770_v60  ;;  %v10080_v29 = vpop.f32.mrb[183].mxu1  ;;  %v8851_v23 = vcombine.high %v385_v11, %v405_v7  ;;  %v425_v37 = vld [vmem:[%s15187_s0 + $0xcd0] sm:$0xff]  ;;  %v8850_v59 = vcombine.low %v385_v11, %v405_v7 }
 0x263   :  { %v6495_v6 = vadd.f32 %v9987_v41, %v13191_v8  ;;  %7049 = vmatprep.mubr.bf16.mxu0 %v8811_v3  ;;  %v13560_v10 = vadd.f32 %v10078_v2, %v6492_v61  ;;  %v10081_v13 = vadd.f32 %v10080_v29, %v10079_v5  ;;  %v426_v41 = vld [vmem:[%s15187_s0 + $0xcd8] sm:$0xff]  ;;  %v8852_v29 = vcombine.low %v386_v28, %v406_v27 }
 0x264   :  { %7178 = vmatmul.mubr.bf16.gmra.mrb[32].mxu1 %v8772_v53  ;;  %v8893_v7 = vcombine.high %v426_v41, %v446_v34 }
 0x265   :  { %v9988_v17 = vpop.f32.mrb[184].mxu0  ;;  %v13568_v22 = vadd.f32 %v10081_v13, %v6495_v6  ;;  %7185 = vmatprep.mubr.bf16.mxu1 %v8813_v54 }
 0x266   :  { %v9989_v19 = vpop.f32.mrb[185].mxu0 }
 0x267   :  { %v9990_v8 = vadd.f32 %v9989_v19, %v9988_v17  ;;  %v9991_v14 = vpop.f32.mrb[186].mxu0  ;;  %v10082_v30 = vpop.f32.mrb[184].mxu1 }
 0x268   :  { %v9992_v57 = vpop.f32.mrb[187].mxu0  ;;  %v10083_v15 = vpop.f32.mrb[185].mxu1 }
 0x269   :  { %v6500_v31 = vadd.f32 %v9990_v8, %v13201_v48  ;;  %v9993_v21 = vadd.f32 %v9992_v57, %v9991_v14  ;;  %v10084_v32 = vadd.f32 %v10083_v15, %v10082_v30  ;;  %v10085_v43 = vpop.f32.mrb[186].mxu1  ;;  %v445_v48 = vld [vmem:[%s15187_s0 + $0xd70] sm:$0xff]  ;;  %v486_v15 = vld [vmem:[%s15187_s0 + $0xeb8] sm:$0xff] }
 0x26a   :  { %7050 = vmatmul.mubr.bf16.gmra.mrb[36].mxu0 %v8810_v18  ;;  %v10086_v52 = vpop.f32.mrb[187].mxu1  ;;  %v8891_v61 = vcombine.high %v425_v37, %v445_v48  ;;  %v465_v14 = vld [vmem:[%s15187_s0 + $0xe10] sm:$0xff]  ;;  %v8890_v30 = vcombine.low %v425_v37, %v445_v48 }
 0x26b   :  { %v6503_v4 = vadd.f32 %v9993_v21, %v13209_v46  ;;  %7057 = vmatprep.mubr.bf16.mxu0 %v8851_v23  ;;  %v13578_v60 = vadd.f32 %v10084_v32, %v6500_v31  ;;  %v10087_v49 = vadd.f32 %v10086_v52, %v10085_v43  ;;  %v466_v21 = vld [vmem:[%s15187_s0 + $0xe18] sm:$0xff]  ;;  %v8892_v52 = vcombine.low %v426_v41, %v446_v34 }
 0x26c   :  { %7186 = vmatmul.mubr.bf16.gmra.mrb[36].mxu1 %v8812_v36  ;;  %v8933_v48 = vcombine.high %v466_v21, %v486_v15 }
 0x26d   :  { %v9994_v3 = vpop.f32.mrb[188].mxu0  ;;  %v13586_v55 = vadd.f32 %v10087_v49, %v6503_v4  ;;  %7193 = vmatprep.mubr.bf16.mxu1 %v8853_v25 }
 0x26e   :  { %v9995_v35 = vpop.f32.mrb[189].mxu0 }
 0x26f   :  { %v9996_v46 = vadd.f32 %v9995_v35, %v9994_v3  ;;  %v9997_v26 = vpop.f32.mrb[190].mxu0  ;;  %v10088_v53 = vpop.f32.mrb[188].mxu1 }
 0x270   :  { %v9998_v2 = vpop.f32.mrb[191].mxu0  ;;  %v10089_v6 = vpop.f32.mrb[189].mxu1 }
 0x271   :  { %v6508_v5 = vadd.f32 %v9996_v46, %v13219_v24  ;;  %v9999_v54 = vadd.f32 %v9998_v2, %v9997_v26  ;;  %v10090_v13 = vadd.f32 %v10089_v6, %v10088_v53  ;;  %v10091_v11 = vpop.f32.mrb[190].mxu1  ;;  %v485_v24 = vld [vmem:[%s15187_s0 + $0xeb0] sm:$0xff] }
 0x272   :  { %7058 = vmatmul.mubr.bf16.gmra.mrb[40].mxu0 %v8850_v59  ;;  %v10092_v19 = vpop.f32.mrb[191].mxu1  ;;  %v8931_v31 = vcombine.high %v465_v14, %v485_v24  ;;  %v505_v26 = vld [vmem:[%s15187_s0 + $0xf50] sm:$0xff]  ;;  %v8930_v34 = vcombine.low %v465_v14, %v485_v24 }
 0x273   :  { %v6511_v17 = vadd.f32 %v9999_v54, %v13227_v63  ;;  %7065 = vmatprep.mubr.bf16.mxu0 %v8891_v61  ;;  %v13596_v18 = vadd.f32 %v10090_v13, %v6508_v5  ;;  %v10093_v8 = vadd.f32 %v10092_v19, %v10091_v11  ;;  %v8971_v5 = vcombine.high %v505_v26, %v505_v26 }
 0x274   :  { %7194 = vmatmul.mubr.bf16.gmra.mrb[40].mxu1 %v8852_v29 }
 0x275   :  { %v10000_v23 = vpop.f32.mrb[192].mxu0  ;;  %v13604_v28 = vadd.f32 %v10093_v8, %v6511_v17  ;;  %7201 = vmatprep.mubr.bf16.mxu1 %v8893_v7  ;;  %v8932_v7 = vcombine.low %v466_v21, %v486_v15  ;;  %v8970_v21 = vcombine.low %v505_v26, %v505_v26 }
 0x276   :  { %v10001_v27 = vpop.f32.mrb[193].mxu0 }
 0x277   :  { %v10002_v63 = vadd.f32 %v10001_v27, %v10000_v23  ;;  %v10003_v57 = vpop.f32.mrb[194].mxu0  ;;  %v10094_v36 = vpop.f32.mrb[192].mxu1 }
 0x278   :  { %v10004_v32 = vpop.f32.mrb[195].mxu0  ;;  %v10095_v4 = vpop.f32.mrb[193].mxu1 }
 0x279   :  { %v6516_v43 = vadd.f32 %v10002_v63, %v13237_v50  ;;  %v10005_v25 = vadd.f32 %v10004_v32, %v10003_v57  ;;  %v10096_v49 = vadd.f32 %v10095_v4, %v10094_v36  ;;  %v10097_v37 = vpop.f32.mrb[194].mxu1  ;;  %v28_v32 = vld [vmem:[%s15187_s0 + $0x68] sm:$0xff] }
 0x27a   :  { %7066 = vmatmul.mubr.bf16.gmra.mrb[44].mxu0 %v8890_v30  ;;  %v10098_v35 = vpop.f32.mrb[195].mxu1  ;;  %v27_v30 = vld [vmem:[%s15187_s0 + $0x60] sm:$0xff] }
 0x27b   :  { %v6519_v3 = vadd.f32 %v10005_v25, %v13242_v56  ;;  %7073 = vmatprep.mubr.bf16.mxu0 %v8931_v31  ;;  %v13614_v59 = vadd.f32 %v10096_v49, %v6516_v43  ;;  %v10099_v46 = vadd.f32 %v10098_v35, %v10097_v37  ;;  %v506_v56 = vld [vmem:[%s15187_s0 + $0xf58] sm:$0xff]  ;;  %v48_v43 = vld [vmem:[%s15187_s0 + $0x108] sm:$0xff] }
 0x27c   :  { %7202 = vmatmul.mubr.bf16.gmra.mrb[44].mxu1 %v8892_v52  ;;  %v8973_v8 = vcombine.high %v506_v56, %v506_v56 }
 0x27d   :  { %v10006_v50 = vpop.f32.mrb[196].mxu0  ;;  %v13619_v61 = vadd.f32 %v10099_v46, %v6519_v3  ;;  %7209 = vmatprep.mubr.bf16.mxu1 %v8933_v48  ;;  %v8972_v48 = vcombine.low %v506_v56, %v506_v56  ;;  %v8497_v46 = vcombine.high %v28_v32, %v48_v43 }
 0x27e   :  { %v10007_v41 = vpop.f32.mrb[197].mxu0 }
 0x27f   :  { %v10008_v53 = vadd.f32 %v10007_v41, %v10006_v50  ;;  %v10009_v2 = vpop.f32.mrb[198].mxu0  ;;  %v10100_v54 = vpop.f32.mrb[196].mxu1 }
 0x280   :  { %v10010_v6 = vpop.f32.mrb[199].mxu0  ;;  %v10101_v11 = vpop.f32.mrb[197].mxu1 }
 0x281   :  { %v6524_v29 = vadd.f32 %v10008_v53, %v13249_v20  ;;  %v10011_v13 = vadd.f32 %v10010_v6, %v10009_v2  ;;  %v10102_v17 = vadd.f32 %v10101_v11, %v10100_v54  ;;  %v10103_v19 = vpop.f32.mrb[198].mxu1  ;;  %v47_v20 = vld [vmem:[%s15187_s0 + $0x100] sm:$0xff]  ;;  %v13660_v11 = vld [vmem:[%s15187_s0 + $0x1a8] sm:$0xff] }
 0x282   :  { %7074 = vmatmul.mubr.bf16.gmra.mrb[48].mxu0 %v8930_v34  ;;  %v10104_v24 = vpop.f32.mrb[199].mxu1  ;;  %v8495_v36 = vcombine.high %v27_v30, %v47_v20  ;;  %v67_v53 = vld [vmem:[%s15187_s0 + $0x1a0] sm:$0xff]  ;;  %v8494_v54 = vcombine.low %v27_v30, %v47_v20 }
 0x283   :  { %v6527_v14 = vadd.f32 %v10011_v13, %v13257_v39  ;;  %7081 = vmatprep.mubr.bf16.mxu0 %v8971_v5  ;;  %v13626_v23 = vadd.f32 %v10102_v17, %v6524_v29  ;;  %v10105_v27 = vadd.f32 %v10104_v24, %v10103_v19  ;;  %v11402_v29 = vld [vmem:[%s15186_s1 + $0x700] sm:$0xff]  }
 0x284   :  { %7210 = vmatmul.mubr.bf16.gmra.mrb[48].mxu1 %v8932_v7  ;;  %v13665_v7 = vld [vmem:[%s15187_s0 + $0x248] sm:$0xff] }
 0x285   :  { %v10012_v63 = vpop.f32.mrb[200].mxu0  ;;  %v13634_v57 = vadd.f32 %v10105_v27, %v6527_v14  ;;  %7217 = vmatprep.mubr.bf16.mxu1 %v8973_v8  ;;  %v11405_v8 = vld [vmem:[%s15186_s1 + $0x748] sm:$0xff]   ;;  %v8496_v27 = vcombine.low %v28_v32, %v48_v43  ;;  %v13692_v32 = vld [vmem:[%s15187_s0 + $0x380] sm:$0xff]  ;;  %v11409_v43 = vld [vmem:[%s15186_s1 + $0x750] sm:$0xff]  }
 0x286   :  { %v10013_v31 = vpop.f32.mrb[201].mxu0 }
 0x287   :  { %v10014_v39 = vadd.f32 %v10013_v31, %v10012_v63  ;;  %v10015_v15 = vpop.f32.mrb[202].mxu0  ;;  %v10106_v25 = vpop.f32.mrb[200].mxu1  ;;  %v11404_v63 = vld [vmem:[%s15186_s1 + $0x780] sm:$0xff]   ;;  %v8537_v31 = vcombine.high %v13660_v11, %v13665_v7 }
 0x288   :  { %v10016_v4 = vpop.f32.mrb[203].mxu0  ;;  %v10107_v37 = vpop.f32.mrb[201].mxu1 }
 0x289   :  { %v6532_v52 = vadd.f32 %v10014_v39, %v13267_v51  ;;  %v10017_v49 = vadd.f32 %v10016_v4, %v10015_v15  ;;  %v10108_v3 = vadd.f32 %v10107_v37, %v10106_v25  ;;  %v10109_v35 = vpop.f32.mrb[202].mxu1  ;;  %v87_v51 = vld [vmem:[%s15187_s0 + $0x240] sm:$0xff]  ;;  %v11406_v39 = vld [vmem:[%s15186_s1 + $0x708] sm:$0xff]  }
 0x28a   :  { %7082 = vmatmul.mubr.bf16.gmra.mrb[52].mxu0 %v8970_v21  ;;  %v10110_v50 = vpop.f32.mrb[203].mxu1  ;;  %v8535_v13 = vcombine.high %v67_v53, %v87_v51 }
 0x28b   :  { %v6535_v26 = vadd.f32 %v10017_v49, %v13275_v0  ;;  %7257 = vmatprep.mubr.bf16.mxu0 %v8495_v36  ;;  %v13644_v41 = vadd.f32 %v10108_v3, %v6532_v52  ;;  %v10111_v34 = vadd.f32 %v10110_v50, %v10109_v35  ;;  %v13687_v36 = vld [vmem:[%s15187_s0 + $0x2e0] sm:$0xff]  ;;  %v8534_v52 = vcombine.low %v67_v53, %v87_v51  ;;  %v11408_v49 = vld [vmem:[%s15186_s1 + $0x788] sm:$0xff]   ;;  %v11411_v53 = vld [vmem:[%s15186_s1 + $0x7d0] sm:$0xff]  }
 0x28c   :  { %7218 = vmatmul.mubr.bf16.gmra.mrb[52].mxu1 %v8972_v48  ;;  %v8575_v3 = vcombine.high %v13687_v36, %v13692_v32  ;;  %v13705_v35 = vld [vmem:[%s15187_s0 + $0x2e8] sm:$0xff]  ;;  %v11413_v51 = vld [vmem:[%s15186_s1 + $0x758] sm:$0xff]  }
 0x28d   :  { %v10018_v2 = vpop.f32.mrb[204].mxu0  ;;  %v13652_v5 = vadd.f32 %v10111_v34, %v6535_v26  ;;  %7393 = vmatprep.mubr.bf16.mxu1 %v8497_v46  ;;  %v13710_v46 = vld [vmem:[%s15187_s0 + $0x388] sm:$0xff]  ;;  %v11410_v26 = vld [vmem:[%s15186_s1 + $0x710] sm:$0xff]  }
 0x28e   :  { %v10019_v56 = vpop.f32.mrb[205].mxu0 }
 0x28f   :  { %v10020_v0 = vadd.f32 %v10019_v56, %v10018_v2  ;;  %v10021_v6 = vpop.f32.mrb[206].mxu0  ;;  %v10112_v17 = vpop.f32.mrb[204].mxu1 }
 0x290   :  { %v10022_v19 = vpop.f32.mrb[207].mxu0  ;;  %v10113_v24 = vpop.f32.mrb[205].mxu1 }
 0x291   :  { %v6540_v14 = vadd.f32 %v10020_v0, %v13305_v16  ;;  %v10114_v30 = vadd.f32 %v10113_v24, %v10112_v17  ;;  %v10115_v20 = vpop.f32.mrb[206].mxu1  ;;  %v11407_v16 = vld [vmem:[%s15186_s1 + $0x7c8] sm:$0xff]   ;;  %v8536_v0 = vcombine.low %v13660_v11, %v13665_v7  ;;  %v11412_v17 = vld [vmem:[%s15186_s1 + $0x790] sm:$0xff]   ;;  %v11415_v11 = vld [vmem:[%s15186_s1 + $0x7d8] sm:$0xff]  }
 0x292   :  { %7258 = vmatmul.mubr.bf16.vlgmr.msra.gmra.mrb[56].mxu0 %v8494_v54  ;;  %v10116_v21 = vpop.f32.mrb[207].mxu1  ;;  %v13741_v24 = vld [vmem:[%s15187_s0 + $0x420] sm:$0xff] }
 0x293   :  { %10683 = vmatpush3.bf16.msra.mxu0 %v11402_v29  ;;  %7265 = vmatprep.mubr.bf16.mxu0 %v8535_v13  ;;  %v13682_v15 = vadd.f32 %v10114_v30, %v6540_v14  ;;  %v8577_v13 = vcombine.high %v13705_v35, %v13710_v46  ;;  %v11416_v21 = vld [vmem:[%s15186_s1 + $0x798] sm:$0xff]  }
 0x294   :  { %10684 = vmatprep.subr.bf16.mxu0 %v11405_v8  ;;  %7394 = vmatmul.mubr.bf16.vlgmr.msra.gmra.mrb[56].mxu1 %v8496_v27  ;;  %v11417_v27 = vld [vmem:[%s15186_s1 + $0x760] sm:$0xff]  }
 0x295   :  { %v10134_v25 = vpop.f32.mrb[208].mxu0  ;;  %10777 = vmatpush3.bf16.msra.mxu1 %v11404_v63  ;;  %7401 = vmatprep.mubr.bf16.mxu1 %v8537_v31  ;;  %v8574_v31 = vcombine.low %v13687_v36, %v13692_v32  ;;  %v13768_v36 = vld [vmem:[%s15187_s0 + $0x4c8] sm:$0xff]  ;;  %v11418_v32 = vld [vmem:[%s15186_s1 + $0x720] sm:$0xff]  }
 0x296   :  { %v10135_v4 = vpop.f32.mrb[209].mxu0  ;;  %10778 = vmatprep.subr.bf16.mxu1 %v11407_v16 }
 0x297   :  { %v10136_v37 = vadd.f32 %v10135_v4, %v10134_v25  ;;  %v10137_v48 = vpop.f32.mrb[210].mxu0  ;;  %10685 = vmatpush3.bf16.msra.mxu0 %v11406_v39  ;;  %v10228_v50 = vpop.f32.mrb[208].mxu1  ;;  %v13763_v25 = vld [vmem:[%s15187_s0 + $0x428] sm:$0xff] }
 0x298   :  { %v10138_v34 = vpop.f32.mrb[211].mxu0  ;;  %10686 = vmatprep.subr.bf16.mxu0 %v11409_v43  ;;  %v10229_v54 = vpop.f32.mrb[209].mxu1 }
 0x299   :  { %v6716_v2 = vadd.f32 %v10136_v37, %v13359_v9  ;;  %v10139_v56 = vadd.f32 %v10138_v34, %v10137_v48  ;;  %v10230_v6 = vadd.f32 %v10229_v54, %v10228_v50  ;;  %v10231_v29 = vpop.f32.mrb[210].mxu1  ;;  %10779 = vmatpush3.bf16.msra.mxu1 %v11408_v49  ;;  %v11414_v9 = vld [vmem:[%s15186_s1 + $0x718] sm:$0xff]   ;;  %v11419_v49 = vld [vmem:[%s15186_s1 + $0x7e0] sm:$0xff]   ;;  %v11421_v37 = vld [vmem:[%s15186_s1 + $0x768] sm:$0xff]   ;;  %v8576_v50 = vcombine.low %v13705_v35, %v13710_v46 }
 0x29a   :  { %7266 = vmatmul.mubr.bf16.gmra.mrb[60].mxu0 %v8534_v52  ;;  %v10232_v8 = vpop.f32.mrb[211].mxu1  ;;  %10780 = vmatprep.subr.bf16.mxu1 %v11411_v53  ;;  %v11423_v35 = vld [vmem:[%s15186_s1 + $0x7e8] sm:$0xff]  }
 0x29b   :  { %v6719_v19 = vadd.f32 %v10139_v56, %v13374_v40  ;;  %7273 = vmatprep.mubr.bf16.mxu0 %v8575_v3  ;;  %10687 = vmatpush3.bf16.msra.mxu0 %v11410_v26  ;;  %v13736_v7 = vadd.f32 %v10230_v6, %v6716_v2  ;;  %v10233_v14 = vadd.f32 %v10232_v8, %v10231_v29  ;;  %v13746_v40 = vld [vmem:[%s15187_s0 + $0x4c0] sm:$0xff]  ;;  %v11425_v6 = vld [vmem:[%s15186_s1 + $0x770] sm:$0xff]   ;;  %v11424_v8 = vld [vmem:[%s15186_s1 + $0x7a8] sm:$0xff]  }
 0x29c   :  { %10688 = vmatprep.subr.bf16.mxu0 %v11413_v51  ;;  %7402 = vmatmul.mubr.bf16.gmra.mrb[60].mxu1 %v8536_v0  ;;  %v8615_v43 = vcombine.high %v13741_v24, %v13746_v40  ;;  %v8617_v51 = vcombine.high %v13763_v25, %v13768_v36  ;;  %v11420_v2 = vld [vmem:[%s15186_s1 + $0x7a0] sm:$0xff]  }
 0x29d   :  { %v10140_v30 = vpop.f32.mrb[212].mxu0  ;;  %v13751_v20 = vadd.f32 %v10233_v14, %v6719_v19  ;;  %7409 = vmatprep.mubr.bf16.mxu1 %v8577_v13  ;;  %10781 = vmatpush3.bf16.msra.mxu1 %v11412_v17  ;;  %v13797_v0 = vld [vmem:[%s15187_s0 + $0x560] sm:$0xff]  ;;  %v8614_v19 = vcombine.low %v13741_v24, %v13746_v40  ;;  %v13826_v24 = vld [vmem:[%s15187_s0 + $0x608] sm:$0xff]  ;;  %v11426_v40 = vld [vmem:[%s15186_s1 + $0x730] sm:$0xff]  }
 0x29e   :  { %v10141_v63 = vpop.f32.mrb[213].mxu0  ;;  %10782 = vmatprep.subr.bf16.mxu1 %v11415_v11 }
 0x29f   :  { %v10142_v39 = vadd.f32 %v10141_v63, %v10140_v30  ;;  %v10143_v16 = vpop.f32.mrb[214].mxu0  ;;  %10689 = vmatpush3.bf16.msra.mxu0 %v11414_v9  ;;  %v10234_v4 = vpop.f32.mrb[212].mxu1  ;;  %v13821_v30 = vld [vmem:[%s15187_s0 + $0x568] sm:$0xff] }
 0x2a0   :  { %v10144_v52 = vpop.f32.mrb[215].mxu0  ;;  %10690 = vmatprep.subr.bf16.mxu0 %v11417_v27  ;;  %v10235_v26 = vpop.f32.mrb[213].mxu1 }
 0x2a1   :  { %v6724_v48 = vadd.f32 %v10142_v39, %v13417_v47  ;;  %v10145_v3 = vadd.f32 %v10144_v52, %v10143_v16  ;;  %v10236_v34 = vadd.f32 %v10235_v26, %v10234_v4  ;;  %v10237_v53 = vpop.f32.mrb[214].mxu1  ;;  %10783 = vmatpush3.bf16.msra.mxu1 %v11416_v21  ;;  %v11422_v47 = vld [vmem:[%s15186_s1 + $0x728] sm:$0xff]   ;;  %v11427_v21 = vld [vmem:[%s15186_s1 + $0x7f0] sm:$0xff]   ;;  %v11429_v39 = vld [vmem:[%s15186_s1 + $0x778] sm:$0xff]   ;;  %v8616_v4 = vcombine.low %v13763_v25, %v13768_v36 }
 0x2a2   :  { %7274 = vmatmul.mubr.bf16.gmra.mrb[64].mxu0 %v8574_v31  ;;  %v10238_v54 = vpop.f32.mrb[215].mxu1  ;;  %10784 = vmatprep.subr.bf16.mxu1 %v11419_v49  ;;  %v11433_v25 = vld [vmem:[%s15186_s1 + $0x7f8] sm:$0xff]  }
 0x2a3   :  { %v6727_v56 = vadd.f32 %v10145_v3, %v13432_v12  ;;  %7281 = vmatprep.mubr.bf16.mxu0 %v8615_v43  ;;  %10691 = vmatpush3.bf16.msra.mxu0 %v11418_v32  ;;  %v10239_v46 = vadd.f32 %v10238_v54, %v10237_v53  ;;  %v13802_v12 = vld [vmem:[%s15187_s0 + $0x600] sm:$0xff]  ;;  %v13807_v29 = vadd.f32 %v10236_v34, %v6724_v48  ;;  %v11428_v48 = vld [vmem:[%s15186_s1 + $0x7b0] sm:$0xff]   ;;  %v11436_v54 = vld [vmem:[%s15186_s1 + $0x7b8] sm:$0xff]  }
 0x2a4   :  { %10692 = vmatprep.subr.bf16.mxu0 %v11421_v37  ;;  %7410 = vmatmul.mubr.bf16.gmra.mrb[64].mxu1 %v8576_v50  ;;  %v8655_v27 = vcombine.high %v13797_v0, %v13802_v12  ;;  %v8657_v37 = vcombine.high %v13821_v30, %v13826_v24  ;;  %v227_v50 = vld [vmem:[%s15187_s0 + $0x6a0] sm:$0xff] }
 0x2a5   :  { %v10146_v13 = vpop.f32.mrb[216].mxu0  ;;  %7417 = vmatprep.mubr.bf16.mxu1 %v8617_v51  ;;  %10785 = vmatpush3.bf16.msra.mxu1 %v11420_v2  ;;  %v13814_v9 = vadd.f32 %v10239_v46, %v6727_v56  ;;  %v11437_v34 = vld [vmem:[%s15186_s1 + $0x840] sm:$0xff]   ;;  %v8654_v56 = vcombine.low %v13797_v0, %v13802_v12 }
 0x2a6   :  { %v10147_v17 = vpop.f32.mrb[217].mxu0  ;;  %10786 = vmatprep.subr.bf16.mxu1 %v11423_v35  ;;  %v11439_v0 = vld [vmem:[%s15186_s1 + $0x8c0] sm:$0xff]  }
 0x2a7   :  { %v10148_v11 = vadd.f32 %v10147_v17, %v10146_v13  ;;  %v10149_v14 = vpop.f32.mrb[218].mxu0  ;;  %10693 = vmatpush3.bf16.msra.mxu0 %v11422_v47  ;;  %v10240_v63 = vpop.f32.mrb[216].mxu1  ;;  %v228_v13 = vld [vmem:[%s15187_s0 + $0x6a8] sm:$0xff] }
 0x2a8   :  { %v10150_v31 = vpop.f32.mrb[219].mxu0  ;;  %10694 = vmatprep.subr.bf16.mxu0 %v11425_v6  ;;  %v10241_v32 = vpop.f32.mrb[217].mxu1  ;;  %v248_v17 = vld [vmem:[%s15187_s0 + $0x748] sm:$0xff] }
 0x2a9   :  { %v6732_v16 = vadd.f32 %v10148_v11, %v13475_v42  ;;  %v10151_v43 = vadd.f32 %v10150_v31, %v10149_v14  ;;  %v10242_v52 = vadd.f32 %v10241_v32, %v10240_v63  ;;  %v10243_v49 = vpop.f32.mrb[218].mxu1  ;;  %10787 = vmatpush3.bf16.msra.mxu1 %v11424_v8  ;;  %v11430_v42 = vld [vmem:[%s15186_s1 + $0x738] sm:$0xff]   ;;  %v8697_v31 = vcombine.high %v228_v13, %v248_v17 }
 0x2aa   :  { %7282 = vmatmul.mubr.bf16.gmra.mrb[68].mxu0 %v8614_v19  ;;  %v10244_v26 = vpop.f32.mrb[219].mxu1  ;;  %10788 = vmatprep.subr.bf16.mxu1 %v11427_v21 }
 0x2ab   :  { %v6735_v3 = vadd.f32 %v10151_v43, %v13486_v58  ;;  %7289 = vmatprep.mubr.bf16.mxu0 %v8655_v27  ;;  %10695 = vmatpush3.bf16.msra.mxu0 %v11426_v40  ;;  %v10245_v36 = vadd.f32 %v10244_v26, %v10243_v49  ;;  %v247_v58 = vld [vmem:[%s15187_s0 + $0x740] sm:$0xff]  ;;  %v13861_v53 = vadd.f32 %v10242_v52, %v6732_v16 }
 0x2ac   :  { %10696 = vmatprep.subr.bf16.mxu0 %v11429_v39  ;;  %7418 = vmatmul.mubr.bf16.gmra.mrb[68].mxu1 %v8616_v4  ;;  %v8695_v6 = vcombine.high %v227_v50, %v247_v58  ;;  %v8656_v27 = vcombine.low %v13821_v30, %v13826_v24  ;;  %v287_v43 = vld [vmem:[%s15187_s0 + $0x880] sm:$0xff]  ;;  %v8694_v4 = vcombine.low %v227_v50, %v247_v58 }
 0x2ad   :  { %v10152_v51 = vpop.f32.mrb[220].mxu0  ;;  %7425 = vmatprep.mubr.bf16.mxu1 %v8657_v37  ;;  %10789 = vmatpush3.bf16.msra.mxu1 %v11428_v48  ;;  %v13868_v47 = vadd.f32 %v10245_v36, %v6735_v3  ;;  %v268_v48 = vld [vmem:[%s15187_s0 + $0x7e8] sm:$0xff]  ;;  %v8696_v58 = vcombine.low %v228_v13, %v248_v17 }
 0x2ae   :  { %v10153_v2 = vpop.f32.mrb[221].mxu0  ;;  %10790 = vmatprep.subr.bf16.mxu1 %v11433_v25  ;;  %v288_v3 = vld [vmem:[%s15187_s0 + $0x888] sm:$0xff] }
 0x2af   :  { %v10154_v35 = vadd.f32 %v10153_v2, %v10152_v51  ;;  %v10155_v46 = vpop.f32.mrb[222].mxu0  ;;  %10697 = vmatpush3.bf16.msra.mxu0 %v11430_v42  ;;  %v10246_v12 = vpop.f32.mrb[220].mxu1  ;;  %v8737_v2 = vcombine.high %v268_v48, %v288_v3 }
 0x2b0   :  { %v10156_v19 = vpop.f32.mrb[223].mxu0  ;;  %10870 = vmatprep.subr.bf16.mxu0 %v11437_v34  ;;  %v10247_v14 = vpop.f32.mrb[221].mxu1 }
 0x2b1   :  { %v6740_v8 = vadd.f32 %v10154_v35, %v13506_v33  ;;  %v10157_v11 = vadd.f32 %v10156_v19, %v10155_v46  ;;  %v10248_v40 = vadd.f32 %v10247_v14, %v10246_v12  ;;  %v10249_v63 = vpop.f32.mrb[222].mxu1  ;;  %10791 = vmatpush3.bf16.msra.mxu1 %v11436_v54  ;;  %v267_v33 = vld [vmem:[%s15187_s0 + $0x7e0] sm:$0xff]  ;;  %v328_v14 = vld [vmem:[%s15187_s0 + $0x9c8] sm:$0xff] }
 0x2b2   :  { %7290 = vmatmul.mubr.bf16.gmra.mrb[72].mxu0 %v8654_v56  ;;  %v10250_v39 = vpop.f32.mrb[223].mxu1  ;;  %10964 = vmatprep.subr.bf16.mxu1 %v11439_v0  ;;  %v8735_v37 = vcombine.high %v267_v33, %v287_v43  ;;  %v307_v46 = vld [vmem:[%s15187_s0 + $0x920] sm:$0xff]  ;;  %v8734_v0 = vcombine.low %v267_v33, %v287_v43 }
 0x2b3   :  { %v6743_v21 = vadd.f32 %v10157_v11, %v13514_v44  ;;  %7297 = vmatprep.mubr.bf16.mxu0 %v8695_v6  ;;  %v10251_v16 = vadd.f32 %v10250_v39, %v10249_v63  ;;  %v13889_v30 = vadd.f32 %v10248_v40, %v6740_v8  ;;  %v308_v11 = vld [vmem:[%s15187_s0 + $0x928] sm:$0xff]  ;;  %v8736_v39 = vcombine.low %v268_v48, %v288_v3 }
 0x2b4   :  { %7426 = vmatmul.mubr.bf16.gmra.mrb[72].mxu1 %v8656_v27  ;;  %v8777_v43 = vcombine.high %v308_v11, %v328_v14 }
 0x2b5   :  { %v10158_v24 = vpop.f32.mrb[224].mxu0  ;;  %7433 = vmatprep.mubr.bf16.mxu1 %v8697_v31  ;;  %v13891_v44 = vadd.f32 %v10251_v16, %v6743_v21 }
 0x2b6   :  { %v10159_v32 = vpop.f32.mrb[225].mxu0 }
 0x2b7   :  { %v10160_v52 = vadd.f32 %v10159_v32, %v10158_v24  ;;  %v10161_v49 = vpop.f32.mrb[226].mxu0  ;;  %v10252_v26 = vpop.f32.mrb[224].mxu1 }
 0x2b8   :  { %v10162_v42 = vpop.f32.mrb[227].mxu0  ;;  %v10253_v50 = vpop.f32.mrb[225].mxu1 }
 0x2b9   :  { %v6748_v25 = vadd.f32 %v10160_v52, %v13524_v1  ;;  %v10163_v36 = vadd.f32 %v10162_v42, %v10161_v49  ;;  %v10254_v34 = vadd.f32 %v10253_v50, %v10252_v26  ;;  %v10255_v51 = vpop.f32.mrb[226].mxu1  ;;  %v327_v1 = vld [vmem:[%s15187_s0 + $0x9c0] sm:$0xff]  ;;  %v368_v50 = vld [vmem:[%s15187_s0 + $0xb08] sm:$0xff] }
 0x2ba   :  { %7298 = vmatmul.mubr.bf16.gmra.mrb[76].mxu0 %v8694_v4  ;;  %v10256_v54 = vpop.f32.mrb[227].mxu1  ;;  %v8775_v8 = vcombine.high %v307_v46, %v327_v1  ;;  %v347_v52 = vld [vmem:[%s15187_s0 + $0xa60] sm:$0xff]  ;;  %v8774_v3 = vcombine.low %v307_v46, %v327_v1 }
 0x2bb   :  { %v6751_v56 = vadd.f32 %v10163_v36, %v13532_v62  ;;  %7305 = vmatprep.mubr.bf16.mxu0 %v8735_v37  ;;  %v10257_v35 = vadd.f32 %v10256_v54, %v10255_v51  ;;  %v13907_v6 = vadd.f32 %v10254_v34, %v6748_v25  ;;  %v348_v36 = vld [vmem:[%s15187_s0 + $0xa68] sm:$0xff]  ;;  %v8776_v54 = vcombine.low %v308_v11, %v328_v14 }
 0x2bc   :  { %7434 = vmatmul.mubr.bf16.gmra.mrb[76].mxu1 %v8696_v58  ;;  %v8817_v1 = vcombine.high %v348_v36, %v368_v50 }
 0x2bd   :  { %v10164_v13 = vpop.f32.mrb[228].mxu0  ;;  %7441 = vmatprep.mubr.bf16.mxu1 %v8737_v2  ;;  %v13909_v12 = vadd.f32 %v10257_v35, %v6751_v56 }
 0x2be   :  { %v10165_v17 = vpop.f32.mrb[229].mxu0 }
 0x2bf   :  { %v10166_v62 = vadd.f32 %v10165_v17, %v10164_v13  ;;  %v10167_v19 = vpop.f32.mrb[230].mxu0  ;;  %v10258_v27 = vpop.f32.mrb[228].mxu1 }
 0x2c0   :  { %v10168_v40 = vpop.f32.mrb[231].mxu0  ;;  %v10259_v21 = vpop.f32.mrb[229].mxu1 }
 0x2c1   :  { %v6756_v63 = vadd.f32 %v10166_v62, %v13542_v38  ;;  %v10169_v31 = vadd.f32 %v10168_v40, %v10167_v19  ;;  %v10260_v16 = vadd.f32 %v10259_v21, %v10258_v27  ;;  %v10261_v33 = vpop.f32.mrb[230].mxu1  ;;  %v367_v38 = vld [vmem:[%s15187_s0 + $0xb00] sm:$0xff]  ;;  %v408_v21 = vld [vmem:[%s15187_s0 + $0xc48] sm:$0xff] }
 0x2c2   :  { %7306 = vmatmul.mubr.bf16.gmra.mrb[80].mxu0 %v8734_v0  ;;  %v10262_v32 = vpop.f32.mrb[231].mxu1  ;;  %v8815_v25 = vcombine.high %v347_v52, %v367_v38  ;;  %v387_v62 = vld [vmem:[%s15187_s0 + $0xba0] sm:$0xff]  ;;  %v8814_v14 = vcombine.low %v347_v52, %v367_v38 }
 0x2c3   :  { %v6759_v24 = vadd.f32 %v10169_v31, %v13550_v45  ;;  %7313 = vmatprep.mubr.bf16.mxu0 %v8775_v8  ;;  %v10263_v4 = vadd.f32 %v10262_v32, %v10261_v33  ;;  %v13925_v49 = vadd.f32 %v10260_v16, %v6756_v63  ;;  %v388_v31 = vld [vmem:[%s15187_s0 + $0xba8] sm:$0xff]  ;;  %v8816_v32 = vcombine.low %v348_v36, %v368_v50 }
 0x2c4   :  { %7442 = vmatmul.mubr.bf16.gmra.mrb[80].mxu1 %v8736_v39  ;;  %v8857_v38 = vcombine.high %v388_v31, %v408_v21 }
 0x2c5   :  { %v10170_v37 = vpop.f32.mrb[232].mxu0  ;;  %7449 = vmatprep.mubr.bf16.mxu1 %v8777_v43  ;;  %v13927_v26 = vadd.f32 %v10263_v4, %v6759_v24 }
 0x2c6   :  { %v10171_v48 = vpop.f32.mrb[233].mxu0 }
 0x2c7   :  { %v10172_v45 = vadd.f32 %v10171_v48, %v10170_v37  ;;  %v10173_v42 = vpop.f32.mrb[234].mxu0  ;;  %v10264_v58 = vpop.f32.mrb[232].mxu1 }
 0x2c8   :  { %v10174_v34 = vpop.f32.mrb[235].mxu0  ;;  %v10265_v56 = vpop.f32.mrb[233].mxu1 }
 0x2c9   :  { %v6764_v51 = vadd.f32 %v10172_v45, %v13560_v10  ;;  %v10175_v2 = vadd.f32 %v10174_v34, %v10173_v42  ;;  %v10266_v35 = vadd.f32 %v10265_v56, %v10264_v58  ;;  %v10267_v46 = vpop.f32.mrb[234].mxu1  ;;  %v407_v10 = vld [vmem:[%s15187_s0 + $0xc40] sm:$0xff]  ;;  %v448_v56 = vld [vmem:[%s15187_s0 + $0xd88] sm:$0xff] }
 0x2ca   :  { %7314 = vmatmul.mubr.bf16.gmra.mrb[84].mxu0 %v8774_v3  ;;  %v10268_v17 = vpop.f32.mrb[235].mxu1  ;;  %v8855_v63 = vcombine.high %v387_v62, %v407_v10  ;;  %v427_v45 = vld [vmem:[%s15187_s0 + $0xce0] sm:$0xff]  ;;  %v8854_v50 = vcombine.low %v387_v62, %v407_v10 }
 0x2cb   :  { %v6767_v13 = vadd.f32 %v10175_v2, %v13568_v22  ;;  %7321 = vmatprep.mubr.bf16.mxu0 %v8815_v25  ;;  %v10269_v0 = vadd.f32 %v10268_v17, %v10267_v46  ;;  %v13943_v19 = vadd.f32 %v10266_v35, %v6764_v51  ;;  %v428_v2 = vld [vmem:[%s15187_s0 + $0xce8] sm:$0xff]  ;;  %v8856_v17 = vcombine.low %v388_v31, %v408_v21 }
 0x2cc   :  { %7450 = vmatmul.mubr.bf16.gmra.mrb[84].mxu1 %v8776_v54  ;;  %v8897_v10 = vcombine.high %v428_v2, %v448_v56 }
 0x2cd   :  { %v10176_v8 = vpop.f32.mrb[236].mxu0  ;;  %7457 = vmatprep.mubr.bf16.mxu1 %v8817_v1  ;;  %v13945_v27 = vadd.f32 %v10269_v0, %v6767_v13 }
 0x2ce   :  { %v10177_v11 = vpop.f32.mrb[237].mxu0 }
 0x2cf   :  { %v10178_v22 = vadd.f32 %v10177_v11, %v10176_v8  ;;  %v10179_v40 = vpop.f32.mrb[238].mxu0  ;;  %v10270_v39 = vpop.f32.mrb[236].mxu1 }
 0x2d0   :  { %v10180_v16 = vpop.f32.mrb[239].mxu0  ;;  %v10271_v24 = vpop.f32.mrb[237].mxu1 }
 0x2d1   :  { %v6772_v33 = vadd.f32 %v10178_v22, %v13578_v60  ;;  %v10181_v43 = vadd.f32 %v10180_v16, %v10179_v40  ;;  %v10272_v4 = vadd.f32 %v10271_v24, %v10270_v39  ;;  %v10273_v52 = vpop.f32.mrb[238].mxu1  ;;  %v447_v60 = vld [vmem:[%s15187_s0 + $0xd80] sm:$0xff]  ;;  %v488_v24 = vld [vmem:[%s15187_s0 + $0xec8] sm:$0xff] }
 0x2d2   :  { %7322 = vmatmul.mubr.bf16.gmra.mrb[88].mxu0 %v8814_v14  ;;  %v10274_v48 = vpop.f32.mrb[239].mxu1  ;;  %v8895_v51 = vcombine.high %v427_v45, %v447_v60  ;;  %v467_v22 = vld [vmem:[%s15187_s0 + $0xe20] sm:$0xff]  ;;  %v8894_v21 = vcombine.low %v427_v45, %v447_v60 }
 0x2d3   :  { %v6775_v37 = vadd.f32 %v10181_v43, %v13586_v55  ;;  %7329 = vmatprep.mubr.bf16.mxu0 %v8855_v63  ;;  %v10275_v3 = vadd.f32 %v10274_v48, %v10273_v52  ;;  %v13961_v42 = vadd.f32 %v10272_v4, %v6772_v33  ;;  %v468_v43 = vld [vmem:[%s15187_s0 + $0xe28] sm:$0xff]  ;;  %v8896_v48 = vcombine.low %v428_v2, %v448_v56 }
 0x2d4   :  { %7458 = vmatmul.mubr.bf16.gmra.mrb[88].mxu1 %v8816_v32  ;;  %v8937_v60 = vcombine.high %v468_v43, %v488_v24 }
 0x2d5   :  { %v10182_v25 = vpop.f32.mrb[240].mxu0  ;;  %7465 = vmatprep.mubr.bf16.mxu1 %v8857_v38  ;;  %v13963_v58 = vadd.f32 %v10275_v3, %v6775_v37 }
 0x2d6   :  { %v10183_v36 = vpop.f32.mrb[241].mxu0 }
 0x2d7   :  { %v10184_v55 = vadd.f32 %v10183_v36, %v10182_v25  ;;  %v10185_v34 = vpop.f32.mrb[242].mxu0  ;;  %v10276_v54 = vpop.f32.mrb[240].mxu1 }
 0x2d8   :  { %v10186_v35 = vpop.f32.mrb[243].mxu0  ;;  %v10277_v13 = vpop.f32.mrb[241].mxu1 }
 0x2d9   :  { %v6780_v46 = vadd.f32 %v10184_v55, %v13596_v18  ;;  %v10187_v1 = vadd.f32 %v10186_v35, %v10185_v34  ;;  %v10278_v0 = vadd.f32 %v10277_v13, %v10276_v54  ;;  %v10279_v62 = vpop.f32.mrb[242].mxu1  ;;  %v487_v18 = vld [vmem:[%s15187_s0 + $0xec0] sm:$0xff] }
 0x2da   :  { %7330 = vmatmul.mubr.bf16.gmra.mrb[92].mxu0 %v8854_v50  ;;  %v10280_v11 = vpop.f32.mrb[243].mxu1  ;;  %v8935_v33 = vcombine.high %v467_v22, %v487_v18  ;;  %v507_v55 = vld [vmem:[%s15187_s0 + $0xf60] sm:$0xff]  ;;  %v8934_v54 = vcombine.low %v467_v22, %v487_v18 }
 0x2db   :  { %v6783_v8 = vadd.f32 %v10187_v1, %v13604_v28  ;;  %7337 = vmatprep.mubr.bf16.mxu0 %v8895_v51  ;;  %v10281_v14 = vadd.f32 %v10280_v11, %v10279_v62  ;;  %v13979_v40 = vadd.f32 %v10278_v0, %v6780_v46  ;;  %v8975_v46 = vcombine.high %v507_v55, %v507_v55 }
 0x2dc   :  { %7466 = vmatmul.mubr.bf16.gmra.mrb[92].mxu1 %v8856_v17 }
 0x2dd   :  { %v10188_v63 = vpop.f32.mrb[244].mxu0  ;;  %7473 = vmatprep.mubr.bf16.mxu1 %v8897_v10  ;;  %v13981_v39 = vadd.f32 %v10281_v14, %v6783_v8  ;;  %v8936_v10 = vcombine.low %v468_v43, %v488_v24 }
 0x2de   :  { %v10189_v31 = vpop.f32.mrb[245].mxu0 }
 0x2df   :  { %v10190_v28 = vadd.f32 %v10189_v31, %v10188_v63  ;;  %v10191_v16 = vpop.f32.mrb[246].mxu0  ;;  %v10282_v32 = vpop.f32.mrb[244].mxu1  ;;  %v29_v31 = vld [vmem:[%s15187_s0 + $0x70] sm:$0xff] }
 0x2e0   :  { %v10192_v4 = vpop.f32.mrb[247].mxu0  ;;  %v10283_v37 = vpop.f32.mrb[245].mxu1 }
 0x2e1   :  { %v6788_v52 = vadd.f32 %v10190_v28, %v13614_v59  ;;  %v10193_v38 = vadd.f32 %v10192_v4, %v10191_v16  ;;  %v10284_v3 = vadd.f32 %v10283_v37, %v10282_v32  ;;  %v10285_v45 = vpop.f32.mrb[246].mxu1  ;;  %v30_v4 = vld [vmem:[%s15187_s0 + $0x78] sm:$0xff] }
 0x2e2   :  { %7338 = vmatmul.mubr.bf16.gmra.mrb[96].mxu0 %v8894_v21  ;;  %v10286_v36 = vpop.f32.mrb[247].mxu1 }
 0x2e3   :  { %v6791_v25 = vadd.f32 %v10193_v38, %v13619_v61  ;;  %7345 = vmatprep.mubr.bf16.mxu0 %v8935_v33  ;;  %v10287_v50 = vadd.f32 %v10286_v36, %v10285_v45  ;;  %v13994_v34 = vadd.f32 %v10284_v3, %v6788_v52  ;;  %v508_v61 = vld [vmem:[%s15187_s0 + $0xf68] sm:$0xff]  ;;  %v8974_v33 = vcombine.low %v507_v55, %v507_v55  ;;  %v50_v52 = vld [vmem:[%s15187_s0 + $0x118] sm:$0xff] }
 0x2e4   :  { %7474 = vmatmul.mubr.bf16.gmra.mrb[96].mxu1 %v8896_v48  ;;  %v8977_v14 = vcombine.high %v508_v61, %v508_v61 }
 0x2e5   :  { %v10194_v59 = vpop.f32.mrb[248].mxu0  ;;  %7481 = vmatprep.mubr.bf16.mxu1 %v8937_v60  ;;  %v13996_v2 = vadd.f32 %v10287_v50, %v6791_v25  ;;  %v8976_v60 = vcombine.low %v508_v61, %v508_v61  ;;  %v8501_v50 = vcombine.high %v30_v4, %v50_v52 }
 0x2e6   :  { %v10195_v51 = vpop.f32.mrb[249].mxu0 }
 0x2e7   :  { %v10196_v56 = vadd.f32 %v10195_v51, %v10194_v59  ;;  %v10197_v35 = vpop.f32.mrb[250].mxu0  ;;  %v10288_v1 = vpop.f32.mrb[248].mxu1 }
 0x2e8   :  { %v10198_v13 = vpop.f32.mrb[251].mxu0  ;;  %v10289_v62 = vpop.f32.mrb[249].mxu1 }
 0x2e9   :  { %v6796_v17 = vadd.f32 %v10196_v56, %v13626_v23  ;;  %v10199_v0 = vadd.f32 %v10198_v13, %v10197_v35  ;;  %v10290_v8 = vadd.f32 %v10289_v62, %v10288_v1  ;;  %v10291_v11 = vpop.f32.mrb[250].mxu1  ;;  %v49_v23 = vld [vmem:[%s15187_s0 + $0x110] sm:$0xff]  ;;  %v14037_v62 = vld [vmem:[%s15187_s0 + $0x1b8] sm:$0xff] }
 0x2ea   :  { %7346 = vmatmul.mubr.bf16.gmra.mrb[100].mxu0 %v8934_v54  ;;  %v10292_v18 = vpop.f32.mrb[251].mxu1  ;;  %v8499_v32 = vcombine.high %v29_v31, %v49_v23  ;;  %v69_v54 = vld [vmem:[%s15187_s0 + $0x1b0] sm:$0xff]  ;;  %v8498_v61 = vcombine.low %v29_v31, %v49_v23 }
 0x2eb   :  { %v6799_v22 = vadd.f32 %v10199_v0, %v13634_v57  ;;  %7353 = vmatprep.mubr.bf16.mxu0 %v8975_v46  ;;  %v10293_v63 = vadd.f32 %v10292_v18, %v10291_v11  ;;  %v14009_v21 = vadd.f32 %v10290_v8, %v6796_v17  ;;  %v11438_v17 = vld [vmem:[%s15186_s1 + $0x800] sm:$0xff]  }
 0x2ec   :  { %7482 = vmatmul.mubr.bf16.gmra.mrb[100].mxu1 %v8936_v10  ;;  %v14042_v10 = vld [vmem:[%s15187_s0 + $0x258] sm:$0xff] }
 0x2ed   :  { %v10200_v28 = vpop.f32.mrb[252].mxu0  ;;  %7489 = vmatprep.mubr.bf16.mxu1 %v8977_v14  ;;  %v14011_v43 = vadd.f32 %v10293_v63, %v6799_v22  ;;  %v11441_v14 = vld [vmem:[%s15186_s1 + $0x848] sm:$0xff]   ;;  %v8500_v63 = vcombine.low %v30_v4, %v50_v52  ;;  %v11445_v4 = vld [vmem:[%s15186_s1 + $0x850] sm:$0xff]  }
 0x2ee   :  { %v10201_v16 = vpop.f32.mrb[253].mxu0 }
 0x2ef   :  { %v10202_v57 = vadd.f32 %v10201_v16, %v10200_v28  ;;  %v10203_v24 = vpop.f32.mrb[254].mxu0  ;;  %v10294_v38 = vpop.f32.mrb[252].mxu1  ;;  %v11440_v28 = vld [vmem:[%s15186_s1 + $0x880] sm:$0xff]   ;;  %v8541_v16 = vcombine.high %v14037_v62, %v14042_v10 }
 0x2f0   :  { %v10204_v37 = vpop.f32.mrb[255].mxu0  ;;  %v10295_v45 = vpop.f32.mrb[253].mxu1 }
 0x2f1   :  { %v6804_v48 = vadd.f32 %v10202_v57, %v13644_v41  ;;  %v10205_v3 = vadd.f32 %v10204_v37, %v10203_v24  ;;  %v10296_v25 = vadd.f32 %v10295_v45, %v10294_v38  ;;  %v10297_v36 = vpop.f32.mrb[254].mxu1  ;;  %v89_v41 = vld [vmem:[%s15187_s0 + $0x250] sm:$0xff]  ;;  %v11442_v57 = vld [vmem:[%s15186_s1 + $0x808] sm:$0xff]  }
 0x2f2   :  { %7354 = vmatmul.mubr.bf16.gmra.mrb[104].mxu0 %v8974_v33  ;;  %v10298_v59 = vpop.f32.mrb[255].mxu1  ;;  %v8539_v0 = vcombine.high %v69_v54, %v89_v41  ;;  %v14062_v24 = vld [vmem:[%s15187_s0 + $0x2f0] sm:$0xff] }
 0x2f3   :  { %v6807_v55 = vadd.f32 %v10205_v3, %v13652_v5  ;;  %7529 = vmatprep.mubr.bf16.mxu0 %v8499_v32  ;;  %v10299_v51 = vadd.f32 %v10298_v59, %v10297_v36  ;;  %v14027_v56 = vadd.f32 %v10296_v25, %v6804_v48  ;;  %v14067_v32 = vld [vmem:[%s15187_s0 + $0x390] sm:$0xff]  ;;  %v8538_v48 = vcombine.low %v69_v54, %v89_v41  ;;  %v11444_v3 = vld [vmem:[%s15186_s1 + $0x888] sm:$0xff]   ;;  %v14082_v36 = vld [vmem:[%s15187_s0 + $0x2f8] sm:$0xff] }
 0x2f4   :  { %7490 = vmatmul.mubr.bf16.gmra.mrb[104].mxu1 %v8976_v60  ;;  %v8579_v25 = vcombine.high %v14062_v24, %v14067_v32  ;;  %v11447_v54 = vld [vmem:[%s15186_s1 + $0x8d0] sm:$0xff]   ;;  %v11449_v41 = vld [vmem:[%s15186_s1 + $0x858] sm:$0xff]  }
 0x2f5   :  { %v10206_v35 = vpop.f32.mrb[0].mxu0  ;;  %7665 = vmatprep.mubr.bf16.mxu1 %v8501_v50  ;;  %v14029_v1 = vadd.f32 %v10299_v51, %v6807_v55  ;;  %v14087_v50 = vld [vmem:[%s15187_s0 + $0x398] sm:$0xff]  ;;  %v11446_v55 = vld [vmem:[%s15186_s1 + $0x810] sm:$0xff]  }
 0x2f6   :  { %v10207_v46 = vpop.f32.mrb[1].mxu0 }
 0x2f7   :  { %v10208_v5 = vadd.f32 %v10207_v46, %v10206_v35  ;;  %v10209_v13 = vpop.f32.mrb[2].mxu0  ;;  %v10300_v8 = vpop.f32.mrb[0].mxu1 }
 0x2f8   :  { %v10210_v11 = vpop.f32.mrb[3].mxu0  ;;  %v10301_v18 = vpop.f32.mrb[1].mxu1 }
 0x2f9   :  { %v6812_v22 = vadd.f32 %v10208_v5, %v13682_v15  ;;  %v10302_v31 = vadd.f32 %v10301_v18, %v10300_v8  ;;  %v10303_v23 = vpop.f32.mrb[2].mxu1  ;;  %v11443_v15 = vld [vmem:[%s15186_s1 + $0x8c8] sm:$0xff]   ;;  %v8540_v5 = vcombine.low %v14037_v62, %v14042_v10  ;;  %v11448_v8 = vld [vmem:[%s15186_s1 + $0x890] sm:$0xff]   ;;  %v11451_v62 = vld [vmem:[%s15186_s1 + $0x8d8] sm:$0xff]  }
 0x2fa   :  { %7530 = vmatmul.mubr.bf16.vlgmr.msra.gmra.mrb[108].mxu0 %v8498_v61  ;;  %v10304_v33 = vpop.f32.mrb[3].mxu1  ;;  %v11453_v18 = vld [vmem:[%s15186_s1 + $0x860] sm:$0xff]  }
 0x2fb   :  { %10871 = vmatpush3.bf16.msra.mxu0 %v11438_v17  ;;  %7537 = vmatprep.mubr.bf16.mxu0 %v8539_v0  ;;  %v14072_v52 = vadd.f32 %v10302_v31, %v6812_v22  ;;  %v8581_v0 = vcombine.high %v14082_v36, %v14087_v50  ;;  %v14116_v22 = vld [vmem:[%s15187_s0 + $0x430] sm:$0xff] }
 0x2fc   :  { %10872 = vmatprep.subr.bf16.mxu0 %v11441_v14  ;;  %7666 = vmatmul.mubr.bf16.vlgmr.msra.gmra.mrb[108].mxu1 %v8500_v63 }
 0x2fd   :  { %v10322_v38 = vpop.f32.mrb[4].mxu0  ;;  %10965 = vmatpush3.bf16.msra.mxu1 %v11440_v28  ;;  %7673 = vmatprep.mubr.bf16.mxu1 %v8541_v16  ;;  %v8578_v28 = vcombine.low %v14062_v24, %v14067_v32  ;;  %v11452_v16 = vld [vmem:[%s15186_s1 + $0x898] sm:$0xff]   ;;  %v11454_v32 = vld [vmem:[%s15186_s1 + $0x820] sm:$0xff]  }
 0x2fe   :  { %v10323_v37 = vpop.f32.mrb[5].mxu0  ;;  %10966 = vmatprep.subr.bf16.mxu1 %v11443_v15  ;;  %v14145_v24 = vld [vmem:[%s15187_s0 + $0x4d8] sm:$0xff] }
 0x2ff   :  { %v10324_v45 = vadd.f32 %v10323_v37, %v10322_v38  ;;  %v10325_v60 = vpop.f32.mrb[6].mxu0  ;;  %10873 = vmatpush3.bf16.msra.mxu0 %v11442_v57  ;;  %v10416_v59 = vpop.f32.mrb[4].mxu1  ;;  %v14140_v38 = vld [vmem:[%s15187_s0 + $0x438] sm:$0xff] }
 0x300   :  { %v10326_v51 = vpop.f32.mrb[7].mxu0  ;;  %10874 = vmatprep.subr.bf16.mxu0 %v11445_v4  ;;  %v10417_v61 = vpop.f32.mrb[5].mxu1 }
 0x301   :  { %v6988_v35 = vadd.f32 %v10324_v45, %v13736_v7  ;;  %v10327_v46 = vadd.f32 %v10326_v51, %v10325_v60  ;;  %v10418_v13 = vadd.f32 %v10417_v61, %v10416_v59  ;;  %v10419_v17 = vpop.f32.mrb[6].mxu1  ;;  %10967 = vmatpush3.bf16.msra.mxu1 %v11444_v3  ;;  %v11450_v7 = vld [vmem:[%s15186_s1 + $0x818] sm:$0xff]   ;;  %v11455_v3 = vld [vmem:[%s15186_s1 + $0x8e0] sm:$0xff]   ;;  %v11457_v45 = vld [vmem:[%s15186_s1 + $0x868] sm:$0xff]   ;;  %v8580_v59 = vcombine.low %v14082_v36, %v14087_v50 }
 0x302   :  { %7538 = vmatmul.mubr.bf16.gmra.mrb[112].mxu0 %v8538_v48  ;;  %v10420_v14 = vpop.f32.mrb[7].mxu1  ;;  %10968 = vmatprep.subr.bf16.mxu1 %v11447_v54  ;;  %v11459_v36 = vld [vmem:[%s15186_s1 + $0x8e8] sm:$0xff]  }
 0x303   :  { %v6991_v11 = vadd.f32 %v10327_v46, %v13751_v20  ;;  %7545 = vmatprep.mubr.bf16.mxu0 %v8579_v25  ;;  %10875 = vmatpush3.bf16.msra.mxu0 %v11446_v55  ;;  %v10421_v10 = vadd.f32 %v10420_v14, %v10419_v17  ;;  %v14121_v20 = vld [vmem:[%s15187_s0 + $0x4d0] sm:$0xff]  ;;  %v14126_v63 = vadd.f32 %v10418_v13, %v6988_v35  ;;  %v11456_v35 = vld [vmem:[%s15186_s1 + $0x8a0] sm:$0xff]  }
 0x304   :  { %10876 = vmatprep.subr.bf16.mxu0 %v11449_v41  ;;  %7674 = vmatmul.mubr.bf16.gmra.mrb[112].mxu1 %v8540_v5  ;;  %v8619_v4 = vcombine.high %v14116_v22, %v14121_v20  ;;  %v8621_v41 = vcombine.high %v14140_v38, %v14145_v24  ;;  %v14176_v13 = vld [vmem:[%s15187_s0 + $0x570] sm:$0xff]  ;;  %v8618_v14 = vcombine.low %v14116_v22, %v14121_v20  ;;  %v14203_v22 = vld [vmem:[%s15187_s0 + $0x618] sm:$0xff] }
 0x305   :  { %v10328_v31 = vpop.f32.mrb[8].mxu0  ;;  %7681 = vmatprep.mubr.bf16.mxu1 %v8581_v0  ;;  %10969 = vmatpush3.bf16.msra.mxu1 %v11448_v8  ;;  %v14133_v33 = vadd.f32 %v10421_v10, %v6991_v11  ;;  %v11461_v17 = vld [vmem:[%s15186_s1 + $0x870] sm:$0xff]  }
 0x306   :  { %v10329_v23 = vpop.f32.mrb[9].mxu0  ;;  %10970 = vmatprep.subr.bf16.mxu1 %v11451_v62  ;;  %v11462_v20 = vld [vmem:[%s15186_s1 + $0x830] sm:$0xff]  }
 0x307   :  { %v10330_v57 = vadd.f32 %v10329_v23, %v10328_v31  ;;  %v10331_v15 = vpop.f32.mrb[10].mxu0  ;;  %10877 = vmatpush3.bf16.msra.mxu0 %v11450_v7  ;;  %v10422_v37 = vpop.f32.mrb[8].mxu1  ;;  %v11460_v7 = vld [vmem:[%s15186_s1 + $0x8a8] sm:$0xff]   ;;  %v14198_v31 = vld [vmem:[%s15187_s0 + $0x578] sm:$0xff] }
 0x308   :  { %v10332_v48 = vpop.f32.mrb[11].mxu0  ;;  %10878 = vmatprep.subr.bf16.mxu0 %v11453_v18  ;;  %v10423_v55 = vpop.f32.mrb[9].mxu1 }
 0x309   :  { %v6996_v60 = vadd.f32 %v10330_v57, %v13807_v29  ;;  %v10333_v25 = vadd.f32 %v10332_v48, %v10331_v15  ;;  %v10424_v51 = vadd.f32 %v10423_v55, %v10422_v37  ;;  %v10425_v54 = vpop.f32.mrb[10].mxu1  ;;  %10971 = vmatpush3.bf16.msra.mxu1 %v11452_v16  ;;  %v11458_v29 = vld [vmem:[%s15186_s1 + $0x828] sm:$0xff]   ;;  %v11463_v16 = vld [vmem:[%s15186_s1 + $0x8f0] sm:$0xff]   ;;  %v11465_v57 = vld [vmem:[%s15186_s1 + $0x878] sm:$0xff]   ;;  %v8620_v37 = vcombine.low %v14140_v38, %v14145_v24 }
 0x30a   :  { %7546 = vmatmul.mubr.bf16.gmra.mrb[116].mxu0 %v8578_v28  ;;  %v10426_v61 = vpop.f32.mrb[11].mxu1  ;;  %10972 = vmatprep.subr.bf16.mxu1 %v11455_v3  ;;  %v11469_v38 = vld [vmem:[%s15186_s1 + $0x8f8] sm:$0xff]  }
 0x30b   :  { %v6999_v46 = vadd.f32 %v10333_v25, %v13814_v9  ;;  %7553 = vmatprep.mubr.bf16.mxu0 %v8619_v4  ;;  %10879 = vmatpush3.bf16.msra.mxu0 %v11454_v32  ;;  %v14171_v50 = vadd.f32 %v10424_v51, %v6996_v60  ;;  %v10427_v5 = vadd.f32 %v10426_v61, %v10425_v54  ;;  %v14181_v9 = vld [vmem:[%s15187_s0 + $0x610] sm:$0xff]  ;;  %v11473_v54 = vld [vmem:[%s15186_s1 + $0x940] sm:$0xff]  }
 0x30c   :  { %10880 = vmatprep.subr.bf16.mxu0 %v11457_v45  ;;  %7682 = vmatmul.mubr.bf16.gmra.mrb[116].mxu1 %v8580_v59  ;;  %v8659_v18 = vcombine.high %v14176_v13, %v14181_v9  ;;  %v8661_v45 = vcombine.high %v14198_v31, %v14203_v22  ;;  %v11464_v60 = vld [vmem:[%s15186_s1 + $0x8b0] sm:$0xff]   ;;  %v8658_v61 = vcombine.low %v14176_v13, %v14181_v9 }
 0x30d   :  { %v10334_v0 = vpop.f32.mrb[12].mxu0  ;;  %v14186_v8 = vadd.f32 %v10427_v5, %v6999_v46  ;;  %7689 = vmatprep.mubr.bf16.mxu1 %v8621_v41  ;;  %10973 = vmatpush3.bf16.msra.mxu1 %v11456_v35  ;;  %v229_v51 = vld [vmem:[%s15187_s0 + $0x6b0] sm:$0xff] }
 0x30e   :  { %v10335_v11 = vpop.f32.mrb[13].mxu0  ;;  %10974 = vmatprep.subr.bf16.mxu1 %v11459_v36 }
 0x30f   :  { %v10336_v62 = vadd.f32 %v10335_v11, %v10334_v0  ;;  %v10337_v10 = vpop.f32.mrb[14].mxu0  ;;  %10881 = vmatpush3.bf16.msra.mxu0 %v11458_v29  ;;  %v10428_v23 = vpop.f32.mrb[12].mxu1  ;;  %v11472_v29 = vld [vmem:[%s15186_s1 + $0x8b8] sm:$0xff]  }
 0x310   :  { %v10338_v28 = vpop.f32.mrb[15].mxu0  ;;  %10882 = vmatprep.subr.bf16.mxu0 %v11461_v17  ;;  %v10429_v32 = vpop.f32.mrb[13].mxu1  ;;  %v230_v0 = vld [vmem:[%s15187_s0 + $0x6b8] sm:$0xff] }
 0x311   :  { %v7004_v15 = vadd.f32 %v10336_v62, %v13861_v53  ;;  %v10339_v4 = vadd.f32 %v10338_v28, %v10337_v10  ;;  %v10430_v48 = vadd.f32 %v10429_v32, %v10428_v23  ;;  %v10431_v3 = vpop.f32.mrb[14].mxu1  ;;  %10975 = vmatpush3.bf16.msra.mxu1 %v11460_v7  ;;  %v11466_v53 = vld [vmem:[%s15186_s1 + $0x838] sm:$0xff]   ;;  %v8660_v10 = vcombine.low %v14198_v31, %v14203_v22  ;;  %v289_v31 = vld [vmem:[%s15187_s0 + $0x890] sm:$0xff] }
 0x312   :  { %7554 = vmatmul.mubr.bf16.gmra.mrb[120].mxu0 %v8618_v14  ;;  %v10432_v55 = vpop.f32.mrb[15].mxu1  ;;  %10976 = vmatprep.subr.bf16.mxu1 %v11463_v16  ;;  %v250_v11 = vld [vmem:[%s15187_s0 + $0x758] sm:$0xff] }
 0x313   :  { %v7007_v25 = vadd.f32 %v10339_v4, %v13868_v47  ;;  %7561 = vmatprep.mubr.bf16.mxu0 %v8659_v18  ;;  %10883 = vmatpush3.bf16.msra.mxu0 %v11462_v20  ;;  %v14229_v24 = vadd.f32 %v10430_v48, %v7004_v15  ;;  %v10433_v59 = vadd.f32 %v10432_v55, %v10431_v3  ;;  %v249_v47 = vld [vmem:[%s15187_s0 + $0x750] sm:$0xff] }
 0x314   :  { %10884 = vmatprep.subr.bf16.mxu0 %v11465_v57  ;;  %7690 = vmatmul.mubr.bf16.gmra.mrb[120].mxu1 %v8620_v37  ;;  %v8699_v17 = vcombine.high %v229_v51, %v249_v47  ;;  %v8701_v23 = vcombine.high %v230_v0, %v250_v11  ;;  %v11507_v57 = vmov 0   ;;  %v269_v4 = vld [vmem:[%s15187_s0 + $0x7f0] sm:$0xff]  ;;  %v8698_v37 = vcombine.low %v229_v51, %v249_v47 }
 0x315   :  { %v10340_v41 = vpop.f32.mrb[16].mxu0  ;;  %v14240_v35 = vadd.f32 %v10433_v59, %v7007_v25  ;;  %7697 = vmatprep.mubr.bf16.mxu1 %v8661_v45  ;;  %10977 = vmatpush3.bf16.msra.mxu1 %v11464_v60  ;;  %v8739_v45 = vcombine.high %v269_v4, %v289_v31  ;;  %v270_v60 = vld [vmem:[%s15187_s0 + $0x7f8] sm:$0xff] }
 0x316   :  { %v10341_v46 = vpop.f32.mrb[17].mxu0  ;;  %10978 = vmatprep.subr.bf16.mxu1 %v11469_v38  ;;  %v290_v25 = vld [vmem:[%s15187_s0 + $0x898] sm:$0xff] }
 0x317   :  { %v10342_v36 = vadd.f32 %v10341_v46, %v10340_v41  ;;  %v10343_v5 = vpop.f32.mrb[18].mxu0  ;;  %10885 = vmatpush3.bf16.msra.mxu0 %v11466_v53  ;;  %v10434_v13 = vpop.f32.mrb[16].mxu1  ;;  %v8700_v41 = vcombine.low %v230_v0, %v250_v11  ;;  %v8741_v46 = vcombine.high %v270_v60, %v290_v25 }
 0x318   :  { %v10344_v9 = vpop.f32.mrb[19].mxu0  ;;  %11058 = vmatprep.subr.bf16.mxu0 %v11473_v54  ;;  %v10435_v62 = vpop.f32.mrb[17].mxu1 }
 0x319   :  { %v7012_v14 = vadd.f32 %v10342_v36, %v13889_v30  ;;  %v10345_v7 = vadd.f32 %v10344_v9, %v10343_v5  ;;  %v10436_v18 = vadd.f32 %v10435_v62, %v10434_v13  ;;  %v10437_v20 = vpop.f32.mrb[18].mxu1  ;;  %10979 = vmatpush3.bf16.msra.mxu1 %v11472_v29  ;;  %v8738_v9 = vcombine.low %v269_v4, %v289_v31  ;;  %v310_v62 = vld [vmem:[%s15187_s0 + $0x938] sm:$0xff] }
 0x31a   :  { %7562 = vmatmul.mubr.bf16.gmra.mrb[124].mxu0 %v8658_v61  ;;  %v10438_v16 = vpop.f32.mrb[19].mxu1  ;;  %8177 = vmatprep.subr.bf16.mxu1 %v11507_v57 }
 0x31b   :  { %v7015_v28 = vadd.f32 %v10345_v7, %v13891_v44  ;;  %7569 = vmatprep.mubr.bf16.mxu0 %v8699_v17  ;;  %v14258_v15 = vadd.f32 %v10436_v18, %v7012_v14  ;;  %v10439_v30 = vadd.f32 %v10438_v16, %v10437_v20  ;;  %v309_v17 = vld [vmem:[%s15187_s0 + $0x930] sm:$0xff] }
 0x31c   :  { %7698 = vmatmul.mubr.bf16.gmra.mrb[124].mxu1 %v8660_v10  ;;  %v330_v10 = vld [vmem:[%s15187_s0 + $0x9d8] sm:$0xff] }
 0x31d   :  { %v10346_v22 = vpop.f32.mrb[20].mxu0  ;;  %v14266_v32 = vadd.f32 %v10439_v30, %v7015_v28  ;;  %7705 = vmatprep.mubr.bf16.mxu1 %v8701_v23  ;;  %v8740_v30 = vcombine.low %v270_v60, %v290_v25 }
 0x31e   :  { %v10347_v44 = vpop.f32.mrb[21].mxu0 }
 0x31f   :  { %v10348_v48 = vadd.f32 %v10347_v44, %v10346_v22  ;;  %v10349_v3 = vpop.f32.mrb[22].mxu0  ;;  %v10440_v55 = vpop.f32.mrb[20].mxu1  ;;  %v8781_v22 = vcombine.high %v310_v62, %v330_v10 }
 0x320   :  { %v10350_v53 = vpop.f32.mrb[23].mxu0  ;;  %v10441_v54 = vpop.f32.mrb[21].mxu1 }
 0x321   :  { %v7020_v38 = vadd.f32 %v10348_v48, %v13907_v6  ;;  %v10351_v59 = vadd.f32 %v10350_v53, %v10349_v3  ;;  %v10442_v51 = vadd.f32 %v10441_v54, %v10440_v55  ;;  %v10443_v47 = vpop.f32.mrb[22].mxu1  ;;  %v329_v6 = vld [vmem:[%s15187_s0 + $0x9d0] sm:$0xff]  ;;  %v350_v54 = vld [vmem:[%s15187_s0 + $0xa78] sm:$0xff] }
 0x322   :  { %7570 = vmatmul.mubr.bf16.gmra.mrb[128].mxu0 %v8698_v37  ;;  %v10444_v29 = vpop.f32.mrb[23].mxu1  ;;  %v8779_v7 = vcombine.high %v309_v17, %v329_v6  ;;  %v8778_v53 = vcombine.low %v309_v17, %v329_v6 }
 0x323   :  { %v7023_v61 = vadd.f32 %v10351_v59, %v13909_v12  ;;  %7577 = vmatprep.mubr.bf16.mxu0 %v8739_v45  ;;  %v14276_v36 = vadd.f32 %v10442_v51, %v7020_v38  ;;  %v10445_v5 = vadd.f32 %v10444_v29, %v10443_v47  ;;  %v349_v45 = vld [vmem:[%s15187_s0 + $0xa70] sm:$0xff] }
 0x324   :  { %7706 = vmatmul.mubr.bf16.gmra.mrb[128].mxu1 %v8700_v41  ;;  %v370_v41 = vld [vmem:[%s15187_s0 + $0xb18] sm:$0xff] }
 0x325   :  { %v10352_v0 = vpop.f32.mrb[24].mxu0  ;;  %v14284_v11 = vadd.f32 %v10445_v5, %v7023_v61  ;;  %7713 = vmatprep.mubr.bf16.mxu1 %v8741_v46  ;;  %v8780_v5 = vcombine.low %v310_v62, %v330_v10 }
 0x326   :  { %v10353_v13 = vpop.f32.mrb[25].mxu0 }
 0x327   :  { %v10354_v12 = vadd.f32 %v10353_v13, %v10352_v0  ;;  %v10355_v14 = vpop.f32.mrb[26].mxu0  ;;  %v10446_v18 = vpop.f32.mrb[24].mxu1  ;;  %v8821_v0 = vcombine.high %v350_v54, %v370_v41 }
 0x328   :  { %v10356_v20 = vpop.f32.mrb[27].mxu0  ;;  %v10447_v16 = vpop.f32.mrb[25].mxu1 }
 0x329   :  { %v7028_v23 = vadd.f32 %v10354_v12, %v13925_v49  ;;  %v10357_v28 = vadd.f32 %v10356_v20, %v10355_v14  ;;  %v10448_v4 = vadd.f32 %v10447_v16, %v10446_v18  ;;  %v10449_v31 = vpop.f32.mrb[26].mxu1  ;;  %v369_v49 = vld [vmem:[%s15187_s0 + $0xb10] sm:$0xff]  ;;  %v390_v16 = vld [vmem:[%s15187_s0 + $0xbb8] sm:$0xff] }
 0x32a   :  { %7578 = vmatmul.mubr.bf16.gmra.mrb[132].mxu0 %v8738_v9  ;;  %v10450_v37 = vpop.f32.mrb[27].mxu1  ;;  %v8819_v59 = vcombine.high %v349_v45, %v369_v49  ;;  %v8818_v20 = vcombine.low %v349_v45, %v369_v49 }
 0x32b   :  { %v7031_v44 = vadd.f32 %v10357_v28, %v13927_v26  ;;  %7585 = vmatprep.mubr.bf16.mxu0 %v8779_v7  ;;  %v14294_v48 = vadd.f32 %v10448_v4, %v7028_v23  ;;  %v10451_v3 = vadd.f32 %v10450_v37, %v10449_v31  ;;  %v389_v7 = vld [vmem:[%s15187_s0 + $0xbb0] sm:$0xff] }
 0x32c   :  { %7714 = vmatmul.mubr.bf16.gmra.mrb[132].mxu1 %v8740_v30  ;;  %v410_v30 = vld [vmem:[%s15187_s0 + $0xc58] sm:$0xff] }
 0x32d   :  { %v10358_v60 = vpop.f32.mrb[28].mxu0  ;;  %v14302_v25 = vadd.f32 %v10451_v3, %v7031_v44  ;;  %7721 = vmatprep.mubr.bf16.mxu1 %v8781_v22  ;;  %v8820_v3 = vcombine.low %v350_v54, %v370_v41 }
 0x32e   :  { %v10359_v55 = vpop.f32.mrb[29].mxu0 }
 0x32f   :  { %v10360_v26 = vadd.f32 %v10359_v55, %v10358_v60  ;;  %v10361_v38 = vpop.f32.mrb[30].mxu0  ;;  %v10452_v51 = vpop.f32.mrb[28].mxu1  ;;  %v8861_v60 = vcombine.high %v390_v16, %v410_v30 }
 0x330   :  { %v10362_v47 = vpop.f32.mrb[31].mxu0  ;;  %v10453_v29 = vpop.f32.mrb[29].mxu1 }
 0x331   :  { %v7036_v46 = vadd.f32 %v10360_v26, %v13943_v19  ;;  %v10363_v61 = vadd.f32 %v10362_v47, %v10361_v38  ;;  %v10454_v17 = vadd.f32 %v10453_v29, %v10452_v51  ;;  %v10455_v6 = vpop.f32.mrb[30].mxu1  ;;  %v409_v19 = vld [vmem:[%s15187_s0 + $0xc50] sm:$0xff]  ;;  %v430_v29 = vld [vmem:[%s15187_s0 + $0xcf8] sm:$0xff] }
 0x332   :  { %7586 = vmatmul.mubr.bf16.gmra.mrb[136].mxu0 %v8778_v53  ;;  %v10456_v9 = vpop.f32.mrb[31].mxu1  ;;  %v8859_v28 = vcombine.high %v389_v7, %v409_v19  ;;  %v8858_v47 = vcombine.low %v389_v7, %v409_v19 }
 0x333   :  { %v7039_v13 = vadd.f32 %v10363_v61, %v13945_v27  ;;  %7593 = vmatprep.mubr.bf16.mxu0 %v8819_v59  ;;  %v14312_v12 = vadd.f32 %v10454_v17, %v7036_v46  ;;  %v10457_v14 = vadd.f32 %v10456_v9, %v10455_v6  ;;  %v429_v59 = vld [vmem:[%s15187_s0 + $0xcf0] sm:$0xff] }
 0x334   :  { %7722 = vmatmul.mubr.bf16.gmra.mrb[136].mxu1 %v8780_v5  ;;  %v450_v5 = vld [vmem:[%s15187_s0 + $0xd98] sm:$0xff] }
 0x335   :  { %v10364_v62 = vpop.f32.mrb[32].mxu0  ;;  %v14320_v10 = vadd.f32 %v10457_v14, %v7039_v13  ;;  %7729 = vmatprep.mubr.bf16.mxu1 %v8821_v0  ;;  %v8860_v14 = vcombine.low %v390_v16, %v410_v30 }
 0x336   :  { %v10365_v18 = vpop.f32.mrb[33].mxu0 }
 0x337   :  { %v10366_v27 = vadd.f32 %v10365_v18, %v10364_v62  ;;  %v10367_v23 = vpop.f32.mrb[34].mxu0  ;;  %v10458_v4 = vpop.f32.mrb[32].mxu1  ;;  %v8901_v62 = vcombine.high %v430_v29, %v450_v5 }
 0x338   :  { %v10368_v31 = vpop.f32.mrb[35].mxu0  ;;  %v10459_v37 = vpop.f32.mrb[33].mxu1 }
 0x339   :  { %v7044_v22 = vadd.f32 %v10366_v27, %v13961_v42  ;;  %v10369_v44 = vadd.f32 %v10368_v31, %v10367_v23  ;;  %v10460_v45 = vadd.f32 %v10459_v37, %v10458_v4  ;;  %v10461_v49 = vpop.f32.mrb[34].mxu1  ;;  %v449_v42 = vld [vmem:[%s15187_s0 + $0xd90] sm:$0xff]  ;;  %v470_v37 = vld [vmem:[%s15187_s0 + $0xe38] sm:$0xff] }
 0x33a   :  { %7594 = vmatmul.mubr.bf16.gmra.mrb[140].mxu0 %v8818_v20  ;;  %v10462_v53 = vpop.f32.mrb[35].mxu1  ;;  %v8899_v61 = vcombine.high %v429_v59, %v449_v42  ;;  %v8898_v31 = vcombine.low %v429_v59, %v449_v42 }
 0x33b   :  { %v7047_v55 = vadd.f32 %v10369_v44, %v13963_v58  ;;  %7601 = vmatprep.mubr.bf16.mxu0 %v8859_v28  ;;  %v14330_v26 = vadd.f32 %v10460_v45, %v7044_v22  ;;  %v10463_v38 = vadd.f32 %v10462_v53, %v10461_v49  ;;  %v469_v28 = vld [vmem:[%s15187_s0 + $0xe30] sm:$0xff] }
 0x33c   :  { %7730 = vmatmul.mubr.bf16.gmra.mrb[140].mxu1 %v8820_v3  ;;  %v490_v3 = vld [vmem:[%s15187_s0 + $0xed8] sm:$0xff] }
 0x33d   :  { %v10370_v54 = vpop.f32.mrb[36].mxu0  ;;  %v14338_v41 = vadd.f32 %v10463_v38, %v7047_v55  ;;  %7737 = vmatprep.mubr.bf16.mxu1 %v8861_v60  ;;  %v8900_v38 = vcombine.low %v430_v29, %v450_v5 }
 0x33e   :  { %v10371_v51 = vpop.f32.mrb[37].mxu0 }
 0x33f   :  { %v10372_v58 = vadd.f32 %v10371_v51, %v10370_v54  ;;  %v10373_v46 = vpop.f32.mrb[38].mxu0  ;;  %v10464_v17 = vpop.f32.mrb[36].mxu1  ;;  %v8941_v54 = vcombine.high %v470_v37, %v490_v3 }
 0x340   :  { %v10374_v6 = vpop.f32.mrb[39].mxu0  ;;  %v10465_v9 = vpop.f32.mrb[37].mxu1 }
 0x341   :  { %v7052_v0 = vadd.f32 %v10372_v58, %v13979_v40  ;;  %v10375_v13 = vadd.f32 %v10374_v6, %v10373_v46  ;;  %v10466_v7 = vadd.f32 %v10465_v9, %v10464_v17  ;;  %v10467_v19 = vpop.f32.mrb[38].mxu1  ;;  %v489_v40 = vld [vmem:[%s15187_s0 + $0xed0] sm:$0xff] }
 0x342   :  { %7602 = vmatmul.mubr.bf16.gmra.mrb[144].mxu0 %v8858_v47  ;;  %v10468_v20 = vpop.f32.mrb[39].mxu1  ;;  %v8939_v44 = vcombine.high %v469_v28, %v489_v40  ;;  %v8938_v5 = vcombine.low %v469_v28, %v489_v40 }
 0x343   :  { %v7055_v18 = vadd.f32 %v10375_v13, %v13981_v39  ;;  %7609 = vmatprep.mubr.bf16.mxu0 %v8899_v61  ;;  %v14348_v27 = vadd.f32 %v10466_v7, %v7052_v0  ;;  %v10469_v23 = vadd.f32 %v10468_v20, %v10467_v19  ;;  %v509_v61 = vld [vmem:[%s15187_s0 + $0xf70] sm:$0xff] }
 0x344   :  { %7738 = vmatmul.mubr.bf16.gmra.mrb[144].mxu1 %v8860_v14  ;;  %v8979_v13 = vcombine.high %v509_v61, %v509_v61 }
 0x345   :  { %v10376_v16 = vpop.f32.mrb[40].mxu0  ;;  %v14356_v30 = vadd.f32 %v10469_v23, %v7055_v18  ;;  %7745 = vmatprep.mubr.bf16.mxu1 %v8901_v62  ;;  %v8940_v18 = vcombine.low %v470_v37, %v490_v3  ;;  %v8978_v3 = vcombine.low %v509_v61, %v509_v61 }
 0x346   :  { %v10377_v4 = vpop.f32.mrb[41].mxu0 }
 0x347   :  { %v10378_v39 = vadd.f32 %v10377_v4, %v10376_v16  ;;  %v10379_v22 = vpop.f32.mrb[42].mxu0  ;;  %v10470_v45 = vpop.f32.mrb[40].mxu1 }
 0x348   :  { %v10380_v49 = vpop.f32.mrb[43].mxu0  ;;  %v10471_v53 = vpop.f32.mrb[41].mxu1 }
 0x349   :  { %v7060_v60 = vadd.f32 %v10378_v39, %v13994_v34  ;;  %v10381_v55 = vadd.f32 %v10380_v49, %v10379_v22  ;;  %v10472_v59 = vadd.f32 %v10471_v53, %v10470_v45  ;;  %v10473_v42 = vpop.f32.mrb[42].mxu1  ;;  %v31_v39 = vld [vmem:[%s15187_s0 + $0x80] sm:$0xff] }
 0x34a   :  { %7610 = vmatmul.mubr.bf16.gmra.mrb[148].mxu0 %v8898_v31  ;;  %v10474_v47 = vpop.f32.mrb[43].mxu1 }
 0x34b   :  { %v7063_v51 = vadd.f32 %v10381_v55, %v13996_v2  ;;  %7617 = vmatprep.mubr.bf16.mxu0 %v8939_v44  ;;  %v14366_v58 = vadd.f32 %v10472_v59, %v7060_v60  ;;  %v10475_v46 = vadd.f32 %v10474_v47, %v10473_v42  ;;  %v510_v2 = vld [vmem:[%s15187_s0 + $0xf78] sm:$0xff]  ;;  %v32_v60 = vld [vmem:[%s15187_s0 + $0x88] sm:$0xff] }
 0x34c   :  { %7746 = vmatmul.mubr.bf16.gmra.mrb[148].mxu1 %v8900_v38  ;;  %v8981_v16 = vcombine.high %v510_v2, %v510_v2  ;;  %v52_v55 = vld [vmem:[%s15187_s0 + $0x128] sm:$0xff] }
 0x34d   :  { %v10382_v34 = vpop.f32.mrb[44].mxu0  ;;  %v14371_v17 = vadd.f32 %v10475_v46, %v7063_v51  ;;  %7753 = vmatprep.mubr.bf16.mxu1 %v8941_v54  ;;  %v8980_v51 = vcombine.low %v510_v2, %v510_v2  ;;  %v8505_v61 = vcombine.high %v32_v60, %v52_v55 }
 0x34e   :  { %v10383_v29 = vpop.f32.mrb[45].mxu0 }
 0x34f   :  { %v10384_v6 = vadd.f32 %v10383_v29, %v10382_v34  ;;  %v10385_v0 = vpop.f32.mrb[46].mxu0  ;;  %v10476_v9 = vpop.f32.mrb[44].mxu1 }
 0x350   :  { %v10386_v14 = vpop.f32.mrb[47].mxu0  ;;  %v10477_v62 = vpop.f32.mrb[45].mxu1 }
 0x351   :  { %v7068_v7 = vadd.f32 %v10384_v6, %v14009_v21  ;;  %v10387_v19 = vadd.f32 %v10386_v14, %v10385_v0  ;;  %v10478_v20 = vadd.f32 %v10477_v62, %v10476_v9  ;;  %v10479_v23 = vpop.f32.mrb[46].mxu1  ;;  %v51_v21 = vld [vmem:[%s15187_s0 + $0x120] sm:$0xff] }
 0x352   :  { %7618 = vmatmul.mubr.bf16.gmra.mrb[152].mxu0 %v8938_v5  ;;  %v10480_v40 = vpop.f32.mrb[47].mxu1  ;;  %v8503_v49 = vcombine.high %v31_v39, %v51_v21  ;;  %v71_v0 = vld [vmem:[%s15187_s0 + $0x1c0] sm:$0xff]  ;;  %v8502_v14 = vcombine.low %v31_v39, %v51_v21  ;;  %v8504_v39 = vcombine.low %v32_v60, %v52_v55  ;;  %v11479_v55 = vld [vmem:[%s15186_s1 + $0x950] sm:$0xff]  }
 0x353   :  { %v7071_v28 = vadd.f32 %v10387_v19, %v14011_v43  ;;  %7625 = vmatprep.mubr.bf16.mxu0 %v8979_v13  ;;  %v14378_v4 = vadd.f32 %v10478_v20, %v7068_v7  ;;  %v10481_v31 = vadd.f32 %v10480_v40, %v10479_v23  ;;  %v11474_v19 = vld [vmem:[%s15186_s1 + $0x900] sm:$0xff]   ;;  %v92_v20 = vld [vmem:[%s15187_s0 + $0x268] sm:$0xff] }
 0x354   :  { %7754 = vmatmul.mubr.bf16.gmra.mrb[152].mxu1 %v8940_v18  ;;  %v14412_v18 = vld [vmem:[%s15187_s0 + $0x1c8] sm:$0xff]  ;;  %v14438_v60 = vld [vmem:[%s15187_s0 + $0x3a0] sm:$0xff] }
 0x355   :  { %v10388_v22 = vpop.f32.mrb[48].mxu0  ;;  %v14386_v44 = vadd.f32 %v10481_v31, %v7071_v28  ;;  %7761 = vmatprep.mubr.bf16.mxu1 %v8981_v16  ;;  %v11476_v28 = vld [vmem:[%s15186_s1 + $0x948] sm:$0xff]  }
 0x356   :  { %v10389_v37 = vpop.f32.mrb[49].mxu0 }
 0x357   :  { %v10390_v43 = vadd.f32 %v10389_v37, %v10388_v22  ;;  %v10391_v45 = vpop.f32.mrb[50].mxu0  ;;  %v10482_v53 = vpop.f32.mrb[48].mxu1  ;;  %v11475_v37 = vld [vmem:[%s15186_s1 + $0x980] sm:$0xff]  }
 0x358   :  { %v10392_v38 = vpop.f32.mrb[51].mxu0  ;;  %v10483_v54 = vpop.f32.mrb[49].mxu1 }
 0x359   :  { %v7076_v59 = vadd.f32 %v10390_v43, %v14027_v56  ;;  %v10393_v42 = vadd.f32 %v10392_v38, %v10391_v45  ;;  %v10484_v47 = vadd.f32 %v10483_v54, %v10482_v53  ;;  %v10485_v46 = vpop.f32.mrb[50].mxu1  ;;  %v91_v56 = vld [vmem:[%s15187_s0 + $0x260] sm:$0xff]  ;;  %v11477_v45 = vld [vmem:[%s15186_s1 + $0x908] sm:$0xff]  }
 0x35a   :  { %7626 = vmatmul.mubr.bf16.gmra.mrb[156].mxu0 %v8978_v3  ;;  %v10486_v29 = vpop.f32.mrb[51].mxu1  ;;  %v8543_v62 = vcombine.high %v71_v0, %v91_v56  ;;  %v8545_v3 = vcombine.high %v14412_v18, %v92_v20 }
 0x35b   :  { %v7079_v34 = vadd.f32 %v10393_v42, %v14029_v1  ;;  %7801 = vmatprep.mubr.bf16.mxu0 %v8503_v49  ;;  %v14396_v5 = vadd.f32 %v10484_v47, %v7076_v59  ;;  %v10487_v6 = vadd.f32 %v10486_v29, %v10485_v46  ;;  %v8542_v59 = vcombine.low %v71_v0, %v91_v56  ;;  %v11478_v42 = vld [vmem:[%s15186_s1 + $0x988] sm:$0xff]   ;;  %v11482_v0 = vld [vmem:[%s15186_s1 + $0x958] sm:$0xff]  }
 0x35c   :  { %7762 = vmatmul.mubr.bf16.gmra.mrb[156].mxu1 %v8980_v51  ;;  %v14451_v46 = vld [vmem:[%s15187_s0 + $0x308] sm:$0xff] }
 0x35d   :  { %v10394_v13 = vpop.f32.mrb[52].mxu0  ;;  %v14404_v2 = vadd.f32 %v10487_v6, %v7079_v34  ;;  %7937 = vmatprep.mubr.bf16.mxu1 %v8505_v61  ;;  %v14456_v61 = vld [vmem:[%s15187_s0 + $0x3a8] sm:$0xff]  ;;  %v11480_v34 = vld [vmem:[%s15186_s1 + $0x910] sm:$0xff]  }
 0x35e   :  { %v10395_v9 = vpop.f32.mrb[53].mxu0 }
 0x35f   :  { %v10396_v1 = vadd.f32 %v10395_v9, %v10394_v13  ;;  %v10397_v7 = vpop.f32.mrb[54].mxu0  ;;  %v10488_v23 = vpop.f32.mrb[52].mxu1 }
 0x360   :  { %v10398_v16 = vpop.f32.mrb[55].mxu0  ;;  %v10489_v31 = vpop.f32.mrb[53].mxu1 }
 0x361   :  { %v7084_v40 = vadd.f32 %v10396_v1, %v14072_v52  ;;  %v10490_v21 = vadd.f32 %v10489_v31, %v10488_v23  ;;  %v10491_v22 = vpop.f32.mrb[54].mxu1  ;;  %v14433_v52 = vld [vmem:[%s15187_s0 + $0x300] sm:$0xff] }
 0x362   :  { %7802 = vmatmul.mubr.bf16.vlgmr.msra.gmra.mrb[160].mxu0 %v8502_v14  ;;  %v10492_v43 = vpop.f32.mrb[55].mxu1  ;;  %v8583_v47 = vcombine.high %v14433_v52, %v14438_v60  ;;  %v8544_v14 = vcombine.low %v14412_v18, %v92_v20  ;;  %v8582_v22 = vcombine.low %v14433_v52, %v14438_v60  ;;  %v14509_v52 = vld [vmem:[%s15187_s0 + $0x4e8] sm:$0xff] }
 0x363   :  { %11059 = vmatpush3.bf16.msra.mxu0 %v11474_v19  ;;  %7809 = vmatprep.mubr.bf16.mxu0 %v8543_v62  ;;  %v14428_v49 = vadd.f32 %v10490_v21, %v7084_v40  ;;  %v8585_v19 = vcombine.high %v14451_v46, %v14456_v61  ;;  %v11481_v62 = vld [vmem:[%s15186_s1 + $0x990] sm:$0xff]   ;;  %v14486_v40 = vld [vmem:[%s15187_s0 + $0x4e0] sm:$0xff] }
 0x364   :  { %11060 = vmatprep.subr.bf16.mxu0 %v11476_v28  ;;  %7938 = vmatmul.mubr.bf16.vlgmr.msra.gmra.mrb[160].mxu1 %v8504_v39  ;;  %v14481_v28 = vld [vmem:[%s15187_s0 + $0x440] sm:$0xff] }
 0x365   :  { %v10510_v53 = vpop.f32.mrb[56].mxu0  ;;  %8178 = vmatpush1.bf16.msra.mxu1 %v11475_v37  ;;  %7945 = vmatprep.mubr.bf16.mxu1 %v8545_v3  ;;  %v11484_v37 = vld [vmem:[%s15186_s1 + $0x998] sm:$0xff]  }
 0x366   :  { %v10511_v38 = vpop.f32.mrb[57].mxu0  ;;  %8179 = vmatprep.subr.bf16.mxu1 %v11507_v57 }
 0x367   :  { %v10512_v54 = vadd.f32 %v10511_v38, %v10510_v53  ;;  %v10513_v51 = vpop.f32.mrb[58].mxu0  ;;  %11061 = vmatpush3.bf16.msra.mxu0 %v11477_v45  ;;  %v10604_v29 = vpop.f32.mrb[56].mxu1  ;;  %v8623_v45 = vcombine.high %v14481_v28, %v14486_v40  ;;  %v11486_v38 = vld [vmem:[%s15186_s1 + $0x920] sm:$0xff]  }
 0x368   :  { %v10514_v6 = vpop.f32.mrb[59].mxu0  ;;  %11062 = vmatprep.subr.bf16.mxu0 %v11479_v55  ;;  %v10605_v9 = vpop.f32.mrb[57].mxu1  ;;  %v14504_v55 = vld [vmem:[%s15187_s0 + $0x448] sm:$0xff] }
 0x369   :  { %v7260_v56 = vadd.f32 %v10512_v54, %v14126_v63  ;;  %v10515_v13 = vadd.f32 %v10514_v6, %v10513_v51  ;;  %v10606_v1 = vadd.f32 %v10605_v9, %v10604_v29  ;;  %v10607_v7 = vpop.f32.mrb[58].mxu1  ;;  %8180 = vmatpush1.bf16.msra.mxu1 %v11478_v42  ;;  %v11483_v63 = vld [vmem:[%s15186_s1 + $0x918] sm:$0xff]   ;;  %v8584_v51 = vcombine.low %v14451_v46, %v14456_v61  ;;  %v14538_v9 = vld [vmem:[%s15187_s0 + $0x620] sm:$0xff] }
 0x36a   :  { %7810 = vmatmul.mubr.bf16.gmra.mrb[164].mxu0 %v8542_v59  ;;  %v10608_v16 = vpop.f32.mrb[59].mxu1  ;;  %8181 = vmatprep.subr.bf16.mxu1 %v11507_v57  ;;  %v8625_v6 = vcombine.high %v14504_v55, %v14509_v52 }
 0x36b   :  { %v7263_v23 = vadd.f32 %v10515_v13, %v14133_v33  ;;  %7817 = vmatprep.mubr.bf16.mxu0 %v8583_v47  ;;  %11063 = vmatpush3.bf16.msra.mxu0 %v11480_v34  ;;  %v14476_v18 = vadd.f32 %v10606_v1, %v7260_v56  ;;  %v10609_v20 = vadd.f32 %v10608_v16, %v10607_v7  ;;  %v11485_v33 = vld [vmem:[%s15186_s1 + $0x960] sm:$0xff]   ;;  %v11489_v47 = vld [vmem:[%s15186_s1 + $0x968] sm:$0xff]   ;;  %v11492_v1 = vld [vmem:[%s15186_s1 + $0x970] sm:$0xff]  }
 0x36c   :  { %11064 = vmatprep.subr.bf16.mxu0 %v11482_v0  ;;  %7946 = vmatmul.mubr.bf16.gmra.mrb[164].mxu1 %v8544_v14  ;;  %v14533_v13 = vld [vmem:[%s15187_s0 + $0x580] sm:$0xff] }
 0x36d   :  { %v10516_v31 = vpop.f32.mrb[60].mxu0  ;;  %v14492_v39 = vadd.f32 %v10609_v20, %v7263_v23  ;;  %7953 = vmatprep.mubr.bf16.mxu1 %v8585_v19  ;;  %8182 = vmatpush1.bf16.msra.mxu1 %v11481_v62  ;;  %v8622_v62 = vcombine.low %v14481_v28, %v14486_v40  ;;  %v11488_v23 = vld [vmem:[%s15186_s1 + $0x9a8] sm:$0xff]   ;;  %v8663_v20 = vcombine.high %v14533_v13, %v14538_v9 }
 0x36e   :  { %v10517_v21 = vpop.f32.mrb[61].mxu0  ;;  %8183 = vmatprep.subr.bf16.mxu1 %v11507_v57  ;;  %v14563_v28 = vld [vmem:[%s15187_s0 + $0x628] sm:$0xff] }
 0x36f   :  { %v10518_v3 = vadd.f32 %v10517_v21, %v10516_v31  ;;  %v10519_v43 = vpop.f32.mrb[62].mxu0  ;;  %11065 = vmatpush3.bf16.msra.mxu0 %v11483_v63  ;;  %v10610_v60 = vpop.f32.mrb[60].mxu1  ;;  %v11493_v21 = vld [vmem:[%s15186_s1 + $0x930] sm:$0xff]  }
 0x370   :  { %v10520_v53 = vpop.f32.mrb[63].mxu0  ;;  %11066 = vmatprep.subr.bf16.mxu0 %v11485_v33  ;;  %v10611_v54 = vpop.f32.mrb[61].mxu1  ;;  %v14558_v33 = vld [vmem:[%s15187_s0 + $0x588] sm:$0xff] }
 0x371   :  { %v7268_v59 = vadd.f32 %v10518_v3, %v14171_v50  ;;  %v10521_v42 = vadd.f32 %v10520_v53, %v10519_v43  ;;  %v10612_v34 = vadd.f32 %v10611_v54, %v10610_v60  ;;  %v10613_v29 = vpop.f32.mrb[62].mxu1  ;;  %8184 = vmatpush1.bf16.msra.mxu1 %v11484_v37  ;;  %v11487_v50 = vld [vmem:[%s15186_s1 + $0x9a0] sm:$0xff]   ;;  %v8624_v43 = vcombine.low %v14504_v55, %v14509_v52 }
 0x372   :  { %7818 = vmatmul.mubr.bf16.gmra.mrb[168].mxu0 %v8582_v22  ;;  %v10614_v56 = vpop.f32.mrb[63].mxu1  ;;  %8185 = vmatprep.subr.bf16.mxu1 %v11507_v57  ;;  %v231_v54 = vld [vmem:[%s15187_s0 + $0x6c0] sm:$0xff] }
 0x373   :  { %v7271_v0 = vadd.f32 %v10521_v42, %v14186_v8  ;;  %7825 = vmatprep.mubr.bf16.mxu0 %v8623_v45  ;;  %v14528_v46 = vadd.f32 %v10612_v34, %v7268_v59  ;;  %v10615_v61 = vadd.f32 %v10614_v56, %v10613_v29  ;;  %11067 = vmatpush3.bf16.msra.mxu0 %v11486_v38  ;;  %v11490_v8 = vld [vmem:[%s15186_s1 + $0x928] sm:$0xff]   ;;  %v11495_v45 = vld [vmem:[%s15186_s1 + $0x978] sm:$0xff]  }
 0x374   :  { %7954 = vmatmul.mubr.bf16.gmra.mrb[168].mxu1 %v8584_v51  ;;  %11068 = vmatprep.subr.bf16.mxu0 %v11489_v47  ;;  %v8665_v38 = vcombine.high %v14558_v33, %v14563_v28  ;;  %v251_v51 = vld [vmem:[%s15187_s0 + $0x760] sm:$0xff] }
 0x375   :  { %v10522_v14 = vpop.f32.mrb[64].mxu0  ;;  %v14546_v7 = vadd.f32 %v10615_v61, %v7271_v0  ;;  %7961 = vmatprep.mubr.bf16.mxu1 %v8625_v6  ;;  %8186 = vmatpush1.bf16.msra.mxu1 %v11487_v50  ;;  %v8662_v6 = vcombine.low %v14533_v13, %v14538_v9  ;;  %v11494_v50 = vld [vmem:[%s15186_s1 + $0x9b8] sm:$0xff]   ;;  %v8703_v61 = vcombine.high %v231_v54, %v251_v51  ;;  %v11501_v13 = vld [vmem:[%s15186_s1 + $0x9c0] ss:$0 sps:$4 sm:$0xff]  }
 0x376   :  { %v10523_v19 = vpop.f32.mrb[65].mxu0  ;;  %8187 = vmatprep.subr.bf16.mxu1 %v11507_v57 }
 0x377   :  { %v10524_v16 = vadd.f32 %v10523_v19, %v10522_v14  ;;  %v10525_v63 = vpop.f32.mrb[66].mxu0  ;;  %v10616_v40 = vpop.f32.mrb[64].mxu1  ;;  %11069 = vmatpush3.bf16.msra.mxu0 %v11490_v8  ;;  %v232_v8 = vld [vmem:[%s15187_s0 + $0x6c8] sm:$0xff] }
 0x378   :  { %v10526_v31 = vpop.f32.mrb[67].mxu0  ;;  %v10617_v3 = vpop.f32.mrb[65].mxu1  ;;  %11070 = vmatprep.subr.bf16.mxu0 %v11492_v1  ;;  %v252_v14 = vld [vmem:[%s15187_s0 + $0x768] sm:$0xff] }
 0x379   :  { %v7276_v22 = vadd.f32 %v10524_v16, %v14229_v24  ;;  %v10527_v37 = vadd.f32 %v10526_v31, %v10525_v63  ;;  %v10618_v60 = vadd.f32 %v10617_v3, %v10616_v40  ;;  %v10619_v53 = vpop.f32.mrb[66].mxu1  ;;  %8188 = vmatpush1.bf16.msra.mxu1 %v11488_v23  ;;  %v11491_v24 = vld [vmem:[%s15186_s1 + $0x9b0] sm:$0xff]   ;;  %v8664_v16 = vcombine.low %v14558_v33, %v14563_v28  ;;  %v271_v3 = vld [vmem:[%s15187_s0 + $0x800] sm:$0xff] }
 0x37a   :  { %7826 = vmatmul.mubr.bf16.gmra.mrb[172].mxu0 %v8622_v62  ;;  %v10620_v42 = vpop.f32.mrb[67].mxu1  ;;  %8189 = vmatprep.subr.bf16.mxu1 %v11507_v57  ;;  %v8705_v40 = vcombine.high %v232_v8, %v252_v14  ;;  %v291_v33 = vld [vmem:[%s15187_s0 + $0x8a0] sm:$0xff] }
 0x37b   :  { %v7279_v59 = vadd.f32 %v10527_v37, %v14240_v35  ;;  %7833 = vmatprep.mubr.bf16.mxu0 %v8663_v20  ;;  %v14582_v55 = vadd.f32 %v10618_v60, %v7276_v22  ;;  %v10621_v52 = vadd.f32 %v10620_v42, %v10619_v53  ;;  %11071 = vmatpush3.bf16.msra.mxu0 %v11493_v21  ;;  %v11496_v35 = vld [vmem:[%s15186_s1 + $0x938] sm:$0xff]   ;;  %v5591_v22 = vsel %vm5589_vm0, %v11501_v13, 0  ;;  %v311_v13 = vld [vmem:[%s15187_s0 + $0x940] sm:$0xff] }
 0x37c   :  { %7962 = vmatmul.mubr.bf16.gmra.mrb[172].mxu1 %v8624_v43  ;;  %11072 = vmatprep.subr.bf16.mxu0 %v11495_v45  ;;  %v8702_v45 = vcombine.low %v231_v54, %v251_v51  ;;  %v8743_v53 = vcombine.high %v271_v3, %v291_v33  ;;  %v8704_v54 = vcombine.low %v232_v8, %v252_v14 }
 0x37d   :  { %v10528_v47 = vpop.f32.mrb[68].mxu0  ;;  %v14593_v34 = vadd.f32 %v10621_v52, %v7279_v59  ;;  %7969 = vmatprep.mubr.bf16.mxu1 %v8665_v38  ;;  %8190 = vmatpush1.bf16.msra.mxu1 %v11491_v24  ;;  %v272_v38 = vld [vmem:[%s15187_s0 + $0x808] sm:$0xff] }
 0x37e   :  { %v10529_v29 = vpop.f32.mrb[69].mxu0  ;;  %8191 = vmatprep.subr.bf16.mxu1 %v11507_v57  ;;  %v292_v24 = vld [vmem:[%s15187_s0 + $0x8a8] sm:$0xff] }
 0x37f   :  { %v10530_v0 = vadd.f32 %v10529_v29, %v10528_v47  ;;  %v10531_v56 = vpop.f32.mrb[70].mxu0  ;;  %v10622_v9 = vpop.f32.mrb[68].mxu1  ;;  %11073 = vmatpush3.bf16.msra.mxu0 %v11496_v35 }
 0x380   :  { %v10532_v1 = vpop.f32.mrb[71].mxu0  ;;  %v10623_v23 = vpop.f32.mrb[69].mxu1 }
 0x381   :  { %v7284_v19 = vadd.f32 %v10530_v0, %v14258_v15  ;;  %v10533_v62 = vadd.f32 %v10532_v1, %v10531_v56  ;;  %v10624_v63 = vadd.f32 %v10623_v23, %v10622_v9  ;;  %v10625_v20 = vpop.f32.mrb[70].mxu1  ;;  %8192 = vmatpush1.bf16.msra.mxu1 %v11494_v50  ;;  %v8742_v1 = vcombine.low %v271_v3, %v291_v33  ;;  %v312_v23 = vld [vmem:[%s15187_s0 + $0x948] sm:$0xff] }
 0x382   :  { %7834 = vmatmul.mubr.bf16.gmra.mrb[176].mxu0 %v8662_v6  ;;  %v10626_v21 = vpop.f32.mrb[71].mxu1  ;;  %8193 = vmatprep.subr.bf16.mxu1 %v11507_v57  ;;  %v8745_v6 = vcombine.high %v272_v38, %v292_v24 }
 0x383   :  { %v7287_v31 = vadd.f32 %v10533_v62, %v14266_v32  ;;  %7841 = vmatprep.mubr.bf16.mxu0 %v8703_v61  ;;  %v14615_v37 = vadd.f32 %v10624_v63, %v7284_v19  ;;  %v10627_v15 = vadd.f32 %v10626_v21, %v10625_v20 }
 0x384   :  { %7970 = vmatmul.mubr.bf16.gmra.mrb[176].mxu1 %v8664_v16  ;;  %v332_v16 = vld [vmem:[%s15187_s0 + $0x9e8] sm:$0xff] }
 0x385   :  { %v10534_v28 = vpop.f32.mrb[72].mxu0  ;;  %v14623_v43 = vadd.f32 %v10627_v15, %v7287_v31  ;;  %7977 = vmatprep.mubr.bf16.mxu1 %v8705_v40  ;;  %8194 = vmatpush1.bf16.msra.mxu1 %v5591_v22  ;;  %v8744_v22 = vcombine.low %v272_v38, %v292_v24  ;;  %v8785_v33 = vcombine.high %v312_v23, %v332_v16 }
 0x386   :  { %v10535_v32 = vpop.f32.mrb[73].mxu0 }
 0x387   :  { %v10536_v57 = vadd.f32 %v10535_v32, %v10534_v28  ;;  %v10537_v60 = vpop.f32.mrb[74].mxu0  ;;  %v10628_v59 = vpop.f32.mrb[72].mxu1 }
 0x388   :  { %v10538_v42 = vpop.f32.mrb[75].mxu0  ;;  %v10629_v47 = vpop.f32.mrb[73].mxu1 }
 0x389   :  { %v7292_v52 = vadd.f32 %v10536_v57, %v14276_v36  ;;  %v10539_v35 = vadd.f32 %v10538_v42, %v10537_v60  ;;  %v10630_v51 = vadd.f32 %v10629_v47, %v10628_v59  ;;  %v10631_v29 = vpop.f32.mrb[74].mxu1  ;;  %v331_v36 = vld [vmem:[%s15187_s0 + $0x9e0] sm:$0xff]  ;;  %v372_v47 = vld [vmem:[%s15187_s0 + $0xb28] sm:$0xff] }
 0x38a   :  { %7842 = vmatmul.mubr.bf16.gmra.mrb[180].mxu0 %v8702_v45  ;;  %v10632_v0 = vpop.f32.mrb[75].mxu1  ;;  %v8783_v62 = vcombine.high %v311_v13, %v331_v36  ;;  %v351_v60 = vld [vmem:[%s15187_s0 + $0xa80] sm:$0xff]  ;;  %v8782_v59 = vcombine.low %v311_v13, %v331_v36 }
 0x38b   :  { %v7295_v50 = vadd.f32 %v10539_v35, %v14284_v11  ;;  %7849 = vmatprep.mubr.bf16.mxu0 %v8743_v53  ;;  %v14633_v56 = vadd.f32 %v10630_v51, %v7292_v52  ;;  %v10633_v61 = vadd.f32 %v10632_v0, %v10631_v29  ;;  %v352_v35 = vld [vmem:[%s15187_s0 + $0xa88] sm:$0xff]  ;;  %v8784_v0 = vcombine.low %v312_v23, %v332_v16 }
 0x38c   :  { %7978 = vmatmul.mubr.bf16.gmra.mrb[180].mxu1 %v8704_v54  ;;  %v8825_v36 = vcombine.high %v352_v35, %v372_v47 }
 0x38d   :  { %v10540_v8 = vpop.f32.mrb[76].mxu0  ;;  %v14641_v14 = vadd.f32 %v10633_v61, %v7295_v50  ;;  %7985 = vmatprep.mubr.bf16.mxu1 %v8745_v6 }
 0x38e   :  { %v10541_v9 = vpop.f32.mrb[77].mxu0 }
 0x38f   :  { %v10542_v11 = vadd.f32 %v10541_v9, %v10540_v8  ;;  %v10543_v19 = vpop.f32.mrb[78].mxu0  ;;  %v10634_v63 = vpop.f32.mrb[76].mxu1 }
 0x390   :  { %v10544_v20 = vpop.f32.mrb[79].mxu0  ;;  %v10635_v21 = vpop.f32.mrb[77].mxu1 }
 0x391   :  { %v7300_v40 = vadd.f32 %v10542_v11, %v14294_v48  ;;  %v10545_v31 = vadd.f32 %v10544_v20, %v10543_v19  ;;  %v10636_v15 = vadd.f32 %v10635_v21, %v10634_v63  ;;  %v10637_v3 = vpop.f32.mrb[78].mxu1  ;;  %v371_v48 = vld [vmem:[%s15187_s0 + $0xb20] sm:$0xff]  ;;  %v412_v21 = vld [vmem:[%s15187_s0 + $0xc68] sm:$0xff] }
 0x392   :  { %7850 = vmatmul.mubr.bf16.gmra.mrb[184].mxu0 %v8742_v1  ;;  %v10638_v32 = vpop.f32.mrb[79].mxu1  ;;  %v8823_v52 = vcombine.high %v351_v60, %v371_v48  ;;  %v391_v19 = vld [vmem:[%s15187_s0 + $0xbc0] sm:$0xff]  ;;  %v8822_v63 = vcombine.low %v351_v60, %v371_v48 }
 0x393   :  { %v7303_v28 = vadd.f32 %v10545_v31, %v14302_v25  ;;  %7857 = vmatprep.mubr.bf16.mxu0 %v8783_v62  ;;  %v14651_v45 = vadd.f32 %v10636_v15, %v7300_v40  ;;  %v10639_v57 = vadd.f32 %v10638_v32, %v10637_v3  ;;  %v392_v31 = vld [vmem:[%s15187_s0 + $0xbc8] sm:$0xff]  ;;  %v8824_v32 = vcombine.low %v352_v35, %v372_v47 }
 0x394   :  { %7986 = vmatmul.mubr.bf16.gmra.mrb[184].mxu1 %v8744_v22  ;;  %v8865_v48 = vcombine.high %v392_v31, %v412_v21 }
 0x395   :  { %v10546_v53 = vpop.f32.mrb[80].mxu0  ;;  %v14659_v38 = vadd.f32 %v10639_v57, %v7303_v28  ;;  %7993 = vmatprep.mubr.bf16.mxu1 %v8785_v33 }
 0x396   :  { %v10547_v24 = vpop.f32.mrb[81].mxu0 }
 0x397   :  { %v10548_v25 = vadd.f32 %v10547_v24, %v10546_v53  ;;  %v10549_v42 = vpop.f32.mrb[82].mxu0  ;;  %v10640_v54 = vpop.f32.mrb[80].mxu1 }
 0x398   :  { %v10550_v51 = vpop.f32.mrb[83].mxu0  ;;  %v10641_v50 = vpop.f32.mrb[81].mxu1 }
 0x399   :  { %v7308_v29 = vadd.f32 %v10548_v25, %v14312_v12  ;;  %v10551_v6 = vadd.f32 %v10550_v51, %v10549_v42  ;;  %v10642_v61 = vadd.f32 %v10641_v50, %v10640_v54  ;;  %v10643_v13 = vpop.f32.mrb[82].mxu1  ;;  %v411_v12 = vld [vmem:[%s15187_s0 + $0xc60] sm:$0xff]  ;;  %v452_v50 = vld [vmem:[%s15187_s0 + $0xda8] sm:$0xff] }
 0x39a   :  { %7858 = vmatmul.mubr.bf16.gmra.mrb[188].mxu0 %v8782_v59  ;;  %v10644_v9 = vpop.f32.mrb[83].mxu1  ;;  %v8863_v40 = vcombine.high %v391_v19, %v411_v12  ;;  %v431_v42 = vld [vmem:[%s15187_s0 + $0xd00] sm:$0xff]  ;;  %v8862_v54 = vcombine.low %v391_v19, %v411_v12 }
 0x39b   :  { %v7311_v8 = vadd.f32 %v10551_v6, %v14320_v10  ;;  %7865 = vmatprep.mubr.bf16.mxu0 %v8823_v52  ;;  %v14669_v1 = vadd.f32 %v10642_v61, %v7308_v29  ;;  %v10645_v11 = vadd.f32 %v10644_v9, %v10643_v13  ;;  %v432_v6 = vld [vmem:[%s15187_s0 + $0xd08] sm:$0xff]  ;;  %v8864_v9 = vcombine.low %v392_v31, %v412_v21 }
 0x39c   :  { %7994 = vmatmul.mubr.bf16.gmra.mrb[188].mxu1 %v8784_v0  ;;  %v8905_v12 = vcombine.high %v432_v6, %v452_v50 }
 0x39d   :  { %v10552_v62 = vpop.f32.mrb[84].mxu0  ;;  %v14677_v23 = vadd.f32 %v10645_v11, %v7311_v8  ;;  %8001 = vmatprep.mubr.bf16.mxu1 %v8825_v36 }
 0x39e   :  { %v10553_v16 = vpop.f32.mrb[85].mxu0 }
 0x39f   :  { %v10554_v10 = vadd.f32 %v10553_v16, %v10552_v62  ;;  %v10555_v20 = vpop.f32.mrb[86].mxu0  ;;  %v10646_v22 = vpop.f32.mrb[84].mxu1 }
 0x3a0   :  { %v10556_v15 = vpop.f32.mrb[87].mxu0  ;;  %v10647_v28 = vpop.f32.mrb[85].mxu1 }
 0x3a1   :  { %v7316_v3 = vadd.f32 %v10554_v10, %v14330_v26  ;;  %v10557_v33 = vadd.f32 %v10556_v15, %v10555_v20  ;;  %v10648_v57 = vadd.f32 %v10647_v28, %v10646_v22  ;;  %v10649_v60 = vpop.f32.mrb[86].mxu1  ;;  %v451_v26 = vld [vmem:[%s15187_s0 + $0xda0] sm:$0xff]  ;;  %v492_v28 = vld [vmem:[%s15187_s0 + $0xee8] sm:$0xff] }
 0x3a2   :  { %7866 = vmatmul.mubr.bf16.gmra.mrb[192].mxu0 %v8822_v63  ;;  %v10650_v24 = vpop.f32.mrb[87].mxu1  ;;  %v8903_v29 = vcombine.high %v431_v42, %v451_v26  ;;  %v471_v20 = vld [vmem:[%s15187_s0 + $0xe40] sm:$0xff]  ;;  %v8902_v22 = vcombine.low %v431_v42, %v451_v26 }
 0x3a3   :  { %v7319_v53 = vadd.f32 %v10557_v33, %v14338_v41  ;;  %7873 = vmatprep.mubr.bf16.mxu0 %v8863_v40  ;;  %v14687_v59 = vadd.f32 %v10648_v57, %v7316_v3  ;;  %v10651_v25 = vadd.f32 %v10650_v24, %v10649_v60  ;;  %v472_v33 = vld [vmem:[%s15187_s0 + $0xe48] sm:$0xff]  ;;  %v8904_v24 = vcombine.low %v432_v6, %v452_v50 }
 0x3a4   :  { %8002 = vmatmul.mubr.bf16.gmra.mrb[192].mxu1 %v8824_v32  ;;  %v8945_v26 = vcombine.high %v472_v33, %v492_v28 }
 0x3a5   :  { %v10558_v52 = vpop.f32.mrb[88].mxu0  ;;  %v14695_v35 = vadd.f32 %v10651_v25, %v7319_v53  ;;  %8009 = vmatprep.mubr.bf16.mxu1 %v8865_v48 }
 0x3a6   :  { %v10559_v47 = vpop.f32.mrb[89].mxu0 }
 0x3a7   :  { %v10560_v41 = vadd.f32 %v10559_v47, %v10558_v52  ;;  %v10561_v51 = vpop.f32.mrb[90].mxu0  ;;  %v10652_v0 = vpop.f32.mrb[88].mxu1 }
 0x3a8   :  { %v10562_v61 = vpop.f32.mrb[91].mxu0  ;;  %v10653_v8 = vpop.f32.mrb[89].mxu1 }
 0x3a9   :  { %v7324_v13 = vadd.f32 %v10560_v41, %v14348_v27  ;;  %v10563_v36 = vadd.f32 %v10562_v61, %v10561_v51  ;;  %v10654_v11 = vadd.f32 %v10653_v8, %v10652_v0  ;;  %v10655_v19 = vpop.f32.mrb[90].mxu1  ;;  %v491_v27 = vld [vmem:[%s15187_s0 + $0xee0] sm:$0xff] }
 0x3aa   :  { %7874 = vmatmul.mubr.bf16.gmra.mrb[196].mxu0 %v8862_v54  ;;  %v10656_v16 = vpop.f32.mrb[91].mxu1  ;;  %v8943_v3 = vcombine.high %v471_v20, %v491_v27  ;;  %v511_v51 = vld [vmem:[%s15187_s0 + $0xf80] sm:$0xff]  ;;  %v8942_v50 = vcombine.low %v471_v20, %v491_v27 }
 0x3ab   :  { %v7327_v62 = vadd.f32 %v10563_v36, %v14356_v30  ;;  %7881 = vmatprep.mubr.bf16.mxu0 %v8903_v29  ;;  %v14705_v63 = vadd.f32 %v10654_v11, %v7324_v13  ;;  %v10657_v10 = vadd.f32 %v10656_v16, %v10655_v19  ;;  %v8983_v13 = vcombine.high %v511_v51, %v511_v51 }
 0x3ac   :  { %8010 = vmatmul.mubr.bf16.gmra.mrb[196].mxu1 %v8864_v9 }
 0x3ad   :  { %v10564_v40 = vpop.f32.mrb[92].mxu0  ;;  %v14713_v31 = vadd.f32 %v10657_v10, %v7327_v62  ;;  %8017 = vmatprep.mubr.bf16.mxu1 %v8905_v12  ;;  %v8944_v12 = vcombine.low %v472_v33, %v492_v28  ;;  %v8982_v33 = vcombine.low %v511_v51, %v511_v51 }
 0x3ae   :  { %v10565_v21 = vpop.f32.mrb[93].mxu0 }
 0x3af   :  { %v10566_v30 = vadd.f32 %v10565_v21, %v10564_v40  ;;  %v10567_v15 = vpop.f32.mrb[94].mxu0  ;;  %v10658_v32 = vpop.f32.mrb[92].mxu1 }
 0x3b0   :  { %v10568_v57 = vpop.f32.mrb[95].mxu0  ;;  %v10659_v53 = vpop.f32.mrb[93].mxu1 }
 0x3b1   :  { %v7332_v60 = vadd.f32 %v10566_v30, %v14366_v58  ;;  %v10569_v48 = vadd.f32 %v10568_v57, %v10567_v15  ;;  %v10660_v25 = vadd.f32 %v10659_v53, %v10658_v32  ;;  %v10661_v42 = vpop.f32.mrb[94].mxu1  ;;  %v34_v57 = vld [vmem:[%s15187_s0 + $0x98] sm:$0xff] }
 0x3b2   :  { %7882 = vmatmul.mubr.bf16.gmra.mrb[200].mxu0 %v8902_v22  ;;  %v10662_v47 = vpop.f32.mrb[95].mxu1  ;;  %v33_v22 = vld [vmem:[%s15187_s0 + $0x90] sm:$0xff] }
 0x3b3   :  { %v7335_v52 = vadd.f32 %v10569_v48, %v14371_v17  ;;  %7889 = vmatprep.mubr.bf16.mxu0 %v8943_v3  ;;  %v14723_v54 = vadd.f32 %v10660_v25, %v7332_v60  ;;  %v10663_v41 = vadd.f32 %v10662_v47, %v10661_v42  ;;  %v512_v17 = vld [vmem:[%s15187_s0 + $0xf88] sm:$0xff]  ;;  %v54_v60 = vld [vmem:[%s15187_s0 + $0x138] sm:$0xff] }
 0x3b4   :  { %8018 = vmatmul.mubr.bf16.gmra.mrb[200].mxu1 %v8904_v24  ;;  %v8985_v10 = vcombine.high %v512_v17, %v512_v17 }
 0x3b5   :  { %v10570_v58 = vpop.f32.mrb[96].mxu0  ;;  %v14728_v29 = vadd.f32 %v10663_v41, %v7335_v52  ;;  %8025 = vmatprep.mubr.bf16.mxu1 %v8945_v26  ;;  %v8984_v26 = vcombine.low %v512_v17, %v512_v17  ;;  %v8509_v41 = vcombine.high %v34_v57, %v54_v60 }
 0x3b6   :  { %v10571_v6 = vpop.f32.mrb[97].mxu0 }
 0x3b7   :  { %v10572_v0 = vadd.f32 %v10571_v6, %v10570_v58  ;;  %v10573_v61 = vpop.f32.mrb[98].mxu0  ;;  %v10664_v36 = vpop.f32.mrb[96].mxu1 }
 0x3b8   :  { %v10574_v8 = vpop.f32.mrb[99].mxu0  ;;  %v10665_v19 = vpop.f32.mrb[97].mxu1 }
 0x3b9   :  { %v7340_v9 = vadd.f32 %v10572_v0, %v14378_v4  ;;  %v10575_v11 = vadd.f32 %v10574_v8, %v10573_v61  ;;  %v10666_v62 = vadd.f32 %v10665_v19, %v10664_v36  ;;  %v10667_v16 = vpop.f32.mrb[98].mxu1  ;;  %v53_v4 = vld [vmem:[%s15187_s0 + $0x130] sm:$0xff]  ;;  %v94_v19 = vld [vmem:[%s15187_s0 + $0x278] sm:$0xff] }
 0x3ba   :  { %7890 = vmatmul.mubr.bf16.gmra.mrb[204].mxu0 %v8942_v50  ;;  %v10668_v27 = vpop.f32.mrb[99].mxu1  ;;  %v8507_v32 = vcombine.high %v33_v22, %v53_v4  ;;  %v73_v0 = vld [vmem:[%s15187_s0 + $0x1d0] sm:$0xff] }
 0x3bb   :  { %v7343_v20 = vadd.f32 %v10575_v11, %v14386_v44  ;;  %7897 = vmatprep.mubr.bf16.mxu0 %v8983_v13  ;;  %v14735_v40 = vadd.f32 %v10666_v62, %v7340_v9  ;;  %v10669_v21 = vadd.f32 %v10668_v27, %v10667_v16  ;;  %v74_v11 = vld [vmem:[%s15187_s0 + $0x1d8] sm:$0xff] }
 0x3bc   :  { %8026 = vmatmul.mubr.bf16.gmra.mrb[204].mxu1 %v8944_v12 }
 0x3bd   :  { %v10576_v30 = vpop.f32.mrb[100].mxu0  ;;  %v14743_v15 = vadd.f32 %v10669_v21, %v7343_v20  ;;  %8033 = vmatprep.mubr.bf16.mxu1 %v8985_v10  ;;  %v8508_v20 = vcombine.low %v34_v57, %v54_v60 }
 0x3be   :  { %v10577_v3 = vpop.f32.mrb[101].mxu0 }
 0x3bf   :  { %v10578_v44 = vadd.f32 %v10577_v3, %v10576_v30  ;;  %v10579_v28 = vpop.f32.mrb[102].mxu0  ;;  %v10670_v48 = vpop.f32.mrb[100].mxu1  ;;  %v113_v3 = vld [vmem:[%s15187_s0 + $0x310] sm:$0xff] }
 0x3c0   :  { %v10580_v53 = vpop.f32.mrb[103].mxu0  ;;  %v10671_v42 = vpop.f32.mrb[101].mxu1 }
 0x3c1   :  { %v7348_v24 = vadd.f32 %v10578_v44, %v14396_v5  ;;  %v10581_v25 = vadd.f32 %v10580_v53, %v10579_v28  ;;  %v10672_v52 = vadd.f32 %v10671_v42, %v10670_v48  ;;  %v10673_v47 = vpop.f32.mrb[102].mxu1  ;;  %v93_v5 = vld [vmem:[%s15187_s0 + $0x270] sm:$0xff]  ;;  %v114_v48 = vld [vmem:[%s15187_s0 + $0x318] sm:$0xff] }
 0x3c2   :  { %7898 = vmatmul.mubr.bf16.gmra.mrb[208].mxu0 %v8982_v33  ;;  %v10674_v58 = vpop.f32.mrb[103].mxu1  ;;  %v8547_v9 = vcombine.high %v73_v0, %v93_v5  ;;  %v133_v33 = vld [vmem:[%s15187_s0 + $0x3b0] sm:$0xff]  ;;  %v8546_v28 = vcombine.low %v73_v0, %v93_v5  ;;  %v134_v53 = vld [vmem:[%s15187_s0 + $0x3b8] sm:$0xff] }
 0x3c3   :  { %v7351_v51 = vadd.f32 %v10581_v25, %v14404_v2  ;;  %8073 = vmatprep.mubr.bf16.mxu0 %v8507_v32  ;;  %v14753_v6 = vadd.f32 %v10672_v52, %v7348_v24  ;;  %v10675_v50 = vadd.f32 %v10674_v58, %v10673_v47  ;;  %v8506_v2 = vcombine.low %v33_v22, %v53_v4 }
 0x3c4   :  { %8034 = vmatmul.mubr.bf16.gmra.mrb[208].mxu1 %v8984_v26  ;;  %v8549_v22 = vcombine.high %v74_v11, %v94_v19  ;;  %v8587_v60 = vcombine.high %v113_v3, %v133_v33  ;;  %v8548_v47 = vcombine.low %v74_v11, %v94_v19  ;;  %v8589_v58 = vcombine.high %v114_v48, %v134_v53 }
 0x3c5   :  { %v10582_v61 = vpop.f32.mrb[104].mxu0  ;;  %v14761_v13 = vadd.f32 %v10675_v50, %v7351_v51  ;;  %9303 = vmatprep.mubr.msk.bf16.mxu1 %vm5549_vm1, %v8509_v41 }
 0x3c6   :  { %v10583_v17 = vpop.f32.mrb[105].mxu0 }
 0x3c7   :  { %v10584_v36 = vadd.f32 %v10583_v17, %v10582_v61  ;;  %v10585_v8 = vpop.f32.mrb[106].mxu0  ;;  %v10676_v12 = vpop.f32.mrb[104].mxu1  ;;  %v153_v17 = vld [vmem:[%s15187_s0 + $0x450] sm:$0xff] }
 0x3c8   :  { %v10586_v62 = vpop.f32.mrb[107].mxu0  ;;  %v10677_v10 = vpop.f32.mrb[105].mxu1 }
 0x3c9   :  { %v7356_v16 = vadd.f32 %v10584_v36, %v14428_v49  ;;  %v10678_v27 = vadd.f32 %v10677_v10, %v10676_v12  ;;  %v10679_v21 = vpop.f32.mrb[106].mxu1  ;;  %v154_v12 = vld [vmem:[%s15187_s0 + $0x458] sm:$0xff] }
 0x3ca   :  { %8074 = vmatmul.mubr.bf16.vlgmr.msra.gmra.mrb[212].mxu0 %v8506_v2  ;;  %v10680_v4 = vpop.f32.mrb[107].mxu1  ;;  %v174_v62 = vld [vmem:[%s15187_s0 + $0x4f8] sm:$0xff] }
 0x3cb   :  { %8081 = vmatprep.mubr.bf16.mxu0 %v8547_v9  ;;  %v14771_v30 = vadd.f32 %v10678_v27, %v7356_v16  ;;  %v8586_v9 = vcombine.low %v113_v3, %v133_v33  ;;  %v8629_v33 = vcombine.high %v154_v12, %v174_v62 }
 0x3cc   :  { %8210 = vmatmul.mubr.bf16.vlgmr.msra.gmra.mrb[212].mxu1 %v8508_v20 }
 0x3cd   :  { %v10698_v44 = vpop.f32.mrb[108].mxu0  ;;  %9304 = vmatprep.mubr.msk.bf16.mxu1 %vm5549_vm1, %v8549_v22  ;;  %v8588_v22 = vcombine.low %v114_v48, %v134_v53 }
 0x3ce   :  { %v10699_v49 = vpop.f32.mrb[109].mxu0 }
 0x3cf   :  { %v10700_v32 = vadd.f32 %v10699_v49, %v10698_v44  ;;  %v10701_v57 = vpop.f32.mrb[110].mxu0  ;;  %v10792_v24 = vpop.f32.mrb[108].mxu1 }
 0x3d0   :  { %v10702_v25 = vpop.f32.mrb[111].mxu0  ;;  %v10793_v52 = vpop.f32.mrb[109].mxu1 }
 0x3d1   :  { %v7532_v42 = vadd.f32 %v10700_v32, %v14476_v18  ;;  %v10703_v26 = vadd.f32 %v10702_v25, %v10701_v57  ;;  %v10794_v41 = vadd.f32 %v10793_v52, %v10792_v24  ;;  %v10795_v51 = vpop.f32.mrb[110].mxu1  ;;  %v173_v18 = vld [vmem:[%s15187_s0 + $0x4f0] sm:$0xff]  ;;  %v214_v52 = vld [vmem:[%s15187_s0 + $0x638] sm:$0xff] }
 0x3d2   :  { %8082 = vmatmul.mubr.bf16.gmra.mrb[216].mxu0 %v8546_v28  ;;  %v10796_v0 = vpop.f32.mrb[111].mxu1  ;;  %v8627_v19 = vcombine.high %v153_v17, %v173_v18  ;;  %v193_v57 = vld [vmem:[%s15187_s0 + $0x590] sm:$0xff]  ;;  %v8626_v24 = vcombine.low %v153_v17, %v173_v18 }
 0x3d3   :  { %v7535_v50 = vadd.f32 %v10703_v26, %v14492_v39  ;;  %8089 = vmatprep.mubr.bf16.mxu0 %v8587_v60  ;;  %v14788_v5 = vadd.f32 %v10794_v41, %v7532_v42  ;;  %v10797_v61 = vadd.f32 %v10796_v0, %v10795_v51  ;;  %v194_v26 = vld [vmem:[%s15187_s0 + $0x598] sm:$0xff]  ;;  %v8628_v0 = vcombine.low %v154_v12, %v174_v62 }
 0x3d4   :  { %8218 = vmatmul.mubr.bf16.gmra.mrb[216].mxu1 %v8548_v47  ;;  %v8669_v18 = vcombine.high %v194_v26, %v214_v52 }
 0x3d5   :  { %v10704_v2 = vpop.f32.mrb[112].mxu0  ;;  %v14796_v36 = vadd.f32 %v10797_v61, %v7535_v50  ;;  %9305 = vmatprep.mubr.msk.bf16.mxu1 %vm5549_vm1, %v8589_v58 }
 0x3d6   :  { %v10705_v8 = vpop.f32.mrb[113].mxu0 }
 0x3d7   :  { %v10706_v39 = vadd.f32 %v10705_v8, %v10704_v2  ;;  %v10707_v11 = vpop.f32.mrb[114].mxu0  ;;  %v10798_v16 = vpop.f32.mrb[112].mxu1 }
 0x3d8   :  { %v10708_v10 = vpop.f32.mrb[115].mxu0  ;;  %v10799_v21 = vpop.f32.mrb[113].mxu1 }
 0x3d9   :  { %v7540_v20 = vadd.f32 %v10706_v39, %v14528_v46  ;;  %v10709_v27 = vadd.f32 %v10708_v10, %v10707_v11  ;;  %v10800_v4 = vadd.f32 %v10799_v21, %v10798_v16  ;;  %v10801_v3 = vpop.f32.mrb[114].mxu1  ;;  %v213_v46 = vld [vmem:[%s15187_s0 + $0x630] sm:$0xff]  ;;  %v254_v21 = vld [vmem:[%s15187_s0 + $0x778] sm:$0xff] }
 0x3da   :  { %8090 = vmatmul.mubr.bf16.gmra.mrb[220].mxu0 %v8586_v9  ;;  %v10802_v49 = vpop.f32.mrb[115].mxu1  ;;  %v8667_v42 = vcombine.high %v193_v57, %v213_v46  ;;  %v233_v11 = vld [vmem:[%s15187_s0 + $0x6d0] sm:$0xff]  ;;  %v8666_v16 = vcombine.low %v193_v57, %v213_v46 }
 0x3db   :  { %v7543_v44 = vadd.f32 %v10709_v27, %v14546_v7  ;;  %8097 = vmatprep.mubr.bf16.mxu0 %v8627_v19  ;;  %v14807_v28 = vadd.f32 %v10800_v4, %v7540_v20  ;;  %v10803_v32 = vadd.f32 %v10802_v49, %v10801_v3  ;;  %v234_v27 = vld [vmem:[%s15187_s0 + $0x6d8] sm:$0xff]  ;;  %v8668_v49 = vcombine.low %v194_v26, %v214_v52 }
 0x3dc   :  { %8226 = vmatmul.mubr.bf16.gmra.mrb[220].mxu1 %v8588_v22  ;;  %v8709_v46 = vcombine.high %v234_v27, %v254_v21 }
 0x3dd   :  { %v10710_v60 = vpop.f32.mrb[116].mxu0  ;;  %v14815_v48 = vadd.f32 %v10803_v32, %v7543_v44  ;;  %9306 = vmatprep.mubr.msk.bf16.mxu1 %vm5549_vm1, %v8629_v33 }
 0x3de   :  { %v10711_v53 = vpop.f32.mrb[117].mxu0 }
 0x3df   :  { %v10712_v7 = vadd.f32 %v10711_v53, %v10710_v60  ;;  %v10713_v25 = vpop.f32.mrb[118].mxu0  ;;  %v10804_v47 = vpop.f32.mrb[116].mxu1 }
 0x3e0   :  { %v10714_v41 = vpop.f32.mrb[119].mxu0  ;;  %v10805_v50 = vpop.f32.mrb[117].mxu1 }
 0x3e1   :  { %v7548_v51 = vadd.f32 %v10712_v7, %v14582_v55  ;;  %v10715_v58 = vadd.f32 %v10714_v41, %v10713_v25  ;;  %v10806_v61 = vadd.f32 %v10805_v50, %v10804_v47  ;;  %v10807_v17 = vpop.f32.mrb[118].mxu1  ;;  %v253_v55 = vld [vmem:[%s15187_s0 + $0x770] sm:$0xff]  ;;  %v294_v50 = vld [vmem:[%s15187_s0 + $0x8b8] sm:$0xff] }
 0x3e2   :  { %8098 = vmatmul.mubr.bf16.gmra.mrb[224].mxu0 %v8626_v24  ;;  %v10808_v8 = vpop.f32.mrb[119].mxu1  ;;  %v8707_v20 = vcombine.high %v233_v11, %v253_v55  ;;  %v273_v25 = vld [vmem:[%s15187_s0 + $0x810] sm:$0xff]  ;;  %v8706_v47 = vcombine.low %v233_v11, %v253_v55 }
 0x3e3   :  { %v7551_v2 = vadd.f32 %v10715_v58, %v14593_v34  ;;  %8105 = vmatprep.mubr.bf16.mxu0 %v8667_v42  ;;  %v14826_v9 = vadd.f32 %v10806_v61, %v7548_v51  ;;  %v10809_v39 = vadd.f32 %v10808_v8, %v10807_v17  ;;  %v274_v58 = vld [vmem:[%s15187_s0 + $0x818] sm:$0xff]  ;;  %v8708_v8 = vcombine.low %v234_v27, %v254_v21 }
 0x3e4   :  { %8234 = vmatmul.mubr.bf16.gmra.mrb[224].mxu1 %v8628_v0  ;;  %v8749_v55 = vcombine.high %v274_v58, %v294_v50 }
 0x3e5   :  { %v10716_v19 = vpop.f32.mrb[120].mxu0  ;;  %v14834_v12 = vadd.f32 %v10809_v39, %v7551_v2  ;;  %9307 = vmatprep.mubr.msk.bf16.mxu1 %vm5549_vm1, %v8669_v18 }
 0x3e6   :  { %v10717_v62 = vpop.f32.mrb[121].mxu0 }
 0x3e7   :  { %v10718_v34 = vadd.f32 %v10717_v62, %v10716_v19  ;;  %v10719_v10 = vpop.f32.mrb[122].mxu0  ;;  %v10810_v22 = vpop.f32.mrb[120].mxu1 }
 0x3e8   :  { %v10720_v4 = vpop.f32.mrb[123].mxu0  ;;  %v10811_v44 = vpop.f32.mrb[121].mxu1 }
 0x3e9   :  { %v7556_v3 = vadd.f32 %v10718_v34, %v14615_v37  ;;  %v10721_v33 = vadd.f32 %v10720_v4, %v10719_v10  ;;  %v10812_v32 = vadd.f32 %v10811_v44, %v10810_v22  ;;  %v10813_v57 = vpop.f32.mrb[122].mxu1  ;;  %v293_v37 = vld [vmem:[%s15187_s0 + $0x8b0] sm:$0xff]  ;;  %v334_v44 = vld [vmem:[%s15187_s0 + $0x9f8] sm:$0xff] }
 0x3ea   :  { %8106 = vmatmul.mubr.bf16.gmra.mrb[228].mxu0 %v8666_v16  ;;  %v10814_v53 = vpop.f32.mrb[123].mxu1  ;;  %v8747_v51 = vcombine.high %v273_v25, %v293_v37  ;;  %v313_v10 = vld [vmem:[%s15187_s0 + $0x950] sm:$0xff]  ;;  %v8746_v22 = vcombine.low %v273_v25, %v293_v37 }
 0x3eb   :  { %v7559_v60 = vadd.f32 %v10721_v33, %v14623_v43  ;;  %8113 = vmatprep.mubr.bf16.mxu0 %v8707_v20  ;;  %v14845_v24 = vadd.f32 %v10812_v32, %v7556_v3  ;;  %v10815_v7 = vadd.f32 %v10814_v53, %v10813_v57  ;;  %v314_v33 = vld [vmem:[%s15187_s0 + $0x958] sm:$0xff]  ;;  %v8748_v53 = vcombine.low %v274_v58, %v294_v50 }
 0x3ec   :  { %8242 = vmatmul.mubr.bf16.gmra.mrb[228].mxu1 %v8668_v49  ;;  %v8789_v37 = vcombine.high %v314_v33, %v334_v44 }
 0x3ed   :  { %v10722_v42 = vpop.f32.mrb[124].mxu0  ;;  %v14853_v26 = vadd.f32 %v10815_v7, %v7559_v60  ;;  %9308 = vmatprep.mubr.msk.bf16.mxu1 %vm5549_vm1, %v8709_v46 }
 0x3ee   :  { %v10723_v52 = vpop.f32.mrb[125].mxu0 }
 0x3ef   :  { %v10724_v43 = vadd.f32 %v10723_v52, %v10722_v42  ;;  %v10725_v41 = vpop.f32.mrb[126].mxu0  ;;  %v10816_v0 = vpop.f32.mrb[124].mxu1 }
 0x3f0   :  { %v10726_v61 = vpop.f32.mrb[127].mxu0  ;;  %v10817_v2 = vpop.f32.mrb[125].mxu1 }
 0x3f1   :  { %v7564_v17 = vadd.f32 %v10724_v43, %v14633_v56  ;;  %v10727_v18 = vadd.f32 %v10726_v61, %v10725_v41  ;;  %v10818_v39 = vadd.f32 %v10817_v2, %v10816_v0  ;;  %v10819_v11 = vpop.f32.mrb[126].mxu1  ;;  %v333_v56 = vld [vmem:[%s15187_s0 + $0x9f0] sm:$0xff]  ;;  %v374_v2 = vld [vmem:[%s15187_s0 + $0xb38] sm:$0xff] }
 0x3f2   :  { %8114 = vmatmul.mubr.bf16.gmra.mrb[232].mxu0 %v8706_v47  ;;  %v10820_v62 = vpop.f32.mrb[127].mxu1  ;;  %v8787_v3 = vcombine.high %v313_v10, %v333_v56  ;;  %v353_v41 = vld [vmem:[%s15187_s0 + $0xa90] sm:$0xff]  ;;  %v8786_v0 = vcombine.low %v313_v10, %v333_v56 }
 0x3f3   :  { %v7567_v19 = vadd.f32 %v10727_v18, %v14641_v14  ;;  %8121 = vmatprep.mubr.bf16.mxu0 %v8747_v51  ;;  %v14864_v16 = vadd.f32 %v10818_v39, %v7564_v17  ;;  %v10821_v34 = vadd.f32 %v10820_v62, %v10819_v11  ;;  %v354_v18 = vld [vmem:[%s15187_s0 + $0xa98] sm:$0xff]  ;;  %v8788_v62 = vcombine.low %v314_v33, %v334_v44 }
 0x3f4   :  { %8250 = vmatmul.mubr.bf16.gmra.mrb[232].mxu1 %v8708_v8  ;;  %v8829_v56 = vcombine.high %v354_v18, %v374_v2 }
 0x3f5   :  { %v10728_v20 = vpop.f32.mrb[128].mxu0  ;;  %v14872_v27 = vadd.f32 %v10821_v34, %v7567_v19  ;;  %9309 = vmatprep.mubr.msk.bf16.mxu1 %vm5549_vm1, %v8749_v55 }
 0x3f6   :  { %v10729_v21 = vpop.f32.mrb[129].mxu0 }
 0x3f7   :  { %v10730_v14 = vadd.f32 %v10729_v21, %v10728_v20  ;;  %v10731_v4 = vpop.f32.mrb[130].mxu0  ;;  %v10822_v49 = vpop.f32.mrb[128].mxu1 }
 0x3f8   :  { %v10732_v32 = vpop.f32.mrb[131].mxu0  ;;  %v10823_v60 = vpop.f32.mrb[129].mxu1 }
 0x3f9   :  { %v7572_v57 = vadd.f32 %v10730_v14, %v14651_v45  ;;  %v10733_v46 = vadd.f32 %v10732_v32, %v10731_v4  ;;  %v10824_v7 = vadd.f32 %v10823_v60, %v10822_v49  ;;  %v10825_v25 = vpop.f32.mrb[130].mxu1  ;;  %v373_v45 = vld [vmem:[%s15187_s0 + $0xb30] sm:$0xff]  ;;  %v414_v60 = vld [vmem:[%s15187_s0 + $0xc78] sm:$0xff] }
 0x3fa   :  { %8122 = vmatmul.mubr.bf16.gmra.mrb[236].mxu0 %v8746_v22  ;;  %v10826_v52 = vpop.f32.mrb[131].mxu1  ;;  %v8827_v17 = vcombine.high %v353_v41, %v373_v45  ;;  %v393_v4 = vld [vmem:[%s15187_s0 + $0xbd0] sm:$0xff]  ;;  %v8826_v49 = vcombine.low %v353_v41, %v373_v45 }
 0x3fb   :  { %v7575_v42 = vadd.f32 %v10733_v46, %v14659_v38  ;;  %8129 = vmatprep.mubr.bf16.mxu0 %v8787_v3  ;;  %v14883_v47 = vadd.f32 %v10824_v7, %v7572_v57  ;;  %v10827_v43 = vadd.f32 %v10826_v52, %v10825_v25  ;;  %v394_v46 = vld [vmem:[%s15187_s0 + $0xbd8] sm:$0xff]  ;;  %v8828_v52 = vcombine.low %v354_v18, %v374_v2 }
 0x3fc   :  { %8258 = vmatmul.mubr.bf16.gmra.mrb[236].mxu1 %v8748_v53  ;;  %v8869_v45 = vcombine.high %v394_v46, %v414_v60 }
 0x3fd   :  { %v10734_v51 = vpop.f32.mrb[132].mxu0  ;;  %v14891_v58 = vadd.f32 %v10827_v43, %v7575_v42  ;;  %9310 = vmatprep.mubr.msk.bf16.mxu1 %vm5549_vm1, %v8789_v37 }
 0x3fe   :  { %v10735_v50 = vpop.f32.mrb[133].mxu0 }
 0x3ff   :  { %v10736_v38 = vadd.f32 %v10735_v50, %v10734_v51  ;;  %v10737_v61 = vpop.f32.mrb[134].mxu0  ;;  %v10828_v8 = vpop.f32.mrb[132].mxu1 }
 0x400   :  { %v10738_v39 = vpop.f32.mrb[135].mxu0  ;;  %v10829_v19 = vpop.f32.mrb[133].mxu1 }
 0x401   :  { %v7580_v11 = vadd.f32 %v10736_v38, %v14669_v1  ;;  %v10739_v55 = vadd.f32 %v10738_v39, %v10737_v61  ;;  %v10830_v34 = vadd.f32 %v10829_v19, %v10828_v8  ;;  %v10831_v10 = vpop.f32.mrb[134].mxu1  ;;  %v413_v1 = vld [vmem:[%s15187_s0 + $0xc70] sm:$0xff]  ;;  %v454_v19 = vld [vmem:[%s15187_s0 + $0xdb8] sm:$0xff] }
 0x402   :  { %8130 = vmatmul.mubr.bf16.gmra.mrb[240].mxu0 %v8786_v0  ;;  %v10832_v21 = vpop.f32.mrb[135].mxu1  ;;  %v8867_v57 = vcombine.high %v393_v4, %v413_v1  ;;  %v433_v61 = vld [vmem:[%s15187_s0 + $0xd10] sm:$0xff]  ;;  %v8866_v8 = vcombine.low %v393_v4, %v413_v1 }
 0x403   :  { %v7583_v20 = vadd.f32 %v10739_v55, %v14677_v23  ;;  %8137 = vmatprep.mubr.bf16.mxu0 %v8827_v17  ;;  %v14902_v22 = vadd.f32 %v10830_v34, %v7580_v11  ;;  %v10833_v14 = vadd.f32 %v10832_v21, %v10831_v10  ;;  %v434_v55 = vld [vmem:[%s15187_s0 + $0xd18] sm:$0xff]  ;;  %v8868_v21 = vcombine.low %v394_v46, %v414_v60 }
 0x404   :  { %8266 = vmatmul.mubr.bf16.gmra.mrb[240].mxu1 %v8788_v62  ;;  %v8909_v1 = vcombine.high %v434_v55, %v454_v19 }
 0x405   :  { %v10740_v3 = vpop.f32.mrb[136].mxu0  ;;  %v14910_v33 = vadd.f32 %v10833_v14, %v7583_v20  ;;  %9311 = vmatprep.mubr.msk.bf16.mxu1 %vm5549_vm1, %v8829_v56 }
 0x406   :  { %v10741_v44 = vpop.f32.mrb[137].mxu0 }
 0x407   :  { %v10742_v23 = vadd.f32 %v10741_v44, %v10740_v3  ;;  %v10743_v32 = vpop.f32.mrb[138].mxu0  ;;  %v10834_v53 = vpop.f32.mrb[136].mxu1 }
 0x408   :  { %v10744_v7 = vpop.f32.mrb[139].mxu0  ;;  %v10835_v42 = vpop.f32.mrb[137].mxu1 }
 0x409   :  { %v7588_v25 = vadd.f32 %v10742_v23, %v14687_v59  ;;  %v10745_v37 = vadd.f32 %v10744_v7, %v10743_v32  ;;  %v10836_v43 = vadd.f32 %v10835_v42, %v10834_v53  ;;  %v10837_v41 = vpop.f32.mrb[138].mxu1  ;;  %v453_v59 = vld [vmem:[%s15187_s0 + $0xdb0] sm:$0xff]  ;;  %v494_v42 = vld [vmem:[%s15187_s0 + $0xef8] sm:$0xff] }
 0x40a   :  { %8138 = vmatmul.mubr.bf16.gmra.mrb[244].mxu0 %v8826_v49  ;;  %v10838_v50 = vpop.f32.mrb[139].mxu1  ;;  %v8907_v11 = vcombine.high %v433_v61, %v453_v59  ;;  %v473_v32 = vld [vmem:[%s15187_s0 + $0xe50] sm:$0xff]  ;;  %v8906_v53 = vcombine.low %v433_v61, %v453_v59 }
 0x40b   :  { %v7591_v51 = vadd.f32 %v10745_v37, %v14695_v35  ;;  %8145 = vmatprep.mubr.bf16.mxu0 %v8867_v57  ;;  %v14921_v0 = vadd.f32 %v10836_v43, %v7588_v25  ;;  %v10839_v38 = vadd.f32 %v10838_v50, %v10837_v41  ;;  %v474_v37 = vld [vmem:[%s15187_s0 + $0xe58] sm:$0xff]  ;;  %v8908_v50 = vcombine.low %v434_v55, %v454_v19 }
 0x40c   :  { %8274 = vmatmul.mubr.bf16.gmra.mrb[244].mxu1 %v8828_v52  ;;  %v8949_v59 = vcombine.high %v474_v37, %v494_v42 }
 0x40d   :  { %v10746_v17 = vpop.f32.mrb[140].mxu0  ;;  %v14929_v18 = vadd.f32 %v10839_v38, %v7591_v51  ;;  %9312 = vmatprep.mubr.msk.bf16.mxu1 %vm5549_vm1, %v8869_v45 }
 0x40e   :  { %v10747_v2 = vpop.f32.mrb[141].mxu0 }
 0x40f   :  { %v10748_v35 = vadd.f32 %v10747_v2, %v10746_v17  ;;  %v10749_v39 = vpop.f32.mrb[142].mxu0  ;;  %v10840_v62 = vpop.f32.mrb[140].mxu1 }
 0x410   :  { %v10750_v34 = vpop.f32.mrb[143].mxu0  ;;  %v10841_v20 = vpop.f32.mrb[141].mxu1 }
 0x411   :  { %v7596_v10 = vadd.f32 %v10748_v35, %v14705_v63  ;;  %v10751_v56 = vadd.f32 %v10750_v34, %v10749_v39  ;;  %v10842_v14 = vadd.f32 %v10841_v20, %v10840_v62  ;;  %v10843_v4 = vpop.f32.mrb[142].mxu1  ;;  %v493_v63 = vld [vmem:[%s15187_s0 + $0xef0] sm:$0xff] }
 0x412   :  { %8146 = vmatmul.mubr.bf16.gmra.mrb[248].mxu0 %v8866_v8  ;;  %v10844_v44 = vpop.f32.mrb[143].mxu1  ;;  %v8947_v25 = vcombine.high %v473_v32, %v493_v63  ;;  %v513_v39 = vld [vmem:[%s15187_s0 + $0xf90] sm:$0xff]  ;;  %v8946_v19 = vcombine.low %v473_v32, %v493_v63 }
 0x413   :  { %v7599_v3 = vadd.f32 %v10751_v56, %v14713_v31  ;;  %8153 = vmatprep.mubr.bf16.mxu0 %v8907_v11  ;;  %v14940_v49 = vadd.f32 %v10842_v14, %v7596_v10  ;;  %v10845_v23 = vadd.f32 %v10844_v44, %v10843_v4  ;;  %v514_v10 = vld [vmem:[%s15187_s0 + $0xf98] sm:$0xff] }
 0x414   :  { %8282 = vmatmul.mubr.bf16.gmra.mrb[248].mxu1 %v8868_v21 }
 0x415   :  { %v10752_v57 = vpop.f32.mrb[144].mxu0  ;;  %v14948_v46 = vadd.f32 %v10845_v23, %v7599_v3  ;;  %9313 = vmatprep.mubr.msk.bf16.mxu1 %vm5549_vm1, %v8909_v1  ;;  %v8948_v1 = vcombine.low %v474_v37, %v494_v42  ;;  %v8989_v23 = vcombine.high %v514_v10, %v514_v10 }
 0x416   :  { %v10753_v60 = vpop.f32.mrb[145].mxu0 }
 0x417   :  { %v10754_v31 = vadd.f32 %v10753_v60, %v10752_v57  ;;  %v10755_v7 = vpop.f32.mrb[146].mxu0  ;;  %v10846_v52 = vpop.f32.mrb[144].mxu1 }
 0x418   :  { %v10756_v43 = vpop.f32.mrb[147].mxu0  ;;  %v10847_v51 = vpop.f32.mrb[145].mxu1 }
 0x419   :  { %v7604_v41 = vadd.f32 %v10754_v31, %v14723_v54  ;;  %v10757_v45 = vadd.f32 %v10756_v43, %v10755_v7  ;;  %v10848_v38 = vadd.f32 %v10847_v51, %v10846_v52  ;;  %v10849_v61 = vpop.f32.mrb[146].mxu1 }
 0x41a   :  { %8154 = vmatmul.mubr.bf16.gmra.mrb[252].mxu0 %v8906_v53  ;;  %v10850_v2 = vpop.f32.mrb[147].mxu1 }
 0x41b   :  { %v7607_v17 = vadd.f32 %v10757_v45, %v14728_v29  ;;  %8161 = vmatprep.mubr.bf16.mxu0 %v8947_v25  ;;  %v14959_v8 = vadd.f32 %v10848_v38, %v7604_v41  ;;  %v10851_v35 = vadd.f32 %v10850_v2, %v10849_v61  ;;  %v8987_v29 = vcombine.high %v513_v39, %v513_v39 }
 0x41c   :  { %8290 = vmatmul.mubr.bf16.gmra.mrb[252].mxu1 %v8908_v50  ;;  %v8988_v45 = vcombine.low %v514_v10, %v514_v10 }
 0x41d   :  { %v10758_v11 = vpop.f32.mrb[148].mxu0  ;;  %v14964_v54 = vadd.f32 %v10851_v35, %v7607_v17  ;;  %9314 = vmatprep.mubr.msk.bf16.mxu1 %vm5549_vm1, %v8949_v59 }
 0x41e   :  { %v10759_v55 = vpop.f32.mrb[149].mxu0 }
 0x41f   :  { %v10760_v62 = vadd.f32 %v10759_v55, %v10758_v11  ;;  %v10761_v34 = vpop.f32.mrb[150].mxu0  ;;  %v10852_v56 = vpop.f32.mrb[148].mxu1 }
 0x420   :  { %v10762_v20 = vpop.f32.mrb[151].mxu0  ;;  %v10853_v4 = vpop.f32.mrb[149].mxu1 }
 0x421   :  { %v7612_v21 = vadd.f32 %v10760_v62, %v14735_v40  ;;  %v10763_v14 = vadd.f32 %v10762_v20, %v10761_v34  ;;  %v10854_v3 = vadd.f32 %v10853_v4, %v10852_v56  ;;  %v10855_v44 = vpop.f32.mrb[150].mxu1  ;;  %v8986_v40 = vcombine.low %v513_v39, %v513_v39 }
 0x422   :  { %8162 = vmatmul.mubr.bf16.gmra.mrb[0].mxu0 %v8946_v19  ;;  %v10856_v63 = vpop.f32.mrb[151].mxu1 }
 0x423   :  { %v7615_v32 = vadd.f32 %v10763_v14, %v14743_v15  ;;  %8169 = vmatprep.mubr.bf16.mxu0 %v8987_v29  ;;  %v14972_v57 = vadd.f32 %v10854_v3, %v7612_v21  ;;  %v10857_v60 = vadd.f32 %v10856_v63, %v10855_v44 }
 0x424   :  { %8298 = vmatmul.mubr.bf16.gmra.mrb[0].mxu1 %v8948_v1 }
 0x425   :  { %v10764_v53 = vpop.f32.mrb[152].mxu0  ;;  %v14974_v31 = vadd.f32 %v10857_v60, %v7615_v32  ;;  %9315 = vmatprep.mubr.msk.bf16.mxu1 %vm5549_vm1, %v8989_v23 }
 0x426   :  { %v10765_v7 = vpop.f32.mrb[153].mxu0 }
 0x427   :  { %v10766_v25 = vadd.f32 %v10765_v7, %v10764_v53  ;;  %v10767_v37 = vpop.f32.mrb[154].mxu0  ;;  %v10858_v42 = vpop.f32.mrb[152].mxu1 }
 0x428   :  { %v10768_v52 = vpop.f32.mrb[155].mxu0  ;;  %v10859_v41 = vpop.f32.mrb[153].mxu1 }
 0x429   :  { %v7620_v43 = vadd.f32 %v10766_v25, %v14753_v6  ;;  %v10769_v15 = vadd.f32 %v10768_v52, %v10767_v37  ;;  %v10860_v51 = vadd.f32 %v10859_v41, %v10858_v42  ;;  %v10861_v50 = vpop.f32.mrb[154].mxu1 }
 0x42a   :  { %8170 = vmatmul.mubr.bf16.gmra.mrb[4].mxu0 %v8986_v40  ;;  %v10862_v61 = vpop.f32.mrb[155].mxu1 }
 0x42b   :  { %v7623_v38 = vadd.f32 %v10769_v15, %v14761_v13  ;;  %v14979_v59 = vadd.f32 %v10860_v51, %v7620_v43  ;;  %v10863_v17 = vadd.f32 %v10862_v61, %v10861_v50 }
 0x42c   :  { %8306 = vmatmul.mubr.bf16.gmra.mrb[4].mxu1 %v8988_v45 }
 0x42d   :  { %v10770_v2 = vpop.f32.mrb[156].mxu0  ;;  %v14981_v35 = vadd.f32 %v10863_v17, %v7623_v38 }
 0x42e   :  { %v10771_v39 = vpop.f32.mrb[157].mxu0 }
 0x42f   :  { %v10772_v11 = vadd.f32 %v10771_v39, %v10770_v2  ;;  %v10773_v55 = vpop.f32.mrb[158].mxu0  ;;  %v10864_v6 = vpop.f32.mrb[156].mxu1 }
 0x430   :  { %v10774_v19 = vpop.f32.mrb[159].mxu0  ;;  %v10865_v34 = vpop.f32.mrb[157].mxu1 }
 0x431   :  { %v7628_v62 = vadd.f32 %v10772_v11, %v14771_v30  ;;  %v10866_v29 = vadd.f32 %v10865_v34, %v10864_v6  ;;  %v10867_v10 = vpop.f32.mrb[158].mxu1 }
 0x432   :  { %v10868_v56 = vpop.f32.mrb[159].mxu1 }
 0x433   :  { %v14984_v13 = vadd.f32 %v10866_v29, %v7628_v62 }
 0x435   :  { %v10886_v20 = vpop.f32.mrb[160].mxu0 }
 0x436   :  { %v10887_v21 = vpop.f32.mrb[161].mxu0 }
 0x437   :  { %v10888_v14 = vadd.f32 %v10887_v21, %v10886_v20  ;;  %v10889_v4 = vpop.f32.mrb[162].mxu0  ;;  %v10980_v1 = vpop.f32.mrb[160].mxu1 }
 0x438   :  { %v10890_v3 = vpop.f32.mrb[163].mxu0  ;;  %v10981_v32 = vpop.f32.mrb[161].mxu1 }
 0x439   :  { %v7804_v44 = vadd.f32 %v10888_v14, %v14788_v5  ;;  %v10891_v23 = vadd.f32 %v10890_v3, %v10889_v4  ;;  %v10982_v63 = vadd.f32 %v10981_v32, %v10980_v1  ;;  %v10983_v60 = vpop.f32.mrb[162].mxu1 }
 0x43a   :  { %v10984_v53 = vpop.f32.mrb[163].mxu1 }
 0x43b   :  { %v7807_v30 = vadd.f32 %v10891_v23, %v14796_v36  ;;  %v14988_v7 = vadd.f32 %v10982_v63, %v7804_v44  ;;  %v10985_v40 = vadd.f32 %v10984_v53, %v10983_v60 }
 0x43d   :  { %v10892_v25 = vpop.f32.mrb[164].mxu0  ;;  %v14990_v37 = vadd.f32 %v10985_v40, %v7807_v30 }
 0x43e   :  { %v10893_v42 = vpop.f32.mrb[165].mxu0 }
 0x43f   :  { %v10894_v52 = vadd.f32 %v10893_v42, %v10892_v25  ;;  %v10895_v43 = vpop.f32.mrb[166].mxu0  ;;  %v10986_v15 = vpop.f32.mrb[164].mxu1 }
 0x440   :  { %v10896_v41 = vpop.f32.mrb[167].mxu0  ;;  %v10987_v51 = vpop.f32.mrb[165].mxu1 }
 0x441   :  { %v7812_v5 = vadd.f32 %v10894_v52, %v14807_v28  ;;  %v10897_v45 = vadd.f32 %v10896_v41, %v10895_v43  ;;  %v10988_v50 = vadd.f32 %v10987_v51, %v10986_v15  ;;  %v10989_v38 = vpop.f32.mrb[166].mxu1 }
 0x442   :  { %v10990_v61 = vpop.f32.mrb[167].mxu1 }
 0x443   :  { %v7815_v36 = vadd.f32 %v10897_v45, %v14815_v48  ;;  %v14994_v17 = vadd.f32 %v10988_v50, %v7812_v5  ;;  %v10991_v2 = vadd.f32 %v10990_v61, %v10989_v38 }
 0x445   :  { %v10898_v39 = vpop.f32.mrb[168].mxu0  ;;  %v14996_v11 = vadd.f32 %v10991_v2, %v7815_v36 }
 0x446   :  { %v10899_v55 = vpop.f32.mrb[169].mxu0 }
 0x447   :  { %v10900_v6 = vadd.f32 %v10899_v55, %v10898_v39  ;;  %v10901_v19 = vpop.f32.mrb[170].mxu0  ;;  %v10992_v62 = vpop.f32.mrb[168].mxu1 }
 0x448   :  { %v10902_v34 = vpop.f32.mrb[171].mxu0  ;;  %v10993_v10 = vpop.f32.mrb[169].mxu1 }
 0x449   :  { %v7820_v28 = vadd.f32 %v10900_v6, %v14826_v9  ;;  %v10903_v29 = vadd.f32 %v10902_v34, %v10901_v19  ;;  %v10994_v56 = vadd.f32 %v10993_v10, %v10992_v62  ;;  %v10995_v20 = vpop.f32.mrb[170].mxu1 }
 0x44a   :  { %v10996_v21 = vpop.f32.mrb[171].mxu1 }
 0x44b   :  { %v7823_v48 = vadd.f32 %v10903_v29, %v14834_v12  ;;  %v15000_v14 = vadd.f32 %v10994_v56, %v7820_v28  ;;  %v10997_v4 = vadd.f32 %v10996_v21, %v10995_v20 }
 0x44d   :  { %v10904_v1 = vpop.f32.mrb[172].mxu0  ;;  %v15002_v3 = vadd.f32 %v10997_v4, %v7823_v48 }
 0x44e   :  { %v10905_v44 = vpop.f32.mrb[173].mxu0 }
 0x44f   :  { %v10906_v23 = vadd.f32 %v10905_v44, %v10904_v1  ;;  %v10907_v32 = vpop.f32.mrb[174].mxu0  ;;  %v10998_v63 = vpop.f32.mrb[172].mxu1 }
 0x450   :  { %v10908_v60 = vpop.f32.mrb[175].mxu0  ;;  %v10999_v53 = vpop.f32.mrb[173].mxu1 }
 0x451   :  { %v7828_v9 = vadd.f32 %v10906_v23, %v14845_v24  ;;  %v10909_v30 = vadd.f32 %v10908_v60, %v10907_v32  ;;  %v11000_v40 = vadd.f32 %v10999_v53, %v10998_v63  ;;  %v11001_v25 = vpop.f32.mrb[174].mxu1 }
 0x452   :  { %v11002_v42 = vpop.f32.mrb[175].mxu1 }
 0x453   :  { %v7831_v12 = vadd.f32 %v10909_v30, %v14853_v26  ;;  %v15006_v52 = vadd.f32 %v11000_v40, %v7828_v9  ;;  %v11003_v43 = vadd.f32 %v11002_v42, %v11001_v25 }
 0x455   :  { %v10910_v15 = vpop.f32.mrb[176].mxu0  ;;  %v15008_v41 = vadd.f32 %v11003_v43, %v7831_v12 }
 0x456   :  { %v10911_v5 = vpop.f32.mrb[177].mxu0 }
 0x457   :  { %v10912_v45 = vadd.f32 %v10911_v5, %v10910_v15  ;;  %v10913_v51 = vpop.f32.mrb[178].mxu0  ;;  %v11004_v50 = vpop.f32.mrb[176].mxu1 }
 0x458   :  { %v10914_v38 = vpop.f32.mrb[179].mxu0  ;;  %v11005_v61 = vpop.f32.mrb[177].mxu1 }
 0x459   :  { %v7836_v24 = vadd.f32 %v10912_v45, %v14864_v16  ;;  %v10915_v36 = vadd.f32 %v10914_v38, %v10913_v51  ;;  %v11006_v2 = vadd.f32 %v11005_v61, %v11004_v50  ;;  %v11007_v39 = vpop.f32.mrb[178].mxu1 }
 0x45a   :  { %v11008_v55 = vpop.f32.mrb[179].mxu1 }
 0x45b   :  { %v7839_v26 = vadd.f32 %v10915_v36, %v14872_v27  ;;  %v15012_v6 = vadd.f32 %v11006_v2, %v7836_v24  ;;  %v11009_v19 = vadd.f32 %v11008_v55, %v11007_v39 }
 0x45d   :  { %v10916_v62 = vpop.f32.mrb[180].mxu0  ;;  %v15014_v34 = vadd.f32 %v11009_v19, %v7839_v26 }
 0x45e   :  { %v10917_v28 = vpop.f32.mrb[181].mxu0 }
 0x45f   :  { %v10918_v29 = vadd.f32 %v10917_v28, %v10916_v62  ;;  %v10919_v10 = vpop.f32.mrb[182].mxu0  ;;  %v11010_v56 = vpop.f32.mrb[180].mxu1 }
 0x460   :  { %v10920_v20 = vpop.f32.mrb[183].mxu0  ;;  %v11011_v21 = vpop.f32.mrb[181].mxu1 }
 0x461   :  { %v7844_v16 = vadd.f32 %v10918_v29, %v14883_v47  ;;  %v10921_v48 = vadd.f32 %v10920_v20, %v10919_v10  ;;  %v11012_v4 = vadd.f32 %v11011_v21, %v11010_v56  ;;  %v11013_v1 = vpop.f32.mrb[182].mxu1 }
 0x462   :  { %v11014_v44 = vpop.f32.mrb[183].mxu1 }
 0x463   :  { %v7847_v27 = vadd.f32 %v10921_v48, %v14891_v58  ;;  %v15018_v23 = vadd.f32 %v11012_v4, %v7844_v16  ;;  %v11015_v32 = vadd.f32 %v11014_v44, %v11013_v1 }
 0x465   :  { %v10922_v63 = vpop.f32.mrb[184].mxu0  ;;  %v15020_v60 = vadd.f32 %v11015_v32, %v7847_v27 }
 0x466   :  { %v10923_v9 = vpop.f32.mrb[185].mxu0 }
 0x467   :  { %v10924_v30 = vadd.f32 %v10923_v9, %v10922_v63  ;;  %v10925_v53 = vpop.f32.mrb[186].mxu0  ;;  %v11016_v40 = vpop.f32.mrb[184].mxu1 }
 0x468   :  { %v10926_v25 = vpop.f32.mrb[187].mxu0  ;;  %v11017_v42 = vpop.f32.mrb[185].mxu1 }
 0x469   :  { %v7852_v47 = vadd.f32 %v10924_v30, %v14902_v22  ;;  %v10927_v12 = vadd.f32 %v10926_v25, %v10925_v53  ;;  %v11018_v43 = vadd.f32 %v11017_v42, %v11016_v40  ;;  %v11019_v15 = vpop.f32.mrb[186].mxu1 }
 0x46a   :  { %v11020_v5 = vpop.f32.mrb[187].mxu1 }
 0x46b   :  { %v7855_v58 = vadd.f32 %v10927_v12, %v14910_v33  ;;  %v15024_v45 = vadd.f32 %v11018_v43, %v7852_v47  ;;  %v11021_v51 = vadd.f32 %v11020_v5, %v11019_v15 }
 0x46d   :  { %v10928_v50 = vpop.f32.mrb[188].mxu0  ;;  %v15026_v38 = vadd.f32 %v11021_v51, %v7855_v58 }
 0x46e   :  { %v10929_v24 = vpop.f32.mrb[189].mxu0 }
 0x46f   :  { %v10930_v36 = vadd.f32 %v10929_v24, %v10928_v50  ;;  %v10931_v61 = vpop.f32.mrb[190].mxu0  ;;  %v11022_v2 = vpop.f32.mrb[188].mxu1 }
 0x470   :  { %v10932_v39 = vpop.f32.mrb[191].mxu0  ;;  %v11023_v55 = vpop.f32.mrb[189].mxu1 }
 0x471   :  { %v7860_v22 = vadd.f32 %v10930_v36, %v14921_v0  ;;  %v10933_v26 = vadd.f32 %v10932_v39, %v10931_v61  ;;  %v11024_v19 = vadd.f32 %v11023_v55, %v11022_v2  ;;  %v11025_v62 = vpop.f32.mrb[190].mxu1 }
 0x472   :  { %v11026_v28 = vpop.f32.mrb[191].mxu1 }
 0x473   :  { %v7863_v33 = vadd.f32 %v10933_v26, %v14929_v18  ;;  %v15030_v29 = vadd.f32 %v11024_v19, %v7860_v22  ;;  %v11027_v10 = vadd.f32 %v11026_v28, %v11025_v62 }
 0x475   :  { %v10934_v56 = vpop.f32.mrb[192].mxu0  ;;  %v15032_v20 = vadd.f32 %v11027_v10, %v7863_v33 }
 0x476   :  { %v10935_v16 = vpop.f32.mrb[193].mxu0 }
 0x477   :  { %v10936_v48 = vadd.f32 %v10935_v16, %v10934_v56  ;;  %v10937_v21 = vpop.f32.mrb[194].mxu0  ;;  %v11028_v4 = vpop.f32.mrb[192].mxu1 }
 0x478   :  { %v10938_v1 = vpop.f32.mrb[195].mxu0  ;;  %v11029_v44 = vpop.f32.mrb[193].mxu1 }
 0x479   :  { %v7868_v0 = vadd.f32 %v10936_v48, %v14940_v49  ;;  %v10939_v27 = vadd.f32 %v10938_v1, %v10937_v21  ;;  %v11030_v32 = vadd.f32 %v11029_v44, %v11028_v4  ;;  %v11031_v63 = vpop.f32.mrb[194].mxu1 }
 0x47a   :  { %v11032_v9 = vpop.f32.mrb[195].mxu1 }
 0x47b   :  { %v7871_v18 = vadd.f32 %v10939_v27, %v14948_v46  ;;  %v15036_v30 = vadd.f32 %v11030_v32, %v7868_v0  ;;  %v11033_v53 = vadd.f32 %v11032_v9, %v11031_v63 }
 0x47d   :  { %v10940_v40 = vpop.f32.mrb[196].mxu0  ;;  %v15038_v25 = vadd.f32 %v11033_v53, %v7871_v18 }
 0x47e   :  { %v10941_v47 = vpop.f32.mrb[197].mxu0 }
 0x47f   :  { %v10942_v12 = vadd.f32 %v10941_v47, %v10940_v40  ;;  %v10943_v42 = vpop.f32.mrb[198].mxu0  ;;  %v11034_v43 = vpop.f32.mrb[196].mxu1 }
 0x480   :  { %v10944_v15 = vpop.f32.mrb[199].mxu0  ;;  %v11035_v5 = vpop.f32.mrb[197].mxu1 }
 0x481   :  { %v7876_v49 = vadd.f32 %v10942_v12, %v14959_v8  ;;  %v10945_v58 = vadd.f32 %v10944_v15, %v10943_v42  ;;  %v11036_v51 = vadd.f32 %v11035_v5, %v11034_v43  ;;  %v11037_v50 = vpop.f32.mrb[198].mxu1 }
 0x482   :  { %v11038_v24 = vpop.f32.mrb[199].mxu1 }
 0x483   :  { %v7879_v46 = vadd.f32 %v10945_v58, %v14964_v54  ;;  %v15042_v36 = vadd.f32 %v11036_v51, %v7876_v49  ;;  %v11039_v61 = vadd.f32 %v11038_v24, %v11037_v50 }
 0x485   :  { %v10946_v2 = vpop.f32.mrb[200].mxu0  ;;  %v15044_v39 = vadd.f32 %v11039_v61, %v7879_v46 }
 0x486   :  { %v10947_v22 = vpop.f32.mrb[201].mxu0 }
 0x487   :  { %v10948_v26 = vadd.f32 %v10947_v22, %v10946_v2  ;;  %v10949_v55 = vpop.f32.mrb[202].mxu0  ;;  %v11040_v19 = vpop.f32.mrb[200].mxu1 }
 0x488   :  { %v10950_v62 = vpop.f32.mrb[203].mxu0  ;;  %v11041_v28 = vpop.f32.mrb[201].mxu1 }
 0x489   :  { %v7884_v8 = vadd.f32 %v10948_v26, %v14972_v57  ;;  %v10951_v33 = vadd.f32 %v10950_v62, %v10949_v55  ;;  %v11042_v10 = vadd.f32 %v11041_v28, %v11040_v19  ;;  %v11043_v56 = vpop.f32.mrb[202].mxu1 }
 0x48a   :  { %v11044_v16 = vpop.f32.mrb[203].mxu1 }
 0x48b   :  { %v7887_v54 = vadd.f32 %v10951_v33, %v14974_v31  ;;  %v15048_v48 = vadd.f32 %v11042_v10, %v7884_v8  ;;  %v11045_v21 = vadd.f32 %v11044_v16, %v11043_v56 }
 0x48d   :  { %v10952_v4 = vpop.f32.mrb[204].mxu0  ;;  %v15050_v1 = vadd.f32 %v11045_v21, %v7887_v54 }
 0x48e   :  { %v10953_v0 = vpop.f32.mrb[205].mxu0 }
 0x48f   :  { %v10954_v27 = vadd.f32 %v10953_v0, %v10952_v4  ;;  %v10955_v44 = vpop.f32.mrb[206].mxu0  ;;  %v11046_v32 = vpop.f32.mrb[204].mxu1 }
 0x490   :  { %v10956_v63 = vpop.f32.mrb[207].mxu0  ;;  %v11047_v9 = vpop.f32.mrb[205].mxu1 }
 0x491   :  { %v7892_v57 = vadd.f32 %v10954_v27, %v14979_v59  ;;  %v10957_v18 = vadd.f32 %v10956_v63, %v10955_v44  ;;  %v11048_v53 = vadd.f32 %v11047_v9, %v11046_v32  ;;  %v11049_v40 = vpop.f32.mrb[206].mxu1 }
 0x492   :  { %v11050_v47 = vpop.f32.mrb[207].mxu1 }
 0x493   :  { %v7895_v31 = vadd.f32 %v10957_v18, %v14981_v35  ;;  %v15054_v12 = vadd.f32 %v11048_v53, %v7892_v57  ;;  %v11051_v42 = vadd.f32 %v11050_v47, %v11049_v40 }
 0x495   :  { %v10958_v43 = vpop.f32.mrb[208].mxu0  ;;  %v15056_v15 = vadd.f32 %v11051_v42, %v7895_v31 }
 0x496   :  { %v10959_v49 = vpop.f32.mrb[209].mxu0 }
 0x497   :  { %v10960_v58 = vadd.f32 %v10959_v49, %v10958_v43  ;;  %v10961_v5 = vpop.f32.mrb[210].mxu0  ;;  %v11052_v51 = vpop.f32.mrb[208].mxu1 }
 0x498   :  { %v10962_v50 = vpop.f32.mrb[211].mxu0  ;;  %v11053_v46 = vpop.f32.mrb[209].mxu1 }
 0x499   :  { %v7900_v59 = vadd.f32 %v10960_v58, %v14984_v13  ;;  %v11054_v24 = vadd.f32 %v11053_v46, %v11052_v51  ;;  %v11055_v61 = vpop.f32.mrb[210].mxu1 }
 0x49a   :  { %v11056_v2 = vpop.f32.mrb[211].mxu1 }
 0x49b   :  { %v15059_v22 = vadd.f32 %v11054_v24, %v7900_v59 }
 0x49d   :  { %v11074_v35 = vpop.f32.mrb[212].mxu0 }
 0x49e   :  { %v11075_v26 = vpop.f32.mrb[213].mxu0 }
 0x49f   :  { %v11076_v55 = vadd.f32 %v11075_v26, %v11074_v35  ;;  %v11077_v19 = vpop.f32.mrb[214].mxu0  ;;  %v8211_v8 = vpop.f32.mrb[212].mxu1 }
 0x4a0   :  { %v11078_v62 = vpop.f32.mrb[215].mxu0  ;;  %v8213_v10 = vpop.f32.mrb[213].mxu1 }
 0x4a1   :  { %v11079_v33 = vadd.f32 %v11078_v62, %v11077_v19  ;;  %v8076_v28 = vadd.f32 %v11076_v55, %v14988_v7  ;;  %v8214_v56 = vpop.f32.mrb[214].mxu1 }
 0x4a2   :  { %v8216_v16 = vpop.f32.mrb[215].mxu1 }
 0x4a3   :  { %v8212_v54 = vadd.f32 %v8211_v8, %v8076_v28  ;;  %v8079_v13 = vadd.f32 %v11079_v33, %v14990_v37 }
 0x4a5   :  { %v8313_v21 = vmax.f32 %v8212_v54, 0.0  ;;  %v8215_v4 = vadd.f32 %v8214_v56, %v8079_v13  ;;  %v11080_v0 = vpop.f32.mrb[216].mxu0 }
 0x4a6   :  { %v11081_v27 = vpop.f32.mrb[217].mxu0 }
 0x4a7   :  { %v9341_v44 = vpack.c.bf16 %v8313_v21, %v8313_v21  ;;  %v8314_v32 = vmax.f32 %v8215_v4, 0.0  ;;  %v11082_v63 = vadd.f32 %v11081_v27, %v11080_v0  ;;  %v11083_v57 = vpop.f32.mrb[218].mxu0  ;;  %v8219_v9 = vpop.f32.mrb[216].mxu1 }
 0x4a8   :  { %v11084_v18 = vpop.f32.mrb[219].mxu0  ;;  %v8221_v40 = vpop.f32.mrb[217].mxu1 }
 0x4a9   :  { %8440 = vst.msk [vmem:[%s15189_s3] sm:$0xf] %vm8439_vm2, %v9341_v44  ;;  %v9342_v7 = vpack.c.bf16 %v8314_v32, %v8314_v32  ;;  %v11085_v53 = vadd.f32 %v11084_v18, %v11083_v57  ;;  %v8084_v37 = vadd.f32 %v11082_v63, %v14994_v17  ;;  %v8222_v31 = vpop.f32.mrb[218].mxu1 }
 0x4aa   :  { %v8224_v43 = vpop.f32.mrb[219].mxu1 }
 0x4ab   :  { %8441 = vst.msk [vmem:[%s15189_s3 + $0x4] sm:$0xf] %vm8439_vm2, %v9342_v7  ;;  %v8220_v47 = vadd.f32 %v8219_v9, %v8084_v37  ;;  %v8087_v42 = vadd.f32 %v11085_v53, %v14996_v11 }
 0x4ad   :  { %v8315_v49 = vmax.f32 %v8220_v47, 0.0  ;;  %v8223_v58 = vadd.f32 %v8222_v31, %v8087_v42  ;;  %v11086_v5 = vpop.f32.mrb[220].mxu0 }
 0x4ae   :  { %v11087_v51 = vpop.f32.mrb[221].mxu0 }
 0x4af   :  { %v9343_v50 = vpack.c.bf16 %v8315_v49, %v8315_v49  ;;  %v8316_v59 = vmax.f32 %v8223_v58, 0.0  ;;  %v11088_v46 = vadd.f32 %v11087_v51, %v11086_v5  ;;  %v11089_v24 = vpop.f32.mrb[222].mxu0  ;;  %v8227_v61 = vpop.f32.mrb[220].mxu1 }
 0x4b0   :  { %v11090_v17 = vpop.f32.mrb[223].mxu0  ;;  %v8229_v26 = vpop.f32.mrb[221].mxu1 }
 0x4b1   :  { %8442 = vst.msk [vmem:[%s15189_s3 + $0x8] sm:$0xf] %vm8439_vm2, %v9343_v50  ;;  %v9344_v2 = vpack.c.bf16 %v8316_v59, %v8316_v59  ;;  %v11091_v35 = vadd.f32 %v11090_v17, %v11089_v24  ;;  %v8092_v11 = vadd.f32 %v11088_v46, %v15000_v14  ;;  %v8230_v55 = vpop.f32.mrb[222].mxu1 }
 0x4b2   :  { %v8232_v8 = vpop.f32.mrb[223].mxu1 }
 0x4b3   :  { %8443 = vst.msk [vmem:[%s15189_s3 + $0xc] sm:$0xf] %vm8439_vm2, %v9344_v2  ;;  %v8228_v19 = vadd.f32 %v8227_v61, %v8092_v11  ;;  %v8095_v62 = vadd.f32 %v11091_v35, %v15002_v3 }
 0x4b5   :  { %v8317_v33 = vmax.f32 %v8228_v19, 0.0  ;;  %v8231_v28 = vadd.f32 %v8230_v55, %v8095_v62  ;;  %v11092_v10 = vpop.f32.mrb[224].mxu0 }
 0x4b6   :  { %v11093_v56 = vpop.f32.mrb[225].mxu0 }
 0x4b7   :  { %v9345_v54 = vpack.c.bf16 %v8317_v33, %v8317_v33  ;;  %v8318_v13 = vmax.f32 %v8231_v28, 0.0  ;;  %v11094_v16 = vadd.f32 %v11093_v56, %v11092_v10  ;;  %v11095_v21 = vpop.f32.mrb[226].mxu0  ;;  %v8235_v4 = vpop.f32.mrb[224].mxu1 }
 0x4b8   :  { %v11096_v14 = vpop.f32.mrb[227].mxu0  ;;  %v8237_v44 = vpop.f32.mrb[225].mxu1 }
 0x4b9   :  { %8444 = vst.msk [vmem:[%s15189_s3 + $0x10] sm:$0xf] %vm8439_vm2, %v9345_v54  ;;  %v9346_v0 = vpack.c.bf16 %v8318_v13, %v8318_v13  ;;  %v11097_v27 = vadd.f32 %v11096_v14, %v11095_v21  ;;  %v8100_v3 = vadd.f32 %v11094_v16, %v15006_v52  ;;  %v8238_v32 = vpop.f32.mrb[226].mxu1 }
 0x4ba   :  { %v8240_v18 = vpop.f32.mrb[227].mxu1 }
 0x4bb   :  { %8445 = vst.msk [vmem:[%s15189_s3 + $0x14] sm:$0xf] %vm8439_vm2, %v9346_v0  ;;  %v8236_v63 = vadd.f32 %v8235_v4, %v8100_v3  ;;  %v8103_v57 = vadd.f32 %v11097_v27, %v15008_v41 }
 0x4bd   :  { %v8319_v9 = vmax.f32 %v8236_v63, 0.0  ;;  %v8239_v7 = vadd.f32 %v8238_v32, %v8103_v57  ;;  %v11098_v53 = vpop.f32.mrb[228].mxu0 }
 0x4be   :  { %v11099_v37 = vpop.f32.mrb[229].mxu0 }
 0x4bf   :  { %v9347_v40 = vpack.c.bf16 %v8319_v9, %v8319_v9  ;;  %v8320_v31 = vmax.f32 %v8239_v7, 0.0  ;;  %v11100_v47 = vadd.f32 %v11099_v37, %v11098_v53  ;;  %v11101_v42 = vpop.f32.mrb[230].mxu0  ;;  %v8243_v43 = vpop.f32.mrb[228].mxu1 }
 0x4c0   :  { %v11102_v52 = vpop.f32.mrb[231].mxu0  ;;  %v8245_v5 = vpop.f32.mrb[229].mxu1 }
 0x4c1   :  { %8446 = vst.msk [vmem:[%s15189_s3 + $0x18] sm:$0xf] %vm8439_vm2, %v9347_v40  ;;  %v9348_v49 = vpack.c.bf16 %v8320_v31, %v8320_v31  ;;  %v11103_v58 = vadd.f32 %v11102_v52, %v11101_v42  ;;  %v8108_v41 = vadd.f32 %v11100_v47, %v15012_v6  ;;  %v8246_v51 = vpop.f32.mrb[230].mxu1 }
 0x4c2   :  { %v8248_v46 = vpop.f32.mrb[231].mxu1 }
 0x4c3   :  { %8447 = vst.msk [vmem:[%s15189_s3 + $0x1c] sm:$0xf] %vm8439_vm2, %v9348_v49  ;;  %v8244_v50 = vadd.f32 %v8243_v43, %v8108_v41  ;;  %v8111_v59 = vadd.f32 %v11103_v58, %v15014_v34 }
 0x4c5   :  { %v8321_v24 = vmax.f32 %v8244_v50, 0.0  ;;  %v8247_v17 = vadd.f32 %v8246_v51, %v8111_v59  ;;  %v11104_v61 = vpop.f32.mrb[232].mxu0 }
 0x4c6   :  { %v11105_v2 = vpop.f32.mrb[233].mxu0 }
 0x4c7   :  { %v9349_v35 = vpack.c.bf16 %v8321_v24, %v8321_v24  ;;  %v8322_v11 = vmax.f32 %v8247_v17, 0.0  ;;  %v11106_v26 = vadd.f32 %v11105_v2, %v11104_v61  ;;  %v11107_v55 = vpop.f32.mrb[234].mxu0  ;;  %v8251_v19 = vpop.f32.mrb[232].mxu1 }
 0x4c8   :  { %v11108_v6 = vpop.f32.mrb[235].mxu0  ;;  %v8253_v33 = vpop.f32.mrb[233].mxu1 }
 0x4c9   :  { %8448 = vst.msk [vmem:[%s15189_s3 + $0x20] sm:$0xf] %vm8439_vm2, %v9349_v35  ;;  %v9350_v62 = vpack.c.bf16 %v8322_v11, %v8322_v11  ;;  %v11109_v8 = vadd.f32 %v11108_v6, %v11107_v55  ;;  %v8116_v34 = vadd.f32 %v11106_v26, %v15018_v23  ;;  %v8254_v28 = vpop.f32.mrb[234].mxu1 }
 0x4ca   :  { %v8256_v54 = vpop.f32.mrb[235].mxu1 }
 0x4cb   :  { %8449 = vst.msk [vmem:[%s15189_s3 + $0x24] sm:$0xf] %vm8439_vm2, %v9350_v62  ;;  %v8252_v10 = vadd.f32 %v8251_v19, %v8116_v34  ;;  %v8119_v56 = vadd.f32 %v11109_v8, %v15020_v60 }
 0x4cd   :  { %v8323_v13 = vmax.f32 %v8252_v10, 0.0  ;;  %v8255_v16 = vadd.f32 %v8254_v28, %v8119_v56  ;;  %v11110_v21 = vpop.f32.mrb[236].mxu0 }
 0x4ce   :  { %v11111_v14 = vpop.f32.mrb[237].mxu0 }
 0x4cf   :  { %v9351_v4 = vpack.c.bf16 %v8323_v13, %v8323_v13  ;;  %v8324_v0 = vmax.f32 %v8255_v16, 0.0  ;;  %v11112_v27 = vadd.f32 %v11111_v14, %v11110_v21  ;;  %v11113_v3 = vpop.f32.mrb[238].mxu0  ;;  %v8259_v44 = vpop.f32.mrb[236].mxu1 }
 0x4d0   :  { %v11114_v23 = vpop.f32.mrb[239].mxu0  ;;  %v8261_v57 = vpop.f32.mrb[237].mxu1 }
 0x4d1   :  { %8450 = vst.msk [vmem:[%s15189_s3 + $0x28] sm:$0xf] %vm8439_vm2, %v9351_v4  ;;  %v9352_v32 = vpack.c.bf16 %v8324_v0, %v8324_v0  ;;  %v11115_v63 = vadd.f32 %v11114_v23, %v11113_v3  ;;  %v8124_v60 = vadd.f32 %v11112_v27, %v15024_v45  ;;  %v8262_v18 = vpop.f32.mrb[238].mxu1 }
 0x4d2   :  { %v8264_v53 = vpop.f32.mrb[239].mxu1 }
 0x4d3   :  { %8451 = vst.msk [vmem:[%s15189_s3 + $0x2c] sm:$0xf] %vm8439_vm2, %v9352_v32  ;;  %v8260_v9 = vadd.f32 %v8259_v44, %v8124_v60  ;;  %v8127_v7 = vadd.f32 %v11115_v63, %v15026_v38 }
 0x4d5   :  { %v8325_v37 = vmax.f32 %v8260_v9, 0.0  ;;  %v8263_v40 = vadd.f32 %v8262_v18, %v8127_v7  ;;  %v11116_v31 = vpop.f32.mrb[240].mxu0 }
 0x4d6   :  { %v11117_v47 = vpop.f32.mrb[241].mxu0 }
 0x4d7   :  { %v9353_v42 = vpack.c.bf16 %v8325_v37, %v8325_v37  ;;  %v8326_v52 = vmax.f32 %v8263_v40, 0.0  ;;  %v11118_v43 = vadd.f32 %v11117_v47, %v11116_v31  ;;  %v11119_v49 = vpop.f32.mrb[242].mxu0  ;;  %v8267_v58 = vpop.f32.mrb[240].mxu1 }
 0x4d8   :  { %v11120_v45 = vpop.f32.mrb[243].mxu0  ;;  %v8269_v51 = vpop.f32.mrb[241].mxu1 }
 0x4d9   :  { %8452 = vst.msk [vmem:[%s15189_s3 + $0x30] sm:$0xf] %vm8439_vm2, %v9353_v42  ;;  %v9354_v41 = vpack.c.bf16 %v8326_v52, %v8326_v52  ;;  %v11121_v5 = vadd.f32 %v11120_v45, %v11119_v49  ;;  %v8132_v38 = vadd.f32 %v11118_v43, %v15030_v29  ;;  %v8270_v50 = vpop.f32.mrb[242].mxu1 }
 0x4da   :  { %v8272_v24 = vpop.f32.mrb[243].mxu1 }
 0x4db   :  { %8453 = vst.msk [vmem:[%s15189_s3 + $0x34] sm:$0xf] %vm8439_vm2, %v9354_v41  ;;  %v8268_v59 = vadd.f32 %v8267_v58, %v8132_v38  ;;  %v8135_v46 = vadd.f32 %v11121_v5, %v15032_v20 }
 0x4dd   :  { %v8327_v17 = vmax.f32 %v8268_v59, 0.0  ;;  %v8271_v61 = vadd.f32 %v8270_v50, %v8135_v46  ;;  %v11122_v2 = vpop.f32.mrb[244].mxu0 }
 0x4de   :  { %v11123_v35 = vpop.f32.mrb[245].mxu0 }
 0x4df   :  { %v9355_v11 = vpack.c.bf16 %v8327_v17, %v8327_v17  ;;  %v8328_v26 = vmax.f32 %v8271_v61, 0.0  ;;  %v11124_v55 = vadd.f32 %v11123_v35, %v11122_v2  ;;  %v11125_v6 = vpop.f32.mrb[246].mxu0  ;;  %v8275_v19 = vpop.f32.mrb[244].mxu1 }
 0x4e0   :  { %v11126_v29 = vpop.f32.mrb[247].mxu0  ;;  %v8277_v34 = vpop.f32.mrb[245].mxu1 }
 0x4e1   :  { %8454 = vst.msk [vmem:[%s15189_s3 + $0x38] sm:$0xf] %vm8439_vm2, %v9355_v11  ;;  %v9356_v62 = vpack.c.bf16 %v8328_v26, %v8328_v26  ;;  %v11127_v8 = vadd.f32 %v11126_v29, %v11125_v6  ;;  %v8140_v20 = vadd.f32 %v11124_v55, %v15036_v30  ;;  %v8278_v33 = vpop.f32.mrb[246].mxu1 }
 0x4e2   :  { %v8280_v56 = vpop.f32.mrb[247].mxu1 }
 0x4e3   :  { %8455 = vst.msk [vmem:[%s15189_s3 + $0x3c] sm:$0xf] %vm8439_vm2, %v9356_v62  ;;  %v8276_v28 = vadd.f32 %v8275_v19, %v8140_v20  ;;  %v8143_v10 = vadd.f32 %v11127_v8, %v15038_v25 }
 0x4e5   :  { %v8329_v54 = vmax.f32 %v8276_v28, 0.0  ;;  %v8279_v13 = vadd.f32 %v8278_v33, %v8143_v10  ;;  %v11128_v16 = vpop.f32.mrb[248].mxu0 }
 0x4e6   :  { %v11129_v21 = vpop.f32.mrb[249].mxu0 }
 0x4e7   :  { %v9357_v14 = vpack.c.bf16 %v8329_v54, %v8329_v54  ;;  %v8330_v4 = vmax.f32 %v8279_v13, 0.0  ;;  %v11130_v0 = vadd.f32 %v11129_v21, %v11128_v16  ;;  %v11131_v27 = vpop.f32.mrb[250].mxu0  ;;  %v8283_v3 = vpop.f32.mrb[248].mxu1 }
 0x4e8   :  { %v11132_v30 = vpop.f32.mrb[251].mxu0  ;;  %v8285_v32 = vpop.f32.mrb[249].mxu1 }
 0x4e9   :  { %8456 = vst.msk [vmem:[%s15189_s3 + $0x40] sm:$0xf] %vm8439_vm2, %v9357_v14  ;;  %v9358_v23 = vpack.c.bf16 %v8330_v4, %v8330_v4  ;;  %v11133_v44 = vadd.f32 %v11132_v30, %v11131_v27  ;;  %v8148_v25 = vadd.f32 %v11130_v0, %v15042_v36  ;;  %v8286_v63 = vpop.f32.mrb[250].mxu1 }
 0x4ea   :  { %v8288_v18 = vpop.f32.mrb[251].mxu1 }
 0x4eb   :  { %8457 = vst.msk [vmem:[%s15189_s3 + $0x44] sm:$0xf] %vm8439_vm2, %v9358_v23  ;;  %v8284_v60 = vadd.f32 %v8283_v3, %v8148_v25  ;;  %v8151_v57 = vadd.f32 %v11133_v44, %v15044_v39 }
 0x4ed   :  { %v8331_v9 = vmax.f32 %v8284_v60, 0.0  ;;  %v8287_v7 = vadd.f32 %v8286_v63, %v8151_v57  ;;  %v11134_v53 = vpop.f32.mrb[252].mxu0 }
 0x4ee   :  { %v11135_v37 = vpop.f32.mrb[253].mxu0 }
 0x4ef   :  { %v9359_v40 = vpack.c.bf16 %v8331_v9, %v8331_v9  ;;  %v8332_v31 = vmax.f32 %v8287_v7, 0.0  ;;  %v11136_v47 = vadd.f32 %v11135_v37, %v11134_v53  ;;  %v11137_v42 = vpop.f32.mrb[254].mxu0  ;;  %v8291_v52 = vpop.f32.mrb[252].mxu1 }
 0x4f0   :  { %v11138_v36 = vpop.f32.mrb[255].mxu0  ;;  %v8293_v45 = vpop.f32.mrb[253].mxu1 }
 0x4f1   :  { %8458 = vst.msk [vmem:[%s15189_s3 + $0x48] sm:$0xf] %vm8439_vm2, %v9359_v40  ;;  %v9360_v43 = vpack.c.bf16 %v8332_v31, %v8332_v31  ;;  %v11139_v49 = vadd.f32 %v11138_v36, %v11137_v42  ;;  %v8156_v39 = vadd.f32 %v11136_v47, %v15048_v48  ;;  %v8294_v58 = vpop.f32.mrb[254].mxu1 }
 0x4f2   :  { %v8296_v38 = vpop.f32.mrb[255].mxu1 }
 0x4f3   :  { %8459 = vst.msk [vmem:[%s15189_s3 + $0x4c] sm:$0xf] %vm8439_vm2, %v9360_v43  ;;  %v8292_v41 = vadd.f32 %v8291_v52, %v8156_v39  ;;  %v8159_v5 = vadd.f32 %v11139_v49, %v15050_v1 }
 0x4f5   :  { %v8333_v51 = vmax.f32 %v8292_v41, 0.0  ;;  %v8295_v50 = vadd.f32 %v8294_v58, %v8159_v5  ;;  %v11140_v59 = vpop.f32.mrb[0].mxu0 }
 0x4f6   :  { %v11141_v46 = vpop.f32.mrb[1].mxu0 }
 0x4f7   :  { %v9361_v24 = vpack.c.bf16 %v8333_v51, %v8333_v51  ;;  %v8334_v17 = vmax.f32 %v8295_v50, 0.0  ;;  %v11142_v61 = vadd.f32 %v11141_v46, %v11140_v59  ;;  %v11143_v2 = vpop.f32.mrb[2].mxu0  ;;  %v8299_v35 = vpop.f32.mrb[0].mxu1 }
 0x4f8   :  { %v11144_v48 = vpop.f32.mrb[3].mxu0  ;;  %v8301_v55 = vpop.f32.mrb[1].mxu1 }
 0x4f9   :  { %8460 = vst.msk [vmem:[%s15189_s3 + $0x50] sm:$0xf] %vm8439_vm2, %v9361_v24  ;;  %v9362_v11 = vpack.c.bf16 %v8334_v17, %v8334_v17  ;;  %v11145_v26 = vadd.f32 %v11144_v48, %v11143_v2  ;;  %v8164_v1 = vadd.f32 %v11142_v61, %v15054_v12  ;;  %v8302_v6 = vpop.f32.mrb[2].mxu1 }
 0x4fa   :  { %v8304_v62 = vpop.f32.mrb[3].mxu1 }
 0x4fb   :  { %8461 = vst.msk [vmem:[%s15189_s3 + $0x54] sm:$0xf] %vm8439_vm2, %v9362_v11  ;;  %v8300_v29 = vadd.f32 %v8299_v35, %v8164_v1  ;;  %v8167_v19 = vadd.f32 %v11145_v26, %v15056_v15 }
 0x4fd   :  { %v8335_v8 = vmax.f32 %v8300_v29, 0.0  ;;  %v8303_v20 = vadd.f32 %v8302_v6, %v8167_v19  ;;  %v11146_v34 = vpop.f32.mrb[4].mxu0 }
 0x4fe   :  { %v11147_v33 = vpop.f32.mrb[5].mxu0 }
 0x4ff   :  { %v9363_v28 = vpack.c.bf16 %v8335_v8, %v8335_v8  ;;  %v8336_v10 = vmax.f32 %v8303_v20, 0.0  ;;  %v11148_v56 = vadd.f32 %v11147_v33, %v11146_v34  ;;  %v11149_v54 = vpop.f32.mrb[6].mxu0  ;;  %v8307_v13 = vpop.f32.mrb[4].mxu1 }
 0x500   :  { %v11150_v12 = vpop.f32.mrb[7].mxu0  ;;  %v8309_v15 = vpop.f32.mrb[5].mxu1 }
 0x501   :  { %8462 = vst.msk [vmem:[%s15189_s3 + $0x58] sm:$0xf] %vm8439_vm2, %v9363_v28  ;;  %v9364_v16 = vpack.c.bf16 %v8336_v10, %v8336_v10  ;;  %v8172_v21 = vadd.f32 %v11148_v56, %v15059_v22  ;;  %v8310_v14 = vpop.f32.mrb[6].mxu1 }
 0x502   :  { %v8311_v0 = vpop.f32.mrb[7].mxu1 }
 0x503   :  { %8463 = vst.msk [vmem:[%s15189_s3 + $0x5c] sm:$0xf] %vm8439_vm2, %v9364_v16  ;;  %v8308_v4 = vadd.f32 %v8307_v13, %v8172_v21 }
 0x505   :  { %v8337_v27 = vmax.f32 %v8308_v4, 0.0 }
 0x507   :  { %v9365_v30 = vpack.c.bf16 %v8337_v27, %v8337_v27 }
 0x509   :  { %8464 = vst.msk [vmem:[%s15189_s3 + $0x60] sm:$0xf] %vm8439_vm2, %v9365_v30 }

// kernel: net_forward.8
= control target key start
LH: loop header
LB: loop body
LE: loop exit
PB: predicated region body
PF: predicated region fallthrough
CT: control target
= control target key end

     0   :  { %s450_s15 = smov 0   ;;  %s481_s0 = inlined_call_operand.vmem [shape: bf16[2,25,16], index: 0, kind: input, shape index: {}]   ;;  %s482_s1 = inlined_call_operand.vmem [shape: bf16[2,25,16], index: 1, kind: input, shape index: {}]   ;;  %s483_s2 = inlined_call_operand.vmem [shape: bf16[2,25,16], index: 2, kind: input, shape index: {}]   ;;  %s484_s3 = inlined_call_operand.vmem [shape: bf16[2,25,16], index: 3, kind: input, shape index: {}]   ;;  %s485_s4 = inlined_call_operand.vmem [shape: bf16[2,25,16], index: 4, kind: output, shape index: {}]  }
   0x1 LB: > { %s387_s16 = sadd.s32 4294967295, %s423_s15   ;;  %p391_p0 = scmp.ge.s32.totalorder %s423_s15, 1  ;;  %s423_s15 = sphi %s450_s15, %s14_s15  }
   0x2   : > { %p192_p1 = scmp.lt.s32.totalorder %s423_s15, 3 }
   0x4   : > { %p193_p2 = pnand %p391_p0, %p192_p1 }
   0x5   : > { %p233_p3 = scmp.lt.s32.totalorder (!%p193_p2), %s387_s16, 1  ;;  %vm286_vm0 = vcmask (!%p193_p2), 125952   ;;  %vm290_vm1 = vcmask (!%p193_p2), 122880   ;;  %vm291_vm2 = vsmask.f32 (!%p193_p2), 256 }
   0x6   : > { %196 = sbr.rel (%p193_p2) target bundleno = 30 (0x1e), region = 36  ;;  %vm292_vm3 = vmand (!%p193_p2), %vm290_vm1, %vm291_vm2 }
   0xd   : > { %s487_s16 = smov (!%p233_p3, %s387_s16), 1 }
   0xe   : > { %s404_s17 = sshll.u32 %s487_s16, 4 }
   0xf   : > { %s237_s20 = scalar_lea.vmem %s481_s0, %s404_s17  ;;  %s242_s23 = scalar_lea.vmem %s482_s1, %s404_s17 }
  0x10   : > { %s247_s26 = scalar_lea.vmem %s483_s2, %s404_s17  ;;  %s252_s29 = scalar_lea.vmem %s484_s3, %s404_s17  ;;  %v258_v0 = vld [vmem:[%s237_s20] sm:$0xf]  ;;  %v259_v2 = vld [vmem:[%s237_s20 + $0x4] sm:$0xf]  ;;  %v260_v11 = vld [vmem:[%s237_s20 + $0x8] sm:$0xf] }
  0x11   : > { %v262_v1 = vld [vmem:[%s242_s23] sm:$0xf]  ;;  %v263_v6 = vld [vmem:[%s242_s23 + $0x4] sm:$0xf]  ;;  %v264_v13 = vld [vmem:[%s242_s23 + $0x8] sm:$0xf]  ;;  %s257_s6 = scalar_lea.vmem %s485_s4, %s404_s17 }
  0x12   : > { %v266_v3 = vmax.bf16 %v262_v1, %v258_v0  ;;  %v270_v4 = vld [vmem:[%s247_s26] sm:$0xf]  ;;  %v267_v8 = vmax.bf16 %v263_v6, %v259_v2  ;;  %v271_v9 = vld [vmem:[%s247_s26 + $0x4] sm:$0xf]  ;;  %v272_v14 = vld [vmem:[%s247_s26 + $0x8] sm:$0xf]  ;;  %v268_v17 = vmax.bf16 %v264_v13, %v260_v11 }
  0x13   : > { %v274_v5 = vld [vmem:[%s252_s29] sm:$0xf]  ;;  %v275_v10 = vld [vmem:[%s252_s29 + $0x4] sm:$0xf]  ;;  %v276_v15 = vld [vmem:[%s252_s29 + $0x8] sm:$0xf] }
  0x14   : > { %v278_v7 = vmax.bf16 %v274_v5, %v270_v4  ;;  %v279_v12 = vmax.bf16 %v275_v10, %v271_v9  ;;  %v280_v18 = vmax.bf16 %v276_v15, %v272_v14  ;;  %v261_v19 = vld [vmem:[%s237_s20 + $0xc] sm:$0x1] }
  0x15   : > { %v265_v20 = vld [vmem:[%s242_s23 + $0xc] sm:$0x1] }
  0x16   : > { %v282_v16 = vmax.bf16 %v278_v7, %v266_v3  ;;  %v273_v21 = vld [vmem:[%s247_s26 + $0xc] sm:$0x1]  ;;  %v283_v22 = vmax.bf16 %v279_v12, %v267_v8  ;;  %v269_v23 = vmax.bf16 %v265_v20, %v261_v19  ;;  %v284_v25 = vmax.bf16 %v280_v18, %v268_v17 }
  0x17   : > { %v277_v24 = vld [vmem:[%s252_s29 + $0xc] sm:$0x1] }
  0x18   : > { %287 = vst.msk [vmem:[%s257_s6] sm:$0xf] %vm286_vm0, %v282_v16  ;;  %v281_v26 = vmax.bf16 %v277_v24, %v273_v21  ;;  %288 = vst.msk [vmem:[%s257_s6 + $0x4] sm:$0xf] %vm286_vm0, %v283_v22  ;;  %v293_v27 = vld [vmem:[%s257_s6 + $0xc] sm:$0x1] }
  0x19   : > { %289 = vst.msk [vmem:[%s257_s6 + $0x8] sm:$0xf] %vm286_vm0, %v284_v25 }
  0x1a   : > { %v285_v28 = vmax.bf16 %v281_v26, %v269_v23 }
  0x1c   : > { %v294_v29 = vsel %vm292_vm3, %v285_v28, %v293_v27 }
  0x1d   : > { %295 = vst [vmem:[%s257_s6 + $0xc] sm:$0x1] %v294_v29 }
  0x1e PF: > { %s14_s15 = sadd.s32 1, %s423_s15  }
  0x1f   : > { %p11_p4 = scmp.ge.s32.totalorder %s14_s15, 4  }
  0x21   :  { %13 = sbr.rel (!%p11_p4) target bundleno = 1 (0x1), region = 75 }

// kernel: net_forward.9
= control target key start
LH: loop header
LB: loop body
LE: loop exit
PB: predicated region body
PF: predicated region fallthrough
CT: control target
= control target key end

     0   :  { %v677_v2 = vmov 0.0|0.0   ;;  %vm87_vm0 = vcmask 130048   ;;  %vm678_vm1 = vmmov 0   ;;  %s1016_s1 = inlined_call_operand.vmem [shape: f32[400,128], index: 1, kind: input, shape index: {}]   ;;  %s1017_s0 = inlined_call_operand.vmem [shape: f32[8,400], index: 0, kind: input, shape index: {}]   ;;  %s1018_s3 = inlined_call_operand.vmem [shape: f32[128,128], index: 3, kind: input, shape index: {}]   ;;  %s1019_s5 = inlined_call_operand.vmem [shape: f32[128,128], index: 5, kind: input, shape index: {}]   ;;  %s1020_s2 = inlined_call_operand.vmem [shape: f32[1,128], index: 2, kind: input, shape index: {}]   ;;  %s1021_s4 = inlined_call_operand.vmem [shape: f32[1,128], index: 4, kind: input, shape index: {}]   ;;  %s1022_s6 = inlined_call_operand.vmem [shape: f32[1,128], index: 6, kind: input, shape index: {}]   ;;  %s1023_s7 = inlined_call_operand.vmem [shape: f32[8,128], index: 7, kind: output, shape index: {}]  }
   0x1   :  { %v46_v0 = vld [vmem:[%s1016_s1 + $0x80] sm:$0xff]  ;;  %v47_v1 = vld [vmem:[%s1016_s1 + $0x88] sm:$0xff]  ;;  %599 = vmatprep.subr.bf16.mxu1 %v677_v2  ;;  %v48_v10 = vld [vmem:[%s1016_s1 + $0x90] sm:$0xff] }
   0x2   :  { %v30_v3 = vld [vmem:[%s1016_s1] sm:$0xff]  ;;  %v567_v4 = vpack.c.bf16 %v47_v1, %v46_v0  ;;  %v31_v5 = vld [vmem:[%s1016_s1 + $0x8] sm:$0xff]  ;;  %v49_v11 = vld [vmem:[%s1016_s1 + $0x98] sm:$0xff] }
   0x3   :  { %v62_v6 = vld [vmem:[%s1016_s1 + $0x100] sm:$0xff]  ;;  %v63_v7 = vld [vmem:[%s1016_s1 + $0x108] sm:$0xff]  ;;  %v569_v8 = vpack.c.bf16 %v31_v5, %v30_v3  ;;  %v32_v12 = vld [vmem:[%s1016_s1 + $0x10] sm:$0xff]  ;;  %v571_v13 = vpack.c.bf16 %v49_v11, %v48_v10 }
   0x4   :  { %v600_v9 = vpack.c.bf16 %v63_v7, %v62_v6  ;;  %568 = vmatprep.subr.bf16.mxu0 %v567_v4  ;;  %v33_v14 = vld [vmem:[%s1016_s1 + $0x18] sm:$0xff]  ;;  %v64_v15 = vld [vmem:[%s1016_s1 + $0x110] sm:$0xff]  ;;  %v50_v19 = vld [vmem:[%s1016_s1 + $0xa0] sm:$0xff] }
   0x5   :  { %v65_v16 = vld [vmem:[%s1016_s1 + $0x118] sm:$0xff]  ;;  %570 = vmatpush3.bf16.msra.mxu0 %v569_v8  ;;  %v573_v17 = vpack.c.bf16 %v33_v14, %v32_v12  ;;  %v51_v20 = vld [vmem:[%s1016_s1 + $0xa8] sm:$0xff]  ;;  %v34_v21 = vld [vmem:[%s1016_s1 + $0x20] sm:$0xff] }
   0x6   :  { %601 = vmatpush1.bf16.msra.mxu1 %v600_v9  ;;  %v603_v18 = vpack.c.bf16 %v65_v16, %v64_v15  ;;  %572 = vmatprep.subr.bf16.mxu0 %v571_v13  ;;  %v575_v22 = vpack.c.bf16 %v51_v20, %v50_v19  ;;  %v35_v23 = vld [vmem:[%s1016_s1 + $0x28] sm:$0xff]  ;;  %v66_v24 = vld [vmem:[%s1016_s1 + $0x120] sm:$0xff]  ;;  %v52_v26 = vld [vmem:[%s1016_s1 + $0xb0] sm:$0xff] }
   0x7   :  { %602 = vmatprep.subr.bf16.mxu1 %v677_v2  ;;  %v67_v25 = vld [vmem:[%s1016_s1 + $0x128] sm:$0xff]  ;;  %v53_v27 = vld [vmem:[%s1016_s1 + $0xb8] sm:$0xff]  ;;  %v577_v28 = vpack.c.bf16 %v35_v23, %v34_v21  ;;  %v36_v30 = vld [vmem:[%s1016_s1 + $0x30] sm:$0xff] }
   0x8   :  { %v606_v29 = vpack.c.bf16 %v67_v25, %v66_v24  ;;  %v579_v31 = vpack.c.bf16 %v53_v27, %v52_v26  ;;  %v37_v32 = vld [vmem:[%s1016_s1 + $0x38] sm:$0xff]  ;;  %v68_v33 = vld [vmem:[%s1016_s1 + $0x130] sm:$0xff]  ;;  %v54_v35 = vld [vmem:[%s1016_s1 + $0xc0] sm:$0xff] }
   0x9   :  { %574 = vmatpush3.bf16.msra.mxu0 %v573_v17  ;;  %v69_v34 = vld [vmem:[%s1016_s1 + $0x138] sm:$0xff]  ;;  %v55_v36 = vld [vmem:[%s1016_s1 + $0xc8] sm:$0xff]  ;;  %v581_v37 = vpack.c.bf16 %v37_v32, %v36_v30  ;;  %v38_v39 = vld [vmem:[%s1016_s1 + $0x40] sm:$0xff] }
   0xa   :  { %604 = vmatpush1.bf16.msra.mxu1 %v603_v18  ;;  %576 = vmatprep.subr.bf16.mxu0 %v575_v22  ;;  %v609_v38 = vpack.c.bf16 %v69_v34, %v68_v33  ;;  %v583_v40 = vpack.c.bf16 %v55_v36, %v54_v35  ;;  %v39_v41 = vld [vmem:[%s1016_s1 + $0x48] sm:$0xff]  ;;  %v70_v42 = vld [vmem:[%s1016_s1 + $0x140] sm:$0xff]  ;;  %v56_v44 = vld [vmem:[%s1016_s1 + $0xd0] sm:$0xff] }
   0xb   :  { %605 = vmatprep.subr.bf16.mxu1 %v677_v2  ;;  %v71_v43 = vld [vmem:[%s1016_s1 + $0x148] sm:$0xff]  ;;  %v57_v45 = vld [vmem:[%s1016_s1 + $0xd8] sm:$0xff]  ;;  %v585_v46 = vpack.c.bf16 %v39_v41, %v38_v39  ;;  %v40_v48 = vld [vmem:[%s1016_s1 + $0x50] sm:$0xff]  ;;  %v679_v41 = vmov 0.0  }
   0xc   :  { %v612_v47 = vpack.c.bf16 %v71_v43, %v70_v42  ;;  %v41_v49 = vld [vmem:[%s1016_s1 + $0x58] sm:$0xff]  ;;  %v27_v50 = vld [vmem:[%s1017_s0 + $0x8] sm:$0xff]  ;;  %v587_v51 = vpack.c.bf16 %v57_v45, %v56_v44  ;;  %v72_v52 = vld [vmem:[%s1016_s1 + $0x150] sm:$0xff] }
   0xd   :  { %578 = vmatpush3.bf16.msra.mxu0 %v577_v28  ;;  %v73_v53 = vld [vmem:[%s1016_s1 + $0x158] sm:$0xff]  ;;  %v58_v55 = vld [vmem:[%s1016_s1 + $0xe0] sm:$0xff]  ;;  %v59_v56 = vld [vmem:[%s1016_s1 + $0xe8] sm:$0xff]  ;;  %155 = vmatprep.mubr.f32.mxu0 %v27_v50  ;;  %v589_v57 = vpack.c.bf16 %v41_v49, %v40_v48 }
   0xe   :  { %607 = vmatpush1.bf16.msra.mxu1 %v606_v29  ;;  %580 = vmatprep.subr.bf16.mxu0 %v579_v31  ;;  %v29_v54 = vld [vmem:[%s1017_s0 + $0x18] sm:$0xff]  ;;  %v615_v58 = vpack.c.bf16 %v73_v53, %v72_v52  ;;  %v42_v59 = vld [vmem:[%s1016_s1 + $0x60] sm:$0xff]  ;;  %v591_v60 = vpack.c.bf16 %v59_v56, %v58_v55  ;;  %v43_v61 = vld [vmem:[%s1016_s1 + $0x68] sm:$0xff] }
   0xf   :  { %608 = vmatprep.subr.bf16.mxu1 %v677_v2  ;;  %425 = vmatprep.mubr.msk.f32.mxu1 %vm87_vm0, %v29_v54  ;;  %v74_v62 = vld [vmem:[%s1016_s1 + $0x160] sm:$0xff]  ;;  %v75_v63 = vld [vmem:[%s1016_s1 + $0x168] sm:$0xff]  ;;  %v60_v0 = vld [vmem:[%s1016_s1 + $0xf0] sm:$0xff]  ;;  %v593_v3 = vpack.c.bf16 %v43_v61, %v42_v59 }
  0x10   :  { %v61_v1 = vld [vmem:[%s1016_s1 + $0xf8] sm:$0xff]  ;;  %v618_v4 = vpack.c.bf16 %v75_v63, %v74_v62  ;;  %v44_v5 = vld [vmem:[%s1016_s1 + $0x70] sm:$0xff]  ;;  %v78_v12 = vld [vmem:[%s1016_s1 + $0x180] sm:$0xff] }
  0x11   :  { %582 = vmatpush3.bf16.msra.mxu0 %v581_v37  ;;  %v595_v6 = vpack.c.bf16 %v61_v1, %v60_v0  ;;  %v45_v7 = vld [vmem:[%s1016_s1 + $0x78] sm:$0xff]  ;;  %v76_v8 = vld [vmem:[%s1016_s1 + $0x170] sm:$0xff]  ;;  %v79_v13 = vld [vmem:[%s1016_s1 + $0x188] sm:$0xff] }
  0x12   :  { %610 = vmatpush1.bf16.msra.mxu1 %v609_v38  ;;  %584 = vmatprep.subr.bf16.mxu0 %v583_v40  ;;  %v77_v9 = vld [vmem:[%s1016_s1 + $0x178] sm:$0xff]  ;;  %v597_v10 = vpack.c.bf16 %v45_v7, %v44_v5  ;;  %v232_v14 = vld [vmem:[%s1018_s3] sm:$0xff]  ;;  %v233_v15 = vld [vmem:[%s1018_s3 + $0x8] sm:$0xff]  ;;  %v624_v17 = vpack.c.bf16 %v79_v13, %v78_v12 }
  0x13   :  { %611 = vmatprep.subr.bf16.mxu1 %v677_v2  ;;  %v621_v11 = vpack.c.bf16 %v77_v9, %v76_v8  ;;  %v26_v16 = vld [vmem:[%s1017_s0] sm:$0xff]  ;;  %v627_v18 = vpack.c.bf16 %v233_v15, %v232_v14  ;;  %v234_v19 = vld [vmem:[%s1018_s3 + $0x10] sm:$0xff]  ;;  %v235_v20 = vld [vmem:[%s1018_s3 + $0x18] sm:$0xff] }
  0x14   :  { %v28_v21 = vld [vmem:[%s1017_s0 + $0x10] sm:$0xff]  ;;  %v630_v22 = vpack.c.bf16 %v235_v20, %v234_v19  ;;  %v236_v23 = vld [vmem:[%s1018_s3 + $0x20] sm:$0xff]  ;;  %v237_v24 = vld [vmem:[%s1018_s3 + $0x28] sm:$0xff] }
  0x15   :  { %586 = vmatpush3.bf16.msra.mxu0 %v585_v46  ;;  %v633_v25 = vpack.c.bf16 %v237_v24, %v236_v23  ;;  %v238_v26 = vld [vmem:[%s1018_s3 + $0x30] sm:$0xff]  ;;  %v239_v27 = vld [vmem:[%s1018_s3 + $0x38] sm:$0xff]  ;;  %v240_v29 = vld [vmem:[%s1018_s3 + $0x40] sm:$0xff] }
  0x16   :  { %613 = vmatpush1.bf16.msra.mxu1 %v612_v47  ;;  %588 = vmatprep.subr.bf16.mxu0 %v587_v51  ;;  %v636_v28 = vpack.c.bf16 %v239_v27, %v238_v26  ;;  %v241_v30 = vld [vmem:[%s1018_s3 + $0x48] sm:$0xff]  ;;  %v242_v32 = vld [vmem:[%s1018_s3 + $0x50] sm:$0xff]  ;;  %v243_v33 = vld [vmem:[%s1018_s3 + $0x58] sm:$0xff] }
  0x17   :  { %614 = vmatprep.subr.bf16.mxu1 %v677_v2  ;;  %v639_v31 = vpack.c.bf16 %v241_v30, %v240_v29  ;;  %v642_v34 = vpack.c.bf16 %v243_v33, %v242_v32  ;;  %v244_v35 = vld [vmem:[%s1018_s3 + $0x60] sm:$0xff]  ;;  %v245_v36 = vld [vmem:[%s1018_s3 + $0x68] sm:$0xff]  ;;  %v246_v38 = vld [vmem:[%s1018_s3 + $0x70] sm:$0xff] }
  0x18   :  { %v645_v37 = vpack.c.bf16 %v245_v36, %v244_v35  ;;  %v247_v39 = vld [vmem:[%s1018_s3 + $0x78] sm:$0xff]  ;;  %v326_v42 = vld [vmem:[%s1019_s5] sm:$0xff]  ;;  %v327_v43 = vld [vmem:[%s1019_s5 + $0x8] sm:$0xff] }
  0x19   :  { %590 = vmatpush3.bf16.msra.mxu0 %v589_v57  ;;  %v648_v40 = vpack.c.bf16 %v247_v39, %v246_v38  ;;  %v328_v44 = vld [vmem:[%s1019_s5 + $0x10] sm:$0xff]  ;;  %v651_v45 = vpack.c.bf16 %v327_v43, %v326_v42  ;;  %v329_v46 = vld [vmem:[%s1019_s5 + $0x18] sm:$0xff]  ;;  %v330_v48 = vld [vmem:[%s1019_s5 + $0x20] sm:$0xff] }
  0x1a   :  { %616 = vmatpush1.bf16.msra.mxu1 %v615_v58  ;;  %592 = vmatprep.subr.bf16.mxu0 %v591_v60  ;;  %v654_v47 = vpack.c.bf16 %v329_v46, %v328_v44  ;;  %v331_v49 = vld [vmem:[%s1019_s5 + $0x28] sm:$0xff]  ;;  %v332_v51 = vld [vmem:[%s1019_s5 + $0x30] sm:$0xff]  ;;  %v333_v52 = vld [vmem:[%s1019_s5 + $0x38] sm:$0xff] }
  0x1b   :  { %617 = vmatprep.subr.bf16.mxu1 %v677_v2  ;;  %v657_v50 = vpack.c.bf16 %v331_v49, %v330_v48  ;;  %v660_v53 = vpack.c.bf16 %v333_v52, %v332_v51  ;;  %v334_v54 = vld [vmem:[%s1019_s5 + $0x40] sm:$0xff]  ;;  %v335_v55 = vld [vmem:[%s1019_s5 + $0x48] sm:$0xff]  ;;  %v336_v57 = vld [vmem:[%s1019_s5 + $0x50] sm:$0xff] }
  0x1c   :  { %v663_v56 = vpack.c.bf16 %v335_v55, %v334_v54  ;;  %v337_v58 = vld [vmem:[%s1019_s5 + $0x58] sm:$0xff]  ;;  %v338_v60 = vld [vmem:[%s1019_s5 + $0x60] sm:$0xff]  ;;  %v339_v61 = vld [vmem:[%s1019_s5 + $0x68] sm:$0xff] }
  0x1d   :  { %594 = vmatpush3.bf16.msra.mxu0 %v593_v3  ;;  %v666_v59 = vpack.c.bf16 %v337_v58, %v336_v57  ;;  %v669_v62 = vpack.c.bf16 %v339_v61, %v338_v60  ;;  %v424_v1 = vld [vmem:[%s1020_s2] ss:$0 sm:$0xff]  ;;  %v340_v9 = vld [vmem:[%s1019_s5 + $0x70] sm:$0xff] }
  0x1e   :  { %619 = vmatpush1.bf16.msra.mxu1 %v618_v4  ;;  %596 = vmatprep.subr.bf16.mxu0 %v595_v6 }
  0x1f   :  { %620 = vmatprep.subr.bf16.mxu1 %v677_v2 }
  0x21   :  { %598 = vmatpush3.bf16.msra.mxu0 %v597_v10 }
  0x22   :  { %622 = vmatpush1.bf16.msra.mxu1 %v621_v11  ;;  %626 = vmatprep.subr.bf16.mxu0 %v677_v2  ;;  %v426_v11 = vld [vmem:[%s1021_s4] ss:$0 sm:$0xff] }
  0x23   :  { %623 = vmatprep.subr.bf16.mxu1 %v677_v2 }
  0x24   :  { %156 = vmatmul.mubr.f32.vlgmr.msra.gmra.mrb[0].mxu0 %v26_v16  ;;  %v427_v16 = vld [vmem:[%s1022_s6] ss:$0 sm:$0xff] }
  0x25   :  { %628 = vmatpush3.bf16.msra.mxu0 %v627_v18  ;;  %529 = vmatprep.mubr.msk.f32.mxu0 %vm678_vm1, %v679_v41 }
  0x26   :  { %625 = vmatpush1.bf16.msra.mxu1 %v624_v17  ;;  %629 = vmatprep.subr.bf16.mxu0 %v677_v2 }
  0x27   :  { %650 = vmatprep.subr.bf16.mxu1 %v677_v2 }
  0x29   :  { %226 = vmatmul.mubr.f32.vlgmr.msra.gmra.mrb[0].mxu1 %v28_v21  ;;  %631 = vmatpush3.bf16.msra.mxu0 %v630_v22 }
  0x2a   :  { %632 = vmatprep.subr.bf16.mxu0 %v677_v2  ;;  %564 = vmatprep.mubr.msk.f32.mxu1 %vm678_vm1, %v679_v41 }
  0x2b   :  { %652 = vmatpush3.bf16.msra.mxu1 %v651_v45 }
  0x2c   :  { %653 = vmatprep.subr.bf16.mxu1 %v677_v2 }
  0x2d   :  { %634 = vmatpush3.bf16.msra.mxu0 %v633_v25 }
  0x2e   :  { %635 = vmatprep.subr.bf16.mxu0 %v677_v2 }
  0x2f   :  { %655 = vmatpush3.bf16.msra.mxu1 %v654_v47 }
  0x30   :  { %656 = vmatprep.subr.bf16.mxu1 %v677_v2 }
  0x31   :  { %637 = vmatpush3.bf16.msra.mxu0 %v636_v28 }
  0x32   :  { %638 = vmatprep.subr.bf16.mxu0 %v677_v2 }
  0x33   :  { %658 = vmatpush3.bf16.msra.mxu1 %v657_v50 }
  0x34   :  { %659 = vmatprep.subr.bf16.mxu1 %v677_v2 }
  0x35   :  { %640 = vmatpush3.bf16.msra.mxu0 %v639_v31 }
  0x36   :  { %641 = vmatprep.subr.bf16.mxu0 %v677_v2 }
  0x37   :  { %661 = vmatpush3.bf16.msra.mxu1 %v660_v53 }
  0x38   :  { %662 = vmatprep.subr.bf16.mxu1 %v677_v2 }
  0x39   :  { %643 = vmatpush3.bf16.msra.mxu0 %v642_v34 }
  0x3a   :  { %644 = vmatprep.subr.bf16.mxu0 %v677_v2 }
  0x3b   :  { %664 = vmatpush3.bf16.msra.mxu1 %v663_v56 }
  0x3c   :  { %665 = vmatprep.subr.bf16.mxu1 %v677_v2 }
  0x3d   :  { %646 = vmatpush3.bf16.msra.mxu0 %v645_v37 }
  0x3e   :  { %647 = vmatprep.subr.bf16.mxu0 %v677_v2 }
  0x3f   :  { %667 = vmatpush3.bf16.msra.mxu1 %v666_v59 }
  0x40   :  { %668 = vmatprep.subr.bf16.mxu1 %v677_v2 }
  0x41   :  { %649 = vmatpush3.bf16.msra.mxu0 %v648_v40 }
  0x43   :  { %670 = vmatpush3.bf16.msra.mxu1 %v669_v62 }
  0x44   :  { %671 = vmatprep.subr.bf16.mxu1 %v677_v2  ;;  %v341_v2 = vld [vmem:[%s1019_s5 + $0x78] sm:$0xff] }
  0x45   :  { %v672_v10 = vpack.c.bf16 %v341_v2, %v340_v9 }
  0x47   :  { %673 = vmatpush3.bf16.msra.mxu1 %v672_v10 }
  0xf7   :  { %v460_v63 = vpop.f32.mrb[0].mxu0 }
  0xf8   :  { %v461_v0 = vpop.f32.mrb[1].mxu0 }
  0xf9   :  { %v462_v3 = vadd.f32 %v461_v0, %v460_v63 }
  0xfb   :  { %v158_v4 = vadd.f32 %v462_v3, %v424_v1 }
  0xfc   :  { %v227_v5 = vpop.f32.mrb[0].mxu1 }
  0xfd   :  { %v229_v6 = vpop.f32.mrb[1].mxu1  ;;  %v228_v7 = vadd.f32 %v227_v5, %v158_v4 }
  0xff   :  { %v231_v8 = vmax.f32 %v228_v7, 0.0 }
 0x101   :  { %530 = vmatmul.mubr.f32.vlgmr.msra.gmra.mrb[2].mxu0 %v231_v8 }
 0x1d4   :  { %v321_v12 = vpop.f32.mrb[2].mxu0 }
 0x1d5   :  { %v322_v13 = vadd.f32 %v426_v11, %v321_v12  ;;  %v531_v14 = vpop.f32.mrb[3].mxu0 }
 0x1d7   :  { %v325_v15 = vmax.f32 %v322_v13, 0.0 }
 0x1d9   :  { %565 = vmatmul.mubr.f32.vlgmr.msra.gmra.mrb[2].mxu1 %v325_v15 }
 0x2ac   :  { %v415_v17 = vpop.f32.mrb[2].mxu1 }
 0x2ad   :  { %v416_v18 = vadd.f32 %v427_v16, %v415_v17  ;;  %v566_v19 = vpop.f32.mrb[3].mxu1 }
 0x2af   :  { %419 = vst [vmem:[%s1023_s7] sm:$0xff] %v416_v18 }

</bundles_post_ra>
